<compile_context>
chip_gen: v5e
topology: v5e:2x2
jax: 0.10.0
libtpu: 0.0.40
codegen_flags: <defaults>
</compile_context>

<pallas_src>
import functools

import jax
import jax.numpy as jnp
from jax.experimental import pallas as pl
from jax.experimental.pallas import tpu as pltpu


# ----------------------------------------------------------------------------
# Fused Pallas kernel
# ----------------------------------------------------------------------------
def fused_cnn_kernel(x_ref,
                     w1_ref, s1_ref, c1_ref,
                     w2_ref, s2_ref, c2_ref,
                     w3_ref, s3_ref, c3_ref,
                     fc1w_ref, fc1b_ref, fc2w_ref, fc2b_ref,
                     o_ref, *, B, T):
    """Full EnhancedCNN1D forward, everything VMEM-resident.

    x_ref:    (T*B, 34)       activations, time-major rows (row = t*B + b)
    wX_ref:   (3, Cin, Cout)  conv weights, tap-major (tap 0 multiplies x[t-1])
    sX/cX:    (1, Cout)       folded BatchNorm scale / bias
    fc1w_ref: (T, 256, 1024)  bf16, time-major (permuted torch fc1.weight)
    fc1b_ref: (1, 1024)   fc2w_ref: (1024, NC)   fc2b_ref: (1, NC)
    o_ref:    (B, NC)
    """
    n = T * B

    def conv_bn_relu(a, w_ref, s_ref, c_ref):
        # a: (T*B, Cin).  A shift by B rows == one-frame shift for every batch
        # element; the inserted zero rows are exactly the pad frames.
        cin = a.shape[-1]
        zero = jnp.zeros((B, cin), jnp.float32)
        prev_ = jnp.concatenate([zero, a[: n - B]], axis=0)   # x[:, t-1]
        next_ = jnp.concatenate([a[B:], zero], axis=0)        # x[:, t+1]
        acc = jnp.dot(prev_, w_ref[0], preferred_element_type=jnp.float32)
        acc += jnp.dot(a, w_ref[1], preferred_element_type=jnp.float32)
        acc += jnp.dot(next_, w_ref[2], preferred_element_type=jnp.float32)
        return jnp.maximum(acc * s_ref[...] + c_ref[...], 0.0)

    a = x_ref[...]                                   # (T*B, 34)
    a = conv_bn_relu(a, w1_ref, s1_ref, c1_ref)      # (T*B, 64)
    a = conv_bn_relu(a, w2_ref, s2_ref, c2_ref)      # (T*B, 128)
    a = conv_bn_relu(a, w3_ref, s3_ref, c3_ref)      # (T*B, 256)

    # fc1: the channel-major torch flatten is folded into the weight layout,
    # so fc1(feat) == sum_t A3[rows of frame t] @ fc1_w[t]   (bf16 x bf16,
    # f32 accumulation).
    a_bf = a.astype(jnp.bfloat16)
    h = jnp.zeros((B, fc1b_ref.shape[-1]), jnp.float32)
    for t in range(T):                               # static unroll (T = 8)
        h += jnp.dot(a_bf[t * B:(t + 1) * B, :], fc1w_ref[t],
                     preferred_element_type=jnp.float32)
    h = jnp.maximum(h + fc1b_ref[...], 0.0)

    # dropout1: identity in eval mode.
    o_ref[...] = (jnp.dot(h, fc2w_ref[...], preferred_element_type=jnp.float32)
                  + fc2b_ref[...])


# ----------------------------------------------------------------------------
# Wrapper
# ----------------------------------------------------------------------------
def enhanced_cnn1d_forward(params, x_ncl):
    """x_ncl: (B, 34, T) (PyTorch NCL layout) -> logits (B, num_classes)."""
    B, cin, T = x_ncl.shape
    num_classes = params["fc2_b"].shape[-1]
    # Tiny one-off relayout (a few KB): (B, C, T) -> time-major rows (t*B+b, C).
    x_tm = jnp.transpose(x_ncl, (2, 0, 1)).reshape(T * B, cin)
    return pl.pallas_call(
        functools.partial(fused_cnn_kernel, B=B, T=T),
        out_shape=jax.ShapeDtypeStruct((B, num_classes), jnp.float32),
        compiler_params=pltpu.CompilerParams(
            vmem_limit_bytes=32 * 1024 * 1024),
    )(x_tm,
      params["w1"], params["s1"], params["b1"],
      params["w2"], params["s2"], params["b2"],
      params["w3"], params["s3"], params["b3"],
      params["fc1_w"], params["fc1_b"],
      params["fc2_w"], params["fc2_b"])


# ----------------------------------------------------------------------------
# Parameter construction (deterministic, synthetic)
# ----------------------------------------------------------------------------
def fold_bn(conv_b, gamma, beta, mean, var, eps=1e-5):
    scale = gamma / jnp.sqrt(var + eps)
    bias = (conv_b - mean) * scale + beta
    return scale[None, :], bias[None, :]


def init_params(key, num_classes, num_frames):
    def conv_layer(k, cin, cout):
        kw, kb, kg, kbeta, km, kv = jax.random.split(k, 6)
        w = 0.05 * jax.random.normal(kw, (3, cin, cout), jnp.float32)
        b = 0.05 * jax.random.normal(kb, (cout,), jnp.float32)
        gamma = 1.0 + 0.1 * jax.random.normal(kg, (cout,), jnp.float32)
        beta = 0.1 * jax.random.normal(kbeta, (cout,), jnp.float32)
        mean = 0.1 * jax.random.normal(km, (cout,), jnp.float32)
        var = jnp.abs(1.0 + 0.1 * jax.random.normal(kv, (cout,), jnp.float32))
        scale, bias = fold_bn(b, gamma, beta, mean, var)
        return w, scale, bias

    k1, k2, k3, k4 = jax.random.split(key, 4)
    p = {}
    p["w1"], p["s1"], p["b1"] = conv_layer(k1, 34, 64)
    p["w2"], p["s2"], p["b2"] = conv_layer(k2, 64, 128)
    p["w3"], p["s3"], p["b3"] = conv_layer(k3, 128, 256)

    kf1w, kf1b, kf2w, kf2b = jax.random.split(k4, 4)
    # fc1 weight stored time-major (T, 256, 1024): entry [t, c, h] is the torch
    # fc1.weight[h, c*T + t] -- a one-time permutation of a real checkpoint.
    p["fc1_w"] = (0.02 * jax.random.normal(
        kf1w, (num_frames, 256, 1024), jnp.float32)).astype(jnp.bfloat16)
    p["fc1_b"] = 0.02 * jax.random.normal(kf1b, (1, 1024), jnp.float32)
    p["fc2_w"] = 0.02 * jax.random.normal(kf2w, (1024, num_classes), jnp.float32)
    p["fc2_b"] = 0.02 * jax.random.normal(kf2b, (1, num_classes), jnp.float32)
    return p


# ----------------------------------------------------------------------------
# Pure-JAX reference (PyTorch layout/semantics) for validation
# ----------------------------------------------------------------------------
def reference_forward(params, x_ncl):
    x = x_ncl                                             # (B, 34, T)
    for i in (1, 2, 3):
        w = params[f"w{i}"]                               # (3, Cin, Cout)
        w_oik = jnp.transpose(w, (2, 1, 0))               # (Cout, Cin, 3)
        x = jax.lax.conv_general_dilated(
            x, w_oik, window_strides=(1,), padding=((1, 1),),
            dimension_numbers=("NCH", "OIH", "NCH"),
            precision=jax.lax.Precision.HIGHEST)
        s = params[f"s{i}"][0]
        b = params[f"b{i}"][0]
        x = jnp.maximum(x * s[None, :, None] + b[None, :, None], 0.0)
    B, C, T = x.shape
    feat = x.reshape(B, C * T)                            # torch x.view(B, -1)
    H = params["fc1_b"].shape[-1]
    # Undo the time-major storage to get the torch channel-major (C*T, H) weight.
    w1_torch = jnp.transpose(params["fc1_w"], (1, 0, 2)).reshape(C * T, H)
    h = jnp.dot(feat.astype(jnp.bfloat16), w1_torch,
                preferred_element_type=jnp.float32) + params["fc1_b"]
    h = jnp.maximum(h, 0.0)
    return jnp.dot(h, params["fc2_w"], preferred_element_type=jnp.float32,
                   precision=jax.lax.Precision.HIGHEST) + params["fc2_b"]


# ----------------------------------------------------------------------------
if __name__ == "__main__":
    num_classes = 5
    num_frames = 8
    batch = 2

    key = jax.random.PRNGKey(0)
    k_params, k_x = jax.random.split(key)
    params = init_params(k_params, num_classes, num_frames)
    x = jax.random.normal(k_x, (batch, 34, num_frames), jnp.float32)

    fwd = jax.jit(enhanced_cnn1d_forward)
    out = jax.block_until_ready(fwd(params, x))
    assert out.shape == (batch, num_classes), out.shape
    assert bool(jnp.all(jnp.isfinite(out)))

    ref = reference_forward(params, x)
    rel_err = float(jnp.max(jnp.abs(out - ref)) /
                    (jnp.max(jnp.abs(ref)) + 1e-6))
    assert rel_err < 0.1, f"kernel vs reference mismatch: rel_err={rel_err}"

    print("KERNEL_OK")
</pallas_src>

<mosaic_0001>
module attributes {stable_mosaic.version = 11 : i64} {
  func.func @fused_cnn_kernel(%arg0: memref<16x34xf32, #tpu.memory_space<vmem>>, %arg1: memref<3x34x64xf32, #tpu.memory_space<vmem>>, %arg2: memref<1x64xf32, #tpu.memory_space<vmem>>, %arg3: memref<1x64xf32, #tpu.memory_space<vmem>>, %arg4: memref<3x64x128xf32, #tpu.memory_space<vmem>>, %arg5: memref<1x128xf32, #tpu.memory_space<vmem>>, %arg6: memref<1x128xf32, #tpu.memory_space<vmem>>, %arg7: memref<3x128x256xf32, #tpu.memory_space<vmem>>, %arg8: memref<1x256xf32, #tpu.memory_space<vmem>>, %arg9: memref<1x256xf32, #tpu.memory_space<vmem>>, %arg10: memref<8x256x1024xbf16, #tpu.memory_space<vmem>>, %arg11: memref<1x1024xf32, #tpu.memory_space<vmem>>, %arg12: memref<1024x5xf32, #tpu.memory_space<vmem>>, %arg13: memref<1x5xf32, #tpu.memory_space<vmem>>, %arg14: memref<2x5xf32, #tpu.memory_space<vmem>>) attributes {dimension_semantics = [], scalar_prefetch = 0 : i64, scratch_operands = 0 : i64, tpu.core_type = #tpu.core_type<tc>} {
    %c0 = arith.constant 0 : index
    %c0_0 = arith.constant 0 : index
    %0 = vector.load %arg0[%c0, %c0_0] : memref<16x34xf32, #tpu.memory_space<vmem>>, vector<16x34xf32>
    %cst = arith.constant 0.000000e+00 : f32
    %1 = vector.broadcast %cst : f32 to vector<2x34xf32>
    %2 = vector.extract_strided_slice %0 {offsets = [0, 0], sizes = [14, 34], strides = [1, 1]} : vector<16x34xf32> to vector<14x34xf32>
    %3 = tpu.concatenate %1, %2 in 0 : vector<2x34xf32>, vector<14x34xf32> -> vector<16x34xf32>
    %4 = vector.extract_strided_slice %0 {offsets = [2, 0], sizes = [14, 34], strides = [1, 1]} : vector<16x34xf32> to vector<14x34xf32>
    %5 = tpu.concatenate %4, %1 in 0 : vector<14x34xf32>, vector<2x34xf32> -> vector<16x34xf32>
    %c0_1 = arith.constant 0 : index
    %c0_2 = arith.constant 0 : index
    %c0_3 = arith.constant 0 : index
    %6 = vector.load %arg1[%c0_1, %c0_2, %c0_3] : memref<3x34x64xf32, #tpu.memory_space<vmem>>, vector<1x34x64xf32>
    %7 = vector.shape_cast %6 : vector<1x34x64xf32> to vector<34x64xf32>
    %cst_4 = arith.constant dense<0.000000e+00> : vector<16x64xf32>
    %8 = tpu.matmul %3, %7, %cst_4 {dimension_numbers = #tpu.dot_dimension_numbers<[1], [0], [0], [1], [0, 0, 1, 1], [], []>} : vector<16x34xf32>, vector<34x64xf32>, vector<16x64xf32> -> vector<16x64xf32>
    %c1 = arith.constant 1 : index
    %c0_5 = arith.constant 0 : index
    %c0_6 = arith.constant 0 : index
    %9 = vector.load %arg1[%c1, %c0_5, %c0_6] : memref<3x34x64xf32, #tpu.memory_space<vmem>>, vector<1x34x64xf32>
    %10 = vector.shape_cast %9 : vector<1x34x64xf32> to vector<34x64xf32>
    %cst_7 = arith.constant dense<0.000000e+00> : vector<16x64xf32>
    %11 = tpu.matmul %0, %10, %cst_7 {dimension_numbers = #tpu.dot_dimension_numbers<[1], [0], [0], [1], [0, 0, 1, 1], [], []>} : vector<16x34xf32>, vector<34x64xf32>, vector<16x64xf32> -> vector<16x64xf32>
    %12 = arith.addf %8, %11 : vector<16x64xf32>
    %c2 = arith.constant 2 : index
    %c0_8 = arith.constant 0 : index
    %c0_9 = arith.constant 0 : index
    %13 = vector.load %arg1[%c2, %c0_8, %c0_9] : memref<3x34x64xf32, #tpu.memory_space<vmem>>, vector<1x34x64xf32>
    %14 = vector.shape_cast %13 : vector<1x34x64xf32> to vector<34x64xf32>
    %cst_10 = arith.constant dense<0.000000e+00> : vector<16x64xf32>
    %15 = tpu.matmul %5, %14, %cst_10 {dimension_numbers = #tpu.dot_dimension_numbers<[1], [0], [0], [1], [0, 0, 1, 1], [], []>} : vector<16x34xf32>, vector<34x64xf32>, vector<16x64xf32> -> vector<16x64xf32>
    %16 = arith.addf %12, %15 : vector<16x64xf32>
    %c0_11 = arith.constant 0 : index
    %c0_12 = arith.constant 0 : index
    %17 = vector.load %arg2[%c0_11, %c0_12] : memref<1x64xf32, #tpu.memory_space<vmem>>, vector<1x64xf32>
    %18 = vector.broadcast %17 : vector<1x64xf32> to vector<16x64xf32>
    %19 = arith.mulf %16, %18 : vector<16x64xf32>
    %c0_13 = arith.constant 0 : index
    %c0_14 = arith.constant 0 : index
    %20 = vector.load %arg3[%c0_13, %c0_14] : memref<1x64xf32, #tpu.memory_space<vmem>>, vector<1x64xf32>
    %21 = vector.broadcast %20 : vector<1x64xf32> to vector<16x64xf32>
    %22 = arith.addf %19, %21 : vector<16x64xf32>
    %cst_15 = arith.constant 0.000000e+00 : f32
    %23 = vector.broadcast %cst_15 : f32 to vector<16x64xf32>
    %24 = arith.maximumf %22, %23 : vector<16x64xf32>
    %cst_16 = arith.constant 0.000000e+00 : f32
    %25 = vector.broadcast %cst_16 : f32 to vector<2x64xf32>
    %26 = vector.extract_strided_slice %24 {offsets = [0, 0], sizes = [14, 64], strides = [1, 1]} : vector<16x64xf32> to vector<14x64xf32>
    %27 = tpu.concatenate %25, %26 in 0 : vector<2x64xf32>, vector<14x64xf32> -> vector<16x64xf32>
    %28 = vector.extract_strided_slice %24 {offsets = [2, 0], sizes = [14, 64], strides = [1, 1]} : vector<16x64xf32> to vector<14x64xf32>
    %29 = tpu.concatenate %28, %25 in 0 : vector<14x64xf32>, vector<2x64xf32> -> vector<16x64xf32>
    %c0_17 = arith.constant 0 : index
    %c0_18 = arith.constant 0 : index
    %c0_19 = arith.constant 0 : index
    %30 = vector.load %arg4[%c0_17, %c0_18, %c0_19] : memref<3x64x128xf32, #tpu.memory_space<vmem>>, vector<1x64x128xf32>
    %31 = vector.shape_cast %30 : vector<1x64x128xf32> to vector<64x128xf32>
    %cst_20 = arith.constant dense<0.000000e+00> : vector<16x128xf32>
    %32 = tpu.matmul %27, %31, %cst_20 {dimension_numbers = #tpu.dot_dimension_numbers<[1], [0], [0], [1], [0, 0, 1, 1], [], []>} : vector<16x64xf32>, vector<64x128xf32>, vector<16x128xf32> -> vector<16x128xf32>
    %c1_21 = arith.constant 1 : index
    %c0_22 = arith.constant 0 : index
    %c0_23 = arith.constant 0 : index
    %33 = vector.load %arg4[%c1_21, %c0_22, %c0_23] : memref<3x64x128xf32, #tpu.memory_space<vmem>>, vector<1x64x128xf32>
    %34 = vector.shape_cast %33 : vector<1x64x128xf32> to vector<64x128xf32>
    %cst_24 = arith.constant dense<0.000000e+00> : vector<16x128xf32>
    %35 = tpu.matmul %24, %34, %cst_24 {dimension_numbers = #tpu.dot_dimension_numbers<[1], [0], [0], [1], [0, 0, 1, 1], [], []>} : vector<16x64xf32>, vector<64x128xf32>, vector<16x128xf32> -> vector<16x128xf32>
    %36 = arith.addf %32, %35 : vector<16x128xf32>
    %c2_25 = arith.constant 2 : index
    %c0_26 = arith.constant 0 : index
    %c0_27 = arith.constant 0 : index
    %37 = vector.load %arg4[%c2_25, %c0_26, %c0_27] : memref<3x64x128xf32, #tpu.memory_space<vmem>>, vector<1x64x128xf32>
    %38 = vector.shape_cast %37 : vector<1x64x128xf32> to vector<64x128xf32>
    %cst_28 = arith.constant dense<0.000000e+00> : vector<16x128xf32>
    %39 = tpu.matmul %29, %38, %cst_28 {dimension_numbers = #tpu.dot_dimension_numbers<[1], [0], [0], [1], [0, 0, 1, 1], [], []>} : vector<16x64xf32>, vector<64x128xf32>, vector<16x128xf32> -> vector<16x128xf32>
    %40 = arith.addf %36, %39 : vector<16x128xf32>
    %c0_29 = arith.constant 0 : index
    %c0_30 = arith.constant 0 : index
    %41 = vector.load %arg5[%c0_29, %c0_30] : memref<1x128xf32, #tpu.memory_space<vmem>>, vector<1x128xf32>
    %42 = vector.broadcast %41 : vector<1x128xf32> to vector<16x128xf32>
    %43 = arith.mulf %40, %42 : vector<16x128xf32>
    %c0_31 = arith.constant 0 : index
    %c0_32 = arith.constant 0 : index
    %44 = vector.load %arg6[%c0_31, %c0_32] : memref<1x128xf32, #tpu.memory_space<vmem>>, vector<1x128xf32>
    %45 = vector.broadcast %44 : vector<1x128xf32> to vector<16x128xf32>
    %46 = arith.addf %43, %45 : vector<16x128xf32>
    %cst_33 = arith.constant 0.000000e+00 : f32
    %47 = vector.broadcast %cst_33 : f32 to vector<16x128xf32>
    %48 = arith.maximumf %46, %47 : vector<16x128xf32>
    %cst_34 = arith.constant 0.000000e+00 : f32
    %49 = vector.broadcast %cst_34 : f32 to vector<2x128xf32>
    %50 = vector.extract_strided_slice %48 {offsets = [0, 0], sizes = [14, 128], strides = [1, 1]} : vector<16x128xf32> to vector<14x128xf32>
    %51 = tpu.concatenate %49, %50 in 0 : vector<2x128xf32>, vector<14x128xf32> -> vector<16x128xf32>
    %52 = vector.extract_strided_slice %48 {offsets = [2, 0], sizes = [14, 128], strides = [1, 1]} : vector<16x128xf32> to vector<14x128xf32>
    %53 = tpu.concatenate %52, %49 in 0 : vector<14x128xf32>, vector<2x128xf32> -> vector<16x128xf32>
    %c0_35 = arith.constant 0 : index
    %c0_36 = arith.constant 0 : index
    %c0_37 = arith.constant 0 : index
    %54 = vector.load %arg7[%c0_35, %c0_36, %c0_37] : memref<3x128x256xf32, #tpu.memory_space<vmem>>, vector<1x128x256xf32>
    %55 = vector.shape_cast %54 : vector<1x128x256xf32> to vector<128x256xf32>
    %cst_38 = arith.constant dense<0.000000e+00> : vector<16x256xf32>
    %56 = tpu.matmul %51, %55, %cst_38 {dimension_numbers = #tpu.dot_dimension_numbers<[1], [0], [0], [1], [0, 0, 1, 1], [], []>} : vector<16x128xf32>, vector<128x256xf32>, vector<16x256xf32> -> vector<16x256xf32>
    %c1_39 = arith.constant 1 : index
    %c0_40 = arith.constant 0 : index
    %c0_41 = arith.constant 0 : index
    %57 = vector.load %arg7[%c1_39, %c0_40, %c0_41] : memref<3x128x256xf32, #tpu.memory_space<vmem>>, vector<1x128x256xf32>
    %58 = vector.shape_cast %57 : vector<1x128x256xf32> to vector<128x256xf32>
    %cst_42 = arith.constant dense<0.000000e+00> : vector<16x256xf32>
    %59 = tpu.matmul %48, %58, %cst_42 {dimension_numbers = #tpu.dot_dimension_numbers<[1], [0], [0], [1], [0, 0, 1, 1], [], []>} : vector<16x128xf32>, vector<128x256xf32>, vector<16x256xf32> -> vector<16x256xf32>
    %60 = arith.addf %56, %59 : vector<16x256xf32>
    %c2_43 = arith.constant 2 : index
    %c0_44 = arith.constant 0 : index
    %c0_45 = arith.constant 0 : index
    %61 = vector.load %arg7[%c2_43, %c0_44, %c0_45] : memref<3x128x256xf32, #tpu.memory_space<vmem>>, vector<1x128x256xf32>
    %62 = vector.shape_cast %61 : vector<1x128x256xf32> to vector<128x256xf32>
    %cst_46 = arith.constant dense<0.000000e+00> : vector<16x256xf32>
    %63 = tpu.matmul %53, %62, %cst_46 {dimension_numbers = #tpu.dot_dimension_numbers<[1], [0], [0], [1], [0, 0, 1, 1], [], []>} : vector<16x128xf32>, vector<128x256xf32>, vector<16x256xf32> -> vector<16x256xf32>
    %64 = arith.addf %60, %63 : vector<16x256xf32>
    %c0_47 = arith.constant 0 : index
    %c0_48 = arith.constant 0 : index
    %65 = vector.load %arg8[%c0_47, %c0_48] : memref<1x256xf32, #tpu.memory_space<vmem>>, vector<1x256xf32>
    %66 = vector.broadcast %65 : vector<1x256xf32> to vector<16x256xf32>
    %67 = arith.mulf %64, %66 : vector<16x256xf32>
    %c0_49 = arith.constant 0 : index
    %c0_50 = arith.constant 0 : index
    %68 = vector.load %arg9[%c0_49, %c0_50] : memref<1x256xf32, #tpu.memory_space<vmem>>, vector<1x256xf32>
    %69 = vector.broadcast %68 : vector<1x256xf32> to vector<16x256xf32>
    %70 = arith.addf %67, %69 : vector<16x256xf32>
    %cst_51 = arith.constant 0.000000e+00 : f32
    %71 = vector.broadcast %cst_51 : f32 to vector<16x256xf32>
    %72 = arith.maximumf %70, %71 : vector<16x256xf32>
    %73 = arith.truncf %72 : vector<16x256xf32> to vector<16x256xbf16>
    %cst_52 = arith.constant 0.000000e+00 : f32
    %74 = vector.broadcast %cst_52 : f32 to vector<2x1024xf32>
    %75 = vector.extract_strided_slice %73 {offsets = [0, 0], sizes = [2, 256], strides = [1, 1]} : vector<16x256xbf16> to vector<2x256xbf16>
    %c0_53 = arith.constant 0 : index
    %c0_54 = arith.constant 0 : index
    %c0_55 = arith.constant 0 : index
    %76 = vector.load %arg10[%c0_53, %c0_54, %c0_55] : memref<8x256x1024xbf16, #tpu.memory_space<vmem>>, vector<1x256x1024xbf16>
    %77 = vector.shape_cast %76 : vector<1x256x1024xbf16> to vector<256x1024xbf16>
    %cst_56 = arith.constant dense<0.000000e+00> : vector<2x1024xf32>
    %78 = tpu.matmul %75, %77, %cst_56 {dimension_numbers = #tpu.dot_dimension_numbers<[1], [0], [0], [1], [0, 0, 1, 1], [], []>} : vector<2x256xbf16>, vector<256x1024xbf16>, vector<2x1024xf32> -> vector<2x1024xf32>
    %79 = arith.addf %74, %78 : vector<2x1024xf32>
    %80 = vector.extract_strided_slice %73 {offsets = [2, 0], sizes = [2, 256], strides = [1, 1]} : vector<16x256xbf16> to vector<2x256xbf16>
    %c1_57 = arith.constant 1 : index
    %c0_58 = arith.constant 0 : index
    %c0_59 = arith.constant 0 : index
    %81 = vector.load %arg10[%c1_57, %c0_58, %c0_59] : memref<8x256x1024xbf16, #tpu.memory_space<vmem>>, vector<1x256x1024xbf16>
    %82 = vector.shape_cast %81 : vector<1x256x1024xbf16> to vector<256x1024xbf16>
    %cst_60 = arith.constant dense<0.000000e+00> : vector<2x1024xf32>
    %83 = tpu.matmul %80, %82, %cst_60 {dimension_numbers = #tpu.dot_dimension_numbers<[1], [0], [0], [1], [0, 0, 1, 1], [], []>} : vector<2x256xbf16>, vector<256x1024xbf16>, vector<2x1024xf32> -> vector<2x1024xf32>
    %84 = arith.addf %79, %83 : vector<2x1024xf32>
    %85 = vector.extract_strided_slice %73 {offsets = [4, 0], sizes = [2, 256], strides = [1, 1]} : vector<16x256xbf16> to vector<2x256xbf16>
    %c2_61 = arith.constant 2 : index
    %c0_62 = arith.constant 0 : index
    %c0_63 = arith.constant 0 : index
    %86 = vector.load %arg10[%c2_61, %c0_62, %c0_63] : memref<8x256x1024xbf16, #tpu.memory_space<vmem>>, vector<1x256x1024xbf16>
    %87 = vector.shape_cast %86 : vector<1x256x1024xbf16> to vector<256x1024xbf16>
    %cst_64 = arith.constant dense<0.000000e+00> : vector<2x1024xf32>
    %88 = tpu.matmul %85, %87, %cst_64 {dimension_numbers = #tpu.dot_dimension_numbers<[1], [0], [0], [1], [0, 0, 1, 1], [], []>} : vector<2x256xbf16>, vector<256x1024xbf16>, vector<2x1024xf32> -> vector<2x1024xf32>
    %89 = arith.addf %84, %88 : vector<2x1024xf32>
    %90 = vector.extract_strided_slice %73 {offsets = [6, 0], sizes = [2, 256], strides = [1, 1]} : vector<16x256xbf16> to vector<2x256xbf16>
    %c3 = arith.constant 3 : index
    %c0_65 = arith.constant 0 : index
    %c0_66 = arith.constant 0 : index
    %91 = vector.load %arg10[%c3, %c0_65, %c0_66] : memref<8x256x1024xbf16, #tpu.memory_space<vmem>>, vector<1x256x1024xbf16>
    %92 = vector.shape_cast %91 : vector<1x256x1024xbf16> to vector<256x1024xbf16>
    %cst_67 = arith.constant dense<0.000000e+00> : vector<2x1024xf32>
    %93 = tpu.matmul %90, %92, %cst_67 {dimension_numbers = #tpu.dot_dimension_numbers<[1], [0], [0], [1], [0, 0, 1, 1], [], []>} : vector<2x256xbf16>, vector<256x1024xbf16>, vector<2x1024xf32> -> vector<2x1024xf32>
    %94 = arith.addf %89, %93 : vector<2x1024xf32>
    %95 = vector.extract_strided_slice %73 {offsets = [8, 0], sizes = [2, 256], strides = [1, 1]} : vector<16x256xbf16> to vector<2x256xbf16>
    %c4 = arith.constant 4 : index
    %c0_68 = arith.constant 0 : index
    %c0_69 = arith.constant 0 : index
    %96 = vector.load %arg10[%c4, %c0_68, %c0_69] : memref<8x256x1024xbf16, #tpu.memory_space<vmem>>, vector<1x256x1024xbf16>
    %97 = vector.shape_cast %96 : vector<1x256x1024xbf16> to vector<256x1024xbf16>
    %cst_70 = arith.constant dense<0.000000e+00> : vector<2x1024xf32>
    %98 = tpu.matmul %95, %97, %cst_70 {dimension_numbers = #tpu.dot_dimension_numbers<[1], [0], [0], [1], [0, 0, 1, 1], [], []>} : vector<2x256xbf16>, vector<256x1024xbf16>, vector<2x1024xf32> -> vector<2x1024xf32>
    %99 = arith.addf %94, %98 : vector<2x1024xf32>
    %100 = vector.extract_strided_slice %73 {offsets = [10, 0], sizes = [2, 256], strides = [1, 1]} : vector<16x256xbf16> to vector<2x256xbf16>
    %c5 = arith.constant 5 : index
    %c0_71 = arith.constant 0 : index
    %c0_72 = arith.constant 0 : index
    %101 = vector.load %arg10[%c5, %c0_71, %c0_72] : memref<8x256x1024xbf16, #tpu.memory_space<vmem>>, vector<1x256x1024xbf16>
    %102 = vector.shape_cast %101 : vector<1x256x1024xbf16> to vector<256x1024xbf16>
    %cst_73 = arith.constant dense<0.000000e+00> : vector<2x1024xf32>
    %103 = tpu.matmul %100, %102, %cst_73 {dimension_numbers = #tpu.dot_dimension_numbers<[1], [0], [0], [1], [0, 0, 1, 1], [], []>} : vector<2x256xbf16>, vector<256x1024xbf16>, vector<2x1024xf32> -> vector<2x1024xf32>
    %104 = arith.addf %99, %103 : vector<2x1024xf32>
    %105 = vector.extract_strided_slice %73 {offsets = [12, 0], sizes = [2, 256], strides = [1, 1]} : vector<16x256xbf16> to vector<2x256xbf16>
    %c6 = arith.constant 6 : index
    %c0_74 = arith.constant 0 : index
    %c0_75 = arith.constant 0 : index
    %106 = vector.load %arg10[%c6, %c0_74, %c0_75] : memref<8x256x1024xbf16, #tpu.memory_space<vmem>>, vector<1x256x1024xbf16>
    %107 = vector.shape_cast %106 : vector<1x256x1024xbf16> to vector<256x1024xbf16>
    %cst_76 = arith.constant dense<0.000000e+00> : vector<2x1024xf32>
    %108 = tpu.matmul %105, %107, %cst_76 {dimension_numbers = #tpu.dot_dimension_numbers<[1], [0], [0], [1], [0, 0, 1, 1], [], []>} : vector<2x256xbf16>, vector<256x1024xbf16>, vector<2x1024xf32> -> vector<2x1024xf32>
    %109 = arith.addf %104, %108 : vector<2x1024xf32>
    %110 = vector.extract_strided_slice %73 {offsets = [14, 0], sizes = [2, 256], strides = [1, 1]} : vector<16x256xbf16> to vector<2x256xbf16>
    %c7 = arith.constant 7 : index
    %c0_77 = arith.constant 0 : index
    %c0_78 = arith.constant 0 : index
    %111 = vector.load %arg10[%c7, %c0_77, %c0_78] : memref<8x256x1024xbf16, #tpu.memory_space<vmem>>, vector<1x256x1024xbf16>
    %112 = vector.shape_cast %111 : vector<1x256x1024xbf16> to vector<256x1024xbf16>
    %cst_79 = arith.constant dense<0.000000e+00> : vector<2x1024xf32>
    %113 = tpu.matmul %110, %112, %cst_79 {dimension_numbers = #tpu.dot_dimension_numbers<[1], [0], [0], [1], [0, 0, 1, 1], [], []>} : vector<2x256xbf16>, vector<256x1024xbf16>, vector<2x1024xf32> -> vector<2x1024xf32>
    %114 = arith.addf %109, %113 : vector<2x1024xf32>
    %c0_80 = arith.constant 0 : index
    %c0_81 = arith.constant 0 : index
    %115 = vector.load %arg11[%c0_80, %c0_81] : memref<1x1024xf32, #tpu.memory_space<vmem>>, vector<1x1024xf32>
    %116 = vector.broadcast %115 : vector<1x1024xf32> to vector<2x1024xf32>
    %117 = arith.addf %114, %116 : vector<2x1024xf32>
    %cst_82 = arith.constant 0.000000e+00 : f32
    %118 = vector.broadcast %cst_82 : f32 to vector<2x1024xf32>
    %119 = arith.maximumf %117, %118 : vector<2x1024xf32>
    %c0_83 = arith.constant 0 : index
    %c0_84 = arith.constant 0 : index
    %120 = vector.load %arg12[%c0_83, %c0_84] : memref<1024x5xf32, #tpu.memory_space<vmem>>, vector<1024x5xf32>
    %cst_85 = arith.constant dense<0.000000e+00> : vector<2x5xf32>
    %121 = tpu.matmul %119, %120, %cst_85 {dimension_numbers = #tpu.dot_dimension_numbers<[1], [0], [0], [1], [0, 0, 1, 1], [], []>} : vector<2x1024xf32>, vector<1024x5xf32>, vector<2x5xf32> -> vector<2x5xf32>
    %c0_86 = arith.constant 0 : index
    %c0_87 = arith.constant 0 : index
    %122 = vector.load %arg13[%c0_86, %c0_87] : memref<1x5xf32, #tpu.memory_space<vmem>>, vector<1x5xf32>
    %123 = vector.broadcast %122 : vector<1x5xf32> to vector<2x5xf32>
    %124 = arith.addf %121, %123 : vector<2x5xf32>
    %c0_88 = arith.constant 0 : index
    %c0_89 = arith.constant 0 : index
    %125 = vector.load %arg14[%c0_88, %c0_89] : memref<2x5xf32, #tpu.memory_space<vmem>>, vector<2x5xf32>
    tpu.vector_store %arg14[%c0_88, %c0_89], %124 {strides = array<i32>} : memref<2x5xf32, #tpu.memory_space<vmem>>, vector<2x5xf32>,
    return
  }
}

</mosaic_0001>

<bundles_post_ra>
// kernel: enhanced_cnn1d_forward.1
= control target key start
LH: loop header
LB: loop body
LE: loop exit
PB: predicated region body
PF: predicated region fallthrough
CT: control target
= control target key end

     0   :  { %19 = vsyncpa [#allocation3], 0  ;;  %s15455_s0 = inlined_call_operand.vmem [shape: f32[16,34], index: 0, kind: input, shape index: {}]   ;;  %s15456_s1 = inlined_call_operand.hbm [shape: f32[3,34,64], index: 1, kind: input, shape index: {}]   ;;  %s15457_s2 = inlined_call_operand.hbm [shape: f32[1,64], index: 2, kind: input, shape index: {}]   ;;  %s15458_s3 = inlined_call_operand.hbm [shape: f32[1,64], index: 3, kind: input, shape index: {}]   ;;  %s15459_s4 = inlined_call_operand.hbm [shape: f32[3,64,128], index: 4, kind: input, shape index: {}]   ;;  %s15460_s5 = inlined_call_operand.hbm [shape: f32[1,128], index: 5, kind: input, shape index: {}]   ;;  %s15461_s6 = inlined_call_operand.hbm [shape: f32[1,128], index: 6, kind: input, shape index: {}]   ;;  %s15462_s7 = inlined_call_operand.hbm [shape: f32[3,128,256], index: 7, kind: input, shape index: {}]   ;;  %s15463_s8 = inlined_call_operand.hbm [shape: f32[1,256], index: 8, kind: input, shape index: {}]   ;;  %s15464_s9 = inlined_call_operand.hbm [shape: f32[1,256], index: 9, kind: input, shape index: {}]   ;;  %s15465_s10 = inlined_call_operand.hbm [shape: bf16[8,256,1024], index: 10, kind: input, shape index: {}]   ;;  %s15466_s11 = inlined_call_operand.hbm [shape: f32[1,1024], index: 11, kind: input, shape index: {}]   ;;  %s15467_s12 = inlined_call_operand.vmem [shape: f32[1024,5], index: 12, kind: input, shape index: {}]   ;;  %s15468_s13 = inlined_call_operand.hbm [shape: f32[1,5], index: 13, kind: input, shape index: {}]   ;;  %s15469_s14 = inlined_call_operand.hbm [shape: f32[2,5], index: 14, kind: output, shape index: {}]  }
   0x1   :  { %20 = vsyncpa [#allocation6], 0 }
   0x2   :  { %21 = vsyncpa [#allocation9], 0 }
   0x3   :  { %22 = vsyncpa [#allocation12], 0 }
   0x4   :  { %23 = vsyncpa [#allocation15], 0 }
   0x5   :  { %24 = vsyncpa [#allocation18], 0 }
   0x6   :  { %25 = vsyncpa [#allocation21], 0  ;;  %s47_s15 = sshll.u32 %s15457_s2, 4  ;;  %s48_s15 = int_to_ptr.hbm [resolvable:$true] %s47_s15 }
   0x7   :  { %26 = vsyncpa [#allocation4], 0  ;;  %s14524_s16 = smov [#allocation5]   ;;  %s68_s20 = sshll.u32 %s15459_s4, 4  ;;  %s69_s20 = int_to_ptr.hbm [resolvable:$true] %s68_s20 }
   0x8   :  { %s49_s17 = sshll.u32 %s14524_s16, 4  ;;  %s14525_s21 = smov [#allocation8]   ;;  %s50_s17 = int_to_ptr.vmem [resolvable:$true] %s49_s17 }
   0x9   :  { %52 = dma.hbm_to_vmem [thread:$0]  %s48_s15, 16, %s50_s17, [#allocation6]  }
   0xa   :  { %s70_s22 = sshll.u32 %s14525_s21, 4  ;;  %s93_s25 = sshll.u32 %s15461_s6, 4  ;;  %s71_s22 = int_to_ptr.vmem [resolvable:$true] %s70_s22  ;;  %s94_s25 = int_to_ptr.hbm [resolvable:$true] %s93_s25 }
   0xb   :  { %s14526_s2 = smov 128   ;;  %s14527_s26 = smov 8  }
   0xc   :  { %76 = dma.hbm_to_vmem [thread:$0]  %s69_s20, 3072, %s71_s22, [#allocation9], %s14526_s2, %s14526_s2, %s14527_s26  }
   0xd   :  { %s117_s29 = sshll.u32 %s15463_s8, 4  ;;  %s14528_s4 = smov [#allocation11]   ;;  %s118_s29 = int_to_ptr.hbm [resolvable:$true] %s117_s29 }
   0xe   :  { %s95_s30 = sshll.u32 %s14528_s4, 4  ;;  %s14529_s15 = smov [#allocation14]   ;;  %s96_s30 = int_to_ptr.vmem [resolvable:$true] %s95_s30 }
   0xf   :  { %98 = dma.hbm_to_vmem [thread:$0]  %s94_s25, 16, %s96_s30, [#allocation12]  }
  0x10   :  { %s119_s16 = sshll.u32 %s14529_s15, 4  ;;  %s138_s18 = sshll.u32 %s15465_s10, 4  ;;  %s120_s16 = int_to_ptr.vmem [resolvable:$true] %s119_s16  ;;  %s139_s18 = int_to_ptr.hbm [resolvable:$true] %s138_s18 }
  0x11   :  { %122 = dma.hbm_to_vmem [thread:$0]  %s118_s29, 32, %s120_s16, [#allocation15]  }
  0x12   :  { %s14530_s19 = smov [#allocation17]   ;;  %s33_s8 = sshll.u32 %s15456_s1, 4  ;;  %s34_s8 = int_to_ptr.hbm [resolvable:$true] %s33_s8 }
  0x13   :  { %s140_s20 = sshll.u32 %s14530_s19, 4  ;;  %s14531_s23 = smov 512   ;;  %s141_s20 = int_to_ptr.vmem [resolvable:$true] %s140_s20 }
  0x14   :  { %s14532_s24 = smov 32   ;;  %s14533_s25 = smov [#allocation2]  }
  0x15   :  { %146 = dma.hbm_to_vmem [thread:$0]  %s139_s18, 131072, %s141_s20, [#allocation18], %s14531_s23, %s14531_s23, %s14532_s24  }
  0x16   :  { %s35_s27 = sshll.u32 %s14533_s25, 4  ;;  %s58_s10 = sshll.u32 %s15458_s3, 4  ;;  %s36_s27 = int_to_ptr.vmem [resolvable:$true] %s35_s27  ;;  %s59_s10 = int_to_ptr.hbm [resolvable:$true] %s58_s10 }
  0x17   :  { %41 = dma.hbm_to_vmem [thread:$0]  %s34_s8, 1920, %s36_s27, [#allocation3], %s14526_s2, %s14526_s2, %s14527_s26  }
  0x18   :  { %s82_s1 = sshll.u32 %s15460_s5, 4  ;;  %s14534_s15 = smov [#allocation7]   ;;  %s83_s1 = int_to_ptr.hbm [resolvable:$true] %s82_s1 }
  0x19   :  { %s60_s16 = sshll.u32 %s14534_s15, 4  ;;  %s14535_s6 = smov [#allocation10]   ;;  %s61_s16 = int_to_ptr.vmem [resolvable:$true] %s60_s16 }
  0x1a   :  { %63 = dma.hbm_to_vmem [thread:$0]  %s59_s10, 16, %s61_s16, [#allocation6]  }
  0x1b   :  { %s84_s17 = sshll.u32 %s14535_s6, 4  ;;  %s103_s3 = sshll.u32 %s15462_s7, 4  ;;  %s85_s17 = int_to_ptr.vmem [resolvable:$true] %s84_s17  ;;  %s104_s3 = int_to_ptr.hbm [resolvable:$true] %s103_s3 }
  0x1c   :  { %87 = dma.hbm_to_vmem [thread:$0]  %s83_s1, 16, %s85_s17, [#allocation9]  }
  0x1d   :  { %s14536_s20 = smov [#allocation13]   ;;  %s128_s5 = sshll.u32 %s15464_s9, 4  ;;  %s129_s5 = int_to_ptr.hbm [resolvable:$true] %s128_s5 }
  0x1e   :  { %s105_s2 = sshll.u32 %s14536_s20, 4  ;;  %s14537_s22 = smov 256   ;;  %s106_s2 = int_to_ptr.vmem [resolvable:$true] %s105_s2 }
  0x1f   :  { %s14538_s8 = smov 16   ;;  %s14539_s23 = smov [#allocation16]  }
  0x20   :  { %111 = dma.hbm_to_vmem [thread:$0]  %s104_s3, 12288, %s106_s2, [#allocation12], %s14537_s22, %s14537_s22, %s14538_s8  }
  0x21   :  { %s130_s24 = sshll.u32 %s14539_s23, 4  ;;  %s152_s7 = sshll.u32 %s15466_s11, 4  ;;  %s131_s24 = int_to_ptr.vmem [resolvable:$true] %s130_s24  ;;  %s153_s7 = int_to_ptr.hbm [resolvable:$true] %s152_s7 }
  0x22   :  { %133 = dma.hbm_to_vmem [thread:$0]  %s129_s5, 32, %s131_s24, [#allocation15]  }
  0x23   :  { %s165_s10 = sshll.u32 %s15468_s13, 4  ;;  %s14540_s29 = smov [#allocation19]   ;;  %s166_s10 = int_to_ptr.hbm [resolvable:$true] %s165_s10 }
  0x24   :  { %s154_s30 = sshll.u32 %s14540_s29, 4  ;;  %s14541_s9 = smov [#allocation20]   ;;  %s155_s30 = int_to_ptr.vmem [resolvable:$true] %s154_s30 }
  0x25   :  { %157 = dma.hbm_to_vmem [thread:$0]  %s153_s7, 128, %s155_s30, [#allocation18]  }
  0x26   :  { %s167_s1 = sshll.u32 %s14541_s9, 4  ;;  %s168_s1 = int_to_ptr.vmem [resolvable:$true] %s167_s1 }
  0x27   :  { %170 = dma.hbm_to_vmem [thread:$0]  %s166_s10, 16, %s168_s1, [#allocation21]  }
  0x28   :  { %14508 = dma.done.wait [#allocation3], 1920  }
  0x29   :  { %14509 = vsyncadd [#allocation3], 4294965376 }
  0x2a   :  { %14510 = dma.done.wait [#allocation6], 32  }
  0x2b   :  { %14511 = vsyncadd [#allocation6], 4294967264 }
  0x2c   :  { %14512 = dma.done.wait [#allocation9], 3088  }
  0x2d   :  { %14513 = vsyncadd [#allocation9], 4294964208 }
  0x2e   :  { %14514 = dma.done.wait [#allocation12], 12304  }
  0x2f   :  { %14515 = vsyncadd [#allocation12], 4294954992 }
  0x30   :  { %14516 = dma.done.wait [#allocation15], 64  }
  0x31   :  { %14517 = vsyncadd [#allocation15], 4294967232 }
  0x32   :  { %14518 = dma.done.wait [#allocation18], 131200  }
  0x33   :  { %14519 = vsyncadd [#allocation18], 4294836096 }
  0x34   :  { %14520 = dma.done.wait [#allocation21], 16  }
  0x35   :  { %14521 = vsyncadd [#allocation21], 4294967280  ;;  %vm223_vm0 = vcmask 1041408   ;;  %v313_v0 = vld [vmem:[#allocation2 + $0x70] sm:$0x3]  ;;  %v312_v1 = vld [vmem:[#allocation2 + $0x68] sm:$0xff] }
  0x36   :  { %v245_v2 = vld [vmem:[#allocation2 + $0x48] sm:$0x3]  ;;  %9037 = vmatpush.msk.msra.mxu2 %vm223_vm0, %v313_v0  ;;  %v239_v3 = vld [vmem:[#allocation2 + $0x20] sm:$0x3]  ;;  %v238_v6 = vld [vmem:[#allocation2 + $0x18] sm:$0xff]  ;;  %vm229_vm1 = vcmask 1045504  }
  0x37   :  { %9031 = vmatpush.msk.msra.mxu0 %vm223_vm0, %v245_v2  ;;  %v244_v4 = vld [vmem:[#allocation2 + $0x40] sm:$0xff]  ;;  %9034 = vmatpush.msk.msra.mxu1 %vm223_vm0, %v239_v3  ;;  %v243_v7 = vld [vmem:[#allocation2 + $0x38] sm:$0xff]  ;;  %v237_v8 = vld [vmem:[#allocation2 + $0x10] sm:$0xff]  ;;  %vm246_vm2 = vcmask 277504   ;;  %vm390_vm3 = vcmask 523264   ;;  %s9015_s15 = sshll.u32 %s15469_s14, 4  ;;  %s9016_s15 = int_to_ptr.hbm [resolvable:$true] %s9015_s15 }
  0x38   :  { %v311_v5 = vld [vmem:[#allocation2 + $0x60] sm:$0xff]  ;;  %334 = vmatpush.msra.mxu2 %v312_v1  ;;  %v310_v10 = vld [vmem:[#allocation2 + $0x58] sm:$0xff]  ;;  %v220_v11 = vld [vmem:[%s15455_s0 + $0x8] sm:$0xff]  ;;  %vm9006_vm5 = vcmask 33792  }
  0x39   :  { %266 = vmatpush.msra.mxu0 %v244_v4  ;;  %v219_v9 = vld [vmem:[%s15455_s0] sm:$0xff]  ;;  %297 = vmatpush.msra.mxu1 %v238_v6  ;;  %v242_v13 = vld [vmem:[#allocation2 + $0x30] sm:$0xff]  ;;  %v231_v16 = vrot.slane %v220_v11, 2  ;;  %v236_v17 = vld [vmem:[#allocation2 + $0x8] sm:$0xff]  ;;  %v225_v24 = vrot.slane %v220_v11, 6 }
  0x3a   :  { %v230_v12 = vrot.slane %v219_v9, 2  ;;  %v224_v14 = vrot.slane %v219_v9, 6  ;;  %335 = vmatpush.msra.mxu2 %v311_v5  ;;  %v309_v15 = vld [vmem:[#allocation2 + $0x50] sm:$0xff]  ;;  %v241_v18 = vld [vmem:[#allocation2 + $0x28] sm:$0xff]  ;;  %v235_v20 = vld [vmem:[#allocation2] sm:$0xff] }
  0x3b   :  { %267 = vmatpush.msra.mxu0 %v243_v7  ;;  %298 = vmatpush.msra.mxu1 %v237_v8  ;;  %v389_v22 = vld [vmem:[#allocation8 + $0x78] sm:$0xff]  ;;  %v388_v23 = vld [vmem:[#allocation8 + $0x70] sm:$0xff]  ;;  %v234_v25 = vsel %vm229_vm1, %v231_v16, 0.0  ;;  %v387_v27 = vld [vmem:[#allocation8 + $0x68] sm:$0xff] }
  0x3c   :  { %336 = vmatpush.msra.mxu2 %v310_v10  ;;  %v232_v19 = vsel %vm229_vm1, %v230_v12, %v231_v16  ;;  %v228_v21 = vsel %vm223_vm0, 0.0, %v224_v14  ;;  %v226_v26 = vsel %vm223_vm0, %v224_v14, %v225_v24  ;;  %v386_v28 = vld [vmem:[#allocation8 + $0x60] sm:$0xff]  ;;  %v385_v29 = vld [vmem:[#allocation8 + $0x58] sm:$0xff]  ;;  %v384_v30 = vld [vmem:[#allocation8 + $0x50] sm:$0xff] }
  0x3d   :  { %268 = vmatpush.msra.mxu0 %v242_v13  ;;  %299 = vmatpush.msra.mxu1 %v236_v17  ;;  %v454_v31 = vld [vmem:[#allocation8 + $0xb8] sm:$0xff]  ;;  %v383_v32 = vld [vmem:[#allocation8 + $0x48] sm:$0xff]  ;;  %v453_v33 = vld [vmem:[#allocation8 + $0xb0] sm:$0xff] }
  0x3e   :  { %337 = vmatpush.msra.mxu2 %v309_v15  ;;  %v382_v34 = vld [vmem:[#allocation8 + $0x40] sm:$0xff]  ;;  %v452_v35 = vld [vmem:[#allocation8 + $0xa8] sm:$0xff]  ;;  %v380_v36 = vld [vmem:[#allocation8 + $0x38] sm:$0xff] }
  0x3f   :  { %269 = vmatpush.msra.mxu0 %v241_v18  ;;  %9038 = vmatmul.msk.f32.vlgmr.msra.gmra.mxu2 %vm246_vm2, %v232_v19  ;;  %v451_v37 = vld [vmem:[#allocation8 + $0xa0] sm:$0xff]  ;;  %v379_v38 = vld [vmem:[#allocation8 + $0x30] sm:$0xff]  ;;  %v450_v39 = vld [vmem:[#allocation8 + $0x98] sm:$0xff] }
  0x40   :  { %300 = vmatpush.msra.mxu1 %v235_v20  ;;  %9032 = vmatmul.msk.f32.vlgmr.msra.gmra.mxu0 %vm246_vm2, %v219_v9  ;;  %v378_v40 = vld [vmem:[#allocation8 + $0x28] sm:$0xff]  ;;  %v449_v41 = vld [vmem:[#allocation8 + $0x90] sm:$0xff]  ;;  %v377_v42 = vld [vmem:[#allocation8 + $0x20] sm:$0xff] }
  0x41   :  { %9035 = vmatmul.msk.f32.vlgmr.msra.gmra.mxu1 %vm246_vm2, %v228_v21  ;;  %403 = vmatpush.msrb.mxu0 %v389_v22  ;;  %v448_v43 = vld [vmem:[#allocation8 + $0x88] sm:$0xff]  ;;  %v376_v44 = vld [vmem:[#allocation8 + $0x18] sm:$0xff]  ;;  %v447_v45 = vld [vmem:[#allocation8 + $0x80] sm:$0xff] }
  0x42   :  { %468 = vmatpush.msrb.mxu1 %v454_v31  ;;  %v375_v46 = vld [vmem:[#allocation8 + $0x10] sm:$0xff]  ;;  %v374_v47 = vld [vmem:[#allocation8 + $0x8] sm:$0xff]  ;;  %v373_v48 = vld [vmem:[#allocation8] sm:$0xff] }
  0x43   :  { %404 = vmatpush.msrb.mxu0 %v388_v23  ;;  %v14191_v52 = vld [vmem:[#allocation5] ss:$0 sm:$0xff]  ;;  %v14192_v54 = vld [vmem:[#allocation7] ss:$0 sm:$0xff]  ;;  %v576_v56 = vld [vmem:[#allocation13 + $0x1f0] sm:$0xff] }
  0x44   :  { %469 = vmatpush.msrb.mxu1 %v453_v33  ;;  %v577_v57 = vld [vmem:[#allocation13 + $0x1f8] sm:$0xff]  ;;  %v574_v58 = vld [vmem:[#allocation13 + $0x1e0] sm:$0xff]  ;;  %578 = vmatpush.msrb.mxu2 %v576_v56  ;;  %v575_v59 = vld [vmem:[#allocation13 + $0x1e8] sm:$0xff] }
  0x45   :  { %405 = vmatpush.msrb.mxu0 %v387_v27  ;;  %601 = vmatpush.msra.mxu3 %v577_v57  ;;  %v572_v63 = vld [vmem:[#allocation13 + $0x1d0] sm:$0xff]  ;;  %v573_v0 = vld [vmem:[#allocation13 + $0x1d8] sm:$0xff]  ;;  %v570_v3 = vld [vmem:[#allocation13 + $0x1c0] sm:$0xff] }
  0x46   :  { %470 = vmatpush.msrb.mxu1 %v452_v35  ;;  %579 = vmatpush.msrb.mxu2 %v574_v58  ;;  %v571_v4 = vld [vmem:[#allocation13 + $0x1c8] sm:$0xff]  ;;  %v568_v6 = vld [vmem:[#allocation13 + $0x1b0] sm:$0xff]  ;;  %v569_v7 = vld [vmem:[#allocation13 + $0x1b8] sm:$0xff] }
  0x47   :  { %9039 = vmatmul.msk.f32.gmra.mxu2 %vm246_vm2, %v234_v25  ;;  %406 = vmatpush.msrb.mxu0 %v386_v28  ;;  %v544_v8 = vld [vmem:[#allocation13 + $0xf8] sm:$0xff]  ;;  %v543_v10 = vld [vmem:[#allocation13 + $0xf0] sm:$0xff]  ;;  %v566_v12 = vld [vmem:[#allocation13 + $0x1a0] sm:$0xff] }
  0x48   :  { %9033 = vmatmul.msk.f32.gmra.mxu0 %vm246_vm2, %v220_v11  ;;  %471 = vmatpush.msrb.mxu1 %v451_v37  ;;  %v567_v13 = vld [vmem:[#allocation13 + $0x1a8] sm:$0xff]  ;;  %v564_v15 = vld [vmem:[#allocation13 + $0x190] sm:$0xff]  ;;  %v565_v16 = vld [vmem:[#allocation13 + $0x198] sm:$0xff] }
  0x49   :  { %9036 = vmatmul.msk.f32.gmra.mxu1 %vm246_vm2, %v226_v26  ;;  %407 = vmatpush.msrb.mxu0 %v385_v29  ;;  %v562_v18 = vld [vmem:[#allocation13 + $0x180] sm:$0xff]  ;;  %v563_v19 = vld [vmem:[#allocation13 + $0x188] sm:$0xff]  ;;  %v560_v21 = vld [vmem:[#allocation13 + $0x170] sm:$0xff] }
  0x4a   :  { %472 = vmatpush.msrb.mxu1 %v450_v39  ;;  %602 = vmatpush.msra.mxu3 %v575_v59  ;;  %v561_v22 = vld [vmem:[#allocation13 + $0x178] sm:$0xff]  ;;  %v558_v25 = vld [vmem:[#allocation13 + $0x160] sm:$0xff]  ;;  %v559_v26 = vld [vmem:[#allocation13 + $0x168] sm:$0xff] }
  0x4b   :  { %408 = vmatpush.msrb.mxu0 %v384_v30  ;;  %580 = vmatpush.msrb.mxu2 %v572_v63  ;;  %v541_v33 = vld [vmem:[#allocation13 + $0xe0] sm:$0xff]  ;;  %v556_v35 = vld [vmem:[#allocation13 + $0x150] sm:$0xff]  ;;  %v547_v56 = vld [vmem:[#allocation13 + $0x108] sm:$0xff] }
  0x4c   :  { %473 = vmatpush.msrb.mxu1 %v449_v41  ;;  %603 = vmatpush.msra.mxu3 %v573_v0  ;;  %v539_v37 = vld [vmem:[#allocation13 + $0xd0] sm:$0xff]  ;;  %v554_v39 = vld [vmem:[#allocation13 + $0x140] sm:$0xff]  ;;  %v530_v58 = vld [vmem:[#allocation13 + $0x88] sm:$0xff] }
  0x4d   :  { %409 = vmatpush.msrb.mxu0 %v383_v32  ;;  %581 = vmatpush.msrb.mxu2 %v570_v3  ;;  %v537_v41 = vld [vmem:[#allocation13 + $0xc0] sm:$0xff]  ;;  %v701_v59 = vld [vmem:[#allocation13 + $0x2f0] sm:$0xff]  ;;  %v700_v0 = vld [vmem:[#allocation13 + $0x2e8] sm:$0xff] }
  0x4e   :  { %474 = vmatpush.msrb.mxu1 %v448_v43  ;;  %604 = vmatpush.msra.mxu3 %v571_v4  ;;  %v552_v43 = vld [vmem:[#allocation13 + $0x130] sm:$0xff]  ;;  %v529_v57 = vld [vmem:[#allocation13 + $0x80] sm:$0xff]  ;;  %v698_v4 = vld [vmem:[#allocation13 + $0x2d8] sm:$0xff] }
  0x4f   :  { %410 = vmatpush.msrb.mxu0 %v382_v34  ;;  %582 = vmatpush.msrb.mxu2 %v568_v6  ;;  %v542_v34 = vld [vmem:[#allocation13 + $0xe8] sm:$0xff]  ;;  %v699_v63 = vld [vmem:[#allocation13 + $0x2e0] sm:$0xff]  ;;  %v697_v3 = vld [vmem:[#allocation13 + $0x2d0] sm:$0xff] }
  0x50   :  { %475 = vmatpush.msrb.mxu1 %v447_v45  ;;  %605 = vmatpush.msra.mxu3 %v569_v7  ;;  %v535_v45 = vld [vmem:[#allocation13 + $0xb0] sm:$0xff]  ;;  %v524_v6 = vld [vmem:[#allocation13 + $0x58] sm:$0xff]  ;;  %v695_v7 = vld [vmem:[#allocation13 + $0x2c0] sm:$0xff] }
  0x51   :  { %431 = vmatpush.msra.mxu0 %v380_v36  ;;  %583 = vmatpush.msrb.mxu2 %v566_v12  ;;  %v557_v36 = vld [vmem:[#allocation13 + $0x158] sm:$0xff]  ;;  %vm14692_vm4 = vmneg %vm223_vm0 }
  0x52   :  { %647 = vmatpush.msra.mxu1 %v544_v8  ;;  %606 = vmatpush.msra.mxu3 %v567_v13  ;;  %v696_v8 = vld [vmem:[#allocation13 + $0x2c8] sm:$0xff]  ;;  %v694_v12 = vld [vmem:[#allocation13 + $0x2b8] sm:$0xff]  ;;  %v519_v13 = vld [vmem:[#allocation13 + $0x30] sm:$0xff] }
  0x53   :  { %432 = vmatpush.msra.mxu0 %v379_v38  ;;  %584 = vmatpush.msrb.mxu2 %v564_v15  ;;  %v540_v38 = vld [vmem:[#allocation13 + $0xd8] sm:$0xff]  ;;  %v691_v15 = vld [vmem:[#allocation13 + $0x2a0] sm:$0xff] }
  0x54   :  { %607 = vmatpush.msra.mxu3 %v565_v16  ;;  %648 = vmatpush.msra.mxu1 %v542_v34  ;;  %v692_v16 = vld [vmem:[#allocation13 + $0x2a8] sm:$0xff]  ;;  %v679_v34 = vld [vmem:[#allocation13 + $0x240] sm:$0xff] }
  0x55   :  { %433 = vmatpush.msra.mxu0 %v378_v40  ;;  %585 = vmatpush.msrb.mxu2 %v562_v18  ;;  %v555_v40 = vld [vmem:[#allocation13 + $0x148] sm:$0xff] }
  0x56   :  { %608 = vmatpush.msra.mxu3 %v563_v19  ;;  %649 = vmatpush.msra.mxu1 %v540_v38  ;;  %v518_v18 = vld [vmem:[#allocation13 + $0x28] sm:$0xff]  ;;  %v689_v19 = vld [vmem:[#allocation13 + $0x290] sm:$0xff]  ;;  %v675_v38 = vld [vmem:[#allocation13 + $0x220] sm:$0xff] }
  0x57   :  { %434 = vmatpush.msra.mxu0 %v377_v42  ;;  %586 = vmatpush.msrb.mxu2 %v560_v21  ;;  %v538_v42 = vld [vmem:[#allocation13 + $0xc8] sm:$0xff]  ;;  %v515_v21 = vld [vmem:[#allocation13 + $0x10] sm:$0xff] }
  0x58   :  { %609 = vmatpush.msra.mxu3 %v561_v22  ;;  %650 = vmatpush.msra.mxu1 %v538_v42  ;;  %v516_v22 = vld [vmem:[#allocation13 + $0x18] sm:$0xff] }
  0x59   :  { %435 = vmatpush.msra.mxu0 %v376_v44  ;;  %587 = vmatpush.msrb.mxu2 %v558_v25  ;;  %v553_v44 = vld [vmem:[#allocation13 + $0x138] sm:$0xff]  ;;  %v513_v25 = vld [vmem:[#allocation13] sm:$0xff] }
  0x5a   :  { %610 = vmatpush.msra.mxu3 %v559_v26  ;;  %v514_v26 = vld [vmem:[#allocation13 + $0x8] sm:$0xff] }
  0x5b   :  { %436 = vmatpush.msra.mxu0 %v375_v46  ;;  %588 = vmatpush.msrb.mxu2 %v556_v35  ;;  %v536_v46 = vld [vmem:[#allocation13 + $0xb8] sm:$0xff]  ;;  %v680_v35 = vld [vmem:[#allocation13 + $0x248] sm:$0xff] }
  0x5c   :  { %611 = vmatpush.msra.mxu3 %v557_v36  ;;  %651 = vmatpush.msra.mxu1 %v536_v46  ;;  %v677_v36 = vld [vmem:[#allocation13 + $0x230] sm:$0xff] }
  0x5d   :  { %437 = vmatpush.msra.mxu0 %v374_v47  ;;  %589 = vmatpush.msrb.mxu2 %v554_v39  ;;  %v550_v47 = vld [vmem:[#allocation13 + $0x120] sm:$0xff]  ;;  %v676_v39 = vld [vmem:[#allocation13 + $0x228] sm:$0xff] }
  0x5e   :  { %612 = vmatpush.msra.mxu3 %v555_v40  ;;  %v673_v40 = vld [vmem:[#allocation13 + $0x210] sm:$0xff] }
  0x5f   :  { %438 = vmatpush.msra.mxu0 %v373_v48  ;;  %v551_v48 = vld [vmem:[#allocation13 + $0x128] sm:$0xff]  ;;  %590 = vmatpush.msrb.mxu2 %v552_v43  ;;  %v671_v43 = vld [vmem:[#allocation13 + $0x200] sm:$0xff] }
  0x60   :  { %613 = vmatpush.msra.mxu3 %v553_v44  ;;  %v672_v44 = vld [vmem:[#allocation13 + $0x208] sm:$0xff] }
  0x61   :  { %591 = vmatpush.msrb.mxu2 %v550_v47 }
  0x62   :  { %614 = vmatpush.msra.mxu3 %v551_v48  ;;  %v14193_v48 = vld [vmem:[#allocation10] ss:$0 sm:$0xff] }
  0xbd   :  { %v271_v49 = vpop.f32.mrf.mxu0 }
  0xbe   :  { %v302_v50 = vpop.f32.mrf.mxu1 }
  0xbf   :  { %v303_v51 = vadd.f32 %v302_v50, %v271_v49  ;;  %v533_v49 = vld [vmem:[#allocation13 + $0xa0] sm:$0xff]  ;;  %v534_v50 = vld [vmem:[#allocation13 + $0xa8] sm:$0xff] }
  0xc0   :  { %652 = vmatpush.msra.mxu1 %v534_v50 }
  0xc2   :  { %v339_v53 = vpop.f32.mrf.mxu2 }
  0xc3   :  { %v345_v55 = vadd.f32 %v339_v53, %v303_v51  ;;  %v548_v51 = vld [vmem:[#allocation13 + $0x110] sm:$0xff] }
  0xc4   :  { %v531_v53 = vld [vmem:[#allocation13 + $0x90] sm:$0xff]  ;;  %592 = vmatpush.msrb.mxu2 %v548_v51  ;;  %v9278_v51 = vld [vmem:[#allocation17 + $0x5c0] sm:$0xf] }
  0xc5   :  { %v351_v60 = vmul.f32 %v14191_v52, %v345_v55  ;;  %v274_v61 = vpop.f32.mrf.mxu0  ;;  %v546_v55 = vld [vmem:[#allocation13 + $0x100] sm:$0xff] }
  0xc6   :  { %v305_v62 = vpop.f32.mrf.mxu1  ;;  %593 = vmatpush.msrb.mxu2 %v546_v55  ;;  %v13400_v55 = vld [vmem:[#allocation17 + $0x7dc] sm:$0xf0] }
  0xc7   :  { %v357_v1 = vadd.f32 %v14192_v54, %v351_v60  ;;  %v306_v2 = vadd.f32 %v305_v62, %v274_v61  ;;  %v702_v60 = vld [vmem:[#allocation13 + $0x2f8] sm:$0xff]  ;;  %v527_v61 = vld [vmem:[#allocation13 + $0x70] sm:$0xff] }
  0xc8   :  { %v528_v62 = vld [vmem:[#allocation13 + $0x78] sm:$0xff]  ;;  %703 = vmatpush.msra.mxu2 %v701_v59 }
  0xc9   :  { %v359_v5 = vmax.f32 %v357_v1, 0.0  ;;  %v525_v1 = vld [vmem:[#allocation13 + $0x60] sm:$0xff] }
  0xca   :  { %v342_v9 = vpop.f32.mrf.mxu2  ;;  %704 = vmatpush.msra.mxu2 %v699_v63  ;;  %v13328_v63 = vld [vmem:[#allocation17 + $0x59c] sm:$0xf0] }
  0xcb   :  { %v346_v11 = vadd.f32 %v342_v9, %v306_v2  ;;  %9040 = vmatmul.msk.f32.vlgmr.msrb.gmra.mxu0 %vm390_vm3, %v359_v5  ;;  %v368_v23 = vrot.slane %v359_v5, 2  ;;  %v363_v28 = vrot.slane %v359_v5, 6  ;;  %v526_v2 = vld [vmem:[#allocation13 + $0x68] sm:$0xff]  ;;  %v523_v5 = vld [vmem:[#allocation13 + $0x50] sm:$0xff]  ;;  %v521_v9 = vld [vmem:[#allocation13 + $0x40] sm:$0xff] }
  0xcc   :  { %624 = vmatpush.msrb.mxu0 %v543_v10  ;;  %705 = vmatpush.msra.mxu2 %v697_v3  ;;  %v522_v10 = vld [vmem:[#allocation13 + $0x48] sm:$0xff]  ;;  %v13392_v3 = vld [vmem:[#allocation17 + $0x79c] sm:$0xf0] }
  0xcd   :  { %v352_v14 = vmul.f32 %v14191_v52, %v346_v11  ;;  %v367_v29 = vsel %vm223_vm0, 0.0, %v363_v28  ;;  %v549_v52 = vld [vmem:[#allocation13 + $0x118] sm:$0xff]  ;;  %v693_v11 = vld [vmem:[#allocation13 + $0x2b0] sm:$0xff] }
  0xce   :  { %625 = vmatpush.msrb.mxu0 %v541_v33  ;;  %615 = vmatpush.msra.mxu3 %v549_v52  ;;  %v13336_v52 = vld [vmem:[#allocation17 + $0x5dc] sm:$0xf0] }
  0xcf   :  { %v358_v17 = vadd.f32 %v14192_v54, %v352_v14  ;;  %v532_v54 = vld [vmem:[#allocation13 + $0x98] sm:$0xff]  ;;  %706 = vmatpush.msra.mxu2 %v695_v7 }
  0xd0   :  { %626 = vmatpush.msrb.mxu0 %v539_v37  ;;  %653 = vmatpush.msra.mxu1 %v532_v54  ;;  %v520_v14 = vld [vmem:[#allocation13 + $0x38] sm:$0xff]  ;;  %v9279_v54 = vor.u32 %v13336_v52, %v9278_v51  ;;  %v9406_v51 = vld [vmem:[#allocation17 + $0x6c0] sm:$0xf] }
  0xd1   :  { %v360_v20 = vmax.f32 %v358_v17, 0.0  ;;  %616 = vmatpush.msra.mxu3 %v547_v56  ;;  %707 = vmatpush.msra.mxu2 %v693_v11  ;;  %v517_v17 = vld [vmem:[#allocation13 + $0x20] sm:$0xff]  ;;  %v678_v37 = vld [vmem:[#allocation13 + $0x238] sm:$0xff]  ;;  %v13332_v56 = vld [vmem:[#allocation17 + $0x5c4] sm:$0xf] }
  0xd2   :  { %627 = vmatpush.msrb.mxu0 %v537_v41  ;;  %654 = vmatpush.msra.mxu1 %v530_v58  ;;  %v674_v41 = vld [vmem:[#allocation13 + $0x218] sm:$0xff]  ;;  %v13368_v52 = vld [vmem:[#allocation17 + $0x6dc] sm:$0xf0] }
  0xd3   :  { %9041 = vmatmul.msk.f32.gmra.mxu0 %vm390_vm3, %v360_v20  ;;  %v369_v24 = vrot.slane %v360_v20, 2  ;;  %v364_v31 = vrot.slane %v360_v20, 6  ;;  %726 = vmatpush.msrb.mxu3 %v702_v60  ;;  %v690_v20 = vld [vmem:[#allocation13 + $0x298] sm:$0xff]  ;;  %v13396_v60 = vld [vmem:[#allocation17 + $0x7c4] sm:$0xf] }
  0xd4   :  { %628 = vmatpush.msrb.mxu0 %v535_v45  ;;  %655 = vmatpush.msra.mxu1 %v528_v62  ;;  %v9246_v62 = vld [vmem:[#allocation17 + $0x580] sm:$0xf] }
  0xd5   :  { %v370_v27 = vsel %vm229_vm1, %v368_v23, %v369_v24  ;;  %v372_v30 = vsel %vm229_vm1, %v369_v24, 0.0  ;;  %v365_v32 = vsel %vm223_vm0, %v363_v28, %v364_v31  ;;  %727 = vmatpush.msrb.mxu3 %v700_v0  ;;  %708 = vmatpush.msra.mxu2 %v691_v15  ;;  %v687_v23 = vld [vmem:[#allocation13 + $0x280] sm:$0xff]  ;;  %v688_v24 = vld [vmem:[#allocation13 + $0x288] sm:$0xff]  ;;  %v686_v28 = vld [vmem:[#allocation13 + $0x278] sm:$0xff] }
  0xd6   :  { %9044 = vmatmul.msk.f32.vlgmr.msrb.gmra.mxu1 %vm390_vm3, %v370_v27  ;;  %629 = vmatpush.msrb.mxu0 %v533_v49  ;;  %v685_v27 = vld [vmem:[#allocation13 + $0x270] sm:$0xff]  ;;  %v14194_v49 = vld [vmem:[#allocation11] ss:$0 sm:$0xff] }
  0xd7   :  { %656 = vmatpush.msra.mxu1 %v526_v2  ;;  %728 = vmatpush.msrb.mxu3 %v698_v4  ;;  %v681_v31 = vld [vmem:[#allocation13 + $0x250] sm:$0xff]  ;;  %v9502_v2 = vld [vmem:[#allocation17 + $0x780] sm:$0xf]  ;;  %v13324_v4 = vld [vmem:[#allocation17 + $0x584] sm:$0xf] }
  0xd8   :  { %630 = vmatpush.msrb.mxu0 %v531_v53  ;;  %709 = vmatpush.msra.mxu2 %v689_v19  ;;  %v9534_v53 = vld [vmem:[#allocation17 + $0x7c0] sm:$0xf] }
  0xd9   :  { %657 = vmatpush.msra.mxu1 %v524_v6  ;;  %729 = vmatpush.msrb.mxu3 %v696_v8  ;;  %v9535_v59 = vor.u32 %v13400_v55, %v9534_v53  ;;  %v9248_v8 = vld [vmem:[#allocation17 + $0x5a0] sm:$0xf0]  ;;  %v9470_v19 = vld [vmem:[#allocation17 + $0x740] sm:$0xf] }
  0xda   :  { %631 = vmatpush.msrb.mxu0 %v529_v57  ;;  %710 = vmatpush.msra.mxu2 %v687_v23  ;;  %v9280_v57 = vld [vmem:[#allocation17 + $0x5e0] sm:$0xf0]  ;;  %v9182_v23 = vld [vmem:[#allocation17 + $0x500] sm:$0xf] }
  0xdb   :  { %9042 = vmatmul.msk.f32.vlgmr.msra.gmra.mxu0 %vm390_vm3, %v367_v29  ;;  %658 = vmatpush.msra.mxu1 %v522_v10  ;;  %v683_v29 = vld [vmem:[#allocation13 + $0x260] sm:$0xff]  ;;  %v9283_v6 = vor.u32 %v13332_v56, %v9280_v57  ;;  %v13300_v53 = vld [vmem:[#allocation17 + $0x4c4] sm:$0xf] }
  0xdc   :  { %632 = vmatpush.msrb.mxu0 %v527_v61  ;;  %730 = vmatpush.msrb.mxu3 %v694_v12  ;;  %v9536_v61 = vld [vmem:[#allocation17 + $0x7e0] sm:$0xf0]  ;;  %v13320_v10 = vld [vmem:[#allocation17 + $0x55c] sm:$0xf0] }
  0xdd   :  { %659 = vmatpush.msra.mxu1 %v520_v14  ;;  %711 = vmatpush.msra.mxu2 %v685_v27  ;;  %v9539_v7 = vor.u32 %v13396_v60, %v9536_v61  ;;  %v9504_v14 = vld [vmem:[#allocation17 + $0x7a0] sm:$0xf0]  ;;  %v13312_v27 = vld [vmem:[#allocation17 + $0x51c] sm:$0xf0] }
  0xde   :  { %9045 = vmatmul.msk.f32.gmra.mxu1 %vm390_vm3, %v372_v30  ;;  %633 = vmatpush.msrb.mxu0 %v525_v1  ;;  %v684_v30 = vld [vmem:[#allocation13 + $0x268] sm:$0xff]  ;;  %v9247_v1 = vor.u32 %v13328_v63, %v9246_v62  ;;  %v13296_v60 = vld [vmem:[#allocation17 + $0x49c] sm:$0xf0]  ;;  %v9407_v62 = vor.u32 %v13368_v52, %v9406_v51 }
  0xdf   :  { %731 = vmatpush.msrb.mxu3 %v692_v16  ;;  %660 = vmatpush.msra.mxu1 %v518_v18  ;;  %v9152_v55 = vld [vmem:[#allocation17 + $0x4e0] sm:$0xf0]  ;;  %v13352_v16 = vld [vmem:[#allocation17 + $0x65c] sm:$0xf0]  ;;  %v9510_v51 = vld [vmem:[#allocation17 + $0x788] sm:$0xf] }
  0xe0   :  { %634 = vmatpush.msrb.mxu0 %v523_v5  ;;  %712 = vmatpush.msra.mxu2 %v683_v29  ;;  %v9216_v29 = vld [vmem:[#allocation17 + $0x560] sm:$0xf0]  ;;  %v9155_v63 = vor.u32 %v13300_v53, %v9152_v55  ;;  %v13393_v52 = vld [vmem:[#allocation17 + $0x7a4] sm:$0xf0]  ;;  %v13325_v53 = vld [vmem:[#allocation17 + $0x58c] sm:$0xf] }
  0xe1   :  { %732 = vmatpush.msrb.mxu3 %v690_v20  ;;  %661 = vmatpush.msra.mxu1 %v516_v22  ;;  %v13384_v22 = vld [vmem:[#allocation17 + $0x75c] sm:$0xf0]  ;;  %v13364_v56 = vld [vmem:[#allocation17 + $0x6c4] sm:$0xf]  ;;  %v9256_v55 = vld [vmem:[#allocation17 + $0x5a8] sm:$0xf0] }
  0xe2   :  { %635 = vmatpush.msrb.mxu0 %v521_v9  ;;  %713 = vmatpush.msra.mxu2 %v681_v31  ;;  %v9214_v9 = vld [vmem:[#allocation17 + $0x540] sm:$0xf]  ;;  %v9472_v31 = vld [vmem:[#allocation17 + $0x760] sm:$0xf0] }
  0xe3   :  { %9043 = vmatmul.msk.f32.gmra.mxu0 %vm390_vm3, %v365_v32  ;;  %733 = vmatpush.msrb.mxu3 %v688_v24  ;;  %v682_v32 = vld [vmem:[#allocation13 + $0x258] sm:$0xff]  ;;  %v9215_v18 = vor.u32 %v13320_v10, %v9214_v9  ;;  %v9251_v24 = vor.u32 %v13324_v4, %v9248_v8  ;;  %v9408_v57 = vld [vmem:[#allocation17 + $0x6e0] sm:$0xf0] }
  0xe4   :  { %636 = vmatpush.msrb.mxu0 %v519_v13  ;;  %662 = vmatpush.msra.mxu1 %v514_v26  ;;  %v13388_v13 = vld [vmem:[#allocation17 + $0x784] sm:$0xf] }
  0xe5   :  { %734 = vmatpush.msrb.mxu3 %v686_v28  ;;  %714 = vmatpush.msra.mxu2 %v679_v34  ;;  %v13316_v26 = vld [vmem:[#allocation17 + $0x544] sm:$0xf] }
  0xe6   :  { %637 = vmatpush.msrb.mxu0 %v517_v17  ;;  %1698 = vmatpush.bf16.msrb.mxu1 %v9535_v59  ;;  %v9503_v17 = vor.u32 %v13392_v3, %v9502_v2  ;;  %v9118_v59 = vld [vmem:[#allocation17 + $0x480] sm:$0xf]  ;;  %v13292_v4 = vld [vmem:[#allocation17 + $0x484] sm:$0xf] }
  0xe7   :  { %735 = vmatpush.msrb.mxu3 %v684_v30  ;;  %715 = vmatpush.msra.mxu2 %v677_v36  ;;  %v13380_v30 = vld [vmem:[#allocation17 + $0x744] sm:$0xf]  ;;  %v13376_v36 = vld [vmem:[#allocation17 + $0x71c] sm:$0xf0]  ;;  %v9119_v2 = vor.u32 %v13296_v60, %v9118_v59  ;;  %v9222_v60 = vld [vmem:[#allocation17 + $0x548] sm:$0xf] }
  0xe8   :  { %638 = vmatpush.msrb.mxu0 %v515_v21  ;;  %v13360_v3 = vld [vmem:[#allocation17 + $0x69c] sm:$0xf0]  ;;  %v9376_v8 = vld [vmem:[#allocation17 + $0x6a0] sm:$0xf0] }
  0xe9   :  { %736 = vmatpush.msrb.mxu3 %v682_v32  ;;  %716 = vmatpush.msra.mxu2 %v675_v38  ;;  %v9471_v32 = vor.u32 %v13384_v22, %v9470_v19  ;;  %v9219_v38 = vor.u32 %v13316_v26, %v9216_v29  ;;  %v9344_v22 = vld [vmem:[#allocation17 + $0x660] sm:$0xf0]  ;;  %v9310_v26 = vld [vmem:[#allocation17 + $0x600] sm:$0xf] }
  0xea   :  { %639 = vmatpush.msrb.mxu0 %v513_v25  ;;  %v9507_v25 = vor.u32 %v13388_v13, %v9504_v14  ;;  %1699 = vmatpush.bf16.msrb.mxu1 %v9503_v17  ;;  %v13288_v13 = vld [vmem:[#allocation17 + $0x45c] sm:$0xf0]  ;;  %v13284_v17 = vld [vmem:[#allocation17 + $0x444] sm:$0xf] }
  0xeb   :  { %737 = vmatpush.msrb.mxu3 %v680_v35  ;;  %717 = vmatpush.msra.mxu2 %v673_v40  ;;  %v9438_v35 = vld [vmem:[#allocation17 + $0x700] sm:$0xf]  ;;  %v9184_v40 = vld [vmem:[#allocation17 + $0x520] sm:$0xf0] }
  0xec   :  { %1685 = vmatpush.bf16.msra.mxu0 %v9279_v54  ;;  %v9342_v14 = vld [vmem:[#allocation17 + $0x640] sm:$0xf]  ;;  %v13276_v29 = vld [vmem:[#allocation17 + $0x404] sm:$0xf] }
  0xed   :  { %738 = vmatpush.msrb.mxu3 %v678_v37  ;;  %718 = vmatpush.msra.mxu2 %v671_v43  ;;  %v13308_v37 = vld [vmem:[#allocation17 + $0x504] sm:$0xf]  ;;  %v9343_v19 = vor.u32 %v13352_v16, %v9342_v14  ;;  %v9192_v14 = vld [vmem:[#allocation17 + $0x528] sm:$0xf0] }
  0xee   :  { %1700 = vmatpush.bf16.msrb.mxu1 %v9471_v32 }
  0xef   :  { %739 = vmatpush.msrb.mxu3 %v676_v39  ;;  %v9475_v39 = vor.u32 %v13380_v30, %v9472_v31  ;;  %v9056_v30 = vld [vmem:[#allocation17 + $0x420] sm:$0xf0] }
  0xf0   :  { %1686 = vmatpush.bf16.msra.mxu0 %v9247_v1  ;;  %v9411_v1 = vor.u32 %v13364_v56, %v9408_v57  ;;  %v9059_v32 = vor.u32 %v13276_v29, %v9056_v30  ;;  %v13389_v56 = vld [vmem:[#allocation17 + $0x78c] sm:$0xf] }
  0xf1   :  { %740 = vmatpush.msrb.mxu3 %v674_v41  ;;  %v9150_v41 = vld [vmem:[#allocation17 + $0x4c0] sm:$0xf]  ;;  %v9512_v57 = vld [vmem:[#allocation17 + $0x7a8] sm:$0xf0] }
  0xf2   :  { %v9515_v59 = vor.u32 %v13389_v56, %v9512_v57  ;;  %v13365_v29 = vld [vmem:[#allocation17 + $0x6cc] sm:$0xf]  ;;  %v9062_v56 = vld [vmem:[#allocation17 + $0x408] sm:$0xf] }
  0xf3   :  { %741 = vmatpush.msrb.mxu3 %v672_v44  ;;  %v13372_v44 = vld [vmem:[#allocation17 + $0x704] sm:$0xf]  ;;  %v9416_v30 = vld [vmem:[#allocation17 + $0x6e8] sm:$0xf0]  ;;  %v13281_v57 = vld [vmem:[#allocation17 + $0x424] sm:$0xf0] }
  0xf4   :  { %1687 = vmatpush.bf16.msra.mxu0 %v9215_v18  ;;  %v9088_v18 = vld [vmem:[#allocation17 + $0x460] sm:$0xf0] }
 0x148   :  { %v412_v33 = vpop.f32.mrf.mxu0 }
 0x150   :  { %v415_v42 = vpop.f32.mrf.mxu0 }
 0x153   :  { %v477_v45 = vpop.f32.mrf.mxu1 }
 0x158   :  { %v440_v46 = vpop.f32.mrf.mxu0 }
 0x159   :  { %v441_v47 = vadd.f32 %v440_v46, %v412_v33  ;;  %v9183_v33 = vor.u32 %v13312_v27, %v9182_v23 }
 0x15b   :  { %v483_v50 = vadd.f32 %v477_v45, %v441_v47  ;;  %v480_v15 = vpop.f32.mrf.mxu1  ;;  %v9440_v45 = vld [vmem:[#allocation17 + $0x720] sm:$0xf0]  ;;  %1688 = vmatpush.bf16.msra.mxu0 %v9183_v33  ;;  %v9439_v47 = vor.u32 %v13376_v36, %v9438_v35  ;;  %v9286_v35 = vld [vmem:[#allocation17 + $0x5c8] sm:$0xf] }
 0x15c   :  { %v13340_v33 = vld [vmem:[#allocation17 + $0x604] sm:$0xf] }
 0x15d   :  { %v489_v58 = vmul.f32 %v14193_v48, %v483_v50  ;;  %v9443_v50 = vor.u32 %v13372_v44, %v9440_v45  ;;  %1701 = vmatpush.bf16.msrb.mxu1 %v9439_v47  ;;  %v13397_v44 = vld [vmem:[#allocation17 + $0x7cc] sm:$0xf]  ;;  %v9254_v47 = vld [vmem:[#allocation17 + $0x588] sm:$0xf] }
 0x15f   :  { %v495_v0 = vadd.f32 %v14194_v49, %v489_v58 }
 0x160   :  { %v443_v5 = vpop.f32.mrf.mxu0 }
 0x161   :  { %v14689_v11 = vmax.f32 %v495_v0, 0.0  ;;  %v444_v12 = vadd.f32 %v443_v5, %v415_v42  ;;  %v13304_v42 = vld [vmem:[#allocation17 + $0x4dc] sm:$0xf0]  ;;  %v9120_v5 = vld [vmem:[#allocation17 + $0x4a0] sm:$0xf0]  ;;  %1702 = vmatpush.bf16.msrb.mxu1 %v9407_v62 }
 0x162   :  { %v9374_v0 = vld [vmem:[#allocation17 + $0x680] sm:$0xf]  ;;  %v9123_v10 = vor.u32 %v13292_v4, %v9120_v5  ;;  %v9478_v62 = vld [vmem:[#allocation17 + $0x748] sm:$0xf]  ;;  %v13381_v5 = vld [vmem:[#allocation17 + $0x74c] sm:$0xf] }
 0x163   :  { %v484_v20 = vadd.f32 %v480_v15, %v444_v12  ;;  %594 = vmatmul.f32.vlgmr.msrb.gmra.mxu2 %v14689_v11  ;;  %617 = vmatmul.f32.vlgmr.msra.gmra.mxu3 %v14689_v11  ;;  %v501_v21 = vrot.slane %v14689_v11, 6  ;;  %v507_v61 = vrot.slane %v14689_v11, 2  ;;  %v9375_v9 = vor.u32 %v13360_v3, %v9374_v0  ;;  %v9086_v12 = vld [vmem:[#allocation17 + $0x440] sm:$0xf]  ;;  %v13385_v0 = vld [vmem:[#allocation17 + $0x764] sm:$0xf0] }
 0x164   :  { %1711 = vmatpush.bf16.msrb.mxu2 %v9283_v6  ;;  %1724 = vmatpush.bf16.msra.mxu3 %v9539_v7  ;;  %v13356_v7 = vld [vmem:[#allocation17 + $0x684] sm:$0xf]  ;;  %v9087_v15 = vor.u32 %v13288_v13, %v9086_v12  ;;  %v9479_v3 = vor.u32 %v13385_v0, %v9478_v62  ;;  %v13377_v12 = vld [vmem:[#allocation17 + $0x724] sm:$0xf0]  ;;  %v13309_v13 = vld [vmem:[#allocation17 + $0x50c] sm:$0xf] }
 0x165   :  { %v490_v28 = vmul.f32 %v14193_v48, %v484_v20  ;;  %9047 = vmatmul.msk.f32.vlgmr.msrb.gmra.mxu0 %vm14692_vm4, %v501_v21  ;;  %9049 = vmatmul.msk.f32.vlgmr.msra.gmra.mxu1 %vm14692_vm4, %v501_v21  ;;  %v9151_v48 = vor.u32 %v13304_v42, %v9150_v41  ;;  %v9379_v11 = vor.u32 %v13356_v7, %v9376_v8  ;;  %v13333_v42 = vld [vmem:[#allocation17 + $0x5cc] sm:$0xf]  ;;  %v9190_v8 = vld [vmem:[#allocation17 + $0x508] sm:$0xf] }
 0x166   :  { %1703 = vmatpush.bf16.msrb.mxu1 %v9375_v9  ;;  %v9091_v20 = vor.u32 %v13284_v17, %v9088_v18  ;;  %v13313_v9 = vld [vmem:[#allocation17 + $0x524] sm:$0xf0]  ;;  %v9195_v16 = vor.u32 %v13309_v13, %v9192_v14  ;;  %v13373_v17 = vld [vmem:[#allocation17 + $0x70c] sm:$0xf] }
 0x167   :  { %v496_v34 = vadd.f32 %v14194_v49, %v490_v28  ;;  %v9187_v49 = vor.u32 %v13308_v37, %v9184_v40  ;;  %1689 = vmatpush.bf16.msra.mxu0 %v9151_v48  ;;  %v13344_v28 = vld [vmem:[#allocation17 + $0x61c] sm:$0xf0]  ;;  %v13337_v37 = vld [vmem:[#allocation17 + $0x5e4] sm:$0xf0]  ;;  %v9448_v18 = vld [vmem:[#allocation17 + $0x728] sm:$0xf0] }
 0x168   :  { %1712 = vmatpush.bf16.msrb.mxu2 %v9251_v24  ;;  %1725 = vmatpush.bf16.msra.mxu3 %v9507_v25  ;;  %v9054_v24 = vld [vmem:[#allocation17 + $0x400] sm:$0xf]  ;;  %v9311_v31 = vor.u32 %v13344_v28, %v9310_v26  ;;  %v9287_v40 = vor.u32 %v13337_v37, %v9286_v35  ;;  %v13329_v48 = vld [vmem:[#allocation17 + $0x5a4] sm:$0xf0]  ;;  %v13301_v26 = vld [vmem:[#allocation17 + $0x4cc] sm:$0xf] }
 0x169   :  { %v498_v43 = vmax.f32 %v496_v34, 0.0  ;;  %v13280_v25 = vld [vmem:[#allocation17 + $0x41c] sm:$0xf0]  ;;  %v9312_v34 = vld [vmem:[#allocation17 + $0x620] sm:$0xf0] }
 0x16a   :  { %1704 = vmatpush.bf16.msrb.mxu1 %v9343_v19  ;;  %v9055_v27 = vor.u32 %v13280_v25, %v9054_v24  ;;  %v9315_v36 = vor.u32 %v13340_v33, %v9312_v34  ;;  %v9451_v19 = vor.u32 %v13373_v17, %v9448_v18  ;;  %v13369_v24 = vld [vmem:[#allocation17 + $0x6e4] sm:$0xf0]  ;;  %v13293_v37 = vld [vmem:[#allocation17 + $0x48c] sm:$0xf] }
 0x16b   :  { %597 = vmatmul.f32.gmra.mxu2 %v498_v43  ;;  %620 = vmatmul.f32.gmra.mxu3 %v498_v43  ;;  %v502_v46 = vrot.slane %v498_v43, 6  ;;  %v508_v58 = vrot.slane %v498_v43, 2  ;;  %v9288_v43 = vld [vmem:[#allocation17 + $0x5e8] sm:$0xf0]  ;;  %v13297_v33 = vld [vmem:[#allocation17 + $0x4a4] sm:$0xf0] }
 0x16c   :  { %1713 = vmatpush.bf16.msrb.mxu2 %v9219_v38  ;;  %1726 = vmatpush.bf16.msra.mxu3 %v9475_v39  ;;  %v9542_v38 = vld [vmem:[#allocation17 + $0x7c8] sm:$0xf]  ;;  %v9291_v45 = vor.u32 %v13333_v42, %v9288_v43  ;;  %v9384_v42 = vld [vmem:[#allocation17 + $0x6a8] sm:$0xf0] }
 0x16d   :  { %v503_v54 = vsel %vm223_vm0, %v501_v21, %v502_v46  ;;  %v509_v6 = vsel %vm229_vm1, %v507_v61, %v508_v58  ;;  %1690 = vmatpush.bf16.msra.mxu0 %v9119_v2  ;;  %v13348_v21 = vld [vmem:[#allocation17 + $0x644] sm:$0xf]  ;;  %v13401_v39 = vld [vmem:[#allocation17 + $0x7e4] sm:$0xf0]  ;;  %v9544_v46 = vld [vmem:[#allocation17 + $0x7e8] sm:$0xf0] }
 0x16e   :  { %643 = vmatmul.f32.gmra.mxu0 %v503_v54  ;;  %666 = vmatmul.f32.gmra.mxu1 %v503_v54  ;;  %v9347_v23 = vor.u32 %v13348_v21, %v9344_v22  ;;  %v9543_v41 = vor.u32 %v13401_v39, %v9542_v38  ;;  %v9511_v54 = vor.u32 %v13393_v52, %v9510_v51  ;;  %v13321_v61 = vld [vmem:[#allocation17 + $0x564] sm:$0xf0]  ;;  %v9224_v2 = vld [vmem:[#allocation17 + $0x568] sm:$0xf0] }
 0x16f   :  { %1705 = vmatpush.bf16.msrb.mxu1 %v9311_v31  ;;  %v13305_v21 = vld [vmem:[#allocation17 + $0x4e4] sm:$0xf0]  ;;  %v9419_v31 = vor.u32 %v13365_v29, %v9416_v30  ;;  %v9128_v38 = vld [vmem:[#allocation17 + $0x4a8] sm:$0xf0] }
 0x170   :  { %1714 = vmatpush.bf16.msrb.mxu2 %v9187_v49  ;;  %1727 = vmatpush.bf16.msra.mxu3 %v9443_v50  ;;  %v9547_v49 = vor.u32 %v13397_v44, %v9544_v46  ;;  %v9255_v50 = vor.u32 %v13329_v48, %v9254_v47  ;;  %v9382_v34 = vld [vmem:[#allocation17 + $0x688] sm:$0xf]  ;;  %v9064_v62 = vld [vmem:[#allocation17 + $0x428] sm:$0xf0] }
 0x171   :  { %1691 = vmatpush.bf16.msra.mxu0 %v9087_v15  ;;  %v9094_v44 = vld [vmem:[#allocation17 + $0x448] sm:$0xf] }
 0x172   :  { %v9350_v46 = vld [vmem:[#allocation17 + $0x648] sm:$0xf] }
 0x173   :  { %719 = vmatmul.f32.vlgmr.msra.gmra.mxu2 %v509_v6  ;;  %742 = vmatmul.f32.vlgmr.msrb.gmra.mxu3 %v509_v6  ;;  %v9480_v6 = vld [vmem:[#allocation17 + $0x768] sm:$0xf0]  ;;  %v13353_v48 = vld [vmem:[#allocation17 + $0x664] sm:$0xf0] }
 0x174   :  { %1715 = vmatpush.bf16.msrb.mxu2 %v9155_v63  ;;  %1728 = vmatpush.bf16.msra.mxu3 %v9411_v1  ;;  %v9223_v63 = vor.u32 %v13321_v61, %v9222_v60  ;;  %v13317_v1 = vld [vmem:[#allocation17 + $0x54c] sm:$0xf]  ;;  %v9483_v7 = vor.u32 %v13381_v5, %v9480_v6  ;;  %v9351_v51 = vor.u32 %v13353_v48, %v9350_v46  ;;  %v13345_v60 = vld [vmem:[#allocation17 + $0x624] sm:$0xf0] }
 0x175   :  { %1692 = vmatpush.bf16.msra.mxu0 %v9055_v27  ;;  %1750 = vmatpush.bf16.msra.mxu1 %v9543_v41  ;;  %v9227_v4 = vor.u32 %v13317_v1, %v9224_v2  ;;  %v9160_v27 = vld [vmem:[#allocation17 + $0x4e8] sm:$0xf0] }
 0x176   :  { %v9163_v28 = vor.u32 %v13301_v26, %v9160_v27  ;;  %v13357_v41 = vld [vmem:[#allocation17 + $0x68c] sm:$0xf] }
 0x177   :  { %v9387_v43 = vor.u32 %v13357_v41, %v9384_v42  ;;  %v13277_v61 = vld [vmem:[#allocation17 + $0x40c] sm:$0xf]  ;;  %v13338_v42 = vld [vmem:[#allocation17 + $0x5ec] sm:$0xf0] }
 0x178   :  { %1716 = vmatpush.bf16.msrb.mxu2 %v9123_v10  ;;  %1729 = vmatpush.bf16.msra.mxu3 %v9379_v11  ;;  %v9446_v10 = vld [vmem:[#allocation17 + $0x708] sm:$0xf]  ;;  %v9191_v11 = vor.u32 %v13313_v9, %v9190_v8  ;;  %v9067_v0 = vor.u32 %v13277_v61, %v9064_v62  ;;  %v13341_v1 = vld [vmem:[#allocation17 + $0x60c] sm:$0xf] }
 0x179   :  { %1737 = vmatpush.bf16.msrb.mxu0 %v9287_v40  ;;  %1751 = vmatpush.bf16.msra.mxu1 %v9511_v54  ;;  %v9447_v15 = vor.u32 %v13377_v12, %v9446_v10  ;;  %v9131_v40 = vor.u32 %v13293_v37, %v9128_v38  ;;  %v9352_v54 = vld [vmem:[#allocation17 + $0x668] sm:$0xf0]  ;;  %v753_v10 = vld [vmem:[#allocation14] sm:$0x3]  ;;  %v9294_v37 = vld [vmem:[#allocation17 + $0x5d0] sm:$0xf] }
 0x17a   :  { %v9320_v2 = vld [vmem:[#allocation17 + $0x628] sm:$0xf0]  ;;  %v755_v14 = vperm.slane %v753_v10, 0 }
 0x17b   :  { %9050 = vmatmul.msk.f32.gmra.mxu2 %vm229_vm1, %v508_v58  ;;  %9051 = vmatmul.msk.f32.gmra.mxu3 %vm229_vm1, %v508_v58  ;;  %v9259_v58 = vor.u32 %v13325_v53, %v9256_v55  ;;  %v13349_v53 = vld [vmem:[#allocation17 + $0x64c] sm:$0xf]  ;;  %v9323_v5 = vor.u32 %v13341_v1, %v9320_v2  ;;  %v13326_v1 = vld [vmem:[#allocation17 + $0x594] sm:$0xf] }
 0x17c   :  { %1717 = vmatpush.bf16.msrb.mxu2 %v9091_v20  ;;  %1730 = vmatpush.bf16.msra.mxu3 %v9347_v23  ;;  %v9158_v20 = vld [vmem:[#allocation17 + $0x4c8] sm:$0xf]  ;;  %v9355_v55 = vor.u32 %v13349_v53, %v9352_v54  ;;  %v9295_v53 = vor.u32 %v13338_v42, %v9294_v37  ;;  %v13370_v37 = vld [vmem:[#allocation17 + $0x6ec] sm:$0xf0] }
 0x17d   :  { %1738 = vmatpush.bf16.msrb.mxu0 %v9255_v50  ;;  %1752 = vmatpush.bf16.msra.mxu1 %v9479_v3  ;;  %v9159_v22 = vor.u32 %v13305_v21, %v9158_v20  ;;  %v9414_v23 = vld [vmem:[#allocation17 + $0x6c8] sm:$0xf]  ;;  %v9096_v50 = vld [vmem:[#allocation17 + $0x468] sm:$0xf0] }
 0x17e   :  { %v9415_v25 = vor.u32 %v13369_v24, %v9414_v23 }
 0x180   :  { %1718 = vmatpush.bf16.msrb.mxu2 %v9059_v32  ;;  %1731 = vmatpush.bf16.msra.mxu3 %v9315_v36  ;;  %v9126_v32 = vld [vmem:[#allocation17 + $0x488] sm:$0xf] }
 0x181   :  { %1739 = vmatpush.bf16.msrb.mxu0 %v9223_v63  ;;  %1753 = vmatpush.bf16.msra.mxu1 %v9447_v15  ;;  %v9127_v35 = vor.u32 %v13297_v33, %v9126_v32  ;;  %v13361_v36 = vld [vmem:[#allocation17 + $0x6a4] sm:$0xf0]  ;;  %v756_v15 = vperm.slane %v753_v10, 1 }
 0x182   :  { %v9383_v39 = vor.u32 %v13361_v36, %v9382_v34 }
 0x184   :  { %1763 = vmatpush.bf16.msra.mxu2 %v9291_v45  ;;  %1776 = vmatpush.bf16.msrb.mxu3 %v9547_v49  ;;  %v13289_v45 = vld [vmem:[#allocation17 + $0x464] sm:$0xf0]  ;;  %v13285_v49 = vld [vmem:[#allocation17 + $0x44c] sm:$0xf] }
 0x185   :  { %1740 = vmatpush.bf16.msrb.mxu0 %v9191_v11  ;;  %1754 = vmatpush.bf16.msra.mxu1 %v9415_v25  ;;  %v9095_v47 = vor.u32 %v13289_v45, %v9094_v44  ;;  %v9099_v52 = vor.u32 %v13285_v49, %v9096_v50  ;;  %v763_v11 = vld [vmem:[#allocation16] sm:$0x3]  ;;  %v13402_v44 = vld [vmem:[#allocation17 + $0x7ec] sm:$0xf0]  ;;  %v13334_v45 = vld [vmem:[#allocation17 + $0x5d4] sm:$0xf] }
 0x186   :  { %v766_v21 = vperm.slane %v763_v11, 1  ;;  %v9296_v50 = vld [vmem:[#allocation17 + $0x5f0] sm:$0xf0] }
 0x187   :  { %v9299_v61 = vor.u32 %v13334_v45, %v9296_v50  ;;  %v13298_v45 = vld [vmem:[#allocation17 + $0x4ac] sm:$0xf0] }
 0x188   :  { %1764 = vmatpush.bf16.msra.mxu2 %v9259_v58  ;;  %1777 = vmatpush.bf16.msrb.mxu3 %v9515_v59  ;;  %v9318_v58 = vld [vmem:[#allocation17 + $0x608] sm:$0xf]  ;;  %v9063_v59 = vor.u32 %v13281_v57, %v9062_v56  ;;  %v9390_v50 = vld [vmem:[#allocation17 + $0x690] sm:$0xf] }
 0x189   :  { %1741 = vmatpush.bf16.msrb.mxu0 %v9159_v22  ;;  %1755 = vmatpush.bf16.msra.mxu1 %v9383_v39  ;;  %v9319_v63 = vor.u32 %v13345_v60, %v9318_v58  ;;  %v13330_v60 = vld [vmem:[#allocation17 + $0x5ac] sm:$0xf0] }
 0x18c   :  { %1765 = vmatpush.bf16.msra.mxu2 %v9227_v4  ;;  %1778 = vmatpush.bf16.msrb.mxu3 %v9483_v7 }
 0x18d   :  { %1742 = vmatpush.bf16.msrb.mxu0 %v9127_v35  ;;  %1756 = vmatpush.bf16.msra.mxu1 %v9351_v51  ;;  %v13398_v51 = vld [vmem:[#allocation17 + $0x7d4] sm:$0xf] }
 0x190   :  { %1766 = vmatpush.bf16.msra.mxu2 %v9195_v16  ;;  %1779 = vmatpush.bf16.msrb.mxu3 %v9451_v19  ;;  %v765_v19 = vperm.slane %v763_v11, 0 }
 0x191   :  { %1743 = vmatpush.bf16.msrb.mxu0 %v9095_v47  ;;  %1757 = vmatpush.bf16.msra.mxu1 %v9319_v63  ;;  %v9518_v63 = vld [vmem:[#allocation17 + $0x790] sm:$0xf] }
 0x194   :  { %1767 = vmatpush.bf16.msra.mxu2 %v9163_v28  ;;  %1780 = vmatpush.bf16.msrb.mxu3 %v9419_v31 }
 0x195   :  { %1744 = vmatpush.bf16.msrb.mxu0 %v9063_v59 }
 0x198   :  { %1768 = vmatpush.bf16.msra.mxu2 %v9131_v40  ;;  %1781 = vmatpush.bf16.msrb.mxu3 %v9387_v43  ;;  %v9550_v43 = vld [vmem:[#allocation17 + $0x7d0] sm:$0xf] }
 0x199   :  { %v9551_v54 = vor.u32 %v13402_v44, %v9550_v43  ;;  %v9134_v44 = vld [vmem:[#allocation17 + $0x490] sm:$0xf] }
 0x19c   :  { %1769 = vmatpush.bf16.msra.mxu2 %v9099_v52  ;;  %1782 = vmatpush.bf16.msrb.mxu3 %v9355_v55  ;;  %v9552_v52 = vld [vmem:[#allocation17 + $0x7f0] sm:$0xf0]  ;;  %v9262_v55 = vld [vmem:[#allocation17 + $0x590] sm:$0xf] }
 0x19d   :  { %v9555_v62 = vor.u32 %v13398_v51, %v9552_v52  ;;  %v13362_v51 = vld [vmem:[#allocation17 + $0x6ac] sm:$0xf0]  ;;  %v13294_v52 = vld [vmem:[#allocation17 + $0x494] sm:$0xf] }
 0x1a0   :  { %1770 = vmatpush.bf16.msra.mxu2 %v9067_v0  ;;  %1783 = vmatpush.bf16.msrb.mxu3 %v9323_v5  ;;  %v13394_v0 = vld [vmem:[#allocation17 + $0x7ac] sm:$0xf0]  ;;  %v9520_v5 = vld [vmem:[#allocation17 + $0x7b0] sm:$0xf0] }
 0x1e2   :  { %v641_v8 = vpop.f32.mrf.mxu0  ;;  %v664_v9 = vpop.f32.mrf.mxu1 }
 0x1e6   :  { %v595_v3 = vpop.f32.mrf.mxu2  ;;  %v618_v4 = vpop.f32.mrf.mxu3 }
 0x1e7   :  { %v642_v12 = vadd.f32 %v641_v8, %v595_v3  ;;  %v665_v13 = vadd.f32 %v664_v9, %v618_v4  ;;  %v9264_v3 = vld [vmem:[#allocation17 + $0x5b0] sm:$0xf0]  ;;  %v9230_v8 = vld [vmem:[#allocation17 + $0x550] sm:$0xf] }
 0x1e8   :  { %v13390_v4 = vld [vmem:[#allocation17 + $0x794] sm:$0xf]  ;;  %v13322_v9 = vld [vmem:[#allocation17 + $0x56c] sm:$0xf0]  ;;  %v9267_v10 = vor.u32 %v13326_v1, %v9264_v3 }
 0x1e9   :  { %v9523_v11 = vor.u32 %v13390_v4, %v9520_v5  ;;  %v13354_v1 = vld [vmem:[#allocation17 + $0x66c] sm:$0xf0]  ;;  %v13286_v3 = vld [vmem:[#allocation17 + $0x454] sm:$0xf] }
 0x1ea   :  { %v9104_v4 = vld [vmem:[#allocation17 + $0x470] sm:$0xf0] }
 0x1eb   :  { %v644_v26 = vpop.f32.mrf.mxu0  ;;  %v667_v27 = vpop.f32.mrf.mxu1  ;;  %v13350_v5 = vld [vmem:[#allocation17 + $0x654] sm:$0xf] }
 0x1ee   :  { %v598_v6 = vpop.f32.mrf.mxu2  ;;  %v621_v7 = vpop.f32.mrf.mxu3 }
 0x1ef   :  { %v645_v28 = vadd.f32 %v644_v26, %v598_v6  ;;  %v668_v29 = vadd.f32 %v667_v27, %v621_v7  ;;  %v9263_v6 = vor.u32 %v13330_v60, %v9262_v55  ;;  %v9519_v7 = vor.u32 %v13394_v0, %v9518_v63  ;;  %v13310_v26 = vld [vmem:[#allocation17 + $0x514] sm:$0xf]  ;;  %v9102_v60 = vld [vmem:[#allocation17 + $0x450] sm:$0xf] }
 0x1f0   :  { %v9200_v27 = vld [vmem:[#allocation17 + $0x530] sm:$0xf0]  ;;  %v9358_v0 = vld [vmem:[#allocation17 + $0x650] sm:$0xf] }
 0x1f1   :  { %v9392_v55 = vld [vmem:[#allocation17 + $0x6b0] sm:$0xf0] }
 0x1f6   :  { %v720_v16 = vpop.f32.mrf.mxu2  ;;  %v743_v17 = vpop.f32.mrf.mxu3 }
 0x1f7   :  { %v749_v18 = vadd.f32 %v720_v16, %v642_v12  ;;  %v750_v20 = vadd.f32 %v743_v17, %v665_v13  ;;  %v9486_v12 = vld [vmem:[#allocation17 + $0x750] sm:$0xf]  ;;  %v13382_v16 = vld [vmem:[#allocation17 + $0x754] sm:$0xf] }
 0x1f8   :  { %v13386_v13 = vld [vmem:[#allocation17 + $0x76c] sm:$0xf0]  ;;  %v9488_v17 = vld [vmem:[#allocation17 + $0x770] sm:$0xf0] }
 0x1f9   :  { %v759_v22 = vmul.f32 %v755_v14, %v749_v18  ;;  %v760_v23 = vmul.f32 %v756_v15, %v750_v20  ;;  %v9231_v18 = vor.u32 %v13322_v9, %v9230_v8  ;;  %v9198_v20 = vld [vmem:[#allocation17 + $0x510] sm:$0xf]  ;;  %v9359_v9 = vor.u32 %v13354_v1, %v9358_v0  ;;  %v9462_v1 = vld [vmem:[#allocation17 + $0x718] sm:$0xf] }
 0x1fb   :  { %v769_v24 = vadd.f32 %v765_v19, %v759_v22  ;;  %v770_v25 = vadd.f32 %v766_v21, %v760_v23  ;;  %v9491_v23 = vor.u32 %v13382_v16, %v9488_v17  ;;  %v9072_v16 = vld [vmem:[#allocation17 + $0x430] sm:$0xf0] }
 0x1fc   :  { %v13342_v17 = vld [vmem:[#allocation17 + $0x614] sm:$0xf] }
 0x1fd   :  { %v773_v30 = vmax.f32 %v769_v24, 0.0  ;;  %v774_v31 = vmax.f32 %v770_v25, 0.0  ;;  %v9454_v24 = vld [vmem:[#allocation17 + $0x710] sm:$0xf] }
 0x1fe   :  { %v723_v32 = vpop.f32.mrf.mxu2  ;;  %v746_v33 = vpop.f32.mrf.mxu3  ;;  %v13378_v25 = vld [vmem:[#allocation17 + $0x72c] sm:$0xf0] }
 0x1ff   :  { %v777_v34 = vpack.c.bf16 %v774_v31, %v773_v30  ;;  %v751_v35 = vadd.f32 %v723_v32, %v645_v28  ;;  %v752_v36 = vadd.f32 %v746_v33, %v668_v29  ;;  %v13374_v28 = vld [vmem:[#allocation17 + $0x714] sm:$0xf]  ;;  %v9455_v31 = vor.u32 %v13378_v25, %v9454_v24  ;;  %v9166_v32 = vld [vmem:[#allocation17 + $0x4d0] sm:$0xf] }
 0x200   :  { %v9456_v29 = vld [vmem:[#allocation17 + $0x730] sm:$0xf0]  ;;  %v13306_v33 = vld [vmem:[#allocation17 + $0x4ec] sm:$0xf0] }
 0x201   :  { %v1037_v38 = vunpack.c.l.b16 %v777_v34  ;;  %v1038_v39 = vunpack.c.h.b16 %v777_v34  ;;  %v761_v40 = vmul.f32 %v755_v14, %v751_v35  ;;  %v762_v41 = vmul.f32 %v756_v15, %v752_v36  ;;  %v13318_v14 = vld [vmem:[#allocation17 + $0x554] sm:$0xf]  ;;  %v9422_v36 = vld [vmem:[#allocation17 + $0x6d0] sm:$0xf] }
 0x202   :  { %v9232_v15 = vld [vmem:[#allocation17 + $0x570] sm:$0xf0]  ;;  %v9203_v34 = vor.u32 %v13310_v26, %v9200_v27  ;;  %v9459_v35 = vor.u32 %v13374_v28, %v9456_v29  ;;  %v9167_v42 = vor.u32 %v13306_v33, %v9166_v32  ;;  %v9423_v43 = vor.u32 %v13370_v37, %v9422_v36  ;;  %v9304_v26 = vld [vmem:[#allocation17 + $0x5f8] sm:$0xf0]  ;;  %v9270_v33 = vld [vmem:[#allocation17 + $0x598] sm:$0xf] }
 0x203   :  { %v14708_v46 = vpack.c.b16 %v1037_v38, %v1037_v38  ;;  %v14710_v47 = vpack.c.b16 %v1038_v39, %v1038_v39  ;;  %v771_v48 = vadd.f32 %v765_v19, %v761_v40  ;;  %v772_v49 = vadd.f32 %v766_v21, %v762_v41  ;;  %v13314_v21 = vld [vmem:[#allocation17 + $0x52c] sm:$0xf0]  ;;  %v13302_v38 = vld [vmem:[#allocation17 + $0x4d4] sm:$0xf]  ;;  %v13399_v27 = vld [vmem:[#allocation17 + $0x7dc] sm:$0xf] }
 0x204   :  { %v9487_v19 = vor.u32 %v13386_v13, %v9486_v12  ;;  %v9235_v22 = vor.u32 %v13318_v14, %v9232_v15  ;;  %v9199_v30 = vor.u32 %v13314_v21, %v9198_v20  ;;  %v9168_v39 = vld [vmem:[#allocation17 + $0x4f0] sm:$0xf0]  ;;  %v13346_v12 = vld [vmem:[#allocation17 + $0x62c] sm:$0xf0]  ;;  %v9107_v13 = vor.u32 %v13286_v3, %v9104_v4  ;;  %v13339_v20 = vld [vmem:[#allocation17 + $0x5f4] sm:$0xf0] }
 0x205   :  { %v775_v56 = vmax.f32 %v771_v48, 0.0  ;;  %v776_v57 = vmax.f32 %v772_v49, 0.0  ;;  %v14713_v58 = vrot.slane %v14708_v46, 1  ;;  %v14716_v59 = vrot.slane %v14710_v47, 1  ;;  %v13366_v40 = vld [vmem:[#allocation17 + $0x6d4] sm:$0xf] }
 0x206   :  { %v9424_v41 = vld [vmem:[#allocation17 + $0x6f0] sm:$0xf0]  ;;  %v9171_v48 = vor.u32 %v13302_v38, %v9168_v39  ;;  %v9558_v21 = vld [vmem:[#allocation17 + $0x7d8] sm:$0xf]  ;;  %v9560_v28 = vld [vmem:[#allocation17 + $0x7f8] sm:$0xf0] }
 0x207   :  { %v14718_v2 = vpack.c.bf16 %v776_v57, %v775_v56  ;;  %1693 = vmatmul.bf16.vlgmr.msra.gmra.mxu0 %v14713_v58  ;;  %1706 = vmatmul.bf16.vlgmr.msrb.gmra.mxu1 %v14716_v59  ;;  %v9427_v49 = vor.u32 %v13366_v40, %v9424_v41  ;;  %v9135_v56 = vor.u32 %v13298_v45, %v9134_v44  ;;  %v13278_v15 = vld [vmem:[#allocation17 + $0x414] sm:$0xf]  ;;  %v9526_v37 = vld [vmem:[#allocation17 + $0x798] sm:$0xf]  ;;  %v13327_v39 = vld [vmem:[#allocation17 + $0x59c] sm:$0xf] }
 0x208   :  { %1719 = vmatmul.bf16.vlgmr.msrb.gmra.mxu2 %v14713_v58  ;;  %1732 = vmatmul.bf16.vlgmr.msra.gmra.mxu3 %v14716_v59  ;;  %v9391_v57 = vor.u32 %v13362_v51, %v9390_v50  ;;  %v9075_v29 = vor.u32 %v13278_v15, %v9072_v16  ;;  %v9563_v36 = vor.u32 %v13399_v27, %v9560_v28  ;;  %v13395_v38 = vld [vmem:[#allocation17 + $0x7b4] sm:$0xf0]  ;;  %v9272_v40 = vld [vmem:[#allocation17 + $0x5b8] sm:$0xf0] }
 0x209   :  { %1789 = vmatpush.bf16.msra.mxu0 %v9295_v53  ;;  %1802 = vmatpush.bf16.msrb.mxu1 %v9551_v54  ;;  %v9136_v53 = vld [vmem:[#allocation17 + $0x4b0] sm:$0xf0]  ;;  %v13391_v41 = vld [vmem:[#allocation17 + $0x79c] sm:$0xf]  ;;  %v9527_v44 = vor.u32 %v13395_v38, %v9526_v37  ;;  %v9238_v45 = vld [vmem:[#allocation17 + $0x558] sm:$0xf] }
 0x20a   :  { %1815 = vmatpush.bf16.msrb.mxu2 %v9299_v61  ;;  %1828 = vmatpush.bf16.msra.mxu3 %v9555_v62  ;;  %v13358_v54 = vld [vmem:[#allocation17 + $0x694] sm:$0xf]  ;;  %v13290_v61 = vld [vmem:[#allocation17 + $0x46c] sm:$0xf0]  ;;  %v9139_v62 = vor.u32 %v13294_v52, %v9136_v53  ;;  %v9494_v51 = vld [vmem:[#allocation17 + $0x758] sm:$0xf] }
 0x20b   :  { %v9395_v63 = vor.u32 %v13358_v54, %v9392_v55  ;;  %v9103_v8 = vor.u32 %v13290_v61, %v9102_v60  ;;  %v13387_v52 = vld [vmem:[#allocation17 + $0x774] sm:$0xf0]  ;;  %v13319_v53 = vld [vmem:[#allocation17 + $0x55c] sm:$0xf] }
 0x20c   :  { %v9240_v54 = vld [vmem:[#allocation17 + $0x578] sm:$0xf0]  ;;  %v9495_v60 = vor.u32 %v13387_v52, %v9494_v51  ;;  %v9206_v61 = vld [vmem:[#allocation17 + $0x518] sm:$0xf] }
 0x20d   :  { %1790 = vmatpush.bf16.msra.mxu0 %v9263_v6  ;;  %1803 = vmatpush.bf16.msrb.mxu1 %v9519_v7  ;;  %v9360_v6 = vld [vmem:[#allocation17 + $0x670] sm:$0xf0]  ;;  %v9070_v7 = vld [vmem:[#allocation17 + $0x410] sm:$0xf]  ;;  %v13383_v55 = vld [vmem:[#allocation17 + $0x75c] sm:$0xf] }
 0x20e   :  { %1816 = vmatpush.bf16.msrb.mxu2 %v9267_v10  ;;  %1829 = vmatpush.bf16.msra.mxu3 %v9523_v11  ;;  %v13282_v10 = vld [vmem:[#allocation17 + $0x42c] sm:$0xf0]  ;;  %v9363_v14 = vor.u32 %v13350_v5, %v9360_v6  ;;  %v13379_v3 = vld [vmem:[#allocation17 + $0x734] sm:$0xf0]  ;;  %v13311_v4 = vld [vmem:[#allocation17 + $0x51c] sm:$0xf] }
 0x20f   :  { %v9326_v11 = vld [vmem:[#allocation17 + $0x610] sm:$0xf]  ;;  %v9071_v24 = vor.u32 %v13282_v10, %v9070_v7  ;;  %v9208_v5 = vld [vmem:[#allocation17 + $0x538] sm:$0xf0]  ;;  %v9174_v10 = vld [vmem:[#allocation17 + $0x4d8] sm:$0xf] }
 0x210   :  { %v9327_v25 = vor.u32 %v13346_v12, %v9326_v11  ;;  %v13375_v6 = vld [vmem:[#allocation17 + $0x71c] sm:$0xf]  ;;  %v13307_v11 = vld [vmem:[#allocation17 + $0x4f4] sm:$0xf0]  ;;  %v9211_v12 = vor.u32 %v13311_v4, %v9208_v5  ;;  %v9792_v4 = vld [vmem:[#allocation17 + $0x1e0] sm:$0xf0] }
 0x211   :  { %1791 = vmatpush.bf16.msra.mxu0 %v9231_v18  ;;  %1804 = vmatpush.bf16.msrb.mxu1 %v9487_v19  ;;  %v9328_v18 = vld [vmem:[#allocation17 + $0x630] sm:$0xf0]  ;;  %v9302_v19 = vld [vmem:[#allocation17 + $0x5d8] sm:$0xf]  ;;  %v9464_v7 = vld [vmem:[#allocation17 + $0x738] sm:$0xf0] }
 0x212   :  { %1817 = vmatpush.bf16.msrb.mxu2 %v9235_v22  ;;  %1830 = vmatpush.bf16.msra.mxu3 %v9491_v23  ;;  %v13403_v22 = vld [vmem:[#allocation17 + $0x7f4] sm:$0xf0]  ;;  %v13335_v23 = vld [vmem:[#allocation17 + $0x5dc] sm:$0xf]  ;;  %v13268_v5 = vld [vmem:[#allocation17 + $0x3c4] sm:$0xf] }
 0x213   :  { %v9559_v32 = vor.u32 %v13403_v22, %v9558_v21  ;;  %v13371_v15 = vld [vmem:[#allocation17 + $0x6f4] sm:$0xf0]  ;;  %v13303_v16 = vld [vmem:[#allocation17 + $0x4dc] sm:$0xf] }
 0x214   :  { %v9142_v22 = vld [vmem:[#allocation17 + $0x498] sm:$0xf]  ;;  %v13295_v28 = vld [vmem:[#allocation17 + $0x49c] sm:$0xf] }
 0x215   :  { %1792 = vmatpush.bf16.msra.mxu0 %v9199_v30  ;;  %1805 = vmatpush.bf16.msrb.mxu1 %v9455_v31  ;;  %v9331_v30 = vor.u32 %v13342_v17, %v9328_v18  ;;  %v9303_v31 = vor.u32 %v13339_v20, %v9302_v19  ;;  %v9176_v17 = vld [vmem:[#allocation17 + $0x4f8] sm:$0xf0]  ;;  %v9175_v20 = vor.u32 %v13307_v11, %v9174_v10  ;;  %v13363_v27 = vld [vmem:[#allocation17 + $0x6b4] sm:$0xf0]  ;;  %v9758_v11 = vld [vmem:[#allocation17 + $0x180] sm:$0xf] }
 0x216   :  { %1818 = vmatpush.bf16.msrb.mxu2 %v9203_v34  ;;  %1831 = vmatpush.bf16.msra.mxu3 %v9459_v35  ;;  %v13331_v34 = vld [vmem:[#allocation17 + $0x5b4] sm:$0xf0]  ;;  %v9307_v35 = vor.u32 %v13335_v23, %v9304_v26  ;;  %v13367_v18 = vld [vmem:[#allocation17 + $0x6dc] sm:$0xf] }
 0x217   :  { %1745 = vmatmul.bf16.vlgmr.msrb.gmra.mxu0 %v14713_v58  ;;  %1758 = vmatmul.bf16.vlgmr.msra.gmra.mxu1 %v14716_v59  ;;  %v9432_v19 = vld [vmem:[#allocation17 + $0x6f8] sm:$0xf0]  ;;  %v13299_v23 = vld [vmem:[#allocation17 + $0x4b4] sm:$0xf0] }
 0x218   :  { %1771 = vmatmul.bf16.vlgmr.msra.gmra.mxu2 %v14713_v58  ;;  %1784 = vmatmul.bf16.vlgmr.msrb.gmra.mxu3 %v14716_v59  ;;  %v9398_v26 = vld [vmem:[#allocation17 + $0x698] sm:$0xf] }
 0x219   :  { %1793 = vmatpush.bf16.msra.mxu0 %v9167_v42  ;;  %1806 = vmatpush.bf16.msrb.mxu1 %v9423_v43  ;;  %v9528_v42 = vld [vmem:[#allocation17 + $0x7b8] sm:$0xf0]  ;;  %v9271_v43 = vor.u32 %v13331_v34, %v9270_v33  ;;  %v9399_v33 = vor.u32 %v13363_v27, %v9398_v26  ;;  %v9110_v34 = vld [vmem:[#allocation17 + $0x458] sm:$0xf]  ;;  %v9982_v27 = vld [vmem:[#allocation17 + $0x340] sm:$0xf] }
 0x21a   :  { %1819 = vmatpush.bf16.msrb.mxu2 %v9171_v48  ;;  %1832 = vmatpush.bf16.msra.mxu3 %v9427_v49  ;;  %v13323_v48 = vld [vmem:[#allocation17 + $0x574] sm:$0xf0]  ;;  %v9275_v49 = vor.u32 %v13327_v39, %v9272_v40  ;;  %v9531_v50 = vor.u32 %v13391_v41, %v9528_v42  ;;  %v13287_v40 = vld [vmem:[#allocation17 + $0x45c] sm:$0xf] }
 0x21b   :  { %v9366_v38 = vld [vmem:[#allocation17 + $0x658] sm:$0xf]  ;;  %v9112_v41 = vld [vmem:[#allocation17 + $0x478] sm:$0xf0] }
 0x21c   :  { %v13355_v39 = vld [vmem:[#allocation17 + $0x674] sm:$0xf0]  ;;  %v13351_v42 = vld [vmem:[#allocation17 + $0x65c] sm:$0xf]  ;;  %v9115_v52 = vor.u32 %v13287_v40, %v9112_v41  ;;  %v13248_v40 = vld [vmem:[#allocation17 + $0x31c] sm:$0xf0] }
 0x21d   :  { %1794 = vmatpush.bf16.msra.mxu0 %v9135_v56  ;;  %1807 = vmatpush.bf16.msrb.mxu1 %v9391_v57  ;;  %v9496_v56 = vld [vmem:[#allocation17 + $0x778] sm:$0xf0]  ;;  %v9239_v57 = vor.u32 %v13323_v48, %v9238_v45  ;;  %v9367_v48 = vor.u32 %v13355_v39, %v9366_v38  ;;  %v13347_v51 = vld [vmem:[#allocation17 + $0x634] sm:$0xf0]  ;;  %v9950_v39 = vld [vmem:[#allocation17 + $0x300] sm:$0xf] }
 0x21e   :  { %1820 = vmatpush.bf16.msrb.mxu2 %v9139_v62  ;;  %1833 = vmatpush.bf16.msra.mxu3 %v9395_v63  ;;  %v13315_v62 = vld [vmem:[#allocation17 + $0x534] sm:$0xf0]  ;;  %v9243_v63 = vor.u32 %v13319_v53, %v9240_v54  ;;  %v9499_v0 = vor.u32 %v13383_v55, %v9496_v56  ;;  %v13279_v54 = vld [vmem:[#allocation17 + $0x41c] sm:$0xf]  ;;  %v13180_v41 = vld [vmem:[#allocation17 + $0x104] sm:$0xf] }
 0x21f   :  { %v9080_v55 = vld [vmem:[#allocation17 + $0x438] sm:$0xf0] }
 0x220   :  { %v13343_v56 = vld [vmem:[#allocation17 + $0x61c] sm:$0xf] }
 0x221   :  { %1795 = vmatpush.bf16.msra.mxu0 %v9103_v8  ;;  %1808 = vmatpush.bf16.msrb.mxu1 %v9359_v9  ;;  %v9207_v8 = vor.u32 %v13315_v62, %v9206_v61  ;;  %v9463_v9 = vor.u32 %v13379_v3, %v9462_v1  ;;  %v13208_v61 = vld [vmem:[#allocation17 + $0x1dc] sm:$0xf0] }
 0x222   :  { %1821 = vmatpush.bf16.msrb.mxu2 %v9107_v13  ;;  %1834 = vmatpush.bf16.msra.mxu3 %v9363_v14  ;;  %v9467_v13 = vor.u32 %v13375_v6, %v9464_v7  ;;  %v9430_v14 = vld [vmem:[#allocation17 + $0x6d8] sm:$0xf]  ;;  %v10046_v62 = vld [vmem:[#allocation17 + $0x3c0] sm:$0xf]  ;;  %v10048_v6 = vld [vmem:[#allocation17 + $0x3e0] sm:$0xf0]  ;;  %v9083_v7 = vor.u32 %v13279_v54, %v9080_v55 }
 0x223   :  { %v9431_v21 = vor.u32 %v13371_v15, %v9430_v14  ;;  %v10051_v14 = vor.u32 %v13268_v5, %v10048_v6  ;;  %v10014_v15 = vld [vmem:[#allocation17 + $0x380] sm:$0xf]  ;;  %v9664_v54 = vld [vmem:[#allocation17 + $0xe0] sm:$0xf0] }
 0x224   :  { %v13236_v55 = vld [vmem:[#allocation17 + $0x2c4] sm:$0xf] }
 0x225   :  { %1796 = vmatpush.bf16.msra.mxu0 %v9071_v24  ;;  %1809 = vmatpush.bf16.msrb.mxu1 %v9327_v25  ;;  %v9179_v24 = vor.u32 %v13303_v16, %v9176_v17  ;;  %v9435_v25 = vor.u32 %v13367_v18, %v9432_v19  ;;  %v13264_v16 = vld [vmem:[#allocation17 + $0x39c] sm:$0xf0]  ;;  %v13196_v17 = vld [vmem:[#allocation17 + $0x184] sm:$0xf] }
 0x226   :  { %1822 = vmatpush.bf16.msrb.mxu2 %v9075_v29  ;;  %1835 = vmatpush.bf16.msra.mxu3 %v9331_v30  ;;  %v9144_v29 = vld [vmem:[#allocation17 + $0x4b8] sm:$0xf0]  ;;  %v9760_v18 = vld [vmem:[#allocation17 + $0x1a0] sm:$0xf0] }
 0x227   :  { %v13359_v30 = vld [vmem:[#allocation17 + $0x69c] sm:$0xf]  ;;  %v13260_v19 = vld [vmem:[#allocation17 + $0x384] sm:$0xf] }
 0x228   :  { %1797 = vmatmul.bf16.vlgmr.msra.gmra.mxu0 %v14713_v58  ;;  %1810 = vmatmul.bf16.vlgmr.msrb.gmra.mxu1 %v14716_v59  ;;  %v9632_v5 = vld [vmem:[#allocation17 + $0xa0] sm:$0xf0] }
 0x229   :  { %1841 = vmatpush.bf16.msrb.mxu0 %v9303_v31  ;;  %1854 = vmatpush.bf16.msra.mxu1 %v9559_v32  ;;  %v9400_v31 = vld [vmem:[#allocation17 + $0x6b8] sm:$0xf0]  ;;  %v9143_v32 = vor.u32 %v13299_v23, %v9142_v22  ;;  %v10015_v22 = vor.u32 %v13264_v16, %v10014_v15  ;;  %v9726_v23 = vld [vmem:[#allocation17 + $0x140] sm:$0xf]  ;;  %v13228_v6 = vld [vmem:[#allocation17 + $0x284] sm:$0xf] }
 0x22a   :  { %1867 = vmatpush.bf16.msra.mxu2 %v9307_v35  ;;  %1880 = vmatpush.bf16.msrb.mxu3 %v9563_v36  ;;  %v13291_v35 = vld [vmem:[#allocation17 + $0x474] sm:$0xf0]  ;;  %v9147_v36 = vor.u32 %v13295_v28, %v9144_v29  ;;  %v9403_v37 = vor.u32 %v13359_v30, %v9400_v31  ;;  %v13256_v28 = vld [vmem:[#allocation17 + $0x35c] sm:$0xf0]  ;;  %v13188_v29 = vld [vmem:[#allocation17 + $0x144] sm:$0xf] }
 0x22b   :  { %1823 = vmatmul.bf16.vlgmr.msrb.gmra.mxu2 %v14713_v58  ;;  %1836 = vmatmul.bf16.vlgmr.msra.gmra.mxu3 %v14716_v59  ;;  %v9111_v45 = vor.u32 %v13291_v35, %v9110_v34  ;;  %v9728_v30 = vld [vmem:[#allocation17 + $0x160] sm:$0xf0]  ;;  %v9983_v34 = vor.u32 %v13256_v28, %v9982_v27  ;;  %v9694_v35 = vld [vmem:[#allocation17 + $0x100] sm:$0xf] }
 0x22c   :  { %v13252_v31 = vld [vmem:[#allocation17 + $0x344] sm:$0xf]  ;;  %v13224_v15 = vld [vmem:[#allocation17 + $0x25c] sm:$0xf0] }
 0x22d   :  { %1842 = vmatpush.bf16.msrb.mxu0 %v9271_v43  ;;  %1855 = vmatpush.bf16.msra.mxu1 %v9527_v44  ;;  %v9368_v43 = vld [vmem:[#allocation17 + $0x678] sm:$0xf0]  ;;  %v9078_v44 = vld [vmem:[#allocation17 + $0x418] sm:$0xf]  ;;  %v13156_v16 = vld [vmem:[#allocation17 + $0x44] sm:$0xf] }
 0x22e   :  { %1868 = vmatpush.bf16.msra.mxu2 %v9275_v49  ;;  %1881 = vmatpush.bf16.msrb.mxu3 %v9531_v50  ;;  %v13283_v49 = vld [vmem:[#allocation17 + $0x434] sm:$0xf0]  ;;  %v9371_v53 = vor.u32 %v13351_v42, %v9368_v43  ;;  %v9696_v42 = vld [vmem:[#allocation17 + $0x120] sm:$0xf0] }
 0x22f   :  { %v9334_v50 = vld [vmem:[#allocation17 + $0x618] sm:$0xf]  ;;  %v9079_v1 = vor.u32 %v13283_v49, %v9078_v44  ;;  %v13244_v43 = vld [vmem:[#allocation17 + $0x304] sm:$0xf]  ;;  %v9699_v49 = vor.u32 %v13180_v41, %v9696_v42  ;;  %v10056_v41 = vld [vmem:[#allocation17 + $0x3e8] sm:$0xf0] }
 0x230   :  { %v9335_v3 = vor.u32 %v13347_v51, %v9334_v50  ;;  %v9952_v44 = vld [vmem:[#allocation17 + $0x320] sm:$0xf0]  ;;  %v9918_v51 = vld [vmem:[#allocation17 + $0x2c0] sm:$0xf] }
 0x231   :  { %1843 = vmatpush.bf16.msrb.mxu0 %v9239_v57  ;;  %1856 = vmatpush.bf16.msra.mxu1 %v9495_v60  ;;  %v9336_v57 = vld [vmem:[#allocation17 + $0x638] sm:$0xf0]  ;;  %v9790_v60 = vld [vmem:[#allocation17 + $0x1c0] sm:$0xf]  ;;  %v9955_v50 = vor.u32 %v13244_v43, %v9952_v44  ;;  %v13148_v28 = vld [vmem:[#allocation17 + $0x4] sm:$0xf] }
 0x232   :  { %1869 = vmatpush.bf16.msra.mxu2 %v9243_v63  ;;  %1882 = vmatpush.bf16.msrb.mxu3 %v9499_v0  ;;  %v13272_v63 = vld [vmem:[#allocation17 + $0x3dc] sm:$0xf0]  ;;  %v13204_v0 = vld [vmem:[#allocation17 + $0x1c4] sm:$0xf] }
 0x233   :  { %v10047_v10 = vor.u32 %v13272_v63, %v10046_v62  ;;  %v13168_v62 = vld [vmem:[#allocation17 + $0x9c] sm:$0xf0] }
 0x235   :  { %1844 = vmatpush.bf16.msrb.mxu0 %v9207_v8  ;;  %1857 = vmatpush.bf16.msra.mxu1 %v9463_v9  ;;  %v9339_v8 = vor.u32 %v13343_v56, %v9336_v57  ;;  %v9791_v9 = vor.u32 %v13208_v61, %v9790_v60  ;;  %v9920_v56 = vld [vmem:[#allocation17 + $0x2e0] sm:$0xf0]  ;;  %v9630_v61 = vld [vmem:[#allocation17 + $0x80] sm:$0xf] }
 0x236   :  { %1870 = vmatpush.bf16.msra.mxu2 %v9211_v12  ;;  %1883 = vmatpush.bf16.msrb.mxu3 %v9467_v13  ;;  %v13200_v12 = vld [vmem:[#allocation17 + $0x19c] sm:$0xf0]  ;;  %v9795_v13 = vor.u32 %v13204_v0, %v9792_v4  ;;  %v9923_v0 = vor.u32 %v13236_v55, %v9920_v56  ;;  %v13164_v4 = vld [vmem:[#allocation17 + $0x84] sm:$0xf]  ;;  %v10024_v55 = vld [vmem:[#allocation17 + $0x3a8] sm:$0xf0] }
 0x239   :  { %1845 = vmatpush.bf16.msrb.mxu0 %v9175_v20  ;;  %1858 = vmatpush.bf16.msra.mxu1 %v9431_v21  ;;  %v10016_v20 = vld [vmem:[#allocation17 + $0x3a0] sm:$0xf0]  ;;  %v9759_v21 = vor.u32 %v13200_v12, %v9758_v11  ;;  %v13160_v11 = vld [vmem:[#allocation17 + $0x5c] sm:$0xf0]  ;;  %v9635_v12 = vor.u32 %v13164_v4, %v9632_v5  ;;  %v9736_v4 = vld [vmem:[#allocation17 + $0x168] sm:$0xf0] }
 0x23a   :  { %1871 = vmatpush.bf16.msra.mxu2 %v9179_v24  ;;  %1884 = vmatpush.bf16.msrb.mxu3 %v9435_v25  ;;  %v13192_v24 = vld [vmem:[#allocation17 + $0x15c] sm:$0xf0]  ;;  %v9763_v25 = vor.u32 %v13196_v17, %v9760_v18  ;;  %v10019_v26 = vor.u32 %v13260_v19, %v10016_v20  ;;  %v9600_v17 = vld [vmem:[#allocation17 + $0x60] sm:$0xf0]  ;;  %v13253_v5 = vld [vmem:[#allocation17 + $0x34c] sm:$0xf] }
 0x23b   :  { %v13220_v18 = vld [vmem:[#allocation17 + $0x244] sm:$0xf]  ;;  %v9566_v20 = vld [vmem:[#allocation17] sm:$0xf] }
 0x23c   :  { %v9856_v19 = vld [vmem:[#allocation17 + $0x260] sm:$0xf0] }
 0x23d   :  { %1846 = vmatpush.bf16.msrb.mxu0 %v9143_v32  ;;  %1859 = vmatpush.bf16.msra.mxu1 %v9399_v33  ;;  %v9984_v32 = vld [vmem:[#allocation17 + $0x360] sm:$0xf0]  ;;  %v9727_v33 = vor.u32 %v13192_v24, %v9726_v23  ;;  %v13152_v23 = vld [vmem:[#allocation17 + $0x1c] sm:$0xf0]  ;;  %v9859_v27 = vor.u32 %v13220_v18, %v9856_v19  ;;  %v9960_v18 = vld [vmem:[#allocation17 + $0x328] sm:$0xf0] }
 0x23e   :  { %1872 = vmatpush.bf16.msra.mxu2 %v9147_v36  ;;  %1885 = vmatpush.bf16.msrb.mxu3 %v9403_v37  ;;  %v13184_v36 = vld [vmem:[#allocation17 + $0x11c] sm:$0xf0]  ;;  %v9731_v37 = vor.u32 %v13188_v29, %v9728_v30  ;;  %v9987_v38 = vor.u32 %v13252_v31, %v9984_v32  ;;  %v9568_v29 = vld [vmem:[#allocation17 + $0x20] sm:$0xf0]  ;;  %v9798_v32 = vld [vmem:[#allocation17 + $0x1c8] sm:$0xf] }
 0x23f   :  { %v9822_v24 = vld [vmem:[#allocation17 + $0x200] sm:$0xf]  ;;  %v13212_v30 = vld [vmem:[#allocation17 + $0x204] sm:$0xf]  ;;  %v9571_v42 = vor.u32 %v13148_v28, %v9568_v29  ;;  %v9672_v28 = vld [vmem:[#allocation17 + $0xe8] sm:$0xf0] }
 0x240   :  { %v9824_v31 = vld [vmem:[#allocation17 + $0x220] sm:$0xf0]  ;;  %v13237_v29 = vld [vmem:[#allocation17 + $0x2cc] sm:$0xf] }
 0x241   :  { %1847 = vmatpush.bf16.msrb.mxu0 %v9111_v45  ;;  %1860 = vmatpush.bf16.msra.mxu1 %v9367_v48  ;;  %v9662_v45 = vld [vmem:[#allocation17 + $0xc0] sm:$0xf]  ;;  %v9827_v43 = vor.u32 %v13212_v30, %v9824_v31  ;;  %v9928_v30 = vld [vmem:[#allocation17 + $0x2e8] sm:$0xf0] }
 0x242   :  { %1873 = vmatpush.bf16.msra.mxu2 %v9115_v52  ;;  %1886 = vmatpush.bf16.msrb.mxu3 %v9371_v53  ;;  %v13176_v48 = vld [vmem:[#allocation17 + $0xdc] sm:$0xf0]  ;;  %v13172_v53 = vld [vmem:[#allocation17 + $0xc4] sm:$0xf] }
 0x243   :  { %v13240_v52 = vld [vmem:[#allocation17 + $0x2dc] sm:$0xf0]  ;;  %v9663_v57 = vor.u32 %v13176_v48, %v9662_v45  ;;  %v9667_v63 = vor.u32 %v13172_v53, %v9664_v54  ;;  %v13201_v45 = vld [vmem:[#allocation17 + $0x1a4] sm:$0xf0]  ;;  %v9768_v53 = vld [vmem:[#allocation17 + $0x1a8] sm:$0xf0] }
 0x244   :  { %v9919_v60 = vor.u32 %v13240_v52, %v9918_v51  ;;  %v13265_v51 = vld [vmem:[#allocation17 + $0x3a4] sm:$0xf0]  ;;  %v13197_v52 = vld [vmem:[#allocation17 + $0x18c] sm:$0xf] }
 0x245   :  { %1848 = vmatpush.bf16.msrb.mxu0 %v9079_v1  ;;  %1861 = vmatpush.bf16.msra.mxu1 %v9335_v3  ;;  %v9886_v1 = vld [vmem:[#allocation17 + $0x280] sm:$0xf]  ;;  %v13261_v54 = vld [vmem:[#allocation17 + $0x38c] sm:$0xf] }
 0x246   :  { %1874 = vmatpush.bf16.msra.mxu2 %v9083_v7  ;;  %1887 = vmatpush.bf16.msrb.mxu3 %v9339_v8  ;;  %v13232_v3 = vld [vmem:[#allocation17 + $0x29c] sm:$0xf0]  ;;  %v9888_v7 = vld [vmem:[#allocation17 + $0x2a0] sm:$0xf0]  ;;  %v9631_v8 = vor.u32 %v13168_v62, %v9630_v61  ;;  %v13193_v61 = vld [vmem:[#allocation17 + $0x164] sm:$0xf0]  ;;  %v9771_v62 = vor.u32 %v13197_v52, %v9768_v53 }
 0x247   :  { %v9608_v52 = vld [vmem:[#allocation17 + $0x68] sm:$0xf0] }
 0x248   :  { %1849 = vmatmul.bf16.vlgmr.msrb.gmra.mxu0 %v14713_v58  ;;  %1862 = vmatmul.bf16.vlgmr.msra.gmra.mxu1 %v14716_v59  ;;  %v13221_v53 = vld [vmem:[#allocation17 + $0x24c] sm:$0xf] }
 0x249   :  { %2535 = vmatpush.bf16.msra.mxu0 %v9791_v9  ;;  %2548 = vmatpush.bf16.msrb.mxu1 %v10047_v10  ;;  %v9887_v9 = vor.u32 %v13232_v3, %v9886_v1  ;;  %v9598_v10 = vld [vmem:[#allocation17 + $0x40] sm:$0xf]  ;;  %v13257_v1 = vld [vmem:[#allocation17 + $0x364] sm:$0xf0]  ;;  %v13189_v3 = vld [vmem:[#allocation17 + $0x14c] sm:$0xf] }
 0x24a   :  { %2561 = vmatpush.bf16.msrb.mxu2 %v9795_v13  ;;  %2574 = vmatpush.bf16.msra.mxu3 %v10051_v14  ;;  %v9891_v13 = vor.u32 %v13228_v6, %v9888_v7  ;;  %v9854_v14 = vld [vmem:[#allocation17 + $0x240] sm:$0xf]  ;;  %v9992_v6 = vld [vmem:[#allocation17 + $0x368] sm:$0xf0] }
 0x24b   :  { %1875 = vmatmul.bf16.vlgmr.msra.gmra.mxu2 %v14713_v58  ;;  %1888 = vmatmul.bf16.vlgmr.msrb.gmra.mxu3 %v14716_v59  ;;  %v9695_v58 = vor.u32 %v13184_v36, %v9694_v35  ;;  %v9951_v59 = vor.u32 %v13248_v40, %v9950_v39  ;;  %v13273_v35 = vld [vmem:[#allocation17 + $0x3e4] sm:$0xf0]  ;;  %v13205_v36 = vld [vmem:[#allocation17 + $0x1cc] sm:$0xf] }
 0x24c   :  { %v9800_v39 = vld [vmem:[#allocation17 + $0x1e8] sm:$0xf0] }
 0x24d   :  { %2536 = vmatpush.bf16.msra.mxu0 %v9759_v21  ;;  %2549 = vmatpush.bf16.msrb.mxu1 %v10015_v22  ;;  %v9599_v21 = vor.u32 %v13160_v11, %v9598_v10  ;;  %v9855_v22 = vor.u32 %v13224_v15, %v9854_v14  ;;  %v13269_v40 = vld [vmem:[#allocation17 + $0x3cc] sm:$0xf]  ;;  %v9803_v48 = vor.u32 %v13205_v36, %v9800_v39  ;;  %v13185_v10 = vld [vmem:[#allocation17 + $0x124] sm:$0xf0] }
 0x24e   :  { %2562 = vmatpush.bf16.msrb.mxu2 %v9763_v25  ;;  %2575 = vmatpush.bf16.msra.mxu3 %v10019_v26  ;;  %v13216_v25 = vld [vmem:[#allocation17 + $0x21c] sm:$0xf0]  ;;  %v9603_v26 = vor.u32 %v13156_v16, %v9600_v17  ;;  %v9739_v11 = vor.u32 %v13189_v3, %v9736_v4  ;;  %v13249_v14 = vld [vmem:[#allocation17 + $0x324] sm:$0xf0]  ;;  %v13181_v15 = vld [vmem:[#allocation17 + $0x10c] sm:$0xf]  ;;  %v9931_v36 = vor.u32 %v13237_v29, %v9928_v30 }
 0x24f   :  { %v9704_v16 = vld [vmem:[#allocation17 + $0x128] sm:$0xf0]  ;;  %v10032_v29 = vld [vmem:[#allocation17 + $0x3b0] sm:$0xf0] }
 0x250   :  { %v13245_v17 = vld [vmem:[#allocation17 + $0x30c] sm:$0xf] }
 0x251   :  { %2537 = vmatpush.bf16.msra.mxu0 %v9727_v33  ;;  %2550 = vmatpush.bf16.msrb.mxu1 %v9983_v34  ;;  %v13209_v33 = vld [vmem:[#allocation17 + $0x1e4] sm:$0xf0]  ;;  %v13165_v39 = vld [vmem:[#allocation17 + $0x8c] sm:$0xf] }
 0x252   :  { %2563 = vmatpush.bf16.msrb.mxu2 %v9731_v37  ;;  %2576 = vmatpush.bf16.msra.mxu3 %v9987_v38  ;;  %v10054_v34 = vld [vmem:[#allocation17 + $0x3c8] sm:$0xf]  ;;  %v9567_v37 = vor.u32 %v13152_v23, %v9566_v20  ;;  %v9823_v38 = vor.u32 %v13216_v25, %v9822_v24  ;;  %v9799_v44 = vor.u32 %v13209_v33, %v9798_v32  ;;  %v9576_v3 = vld [vmem:[#allocation17 + $0x28] sm:$0xf0] }
 0x253   :  { %v9707_v23 = vor.u32 %v13181_v15, %v9704_v16  ;;  %v9963_v24 = vor.u32 %v13245_v17, %v9960_v18  ;;  %v9926_v25 = vld [vmem:[#allocation17 + $0x2c8] sm:$0xf]  ;;  %v13213_v4 = vld [vmem:[#allocation17 + $0x20c] sm:$0xf]  ;;  %v10064_v15 = vld [vmem:[#allocation17 + $0x3f0] sm:$0xf0] }
 0x254   :  { %v9638_v33 = vld [vmem:[#allocation17 + $0x88] sm:$0xf] }
 0x255   :  { %2538 = vmatpush.bf16.msra.mxu0 %v9695_v58  ;;  %2551 = vmatpush.bf16.msrb.mxu1 %v9951_v59  ;;  %v10055_v58 = vor.u32 %v13273_v35, %v10054_v34  ;;  %v9766_v59 = vld [vmem:[#allocation17 + $0x188] sm:$0xf] }
 0x256   :  { %2564 = vmatpush.bf16.msrb.mxu2 %v9699_v49  ;;  %2577 = vmatpush.bf16.msra.mxu3 %v9955_v50  ;;  %v10059_v49 = vor.u32 %v13269_v40, %v10056_v41  ;;  %v10022_v50 = vld [vmem:[#allocation17 + $0x388] sm:$0xf]  ;;  %v9767_v56 = vor.u32 %v13201_v45, %v9766_v59  ;;  %v9640_v40 = vld [vmem:[#allocation17 + $0xa8] sm:$0xf0] }
 0x257   :  { %v13169_v34 = vld [vmem:[#allocation17 + $0xa4] sm:$0xf0]  ;;  %v13229_v41 = vld [vmem:[#allocation17 + $0x28c] sm:$0xf]  ;;  %v9643_v45 = vor.u32 %v13165_v39, %v9640_v40  ;;  %v9744_v39 = vld [vmem:[#allocation17 + $0x170] sm:$0xf0] }
 0x258   :  { %v13161_v59 = vld [vmem:[#allocation17 + $0x64] sm:$0xf0]  ;;  %v13254_v40 = vld [vmem:[#allocation17 + $0x354] sm:$0xf] }
 0x259   :  { %2539 = vmatpush.bf16.msra.mxu0 %v9663_v57  ;;  %2552 = vmatpush.bf16.msrb.mxu1 %v9919_v60  ;;  %v10023_v57 = vor.u32 %v13265_v51, %v10022_v50  ;;  %v9734_v60 = vld [vmem:[#allocation17 + $0x148] sm:$0xf]  ;;  %v13157_v51 = vld [vmem:[#allocation17 + $0x4c] sm:$0xf] }
 0x25a   :  { %2565 = vmatpush.bf16.msrb.mxu2 %v9667_v63  ;;  %2578 = vmatpush.bf16.msra.mxu3 %v9923_v0  ;;  %v10027_v63 = vor.u32 %v13261_v54, %v10024_v55  ;;  %v9990_v0 = vld [vmem:[#allocation17 + $0x348] sm:$0xf]  ;;  %v9735_v7 = vor.u32 %v13193_v61, %v9734_v60  ;;  %v9864_v54 = vld [vmem:[#allocation17 + $0x268] sm:$0xf0] }
 0x25b   :  { %v13225_v50 = vld [vmem:[#allocation17 + $0x264] sm:$0xf0] }
 0x25c   :  { %v9574_v55 = vld [vmem:[#allocation17 + $0x8] sm:$0xf] }
 0x25d   :  { %2540 = vmatpush.bf16.msra.mxu0 %v9631_v8  ;;  %2553 = vmatpush.bf16.msrb.mxu1 %v9887_v9  ;;  %v9991_v8 = vor.u32 %v13257_v1, %v9990_v0  ;;  %v9702_v9 = vld [vmem:[#allocation17 + $0x108] sm:$0xf]  ;;  %v9867_v0 = vor.u32 %v13221_v53, %v9864_v54  ;;  %v13149_v1 = vld [vmem:[#allocation17 + $0xc] sm:$0xf]  ;;  %v13182_v53 = vld [vmem:[#allocation17 + $0x114] sm:$0xf] }
 0x25e   :  { %2566 = vmatpush.bf16.msrb.mxu2 %v9635_v12  ;;  %2579 = vmatpush.bf16.msra.mxu3 %v9891_v13  ;;  %v9995_v12 = vor.u32 %v13253_v5, %v9992_v6  ;;  %v9958_v13 = vld [vmem:[#allocation17 + $0x308] sm:$0xf]  ;;  %v9703_v19 = vor.u32 %v13185_v10, %v9702_v9  ;;  %v9832_v5 = vld [vmem:[#allocation17 + $0x228] sm:$0xf0]  ;;  %v9806_v6 = vld [vmem:[#allocation17 + $0x1d0] sm:$0xf]  ;;  %v9579_v16 = vor.u32 %v13149_v1, %v9576_v3 }
 0x25f   :  { %v9959_v20 = vor.u32 %v13249_v14, %v9958_v13  ;;  %v13153_v60 = vld [vmem:[#allocation17 + $0x24] sm:$0xf0]  ;;  %v13274_v9 = vld [vmem:[#allocation17 + $0x3ec] sm:$0xf0]  ;;  %v13206_v10 = vld [vmem:[#allocation17 + $0x1d4] sm:$0xf]  ;;  %v9835_v17 = vor.u32 %v13213_v4, %v9832_v5 }
 0x260   :  { %v9830_v61 = vld [vmem:[#allocation17 + $0x208] sm:$0xf]  ;;  %v9808_v13 = vld [vmem:[#allocation17 + $0x1f0] sm:$0xf0]  ;;  %v9934_v1 = vld [vmem:[#allocation17 + $0x2d0] sm:$0xf] }
 0x261   :  { %2541 = vmatpush.bf16.msra.mxu0 %v9599_v21  ;;  %2554 = vmatpush.bf16.msrb.mxu1 %v9855_v22  ;;  %v9670_v21 = vld [vmem:[#allocation17 + $0xc8] sm:$0xf]  ;;  %v13270_v14 = vld [vmem:[#allocation17 + $0x3d4] sm:$0xf]  ;;  %v13242_v3 = vld [vmem:[#allocation17 + $0x2ec] sm:$0xf0] }
 0x262   :  { %2567 = vmatpush.bf16.msrb.mxu2 %v9603_v26  ;;  %2580 = vmatpush.bf16.msra.mxu3 %v9859_v27  ;;  %v13177_v22 = vld [vmem:[#allocation17 + $0xe4] sm:$0xf0]  ;;  %v13173_v27 = vld [vmem:[#allocation17 + $0xcc] sm:$0xf]  ;;  %v9712_v54 = vld [vmem:[#allocation17 + $0x130] sm:$0xf0] }
 0x263   :  { %v13241_v26 = vld [vmem:[#allocation17 + $0x2e4] sm:$0xf0]  ;;  %v9671_v31 = vor.u32 %v13177_v22, %v9670_v21  ;;  %v9675_v35 = vor.u32 %v13173_v27, %v9672_v28  ;;  %v13202_v21 = vld [vmem:[#allocation17 + $0x1ac] sm:$0xf0]  ;;  %v9811_v22 = vor.u32 %v13206_v10, %v9808_v13  ;;  %v9776_v27 = vld [vmem:[#allocation17 + $0x1b0] sm:$0xf0] }
 0x264   :  { %v9927_v32 = vor.u32 %v13241_v26, %v9926_v25  ;;  %v13266_v25 = vld [vmem:[#allocation17 + $0x3ac] sm:$0xf0]  ;;  %v13198_v26 = vld [vmem:[#allocation17 + $0x194] sm:$0xf] }
 0x265   :  { %2542 = vmatpush.bf16.msra.mxu0 %v9567_v37  ;;  %2555 = vmatpush.bf16.msrb.mxu1 %v9823_v38  ;;  %v9894_v37 = vld [vmem:[#allocation17 + $0x288] sm:$0xf]  ;;  %v13262_v28 = vld [vmem:[#allocation17 + $0x394] sm:$0xf] }
 0x266   :  { %2568 = vmatpush.bf16.msrb.mxu2 %v9571_v42  ;;  %2581 = vmatpush.bf16.msra.mxu3 %v9827_v43  ;;  %v13233_v38 = vld [vmem:[#allocation17 + $0x2a4] sm:$0xf0]  ;;  %v9896_v42 = vld [vmem:[#allocation17 + $0x2a8] sm:$0xf0]  ;;  %v9639_v43 = vor.u32 %v13169_v34, %v9638_v33  ;;  %v13194_v33 = vld [vmem:[#allocation17 + $0x16c] sm:$0xf0]  ;;  %v9779_v34 = vor.u32 %v13198_v26, %v9776_v27 }
 0x267   :  { %v13174_v4 = vld [vmem:[#allocation17 + $0xd4] sm:$0xf]  ;;  %v9614_v27 = vld [vmem:[#allocation17 + $0x50] sm:$0xf] }
 0x268   :  { %2543 = vmatmul.bf16.vlgmr.msra.gmra.mxu0 %v14708_v46  ;;  %2556 = vmatmul.bf16.vlgmr.msrb.gmra.mxu1 %v14710_v47 }
 0x269   :  { %2587 = vmatpush.bf16.msrb.mxu0 %v9799_v44  ;;  %2600 = vmatpush.bf16.msra.mxu1 %v10055_v58  ;;  %v9895_v44 = vor.u32 %v13233_v38, %v9894_v37  ;;  %v9606_v58 = vld [vmem:[#allocation17 + $0x48] sm:$0xf]  ;;  %v13258_v37 = vld [vmem:[#allocation17 + $0x36c] sm:$0xf0]  ;;  %v13190_v38 = vld [vmem:[#allocation17 + $0x154] sm:$0xf] }
 0x26a   :  { %2613 = vmatpush.bf16.msra.mxu2 %v9803_v48  ;;  %2626 = vmatpush.bf16.msrb.mxu3 %v10059_v49  ;;  %v9899_v48 = vor.u32 %v13229_v41, %v9896_v42  ;;  %v9862_v49 = vld [vmem:[#allocation17 + $0x248] sm:$0xf]  ;;  %v10000_v41 = vld [vmem:[#allocation17 + $0x370] sm:$0xf0] }
 0x26b   :  { %2569 = vmatmul.bf16.vlgmr.msrb.gmra.mxu2 %v14708_v46  ;;  %2582 = vmatmul.bf16.vlgmr.msra.gmra.mxu3 %v14710_v47 }
 0x26d   :  { %2588 = vmatpush.bf16.msrb.mxu0 %v9767_v56  ;;  %2601 = vmatpush.bf16.msra.mxu1 %v10023_v57  ;;  %v9607_v56 = vor.u32 %v13161_v59, %v9606_v58  ;;  %v9863_v57 = vor.u32 %v13225_v50, %v9862_v49  ;;  %v9747_v49 = vor.u32 %v13190_v38, %v9744_v39  ;;  %v9872_v38 = vld [vmem:[#allocation17 + $0x270] sm:$0xf0] }
 0x26e   :  { %2614 = vmatpush.bf16.msra.mxu2 %v9771_v62  ;;  %2627 = vmatpush.bf16.msrb.mxu3 %v10027_v63  ;;  %v13217_v62 = vld [vmem:[#allocation17 + $0x224] sm:$0xf0]  ;;  %v9611_v63 = vor.u32 %v13157_v51, %v9608_v52  ;;  %v10003_v50 = vor.u32 %v13254_v40, %v10000_v41  ;;  %v9966_v51 = vld [vmem:[#allocation17 + $0x310] sm:$0xf] }
 0x26f   :  { %v13250_v52 = vld [vmem:[#allocation17 + $0x32c] sm:$0xf0] }
 0x270   :  { %v9582_v41 = vld [vmem:[#allocation17 + $0x10] sm:$0xf] }
 0x271   :  { %2589 = vmatpush.bf16.msrb.mxu0 %v9735_v7  ;;  %2602 = vmatpush.bf16.msra.mxu1 %v9991_v8  ;;  %v13210_v7 = vld [vmem:[#allocation17 + $0x1ec] sm:$0xf0] }
 0x272   :  { %2615 = vmatpush.bf16.msra.mxu2 %v9739_v11  ;;  %2628 = vmatpush.bf16.msrb.mxu3 %v9995_v12  ;;  %v10062_v8 = vld [vmem:[#allocation17 + $0x3d0] sm:$0xf]  ;;  %v9575_v11 = vor.u32 %v13153_v60, %v9574_v55  ;;  %v9831_v12 = vor.u32 %v13217_v62, %v9830_v61  ;;  %v9807_v18 = vor.u32 %v13210_v7, %v9806_v6  ;;  %v13246_v55 = vld [vmem:[#allocation17 + $0x314] sm:$0xf] }
 0x273   :  { %v9967_v60 = vor.u32 %v13250_v52, %v9966_v51  ;;  %v9678_v61 = vld [vmem:[#allocation17 + $0xd0] sm:$0xf]  ;;  %v9680_v7 = vld [vmem:[#allocation17 + $0xf0] sm:$0xf0] }
 0x274   :  { %v13178_v62 = vld [vmem:[#allocation17 + $0xec] sm:$0xf0]  ;;  %v13150_v51 = vld [vmem:[#allocation17 + $0x14] sm:$0xf] }
 0x275   :  { %2590 = vmatpush.bf16.msrb.mxu0 %v9703_v19  ;;  %2603 = vmatpush.bf16.msra.mxu1 %v9959_v20  ;;  %v10063_v19 = vor.u32 %v13274_v9, %v10062_v8  ;;  %v9774_v20 = vld [vmem:[#allocation17 + $0x190] sm:$0xf]  ;;  %v13238_v8 = vld [vmem:[#allocation17 + $0x2d4] sm:$0xf]  ;;  %v9679_v13 = vor.u32 %v13178_v62, %v9678_v61  ;;  %v13207_v61 = vld [vmem:[#allocation17 + $0x1dc] sm:$0xf] }
 0x276   :  { %2616 = vmatpush.bf16.msra.mxu2 %v9707_v23  ;;  %2629 = vmatpush.bf16.msrb.mxu3 %v9963_v24  ;;  %v10067_v23 = vor.u32 %v13270_v14, %v10064_v15  ;;  %v10030_v24 = vld [vmem:[#allocation17 + $0x390] sm:$0xf]  ;;  %v9775_v30 = vor.u32 %v13202_v21, %v9774_v20  ;;  %v9936_v9 = vld [vmem:[#allocation17 + $0x2f0] sm:$0xf0]  ;;  %v9935_v14 = vor.u32 %v13242_v3, %v9934_v1  ;;  %v13271_v1 = vld [vmem:[#allocation17 + $0x3dc] sm:$0xf] }
 0x277   :  { %v9646_v15 = vld [vmem:[#allocation17 + $0x90] sm:$0xf]  ;;  %v13166_v21 = vld [vmem:[#allocation17 + $0x94] sm:$0xf]  ;;  %v10072_v3 = vld [vmem:[#allocation17 + $0x3f8] sm:$0xf0] }
 0x278   :  { %v13234_v20 = vld [vmem:[#allocation17 + $0x2ac] sm:$0xf0]  ;;  %v9584_v52 = vld [vmem:[#allocation17 + $0x30] sm:$0xf0] }
 0x279   :  { %2591 = vmatpush.bf16.msrb.mxu0 %v9671_v31  ;;  %2604 = vmatpush.bf16.msra.mxu1 %v9927_v32  ;;  %v10031_v31 = vor.u32 %v13266_v25, %v10030_v24  ;;  %v9742_v32 = vld [vmem:[#allocation17 + $0x150] sm:$0xf]  ;;  %v9904_v24 = vld [vmem:[#allocation17 + $0x2b0] sm:$0xf0] }
 0x27a   :  { %2617 = vmatpush.bf16.msra.mxu2 %v9675_v35  ;;  %2630 = vmatpush.bf16.msrb.mxu3 %v9931_v36  ;;  %v10035_v35 = vor.u32 %v13262_v28, %v10032_v29  ;;  %v9998_v36 = vld [vmem:[#allocation17 + $0x350] sm:$0xf] }
 0x27b   :  { %v9999_v58 = vor.u32 %v13258_v37, %v9998_v36  ;;  %v13162_v28 = vld [vmem:[#allocation17 + $0x6c] sm:$0xf0]  ;;  %v9616_v36 = vld [vmem:[#allocation17 + $0x70] sm:$0xf0] }
 0x27c   :  { %v13222_v37 = vld [vmem:[#allocation17 + $0x254] sm:$0xf] }
 0x27d   :  { %2592 = vmatpush.bf16.msrb.mxu0 %v9639_v43  ;;  %2605 = vmatpush.bf16.msra.mxu1 %v9895_v44  ;;  %v9743_v44 = vor.u32 %v13194_v33, %v9742_v32  ;;  %v13226_v32 = vld [vmem:[#allocation17 + $0x26c] sm:$0xf0]  ;;  %v13158_v33 = vld [vmem:[#allocation17 + $0x54] sm:$0xf] }
 0x27e   :  { %2618 = vmatpush.bf16.msra.mxu2 %v9643_v45  ;;  %2631 = vmatpush.bf16.msrb.mxu3 %v9899_v48  ;;  %v9710_v45 = vld [vmem:[#allocation17 + $0x110] sm:$0xf] }
 0x27f   :  { %v13186_v48 = vld [vmem:[#allocation17 + $0x12c] sm:$0xf0] }
 0x281   :  { %2593 = vmatpush.bf16.msrb.mxu0 %v9607_v56  ;;  %2606 = vmatpush.bf16.msra.mxu1 %v9863_v57  ;;  %v9968_v56 = vld [vmem:[#allocation17 + $0x330] sm:$0xf0]  ;;  %v9711_v57 = vor.u32 %v13186_v48, %v9710_v45  ;;  %v9838_v45 = vld [vmem:[#allocation17 + $0x210] sm:$0xf] }
 0x282   :  { %2619 = vmatpush.bf16.msra.mxu2 %v9611_v63  ;;  %2632 = vmatpush.bf16.msrb.mxu3 %v9867_v0  ;;  %v9715_v63 = vor.u32 %v13182_v53, %v9712_v54  ;;  %v9971_v0 = vor.u32 %v13246_v55, %v9968_v56  ;;  %v13218_v48 = vld [vmem:[#allocation17 + $0x22c] sm:$0xf0]  ;;  %v13214_v53 = vld [vmem:[#allocation17 + $0x214] sm:$0xf]  ;;  %v9814_v55 = vld [vmem:[#allocation17 + $0x1d8] sm:$0xf] }
 0x283   :  { %v9840_v54 = vld [vmem:[#allocation17 + $0x230] sm:$0xf0]  ;;  %v13211_v56 = vld [vmem:[#allocation17 + $0x1f4] sm:$0xf0] }
 0x284   :  { %v1694_v42 = vpop.f32.mrf.mxu0  ;;  %v1707_v43 = vpop.f32.mrf.mxu1 }
 0x285   :  { %2594 = vmatpush.bf16.msrb.mxu0 %v9575_v11  ;;  %2607 = vmatpush.bf16.msra.mxu1 %v9831_v12  ;;  %v14744_v59 = vadd.f32 %v1707_v43, %v1694_v42  ;;  %v9615_v42 = vor.u32 %v13162_v28, %v9614_v27  ;;  %v13195_v27 = vld [vmem:[#allocation17 + $0x174] sm:$0xf0] }
 0x286   :  { %2620 = vmatpush.bf16.msra.mxu2 %v9579_v16  ;;  %2633 = vmatpush.bf16.msrb.mxu3 %v9835_v17  ;;  %v13170_v16 = vld [vmem:[#allocation17 + $0xac] sm:$0xf0]  ;;  %v9683_v17 = vor.u32 %v13174_v4, %v9680_v7  ;;  %v9587_v4 = vor.u32 %v13150_v51, %v9584_v52  ;;  %v9976_v51 = vld [vmem:[#allocation17 + $0x338] sm:$0xf0] }
 0x287   :  { %v9647_v25 = vor.u32 %v13170_v16, %v9646_v15 }
 0x288   :  { %2595 = vmatmul.bf16.vlgmr.msrb.gmra.mxu0 %v14708_v46  ;;  %2608 = vmatmul.bf16.vlgmr.msra.gmra.mxu1 %v14710_v47 }
 0x289   :  { %2639 = vmatpush.bf16.msra.mxu0 %v9807_v18  ;;  %2652 = vmatpush.bf16.msrb.mxu1 %v10063_v19  ;;  %v9939_v18 = vor.u32 %v13238_v8, %v9936_v9  ;;  %v9902_v19 = vld [vmem:[#allocation17 + $0x290] sm:$0xf] }
 0x28a   :  { %2665 = vmatpush.bf16.msrb.mxu2 %v9811_v22  ;;  %2678 = vmatpush.bf16.msra.mxu3 %v10067_v23  ;;  %v9648_v22 = vld [vmem:[#allocation17 + $0xb0] sm:$0xf0]  ;;  %v9903_v26 = vor.u32 %v13234_v20, %v9902_v19  ;;  %v13267_v19 = vld [vmem:[#allocation17 + $0x3b4] sm:$0xf0]  ;;  %v13199_v20 = vld [vmem:[#allocation17 + $0x19c] sm:$0xf] }
 0x28b   :  { %2621 = vmatmul.bf16.vlgmr.msra.gmra.mxu2 %v14708_v46  ;;  %2634 = vmatmul.bf16.vlgmr.msrb.gmra.mxu3 %v14710_v47  ;;  %v1720_v5 = vpop.f32.mrf.mxu2  ;;  %v1733_v6 = vpop.f32.mrf.mxu3  ;;  %v13230_v23 = vld [vmem:[#allocation17 + $0x294] sm:$0xf]  ;;  %v9651_v29 = vor.u32 %v13166_v21, %v9648_v22  ;;  %v9784_v21 = vld [vmem:[#allocation17 + $0x1b8] sm:$0xf0] }
 0x28c   :  { %v14746_v10 = vadd.f32 %v1733_v6, %v1720_v5  ;;  %v1696_v11 = vpop.f32.mrf.mxu0  ;;  %v1709_v12 = vpop.f32.mrf.mxu1  ;;  %v9843_v5 = vor.u32 %v13214_v53, %v9840_v54  ;;  %v9815_v6 = vor.u32 %v13211_v56, %v9814_v55  ;;  %v13263_v22 = vld [vmem:[#allocation17 + $0x39c] sm:$0xf]  ;;  %v9787_v28 = vor.u32 %v13199_v20, %v9784_v21 }
 0x28d   :  { %2640 = vmatpush.bf16.msra.mxu0 %v9775_v30  ;;  %2653 = vmatpush.bf16.msrb.mxu1 %v10031_v31  ;;  %v9907_v30 = vor.u32 %v13230_v23, %v9904_v24  ;;  %v9870_v31 = vld [vmem:[#allocation17 + $0x250] sm:$0xf]  ;;  %v9782_v11 = vld [vmem:[#allocation17 + $0x198] sm:$0xf]  ;;  %v10040_v23 = vld [vmem:[#allocation17 + $0x3b8] sm:$0xf0] }
 0x28e   :  { %2666 = vmatpush.bf16.msrb.mxu2 %v9779_v34  ;;  %2679 = vmatpush.bf16.msra.mxu3 %v10035_v35  ;;  %v9871_v43 = vor.u32 %v13226_v32, %v9870_v31  ;;  %v13203_v12 = vld [vmem:[#allocation17 + $0x1b4] sm:$0xf0]  ;;  %v13191_v32 = vld [vmem:[#allocation17 + $0x15c] sm:$0xf] }
 0x28f   :  { %v9783_v24 = vor.u32 %v13203_v12, %v9782_v11  ;;  %v13259_v31 = vld [vmem:[#allocation17 + $0x374] sm:$0xf0]  ;;  %v13231_v20 = vld [vmem:[#allocation17 + $0x29c] sm:$0xf] }
 0x290   :  { %v9912_v21 = vld [vmem:[#allocation17 + $0x2b8] sm:$0xf0] }
 0x291   :  { %2641 = vmatpush.bf16.msra.mxu0 %v9743_v44  ;;  %2654 = vmatpush.bf16.msrb.mxu1 %v9999_v58  ;;  %v13154_v58 = vld [vmem:[#allocation17 + $0x2c] sm:$0xf0] }
 0x292   :  { %2667 = vmatpush.bf16.msrb.mxu2 %v9747_v49  ;;  %2680 = vmatpush.bf16.msra.mxu3 %v10003_v50  ;;  %v9619_v49 = vor.u32 %v13158_v33, %v9616_v36  ;;  %v9875_v50 = vor.u32 %v13222_v37, %v9872_v38  ;;  %v9583_v62 = vor.u32 %v13154_v58, %v9582_v41  ;;  %v9752_v33 = vld [vmem:[#allocation17 + $0x178] sm:$0xf0]  ;;  %v13187_v41 = vld [vmem:[#allocation17 + $0x134] sm:$0xf0] }
 0x293   :  { %v1722_v34 = vpop.f32.mrf.mxu2  ;;  %v1735_v35 = vpop.f32.mrf.mxu3  ;;  %v9974_v58 = vld [vmem:[#allocation17 + $0x318] sm:$0xf] }
 0x294   :  { %v1746_v39 = vpop.f32.mrf.mxu0  ;;  %v1759_v40 = vpop.f32.mrf.mxu1  ;;  %v13255_v34 = vld [vmem:[#allocation17 + $0x35c] sm:$0xf] }
 0x295   :  { %2642 = vmatpush.bf16.msra.mxu0 %v9711_v57  ;;  %2655 = vmatpush.bf16.msrb.mxu1 %v9967_v60  ;;  %v14748_v44 = vadd.f32 %v1759_v40, %v1746_v39  ;;  %v10070_v57 = vld [vmem:[#allocation17 + $0x3d8] sm:$0xf]  ;;  %v10008_v35 = vld [vmem:[#allocation17 + $0x378] sm:$0xf0] }
 0x296   :  { %2668 = vmatpush.bf16.msrb.mxu2 %v9715_v63  ;;  %2681 = vmatpush.bf16.msra.mxu3 %v9971_v0  ;;  %v13275_v60 = vld [vmem:[#allocation17 + $0x3f4] sm:$0xf0]  ;;  %v9839_v63 = vor.u32 %v13218_v48, %v9838_v45  ;;  %v9816_v0 = vld [vmem:[#allocation17 + $0x1f8] sm:$0xf0] }
 0x297   :  { %v10071_v7 = vor.u32 %v13275_v60, %v10070_v57  ;;  %v9718_v40 = vld [vmem:[#allocation17 + $0x118] sm:$0xf]  ;;  %v13183_v48 = vld [vmem:[#allocation17 + $0x11c] sm:$0xf] }
 0x298   :  { %v13251_v45 = vld [vmem:[#allocation17 + $0x334] sm:$0xf0]  ;;  %v9719_v55 = vor.u32 %v13187_v41, %v9718_v40 }
 0x299   :  { %2643 = vmatpush.bf16.msra.mxu0 %v9679_v13  ;;  %2656 = vmatpush.bf16.msrb.mxu1 %v9935_v14  ;;  %v9819_v13 = vor.u32 %v13207_v61, %v9816_v0  ;;  %v10075_v14 = vor.u32 %v13271_v1, %v10072_v3  ;;  %v9975_v56 = vor.u32 %v13251_v45, %v9974_v58  ;;  %v9686_v57 = vld [vmem:[#allocation17 + $0xd8] sm:$0xf]  ;;  %v13175_v1 = vld [vmem:[#allocation17 + $0xdc] sm:$0xf] }
 0x29a   :  { %2669 = vmatpush.bf16.msrb.mxu2 %v9683_v17  ;;  %2682 = vmatpush.bf16.msra.mxu3 %v9939_v18  ;;  %v10038_v18 = vld [vmem:[#allocation17 + $0x398] sm:$0xf]  ;;  %v9688_v3 = vld [vmem:[#allocation17 + $0xf8] sm:$0xf0] }
 0x29b   :  { %v1772_v8 = vpop.f32.mrf.mxu2  ;;  %v1785_v9 = vpop.f32.mrf.mxu3  ;;  %v13179_v60 = vld [vmem:[#allocation17 + $0xf4] sm:$0xf0]  ;;  %v9691_v11 = vor.u32 %v13175_v1, %v9688_v3  ;;  %v13151_v45 = vld [vmem:[#allocation17 + $0x1c] sm:$0xf]  ;;  %v10560_v1 = vld [vmem:[#allocation17 + $0xbe0] sm:$0xf0] }
 0x29c   :  { %v14750_v15 = vadd.f32 %v1785_v9, %v1772_v8  ;;  %v1748_v16 = vpop.f32.mrf.mxu0  ;;  %v1761_v17 = vpop.f32.mrf.mxu1  ;;  %v13243_v0 = vld [vmem:[#allocation17 + $0x2f4] sm:$0xf0] }
 0x29d   :  { %2644 = vmatpush.bf16.msra.mxu0 %v9647_v25  ;;  %2657 = vmatpush.bf16.msrb.mxu1 %v9903_v26  ;;  %v10039_v25 = vor.u32 %v13267_v19, %v10038_v18  ;;  %v9750_v26 = vld [vmem:[#allocation17 + $0x158] sm:$0xf]  ;;  %v13167_v16 = vld [vmem:[#allocation17 + $0x9c] sm:$0xf] }
 0x29e   :  { %2670 = vmatpush.bf16.msrb.mxu2 %v9651_v29  ;;  %2683 = vmatpush.bf16.msra.mxu3 %v9907_v30  ;;  %v10043_v29 = vor.u32 %v13263_v22, %v10040_v23  ;;  %v10006_v30 = vld [vmem:[#allocation17 + $0x358] sm:$0xf]  ;;  %v9751_v36 = vor.u32 %v13195_v27, %v9750_v26  ;;  %v9656_v19 = vld [vmem:[#allocation17 + $0xb8] sm:$0xf0] }
 0x29f   :  { %v10007_v37 = vor.u32 %v13259_v31, %v10006_v30  ;;  %v9654_v8 = vld [vmem:[#allocation17 + $0x98] sm:$0xf]  ;;  %v9915_v30 = vor.u32 %v13231_v20, %v9912_v21  ;;  %v10238_v21 = vld [vmem:[#allocation17 + $0x940] sm:$0xf] }
 0x2a0   :  { %v13171_v9 = vld [vmem:[#allocation17 + $0xb4] sm:$0xf0] }
 0x2a1   :  { %2645 = vmatpush.bf16.msra.mxu0 %v9615_v42  ;;  %2658 = vmatpush.bf16.msrb.mxu1 %v9871_v43  ;;  %v9755_v42 = vor.u32 %v13191_v32, %v9752_v33  ;;  %v10011_v43 = vor.u32 %v13255_v34, %v10008_v35  ;;  %v9622_v27 = vld [vmem:[#allocation17 + $0x58] sm:$0xf]  ;;  %v13159_v33 = vld [vmem:[#allocation17 + $0x5c] sm:$0xf] }
 0x2a2   :  { %2671 = vmatpush.bf16.msrb.mxu2 %v9619_v49  ;;  %2684 = vmatpush.bf16.msra.mxu3 %v9875_v50  ;;  %v9720_v49 = vld [vmem:[#allocation17 + $0x138] sm:$0xf0]  ;;  %v9878_v31 = vld [vmem:[#allocation17 + $0x258] sm:$0xf] }
 0x2a3   :  { %v1774_v38 = vpop.f32.mrf.mxu2  ;;  %v1787_v39 = vpop.f32.mrf.mxu3  ;;  %v13247_v50 = vld [vmem:[#allocation17 + $0x31c] sm:$0xf]  ;;  %v9723_v61 = vor.u32 %v13183_v48, %v9720_v49  ;;  %v13227_v32 = vld [vmem:[#allocation17 + $0x274] sm:$0xf0] }
 0x2a4   :  { %v9624_v34 = vld [vmem:[#allocation17 + $0x78] sm:$0xf0]  ;;  %v9879_v39 = vor.u32 %v13227_v32, %v9878_v31  ;;  %v13155_v40 = vld [vmem:[#allocation17 + $0x34] sm:$0xf0]  ;;  %v10496_v31 = vld [vmem:[#allocation17 + $0xb60] sm:$0xf0] }
 0x2a5   :  { %2646 = vmatpush.bf16.msra.mxu0 %v9583_v62  ;;  %2659 = vmatpush.bf16.msrb.mxu1 %v9839_v63  ;;  %v1798_v52 = vpop.f32.mrf.mxu0  ;;  %v1811_v53 = vpop.f32.mrf.mxu1  ;;  %v9979_v62 = vor.u32 %v13247_v50, %v9976_v51  ;;  %v9942_v63 = vld [vmem:[#allocation17 + $0x2d8] sm:$0xf]  ;;  %v13223_v35 = vld [vmem:[#allocation17 + $0x25c] sm:$0xf] }
 0x2a6   :  { %2672 = vmatpush.bf16.msrb.mxu2 %v9587_v4  ;;  %2685 = vmatpush.bf16.msra.mxu3 %v9843_v5  ;;  %v14756_v54 = vadd.f32 %v1811_v53, %v1798_v52  ;;  %v13239_v4 = vld [vmem:[#allocation17 + $0x2dc] sm:$0xf]  ;;  %v9846_v41 = vld [vmem:[#allocation17 + $0x218] sm:$0xf]  ;;  %v10302_v53 = vld [vmem:[#allocation17 + $0x9c0] sm:$0xf] }
 0x2a7   :  { %v9944_v5 = vld [vmem:[#allocation17 + $0x2f8] sm:$0xf0] }
 0x2a8   :  { %2647 = vmatmul.bf16.vlgmr.msra.gmra.mxu0 %v14708_v46  ;;  %2660 = vmatmul.bf16.vlgmr.msrb.gmra.mxu1 %v14710_v47  ;;  %v9947_v12 = vor.u32 %v13239_v4, %v9944_v5  ;;  %v9592_v48 = vld [vmem:[#allocation17 + $0x38] sm:$0xf0] }
 0x2a9   :  { %2691 = vmatpush.bf16.msrb.mxu0 %v9815_v6  ;;  %2704 = vmatpush.bf16.msra.mxu1 %v10071_v7  ;;  %v9687_v6 = vor.u32 %v13179_v60, %v9686_v57  ;;  %v9943_v7 = vor.u32 %v13243_v0, %v9942_v63  ;;  %v13215_v49 = vld [vmem:[#allocation17 + $0x21c] sm:$0xf]  ;;  %v13528_v57 = vld [vmem:[#allocation17 + $0xbdc] sm:$0xf0]  ;;  %v13460_v60 = vld [vmem:[#allocation17 + $0x9c4] sm:$0xf]  ;;  %v9595_v3 = vor.u32 %v13151_v45, %v9592_v48 }
 0x2aa   :  { %2717 = vmatpush.bf16.msra.mxu2 %v9819_v13  ;;  %2730 = vmatpush.bf16.msrb.mxu3 %v10075_v14  ;;  %v9910_v13 = vld [vmem:[#allocation17 + $0x298] sm:$0xf]  ;;  %v9848_v52 = vld [vmem:[#allocation17 + $0x238] sm:$0xf0]  ;;  %v10304_v63 = vld [vmem:[#allocation17 + $0x9e0] sm:$0xf0] }
 0x2ab   :  { %2673 = vmatmul.bf16.vlgmr.msrb.gmra.mxu2 %v14708_v46  ;;  %2686 = vmatmul.bf16.vlgmr.msra.gmra.mxu3 %v14710_v47  ;;  %v13235_v14 = vld [vmem:[#allocation17 + $0x2b4] sm:$0xf0]  ;;  %v13524_v0 = vld [vmem:[#allocation17 + $0xbc4] sm:$0xf]  ;;  %v9851_v4 = vor.u32 %v13215_v49, %v9848_v52  ;;  %v13432_v52 = vld [vmem:[#allocation17 + $0x8dc] sm:$0xf0] }
 0x2ac   :  { %v9911_v26 = vor.u32 %v13235_v14, %v9910_v13  ;;  %v13520_v13 = vld [vmem:[#allocation17 + $0xb9c] sm:$0xf0]  ;;  %v13452_v14 = vld [vmem:[#allocation17 + $0x984] sm:$0xf] }
 0x2ad   :  { %2692 = vmatpush.bf16.msrb.mxu0 %v9783_v24  ;;  %2705 = vmatpush.bf16.msra.mxu1 %v10039_v25  ;;  %v1800_v23 = vpop.f32.mrf.mxu0  ;;  %v1813_v24 = vpop.f32.mrf.mxu1  ;;  %v9655_v25 = vor.u32 %v13171_v9, %v9654_v8  ;;  %v13456_v8 = vld [vmem:[#allocation17 + $0x99c] sm:$0xf0]  ;;  %v10307_v9 = vor.u32 %v13460_v60, %v10304_v63  ;;  %v13428_v60 = vld [vmem:[#allocation17 + $0x8c4] sm:$0xf] }
 0x2ae   :  { %2718 = vmatpush.bf16.msra.mxu2 %v9787_v28  ;;  %2731 = vmatpush.bf16.msrb.mxu3 %v10043_v29  ;;  %v1824_v17 = vpop.f32.mrf.mxu2  ;;  %v1837_v18 = vpop.f32.mrf.mxu3  ;;  %v13163_v28 = vld [vmem:[#allocation17 + $0x74] sm:$0xf0]  ;;  %v9659_v29 = vor.u32 %v13167_v16, %v9656_v19  ;;  %v10272_v16 = vld [vmem:[#allocation17 + $0x9a0] sm:$0xf0]  ;;  %v13448_v23 = vld [vmem:[#allocation17 + $0x95c] sm:$0xf0] }
 0x2af   :  { %v14758_v22 = vadd.f32 %v1837_v18, %v1824_v17  ;;  %v9623_v38 = vor.u32 %v13163_v28, %v9622_v27  ;;  %v13516_v17 = vld [vmem:[#allocation17 + $0xb84] sm:$0xf]  ;;  %v10275_v24 = vor.u32 %v13452_v14, %v10272_v16  ;;  %v13512_v27 = vld [vmem:[#allocation17 + $0xb5c] sm:$0xf0]  ;;  %v10239_v32 = vor.u32 %v13448_v23, %v10238_v21 }
 0x2b0   :  { %v10528_v18 = vld [vmem:[#allocation17 + $0xba0] sm:$0xf0]  ;;  %v10110_v23 = vld [vmem:[#allocation17 + $0x840] sm:$0xf] }
 0x2b1   :  { %2693 = vmatpush.bf16.msrb.mxu0 %v9751_v36  ;;  %2706 = vmatpush.bf16.msra.mxu1 %v10007_v37  ;;  %v9880_v36 = vld [vmem:[#allocation17 + $0x278] sm:$0xf0]  ;;  %v9590_v37 = vld [vmem:[#allocation17 + $0x18] sm:$0xf]  ;;  %v13444_v28 = vld [vmem:[#allocation17 + $0x944] sm:$0xf] }
 0x2b2   :  { %2719 = vmatpush.bf16.msra.mxu2 %v9755_v42  ;;  %2732 = vmatpush.bf16.msrb.mxu3 %v10011_v43  ;;  %v13219_v42 = vld [vmem:[#allocation17 + $0x234] sm:$0xf0]  ;;  %v9627_v43 = vor.u32 %v13159_v33, %v9624_v34  ;;  %v9883_v58 = vor.u32 %v13223_v35, %v9880_v36  ;;  %v10206_v34 = vld [vmem:[#allocation17 + $0x900] sm:$0xf]  ;;  %v10432_v63 = vld [vmem:[#allocation17 + $0xae0] sm:$0xf0] }
 0x2b3   :  { %v13440_v35 = vld [vmem:[#allocation17 + $0x91c] sm:$0xf0]  ;;  %v13484_v14 = vld [vmem:[#allocation17 + $0xa84] sm:$0xf] }
 0x2b4   :  { %v10207_v49 = vor.u32 %v13440_v35, %v10206_v34  ;;  %v10400_v16 = vld [vmem:[#allocation17 + $0xaa0] sm:$0xf0] }
 0x2b5   :  { %2694 = vmatpush.bf16.msrb.mxu0 %v9719_v55  ;;  %2707 = vmatpush.bf16.msra.mxu1 %v9975_v56  ;;  %v13464_v55 = vld [vmem:[#allocation17 + $0x9dc] sm:$0xf0] }
 0x2b6   :  { %2720 = vmatpush.bf16.msra.mxu2 %v9723_v61  ;;  %2733 = vmatpush.bf16.msrb.mxu3 %v9979_v62  ;;  %v1826_v50 = vpop.f32.mrf.mxu2  ;;  %v1839_v51 = vpop.f32.mrf.mxu3  ;;  %v10558_v56 = vld [vmem:[#allocation17 + $0xbc0] sm:$0xf]  ;;  %v9591_v61 = vor.u32 %v13155_v40, %v9590_v37  ;;  %v9847_v62 = vor.u32 %v13219_v42, %v9846_v41  ;;  %v10303_v5 = vor.u32 %v13464_v55, %v10302_v53  ;;  %v13436_v40 = vld [vmem:[#allocation17 + $0x904] sm:$0xf] }
 0x2b7   :  { %v10208_v41 = vld [vmem:[#allocation17 + $0x920] sm:$0xf0]  ;;  %v10174_v51 = vld [vmem:[#allocation17 + $0x8c0] sm:$0xf] }
 0x2b8   :  { %v13500_v42 = vld [vmem:[#allocation17 + $0xb04] sm:$0xf]  ;;  %v10211_v53 = vor.u32 %v13436_v40, %v10208_v41 }
 0x2b9   :  { %2695 = vmatpush.bf16.msrb.mxu0 %v9687_v6  ;;  %2708 = vmatpush.bf16.msra.mxu1 %v9943_v7  ;;  %v10559_v6 = vor.u32 %v13528_v57, %v10558_v56  ;;  %v10270_v7 = vld [vmem:[#allocation17 + $0x980] sm:$0xf]  ;;  %v13404_v41 = vld [vmem:[#allocation17 + $0x804] sm:$0xf] }
 0x2ba   :  { %2721 = vmatpush.bf16.msra.mxu2 %v9691_v11  ;;  %2734 = vmatpush.bf16.msrb.mxu3 %v9947_v12  ;;  %v10563_v11 = vor.u32 %v13524_v0, %v10560_v1  ;;  %v10526_v12 = vld [vmem:[#allocation17 + $0xb80] sm:$0xf]  ;;  %v10271_v19 = vor.u32 %v13456_v8, %v10270_v7  ;;  %v10175_v0 = vor.u32 %v13432_v52, %v10174_v51  ;;  %v13465_v51 = vld [vmem:[#allocation17 + $0x9e4] sm:$0xf0] }
 0x2bb   :  { %v10527_v20 = vor.u32 %v13520_v13, %v10526_v12  ;;  %v10430_v56 = vld [vmem:[#allocation17 + $0xac0] sm:$0xf]  ;;  %v10144_v13 = vld [vmem:[#allocation17 + $0x8a0] sm:$0xf0]  ;;  %v10566_v52 = vld [vmem:[#allocation17 + $0xbc8] sm:$0xf] }
 0x2bc   :  { %v13496_v57 = vld [vmem:[#allocation17 + $0xadc] sm:$0xf0] }
 0x2bd   :  { %2696 = vmatpush.bf16.msrb.mxu0 %v9655_v25  ;;  %2709 = vmatpush.bf16.msra.mxu1 %v9911_v26  ;;  %v10531_v25 = vor.u32 %v13516_v17, %v10528_v18  ;;  %v10494_v26 = vld [vmem:[#allocation17 + $0xb40] sm:$0xf]  ;;  %v10431_v1 = vor.u32 %v13496_v57, %v10430_v56 }
 0x2be   :  { %2722 = vmatpush.bf16.msra.mxu2 %v9659_v29  ;;  %2735 = vmatpush.bf16.msrb.mxu3 %v9915_v30  ;;  %v10240_v29 = vld [vmem:[#allocation17 + $0x960] sm:$0xf0]  ;;  %v10495_v33 = vor.u32 %v13512_v27, %v10494_v26  ;;  %v10398_v7 = vld [vmem:[#allocation17 + $0xa80] sm:$0xf]  ;;  %v10403_v26 = vor.u32 %v13484_v14, %v10400_v16  ;;  %v10536_v14 = vld [vmem:[#allocation17 + $0xba8] sm:$0xf0] }
 0x2bf   :  { %v13508_v30 = vld [vmem:[#allocation17 + $0xb44] sm:$0xf]  ;;  %v10243_v36 = vor.u32 %v13444_v28, %v10240_v29  ;;  %v13488_v8 = vld [vmem:[#allocation17 + $0xa9c] sm:$0xf0]  ;;  %v14769_v16 = vrot.slane %v14708_v46, 2 }
 0x2c0   :  { %v10499_v37 = vor.u32 %v13508_v30, %v10496_v31  ;;  %v10399_v21 = vor.u32 %v13488_v8, %v10398_v7  ;;  %v10366_v27 = vld [vmem:[#allocation17 + $0xa40] sm:$0xf]  ;;  %v13412_v29 = vld [vmem:[#allocation17 + $0x844] sm:$0xf]  ;;  %v10534_v8 = vld [vmem:[#allocation17 + $0xb88] sm:$0xf] }
 0x2c1   :  { %2697 = vmatpush.bf16.msrb.mxu0 %v9623_v38  ;;  %2710 = vmatpush.bf16.msra.mxu1 %v9879_v39  ;;  %v10462_v38 = vld [vmem:[#allocation17 + $0xb00] sm:$0xf]  ;;  %v10112_v30 = vld [vmem:[#allocation17 + $0x860] sm:$0xf0] }
 0x2c2   :  { %2723 = vmatpush.bf16.msra.mxu2 %v9627_v43  ;;  %2736 = vmatpush.bf16.msrb.mxu3 %v9883_v58  ;;  %v13504_v39 = vld [vmem:[#allocation17 + $0xb1c] sm:$0xf0]  ;;  %v10464_v43 = vld [vmem:[#allocation17 + $0xb20] sm:$0xf0] }
 0x2c3   :  { %v10463_v50 = vor.u32 %v13504_v39, %v10462_v38  ;;  %v10467_v55 = vor.u32 %v13500_v42, %v10464_v43  ;;  %v13480_v28 = vld [vmem:[#allocation17 + $0xa5c] sm:$0xf0]  ;;  %v13476_v31 = vld [vmem:[#allocation17 + $0xa44] sm:$0xf]  ;;  %v10115_v39 = vor.u32 %v13412_v29, %v10112_v30  ;;  %v10248_v29 = vld [vmem:[#allocation17 + $0x968] sm:$0xf0] }
 0x2c4   :  { %v10367_v35 = vor.u32 %v13480_v28, %v10366_v27  ;;  %v13472_v38 = vld [vmem:[#allocation17 + $0xa1c] sm:$0xf0]  ;;  %v10080_v42 = vld [vmem:[#allocation17 + $0x820] sm:$0xf0]  ;;  %v13513_v27 = vld [vmem:[#allocation17 + $0xb64] sm:$0xf0] }
 0x2c5   :  { %2698 = vmatpush.bf16.msrb.mxu0 %v9591_v61  ;;  %2711 = vmatpush.bf16.msra.mxu1 %v9847_v62  ;;  %v1850_v58 = vpop.f32.mrf.mxu0  ;;  %v1863_v45 = vpop.f32.mrf.mxu1  ;;  %v10176_v61 = vld [vmem:[#allocation17 + $0x8e0] sm:$0xf0]  ;;  %v13445_v28 = vld [vmem:[#allocation17 + $0x94c] sm:$0xf] }
 0x2c6   :  { %2724 = vmatpush.bf16.msra.mxu2 %v9595_v3  ;;  %2737 = vmatpush.bf16.msrb.mxu3 %v9851_v4  ;;  %v14764_v48 = vadd.f32 %v1863_v45, %v1850_v58  ;;  %v13492_v62 = vld [vmem:[#allocation17 + $0xac4] sm:$0xf]  ;;  %v10142_v3 = vld [vmem:[#allocation17 + $0x880] sm:$0xf]  ;;  %v13509_v30 = vld [vmem:[#allocation17 + $0xb4c] sm:$0xf] }
 0x2c7   :  { %v13424_v4 = vld [vmem:[#allocation17 + $0x89c] sm:$0xf0]  ;;  %v13468_v43 = vld [vmem:[#allocation17 + $0xa04] sm:$0xf] }
 0x2c8   :  { %2699 = vmatmul.bf16.vlgmr.msrb.gmra.mxu0 %v14708_v46  ;;  %2712 = vmatmul.bf16.vlgmr.msra.gmra.mxu1 %v14710_v47 }
 0x2c9   :  { %3516 = vmatpush.bf16.msra.mxu0 %v10303_v5  ;;  %3529 = vmatpush.bf16.msrb.mxu1 %v10559_v6  ;;  %v10179_v5 = vor.u32 %v13428_v60, %v10176_v61  ;;  %v10435_v6 = vor.u32 %v13492_v62, %v10432_v63  ;;  %v10312_v60 = vld [vmem:[#allocation17 + $0x9e8] sm:$0xf0]  ;;  %v10083_v63 = vor.u32 %v13404_v41, %v10080_v42 }
 0x2ca   :  { %3542 = vmatpush.bf16.msrb.mxu2 %v10307_v9  ;;  %3555 = vmatpush.bf16.msra.mxu3 %v10563_v11  ;;  %v13420_v9 = vld [vmem:[#allocation17 + $0x884] sm:$0xf]  ;;  %v13525_v61 = vld [vmem:[#allocation17 + $0xbcc] sm:$0xf] }
 0x2cb   :  { %2725 = vmatmul.bf16.vlgmr.msra.gmra.mxu2 %v14708_v46  ;;  %2738 = vmatmul.bf16.vlgmr.msrb.gmra.mxu3 %v14710_v47  ;;  %v10568_v62 = vld [vmem:[#allocation17 + $0xbe8] sm:$0xf0] }
 0x2cc   :  { %v10571_v7 = vor.u32 %v13525_v61, %v10568_v62  ;;  %v10216_v41 = vld [vmem:[#allocation17 + $0x928] sm:$0xf0] }
 0x2cd   :  { %3517 = vmatpush.bf16.msra.mxu0 %v10271_v19  ;;  %3530 = vmatpush.bf16.msrb.mxu1 %v10527_v20  ;;  %v1852_v18 = vpop.f32.mrf.mxu0  ;;  %v1865_v19 = vpop.f32.mrf.mxu1  ;;  %v10143_v20 = vor.u32 %v13424_v4, %v10142_v3  ;;  %v10278_v4 = vld [vmem:[#allocation17 + $0x988] sm:$0xf]  ;;  %v13501_v42 = vld [vmem:[#allocation17 + $0xb0c] sm:$0xf] }
 0x2ce   :  { %3543 = vmatpush.bf16.msrb.mxu2 %v10275_v24  ;;  %3556 = vmatpush.bf16.msra.mxu3 %v10531_v25  ;;  %v1876_v11 = vpop.f32.mrf.mxu2  ;;  %v1889_v12 = vpop.f32.mrf.mxu3  ;;  %v13416_v24 = vld [vmem:[#allocation17 + $0x85c] sm:$0xf0]  ;;  %v10147_v25 = vor.u32 %v13420_v9, %v10144_v13  ;;  %v13521_v9 = vld [vmem:[#allocation17 + $0xba4] sm:$0xf0]  ;;  %v13517_v13 = vld [vmem:[#allocation17 + $0xb8c] sm:$0xf] }
 0x2cf   :  { %v14766_v17 = vadd.f32 %v1889_v12, %v1876_v11  ;;  %v10111_v34 = vor.u32 %v13416_v24, %v10110_v23  ;;  %v13453_v11 = vld [vmem:[#allocation17 + $0x98c] sm:$0xf]  ;;  %v14772_v18 = vrot.slane %v14710_v47, 2  ;;  %v13449_v23 = vld [vmem:[#allocation17 + $0x964] sm:$0xf0] }
 0x2d0   :  { %v10280_v12 = vld [vmem:[#allocation17 + $0x9a8] sm:$0xf0] }
 0x2d1   :  { %3518 = vmatpush.bf16.msra.mxu0 %v10239_v32  ;;  %3531 = vmatpush.bf16.msrb.mxu1 %v10495_v33  ;;  %v10368_v32 = vld [vmem:[#allocation17 + $0xa60] sm:$0xf0]  ;;  %v10078_v33 = vld [vmem:[#allocation17 + $0x800] sm:$0xf]  ;;  %v10283_v24 = vor.u32 %v13453_v11, %v10280_v12  ;;  %v13429_v61 = vld [vmem:[#allocation17 + $0x8cc] sm:$0xf] }
 0x2d2   :  { %3544 = vmatpush.bf16.msrb.mxu2 %v10243_v36  ;;  %3557 = vmatpush.bf16.msra.mxu3 %v10499_v37  ;;  %v13408_v36 = vld [vmem:[#allocation17 + $0x81c] sm:$0xf0]  ;;  %v10371_v40 = vor.u32 %v13476_v31, %v10368_v32  ;;  %v10504_v31 = vld [vmem:[#allocation17 + $0xb68] sm:$0xf0] }
 0x2d3   :  { %v10334_v37 = vld [vmem:[#allocation17 + $0xa00] sm:$0xf]  ;;  %v10079_v56 = vor.u32 %v13408_v36, %v10078_v33  ;;  %v10251_v36 = vor.u32 %v13445_v28, %v10248_v29  ;;  %v13421_v11 = vld [vmem:[#allocation17 + $0x88c] sm:$0xf]  ;;  %v13417_v28 = vld [vmem:[#allocation17 + $0x864] sm:$0xf0] }
 0x2d4   :  { %v10335_v57 = vor.u32 %v13472_v38, %v10334_v37  ;;  %v10507_v37 = vor.u32 %v13509_v30, %v10504_v31  ;;  %v10470_v38 = vld [vmem:[#allocation17 + $0xb08] sm:$0xf] }
 0x2d5   :  { %3519 = vmatpush.bf16.msra.mxu0 %v10207_v49  ;;  %3532 = vmatpush.bf16.msrb.mxu1 %v10463_v50  ;;  %v10336_v49 = vld [vmem:[#allocation17 + $0xa20] sm:$0xf0]  ;;  %v10310_v50 = vld [vmem:[#allocation17 + $0x9c8] sm:$0xf] }
 0x2d6   :  { %3545 = vmatpush.bf16.msrb.mxu2 %v10211_v53  ;;  %3558 = vmatpush.bf16.msra.mxu3 %v10467_v55  ;;  %v1878_v58 = vpop.f32.mrf.mxu2  ;;  %v1891_v45 = vpop.f32.mrf.mxu3  ;;  %v13529_v53 = vld [vmem:[#allocation17 + $0xbe4] sm:$0xf0]  ;;  %v13461_v55 = vld [vmem:[#allocation17 + $0x9cc] sm:$0xf] }
 0x2d7   :  { %v10567_v3 = vor.u32 %v13529_v53, %v10566_v52  ;;  %v10182_v52 = vld [vmem:[#allocation17 + $0x8c8] sm:$0xf] }
 0x2d8   :  { %v13433_v53 = vld [vmem:[#allocation17 + $0x8e4] sm:$0xf0] }
 0x2d9   :  { %3520 = vmatpush.bf16.msra.mxu0 %v10175_v0  ;;  %3533 = vmatpush.bf16.msrb.mxu1 %v10431_v1  ;;  %v10339_v0 = vor.u32 %v13468_v43, %v10336_v49  ;;  %v10311_v1 = vor.u32 %v13465_v51, %v10310_v50  ;;  %v10472_v43 = vld [vmem:[#allocation17 + $0xb28] sm:$0xf0] }
 0x2da   :  { %3546 = vmatpush.bf16.msrb.mxu2 %v10179_v5  ;;  %3559 = vmatpush.bf16.msra.mxu3 %v10435_v6  ;;  %v13457_v5 = vld [vmem:[#allocation17 + $0x9a4] sm:$0xf0]  ;;  %v10315_v6 = vor.u32 %v13461_v55, %v10312_v60 }
 0x2db   :  { %v10279_v19 = vor.u32 %v13457_v5, %v10278_v4  ;;  %v13497_v60 = vld [vmem:[#allocation17 + $0xae4] sm:$0xf0] }
 0x2dc   :  { %v10150_v4 = vld [vmem:[#allocation17 + $0x888] sm:$0xf] }
 0x2dd   :  { %3521 = vmatpush.bf16.msra.mxu0 %v10143_v20  ;;  %3534 = vmatpush.bf16.msrb.mxu1 %v10399_v21  ;;  %v10535_v20 = vor.u32 %v13521_v9, %v10534_v8  ;;  %v10246_v21 = vld [vmem:[#allocation17 + $0x948] sm:$0xf] }
 0x2de   :  { %3547 = vmatpush.bf16.msrb.mxu2 %v10147_v25  ;;  %3560 = vmatpush.bf16.msra.mxu3 %v10403_v26  ;;  %v10539_v25 = vor.u32 %v13517_v13, %v10536_v14  ;;  %v10502_v26 = vld [vmem:[#allocation17 + $0xb48] sm:$0xf]  ;;  %v10247_v32 = vor.u32 %v13449_v23, %v10246_v21  ;;  %v10152_v14 = vld [vmem:[#allocation17 + $0x8a8] sm:$0xf0] }
 0x2df   :  { %v10503_v33 = vor.u32 %v13513_v27, %v10502_v26  ;;  %v13425_v5 = vld [vmem:[#allocation17 + $0x8a4] sm:$0xf0]  ;;  %v10155_v30 = vor.u32 %v13421_v11, %v10152_v14  ;;  %v13522_v14 = vld [vmem:[#allocation17 + $0xbac] sm:$0xf0] }
 0x2e0   :  { %v10406_v8 = vld [vmem:[#allocation17 + $0xa88] sm:$0xf] }
 0x2e1   :  { %3522 = vmatpush.bf16.msra.mxu0 %v10111_v34  ;;  %3535 = vmatpush.bf16.msrb.mxu1 %v10367_v35  ;;  %v10214_v34 = vld [vmem:[#allocation17 + $0x908] sm:$0xf] }
 0x2e2   :  { %3548 = vmatpush.bf16.msrb.mxu2 %v10115_v39  ;;  %3561 = vmatpush.bf16.msra.mxu3 %v10371_v40  ;;  %v13441_v35 = vld [vmem:[#allocation17 + $0x924] sm:$0xf0]  ;;  %v13437_v40 = vld [vmem:[#allocation17 + $0x90c] sm:$0xf] }
 0x2e3   :  { %v13505_v39 = vld [vmem:[#allocation17 + $0xb24] sm:$0xf0]  ;;  %v10215_v50 = vor.u32 %v13441_v35, %v10214_v34  ;;  %v10219_v55 = vor.u32 %v13437_v40, %v10216_v41  ;;  %v13413_v34 = vld [vmem:[#allocation17 + $0x84c] sm:$0xf] }
 0x2e4   :  { %v10471_v51 = vor.u32 %v13505_v39, %v10470_v38  ;;  %v13489_v9 = vld [vmem:[#allocation17 + $0xaa4] sm:$0xf0]  ;;  %v10120_v35 = vld [vmem:[#allocation17 + $0x868] sm:$0xf0] }
 0x2e5   :  { %3523 = vmatpush.bf16.msra.mxu0 %v10079_v56  ;;  %3536 = vmatpush.bf16.msrb.mxu1 %v10335_v57  ;;  %v2544_v58 = vpop.f32.mrf.mxu0  ;;  %v2557_v45 = vpop.f32.mrf.mxu1  ;;  %v10475_v56 = vor.u32 %v13501_v42, %v10472_v43  ;;  %v10438_v57 = vld [vmem:[#allocation17 + $0xac8] sm:$0xf]  ;;  %v10407_v26 = vor.u32 %v13489_v9, %v10406_v8  ;;  %v10123_v43 = vor.u32 %v13413_v34, %v10120_v35  ;;  %v10286_v8 = vld [vmem:[#allocation17 + $0x990] sm:$0xf]  ;;  %v10256_v34 = vld [vmem:[#allocation17 + $0x970] sm:$0xf0] }
 0x2e6   :  { %3549 = vmatpush.bf16.msrb.mxu2 %v10083_v63  ;;  %3562 = vmatpush.bf16.msra.mxu3 %v10339_v0  ;;  %v2545_v49 = vadd.f32 %v2544_v58, %v14744_v59  ;;  %v10184_v63 = vld [vmem:[#allocation17 + $0x8e8] sm:$0xf0]  ;;  %v10439_v59 = vor.u32 %v13497_v60, %v10438_v57  ;;  %v10118_v27 = vld [vmem:[#allocation17 + $0x848] sm:$0xf]  ;;  %v10574_v57 = vld [vmem:[#allocation17 + $0xbd0] sm:$0xf] }
 0x2e7   :  { %v13493_v0 = vld [vmem:[#allocation17 + $0xacc] sm:$0xf]  ;;  %v10119_v38 = vor.u32 %v13417_v28, %v10118_v27  ;;  %v13409_v40 = vld [vmem:[#allocation17 + $0x824] sm:$0xf0]  ;;  %v13530_v60 = vld [vmem:[#allocation17 + $0xbec] sm:$0xf0] }
 0x2e8   :  { %3524 = vmatmul.bf16.vlgmr.msra.gmra.mxu0 %v14769_v16  ;;  %3537 = vmatmul.bf16.vlgmr.msrb.gmra.mxu1 %v14772_v18  ;;  %v14779_v62 = vadd.f32 %v2557_v45, %v2545_v49  ;;  %v10342_v41 = vld [vmem:[#allocation17 + $0xa08] sm:$0xf]  ;;  %v13405_v45 = vld [vmem:[#allocation17 + $0x80c] sm:$0xf]  ;;  %v13458_v9 = vld [vmem:[#allocation17 + $0x9ac] sm:$0xf0] }
 0x2e9   :  { %3568 = vmatpush.bf16.msrb.mxu0 %v10311_v1  ;;  %3581 = vmatpush.bf16.msra.mxu1 %v10567_v3  ;;  %v10440_v1 = vld [vmem:[#allocation17 + $0xae8] sm:$0xf0]  ;;  %v10183_v3 = vor.u32 %v13433_v53, %v10182_v52  ;;  %v13473_v42 = vld [vmem:[#allocation17 + $0xa24] sm:$0xf0]  ;;  %v13450_v27 = vld [vmem:[#allocation17 + $0x96c] sm:$0xf0] }
 0x2ea   :  { %3594 = vmatpush.bf16.msra.mxu2 %v10315_v6  ;;  %3607 = vmatpush.bf16.msrb.mxu3 %v10571_v7  ;;  %v10187_v6 = vor.u32 %v13429_v61, %v10184_v63  ;;  %v10443_v7 = vor.u32 %v13493_v0, %v10440_v1  ;;  %v10088_v49 = vld [vmem:[#allocation17 + $0x828] sm:$0xf0]  ;;  %v13462_v61 = vld [vmem:[#allocation17 + $0x9d4] sm:$0xf]  ;;  %v10343_v0 = vor.u32 %v13473_v42, %v10342_v41  ;;  %v10478_v42 = vld [vmem:[#allocation17 + $0xb10] sm:$0xf] }
 0x2eb   :  { %3550 = vmatmul.bf16.vlgmr.msrb.gmra.mxu2 %v14769_v16  ;;  %3563 = vmatmul.bf16.vlgmr.msra.gmra.mxu3 %v14772_v18  ;;  %v10344_v53 = vld [vmem:[#allocation17 + $0xa28] sm:$0xf0]  ;;  %v10320_v1 = vld [vmem:[#allocation17 + $0x9f0] sm:$0xf0] }
 0x2ec   :  { %v10323_v11 = vor.u32 %v13462_v61, %v10320_v1  ;;  %v13510_v35 = vld [vmem:[#allocation17 + $0xb54] sm:$0xf]  ;;  %v13498_v1 = vld [vmem:[#allocation17 + $0xaec] sm:$0xf0] }
 0x2ed   :  { %3569 = vmatpush.bf16.msrb.mxu0 %v10279_v19  ;;  %3582 = vmatpush.bf16.msra.mxu1 %v10535_v20  ;;  %v13485_v19 = vld [vmem:[#allocation17 + $0xa8c] sm:$0xf]  ;;  %v2546_v23 = vpop.f32.mrf.mxu0 }
 0x2ee   :  { %3595 = vmatpush.bf16.msra.mxu2 %v10283_v24  ;;  %3608 = vmatpush.bf16.msrb.mxu3 %v10539_v25  ;;  %v2570_v12 = vpop.f32.mrf.mxu2  ;;  %v2583_v13 = vpop.f32.mrf.mxu3  ;;  %v10408_v20 = vld [vmem:[#allocation17 + $0xaa8] sm:$0xf0]  ;;  %v10151_v25 = vor.u32 %v13425_v5, %v10150_v4  ;;  %v10091_v4 = vor.u32 %v13405_v45, %v10088_v49  ;;  %v10544_v23 = vld [vmem:[#allocation17 + $0xbb0] sm:$0xf0] }
 0x2ef   :  { %v2571_v21 = vadd.f32 %v2570_v12, %v14746_v10  ;;  %v2559_v24 = vpop.f32.mrf.mxu1  ;;  %v10411_v31 = vor.u32 %v13485_v19, %v10408_v20  ;;  %v10376_v10 = vld [vmem:[#allocation17 + $0xa68] sm:$0xf0]  ;;  %v13454_v19 = vld [vmem:[#allocation17 + $0x994] sm:$0xf] }
 0x2f0   :  { %v10288_v20 = vld [vmem:[#allocation17 + $0x9b0] sm:$0xf0]  ;;  %v10287_v24 = vor.u32 %v13458_v9, %v10286_v8  ;;  %v10158_v8 = vld [vmem:[#allocation17 + $0x890] sm:$0xf] }
 0x2f1   :  { %3570 = vmatpush.bf16.msrb.mxu0 %v10247_v32  ;;  %3583 = vmatpush.bf16.msra.mxu1 %v10503_v33  ;;  %v14782_v29 = vadd.f32 %v2583_v13, %v2571_v21  ;;  %v10374_v32 = vld [vmem:[#allocation17 + $0xa48] sm:$0xf]  ;;  %v10542_v13 = vld [vmem:[#allocation17 + $0xb90] sm:$0xf]  ;;  %v13518_v21 = vld [vmem:[#allocation17 + $0xb94] sm:$0xf]  ;;  %v10291_v28 = vor.u32 %v13454_v19, %v10288_v20 }
 0x2f2   :  { %3596 = vmatpush.bf16.msra.mxu2 %v10251_v36  ;;  %3609 = vmatpush.bf16.msrb.mxu3 %v10507_v37  ;;  %v13481_v33 = vld [vmem:[#allocation17 + $0xa64] sm:$0xf0]  ;;  %v13477_v36 = vld [vmem:[#allocation17 + $0xa4c] sm:$0xf]  ;;  %v10224_v45 = vld [vmem:[#allocation17 + $0x930] sm:$0xf0] }
 0x2f3   :  { %v10086_v37 = vld [vmem:[#allocation17 + $0x808] sm:$0xf]  ;;  %v10375_v39 = vor.u32 %v13481_v33, %v10374_v32  ;;  %v10379_v58 = vor.u32 %v13477_v36, %v10376_v10  ;;  %v13514_v32 = vld [vmem:[#allocation17 + $0xb6c] sm:$0xf0]  ;;  %v13446_v33 = vld [vmem:[#allocation17 + $0x954] sm:$0xf] }
 0x2f4   :  { %v10087_v63 = vor.u32 %v13409_v40, %v10086_v37  ;;  %v10512_v36 = vld [vmem:[#allocation17 + $0xb70] sm:$0xf0]  ;;  %v10259_v40 = vor.u32 %v13446_v33, %v10256_v34  ;;  %v13426_v9 = vld [vmem:[#allocation17 + $0x8ac] sm:$0xf0] }
 0x2f5   :  { %3571 = vmatpush.bf16.msrb.mxu0 %v10215_v50  ;;  %3584 = vmatpush.bf16.msra.mxu1 %v10471_v51  ;;  %v13469_v50 = vld [vmem:[#allocation17 + $0xa0c] sm:$0xf]  ;;  %v10515_v41 = vor.u32 %v13510_v35, %v10512_v36  ;;  %v13502_v49 = vld [vmem:[#allocation17 + $0xb14] sm:$0xf]  ;;  %v13418_v33 = vld [vmem:[#allocation17 + $0x86c] sm:$0xf0] }
 0x2f6   :  { %3597 = vmatpush.bf16.msra.mxu2 %v10219_v55  ;;  %3610 = vmatpush.bf16.msrb.mxu3 %v10475_v56  ;;  %v2572_v51 = vpop.f32.mrf.mxu2  ;;  %v2585_v52 = vpop.f32.mrf.mxu3  ;;  %v10318_v55 = vld [vmem:[#allocation17 + $0x9d0] sm:$0xf]  ;;  %v10347_v5 = vor.u32 %v13469_v50, %v10344_v53  ;;  %v10480_v50 = vld [vmem:[#allocation17 + $0xb30] sm:$0xf0] }
 0x2f7   :  { %v13466_v56 = vld [vmem:[#allocation17 + $0x9ec] sm:$0xf0]  ;;  %v13422_v19 = vld [vmem:[#allocation17 + $0x894] sm:$0xf] }
 0x2f9   :  { %3572 = vmatpush.bf16.msrb.mxu0 %v10183_v3  ;;  %3585 = vmatpush.bf16.msra.mxu1 %v10439_v59  ;;  %v13526_v3 = vld [vmem:[#allocation17 + $0xbd4] sm:$0xf] }
 0x2fa   :  { %3598 = vmatpush.bf16.msra.mxu2 %v10187_v6  ;;  %3611 = vmatpush.bf16.msrb.mxu3 %v10443_v7  ;;  %v10576_v59 = vld [vmem:[#allocation17 + $0xbf0] sm:$0xf0]  ;;  %v10319_v6 = vor.u32 %v13466_v56, %v10318_v55  ;;  %v10575_v7 = vor.u32 %v13530_v60, %v10574_v57  ;;  %v10190_v57 = vld [vmem:[#allocation17 + $0x8d0] sm:$0xf] }
 0x2fb   :  { %v10579_v12 = vor.u32 %v13526_v3, %v10576_v59  ;;  %v13434_v60 = vld [vmem:[#allocation17 + $0x8ec] sm:$0xf0]  ;;  %v13430_v3 = vld [vmem:[#allocation17 + $0x8d4] sm:$0xf] }
 0x2fd   :  { %3573 = vmatpush.bf16.msrb.mxu0 %v10151_v25  ;;  %3586 = vmatpush.bf16.msra.mxu1 %v10407_v26  ;;  %v10543_v25 = vor.u32 %v13522_v14, %v10542_v13  ;;  %v10254_v26 = vld [vmem:[#allocation17 + $0x950] sm:$0xf] }
 0x2fe   :  { %3599 = vmatpush.bf16.msra.mxu2 %v10155_v30  ;;  %3612 = vmatpush.bf16.msrb.mxu3 %v10411_v31  ;;  %v10547_v30 = vor.u32 %v13518_v21, %v10544_v23  ;;  %v10510_v31 = vld [vmem:[#allocation17 + $0xb50] sm:$0xf]  ;;  %v10255_v10 = vor.u32 %v13450_v27, %v10254_v26  ;;  %v10160_v23 = vld [vmem:[#allocation17 + $0x8b0] sm:$0xf0] }
 0x2ff   :  { %v10511_v37 = vor.u32 %v13514_v32, %v10510_v31  ;;  %v10414_v13 = vld [vmem:[#allocation17 + $0xa90] sm:$0xf]  ;;  %v10163_v35 = vor.u32 %v13422_v19, %v10160_v23  ;;  %v13523_v23 = vld [vmem:[#allocation17 + $0xbb4] sm:$0xf0] }
 0x300   :  { %v13490_v14 = vld [vmem:[#allocation17 + $0xaac] sm:$0xf0] }
 0x301   :  { %3574 = vmatpush.bf16.msrb.mxu0 %v10119_v38  ;;  %3587 = vmatpush.bf16.msra.mxu1 %v10375_v39  ;;  %v10222_v38 = vld [vmem:[#allocation17 + $0x910] sm:$0xf]  ;;  %v10415_v31 = vor.u32 %v13490_v14, %v10414_v13  ;;  %v10294_v13 = vld [vmem:[#allocation17 + $0x998] sm:$0xf] }
 0x302   :  { %3600 = vmatpush.bf16.msra.mxu2 %v10123_v43  ;;  %3613 = vmatpush.bf16.msrb.mxu3 %v10379_v58  ;;  %v13442_v39 = vld [vmem:[#allocation17 + $0x92c] sm:$0xf0]  ;;  %v13438_v58 = vld [vmem:[#allocation17 + $0x914] sm:$0xf]  ;;  %v13459_v14 = vld [vmem:[#allocation17 + $0x9b4] sm:$0xf0] }
 0x303   :  { %v13506_v43 = vld [vmem:[#allocation17 + $0xb2c] sm:$0xf0]  ;;  %v10223_v55 = vor.u32 %v13442_v39, %v10222_v38  ;;  %v10227_v61 = vor.u32 %v13438_v58, %v10224_v45  ;;  %v13414_v38 = vld [vmem:[#allocation17 + $0x854] sm:$0xf] }
 0x304   :  { %v10479_v56 = vor.u32 %v13506_v43, %v10478_v42  ;;  %v10126_v32 = vld [vmem:[#allocation17 + $0x850] sm:$0xf]  ;;  %v10128_v39 = vld [vmem:[#allocation17 + $0x870] sm:$0xf0] }
 0x305   :  { %3575 = vmatpush.bf16.msrb.mxu0 %v10087_v63  ;;  %3588 = vmatpush.bf16.msra.mxu1 %v10343_v0  ;;  %v2596_v51 = vpop.f32.mrf.mxu0  ;;  %v2609_v52 = vpop.f32.mrf.mxu1  ;;  %v10483_v63 = vor.u32 %v13502_v49, %v10480_v50  ;;  %v10446_v0 = vld [vmem:[#allocation17 + $0xad0] sm:$0xf]  ;;  %v10127_v42 = vor.u32 %v13418_v33, %v10126_v32  ;;  %v10131_v50 = vor.u32 %v13414_v38, %v10128_v39  ;;  %v13451_v32 = vld [vmem:[#allocation17 + $0x974] sm:$0xf0]  ;;  %v10264_v38 = vld [vmem:[#allocation17 + $0x978] sm:$0xf0] }
 0x306   :  { %3601 = vmatpush.bf16.msra.mxu2 %v10091_v4  ;;  %3614 = vmatpush.bf16.msrb.mxu3 %v10347_v5  ;;  %v2597_v53 = vadd.f32 %v2596_v51, %v14748_v44  ;;  %v10192_v4 = vld [vmem:[#allocation17 + $0x8f0] sm:$0xf0]  ;;  %v10447_v44 = vor.u32 %v13498_v1, %v10446_v0  ;;  %v13410_v58 = vld [vmem:[#allocation17 + $0x82c] sm:$0xf0]  ;;  %v10582_v0 = vld [vmem:[#allocation17 + $0xbd8] sm:$0xf] }
 0x307   :  { %v13494_v5 = vld [vmem:[#allocation17 + $0xad4] sm:$0xf]  ;;  %v10350_v45 = vld [vmem:[#allocation17 + $0xa10] sm:$0xf]  ;;  %v13531_v1 = vld [vmem:[#allocation17 + $0xbf4] sm:$0xf0] }
 0x308   :  { %3576 = vmatmul.bf16.vlgmr.msrb.gmra.mxu0 %v14769_v16  ;;  %3589 = vmatmul.bf16.vlgmr.msra.gmra.mxu1 %v14772_v18  ;;  %v14789_v59 = vadd.f32 %v2609_v52, %v2597_v53  ;;  %v13474_v49 = vld [vmem:[#allocation17 + $0xa2c] sm:$0xf0]  ;;  %v13406_v52 = vld [vmem:[#allocation17 + $0x814] sm:$0xf]  ;;  %v13511_v39 = vld [vmem:[#allocation17 + $0xb5c] sm:$0xf] }
 0x309   :  { %3620 = vmatpush.bf16.msra.mxu0 %v10319_v6  ;;  %3633 = vmatpush.bf16.msrb.mxu1 %v10575_v7  ;;  %v10448_v6 = vld [vmem:[#allocation17 + $0xaf0] sm:$0xf0]  ;;  %v10191_v7 = vor.u32 %v13434_v60, %v10190_v57 }
 0x30a   :  { %3646 = vmatpush.bf16.msrb.mxu2 %v10323_v11  ;;  %3659 = vmatpush.bf16.msra.mxu3 %v10579_v12  ;;  %v10195_v11 = vor.u32 %v13430_v3, %v10192_v4  ;;  %v10451_v12 = vor.u32 %v13494_v5, %v10448_v6  ;;  %v10096_v53 = vld [vmem:[#allocation17 + $0x830] sm:$0xf0]  ;;  %v13463_v3 = vld [vmem:[#allocation17 + $0x9dc] sm:$0xf]  ;;  %v10351_v5 = vor.u32 %v13474_v49, %v10350_v45  ;;  %v10486_v49 = vld [vmem:[#allocation17 + $0xb18] sm:$0xf] }
 0x30b   :  { %3602 = vmatmul.bf16.vlgmr.msra.gmra.mxu2 %v14769_v16  ;;  %3615 = vmatmul.bf16.vlgmr.msrb.gmra.mxu3 %v14772_v18  ;;  %v10352_v60 = vld [vmem:[#allocation17 + $0xa30] sm:$0xf0]  ;;  %v10328_v6 = vld [vmem:[#allocation17 + $0x9f8] sm:$0xf0] }
 0x30c   :  { %v10331_v19 = vor.u32 %v13463_v3, %v10328_v6  ;;  %v13499_v6 = vld [vmem:[#allocation17 + $0xaf4] sm:$0xf0] }
 0x30d   :  { %3621 = vmatpush.bf16.msra.mxu0 %v10287_v24  ;;  %3634 = vmatpush.bf16.msrb.mxu1 %v10543_v25  ;;  %v13486_v24 = vld [vmem:[#allocation17 + $0xa94] sm:$0xf]  ;;  %v2598_v27 = vpop.f32.mrf.mxu0 }
 0x30e   :  { %3647 = vmatpush.bf16.msrb.mxu2 %v10291_v28  ;;  %3660 = vmatpush.bf16.msra.mxu3 %v10547_v30  ;;  %v2622_v20 = vpop.f32.mrf.mxu2  ;;  %v2635_v21 = vpop.f32.mrf.mxu3  ;;  %v10416_v25 = vld [vmem:[#allocation17 + $0xab0] sm:$0xf0]  ;;  %v10159_v30 = vor.u32 %v13426_v9, %v10158_v8  ;;  %v10099_v8 = vor.u32 %v13406_v52, %v10096_v53  ;;  %v10552_v27 = vld [vmem:[#allocation17 + $0xbb8] sm:$0xf0] }
 0x30f   :  { %v2623_v26 = vadd.f32 %v2622_v20, %v14750_v15  ;;  %v2611_v28 = vpop.f32.mrf.mxu1  ;;  %v10419_v36 = vor.u32 %v13486_v24, %v10416_v25  ;;  %v10384_v15 = vld [vmem:[#allocation17 + $0xa70] sm:$0xf0]  ;;  %v13455_v24 = vld [vmem:[#allocation17 + $0x99c] sm:$0xf] }
 0x310   :  { %v10296_v25 = vld [vmem:[#allocation17 + $0x9b8] sm:$0xf0]  ;;  %v10295_v28 = vor.u32 %v13459_v14, %v10294_v13  ;;  %v10166_v13 = vld [vmem:[#allocation17 + $0x898] sm:$0xf] }
 0x311   :  { %3622 = vmatpush.bf16.msra.mxu0 %v10255_v10  ;;  %3635 = vmatpush.bf16.msrb.mxu1 %v10511_v37  ;;  %v14792_v34 = vadd.f32 %v2635_v21, %v2623_v26  ;;  %v10382_v10 = vld [vmem:[#allocation17 + $0xa50] sm:$0xf]  ;;  %v10550_v21 = vld [vmem:[#allocation17 + $0xb98] sm:$0xf]  ;;  %v13519_v26 = vld [vmem:[#allocation17 + $0xb9c] sm:$0xf]  ;;  %v10299_v33 = vor.u32 %v13455_v24, %v10296_v25 }
 0x312   :  { %3648 = vmatpush.bf16.msrb.mxu2 %v10259_v40  ;;  %3661 = vmatpush.bf16.msra.mxu3 %v10515_v41  ;;  %v13482_v37 = vld [vmem:[#allocation17 + $0xa6c] sm:$0xf0]  ;;  %v13478_v40 = vld [vmem:[#allocation17 + $0xa54] sm:$0xf]  ;;  %v10232_v52 = vld [vmem:[#allocation17 + $0x938] sm:$0xf0] }
 0x313   :  { %v10094_v41 = vld [vmem:[#allocation17 + $0x810] sm:$0xf]  ;;  %v10383_v43 = vor.u32 %v13482_v37, %v10382_v10  ;;  %v10387_v51 = vor.u32 %v13478_v40, %v10384_v15  ;;  %v13515_v10 = vld [vmem:[#allocation17 + $0xb74] sm:$0xf0]  ;;  %v13447_v37 = vld [vmem:[#allocation17 + $0x95c] sm:$0xf] }
 0x314   :  { %v10095_v4 = vor.u32 %v13410_v58, %v10094_v41  ;;  %v10520_v40 = vld [vmem:[#allocation17 + $0xb78] sm:$0xf0]  ;;  %v10267_v58 = vor.u32 %v13447_v37, %v10264_v38  ;;  %v13427_v14 = vld [vmem:[#allocation17 + $0x8b4] sm:$0xf0] }
 0x315   :  { %3623 = vmatpush.bf16.msra.mxu0 %v10223_v55  ;;  %3636 = vmatpush.bf16.msrb.mxu1 %v10479_v56  ;;  %v13470_v55 = vld [vmem:[#allocation17 + $0xa14] sm:$0xf]  ;;  %v10523_v45 = vor.u32 %v13511_v39, %v10520_v40  ;;  %v13503_v53 = vld [vmem:[#allocation17 + $0xb1c] sm:$0xf]  ;;  %v13419_v37 = vld [vmem:[#allocation17 + $0x874] sm:$0xf0] }
 0x316   :  { %3649 = vmatpush.bf16.msrb.mxu2 %v10227_v61  ;;  %3662 = vmatpush.bf16.msra.mxu3 %v10483_v63  ;;  %v2624_v56 = vpop.f32.mrf.mxu2  ;;  %v2637_v57 = vpop.f32.mrf.mxu3  ;;  %v10326_v61 = vld [vmem:[#allocation17 + $0x9d8] sm:$0xf]  ;;  %v10355_v9 = vor.u32 %v13470_v55, %v10352_v60  ;;  %v10488_v55 = vld [vmem:[#allocation17 + $0xb38] sm:$0xf0] }
 0x317   :  { %v13467_v63 = vld [vmem:[#allocation17 + $0x9f4] sm:$0xf0]  ;;  %v13423_v24 = vld [vmem:[#allocation17 + $0x89c] sm:$0xf] }
 0x319   :  { %3624 = vmatpush.bf16.msra.mxu0 %v10191_v7  ;;  %3637 = vmatpush.bf16.msrb.mxu1 %v10447_v44  ;;  %v13527_v7 = vld [vmem:[#allocation17 + $0xbdc] sm:$0xf] }
 0x31a   :  { %3650 = vmatpush.bf16.msrb.mxu2 %v10195_v11  ;;  %3663 = vmatpush.bf16.msra.mxu3 %v10451_v12  ;;  %v10584_v44 = vld [vmem:[#allocation17 + $0xbf8] sm:$0xf0]  ;;  %v10327_v11 = vor.u32 %v13467_v63, %v10326_v61  ;;  %v10583_v12 = vor.u32 %v13531_v1, %v10582_v0  ;;  %v10198_v0 = vld [vmem:[#allocation17 + $0x8d8] sm:$0xf] }
 0x31b   :  { %v10587_v20 = vor.u32 %v13527_v7, %v10584_v44  ;;  %v13435_v1 = vld [vmem:[#allocation17 + $0x8f4] sm:$0xf0]  ;;  %v13431_v7 = vld [vmem:[#allocation17 + $0x8dc] sm:$0xf] }
 0x31d   :  { %3625 = vmatpush.bf16.msra.mxu0 %v10159_v30  ;;  %3638 = vmatpush.bf16.msrb.mxu1 %v10415_v31  ;;  %v10551_v30 = vor.u32 %v13523_v23, %v10550_v21  ;;  %v10262_v31 = vld [vmem:[#allocation17 + $0x958] sm:$0xf] }
 0x31e   :  { %3651 = vmatpush.bf16.msrb.mxu2 %v10163_v35  ;;  %3664 = vmatpush.bf16.msra.mxu3 %v10419_v36  ;;  %v10555_v35 = vor.u32 %v13519_v26, %v10552_v27  ;;  %v10518_v36 = vld [vmem:[#allocation17 + $0xb58] sm:$0xf]  ;;  %v10263_v15 = vor.u32 %v13451_v32, %v10262_v31  ;;  %v10168_v27 = vld [vmem:[#allocation17 + $0x8b8] sm:$0xf0] }
 0x31f   :  { %v10519_v41 = vor.u32 %v13515_v10, %v10518_v36  ;;  %v10422_v21 = vld [vmem:[#allocation17 + $0xa98] sm:$0xf]  ;;  %v10171_v39 = vor.u32 %v13423_v24, %v10168_v27  ;;  %v13648_v27 = vld [vmem:[#allocation17 + $0xf9c] sm:$0xf0] }
 0x320   :  { %v13491_v23 = vld [vmem:[#allocation17 + $0xab4] sm:$0xf0] }
 0x321   :  { %3626 = vmatpush.bf16.msra.mxu0 %v10127_v42  ;;  %3639 = vmatpush.bf16.msrb.mxu1 %v10383_v43  ;;  %v10230_v42 = vld [vmem:[#allocation17 + $0x918] sm:$0xf]  ;;  %v10423_v36 = vor.u32 %v13491_v23, %v10422_v21  ;;  %v10782_v21 = vld [vmem:[#allocation17 + $0xd80] sm:$0xf] }
 0x322   :  { %3652 = vmatpush.bf16.msrb.mxu2 %v10131_v50  ;;  %3665 = vmatpush.bf16.msra.mxu3 %v10387_v51  ;;  %v13443_v43 = vld [vmem:[#allocation17 + $0x934] sm:$0xf0]  ;;  %v13439_v51 = vld [vmem:[#allocation17 + $0x91c] sm:$0xf]  ;;  %v13584_v23 = vld [vmem:[#allocation17 + $0xd9c] sm:$0xf0] }
 0x323   :  { %v13507_v50 = vld [vmem:[#allocation17 + $0xb34] sm:$0xf0]  ;;  %v10231_v61 = vor.u32 %v13443_v43, %v10230_v42  ;;  %v10235_v3 = vor.u32 %v13439_v51, %v10232_v52  ;;  %v13415_v42 = vld [vmem:[#allocation17 + $0x85c] sm:$0xf] }
 0x324   :  { %v10487_v63 = vor.u32 %v13507_v50, %v10486_v49  ;;  %v10134_v10 = vld [vmem:[#allocation17 + $0x858] sm:$0xf]  ;;  %v10136_v43 = vld [vmem:[#allocation17 + $0x878] sm:$0xf0] }
 0x325   :  { %3627 = vmatpush.bf16.msra.mxu0 %v10095_v4  ;;  %3640 = vmatpush.bf16.msrb.mxu1 %v10351_v5  ;;  %v2648_v56 = vpop.f32.mrf.mxu0  ;;  %v2661_v57 = vpop.f32.mrf.mxu1  ;;  %v10491_v4 = vor.u32 %v13503_v53, %v10488_v55  ;;  %v10454_v5 = vld [vmem:[#allocation17 + $0xad8] sm:$0xf]  ;;  %v10135_v49 = vor.u32 %v13419_v37, %v10134_v10  ;;  %v10139_v55 = vor.u32 %v13415_v42, %v10136_v43  ;;  %v13576_v10 = vld [vmem:[#allocation17 + $0xd5c] sm:$0xf0]  ;;  %v10752_v42 = vld [vmem:[#allocation17 + $0xd60] sm:$0xf0] }
 0x326   :  { %3653 = vmatpush.bf16.msrb.mxu2 %v10099_v8  ;;  %3666 = vmatpush.bf16.msra.mxu3 %v10355_v9  ;;  %v2649_v60 = vadd.f32 %v2648_v56, %v14756_v54  ;;  %v10200_v8 = vld [vmem:[#allocation17 + $0x8f8] sm:$0xf0]  ;;  %v10455_v54 = vor.u32 %v13499_v6, %v10454_v5  ;;  %v13411_v51 = vld [vmem:[#allocation17 + $0x834] sm:$0xf0]  ;;  %v11070_v5 = vld [vmem:[#allocation17 + $0xfc0] sm:$0xf] }
 0x327   :  { %v13495_v9 = vld [vmem:[#allocation17 + $0xadc] sm:$0xf]  ;;  %v10358_v52 = vld [vmem:[#allocation17 + $0xa18] sm:$0xf]  ;;  %v13656_v6 = vld [vmem:[#allocation17 + $0xfdc] sm:$0xf0] }
 0x328   :  { %3628 = vmatmul.bf16.vlgmr.msra.gmra.mxu0 %v14769_v16  ;;  %3641 = vmatmul.bf16.vlgmr.msrb.gmra.mxu1 %v14772_v18  ;;  %v14799_v44 = vadd.f32 %v2661_v57, %v2649_v60  ;;  %v13475_v53 = vld [vmem:[#allocation17 + $0xa34] sm:$0xf0]  ;;  %v13407_v57 = vld [vmem:[#allocation17 + $0x81c] sm:$0xf]  ;;  %v13636_v43 = vld [vmem:[#allocation17 + $0xf44] sm:$0xf] }
 0x329   :  { %3672 = vmatpush.bf16.msrb.mxu0 %v10327_v11  ;;  %3685 = vmatpush.bf16.msra.mxu1 %v10583_v12  ;;  %v10456_v11 = vld [vmem:[#allocation17 + $0xaf8] sm:$0xf0]  ;;  %v10199_v12 = vor.u32 %v13435_v1, %v10198_v0 }
 0x32a   :  { %3698 = vmatpush.bf16.msra.mxu2 %v10331_v19  ;;  %3711 = vmatpush.bf16.msrb.mxu3 %v10587_v20  ;;  %v10203_v19 = vor.u32 %v13431_v7, %v10200_v8  ;;  %v10459_v20 = vor.u32 %v13495_v9, %v10456_v11  ;;  %v10104_v60 = vld [vmem:[#allocation17 + $0x838] sm:$0xf0]  ;;  %v13588_v7 = vld [vmem:[#allocation17 + $0xdc4] sm:$0xf]  ;;  %v10359_v9 = vor.u32 %v13475_v53, %v10358_v52  ;;  %v10974_v53 = vld [vmem:[#allocation17 + $0xf00] sm:$0xf] }
 0x32b   :  { %3654 = vmatmul.bf16.vlgmr.msrb.gmra.mxu2 %v14769_v16  ;;  %3667 = vmatmul.bf16.vlgmr.msra.gmra.mxu3 %v14772_v18  ;;  %v10360_v1 = vld [vmem:[#allocation17 + $0xa38] sm:$0xf0]  ;;  %v10816_v11 = vld [vmem:[#allocation17 + $0xde0] sm:$0xf0] }
 0x32c   :  { %v10819_v24 = vor.u32 %v13588_v7, %v10816_v11  ;;  %v10942_v7 = vld [vmem:[#allocation17 + $0xec0] sm:$0xf] }
 0x32d   :  { %3673 = vmatpush.bf16.msrb.mxu0 %v10295_v28  ;;  %3686 = vmatpush.bf16.msra.mxu1 %v10551_v30  ;;  %v13487_v28 = vld [vmem:[#allocation17 + $0xa9c] sm:$0xf]  ;;  %v2650_v32 = vpop.f32.mrf.mxu0 }
 0x32e   :  { %3699 = vmatpush.bf16.msra.mxu2 %v10299_v33  ;;  %3712 = vmatpush.bf16.msrb.mxu3 %v10555_v35  ;;  %v2674_v25 = vpop.f32.mrf.mxu2  ;;  %v2687_v26 = vpop.f32.mrf.mxu3  ;;  %v10424_v30 = vld [vmem:[#allocation17 + $0xab8] sm:$0xf0]  ;;  %v10167_v35 = vor.u32 %v13427_v14, %v10166_v13  ;;  %v10107_v13 = vor.u32 %v13407_v57, %v10104_v60  ;;  %v11040_v32 = vld [vmem:[#allocation17 + $0xfa0] sm:$0xf0] }
 0x32f   :  { %v2675_v31 = vadd.f32 %v2674_v25, %v14758_v22  ;;  %v2663_v33 = vpop.f32.mrf.mxu1  ;;  %v10427_v40 = vor.u32 %v13487_v28, %v10424_v30  ;;  %v10392_v22 = vld [vmem:[#allocation17 + $0xa78] sm:$0xf0]  ;;  %v13580_v28 = vld [vmem:[#allocation17 + $0xd84] sm:$0xf] }
 0x330   :  { %v10784_v30 = vld [vmem:[#allocation17 + $0xda0] sm:$0xf0]  ;;  %v10783_v33 = vor.u32 %v13584_v23, %v10782_v21 }
 0x331   :  { %3674 = vmatpush.bf16.msrb.mxu0 %v10263_v15  ;;  %3687 = vmatpush.bf16.msra.mxu1 %v10519_v41  ;;  %v14802_v38 = vadd.f32 %v2687_v26, %v2675_v31  ;;  %v10390_v15 = vld [vmem:[#allocation17 + $0xa58] sm:$0xf]  ;;  %v11038_v26 = vld [vmem:[#allocation17 + $0xf80] sm:$0xf]  ;;  %v13644_v31 = vld [vmem:[#allocation17 + $0xf84] sm:$0xf]  ;;  %v10787_v37 = vor.u32 %v13580_v28, %v10784_v30 }
 0x332   :  { %3700 = vmatpush.bf16.msra.mxu2 %v10267_v58  ;;  %3713 = vmatpush.bf16.msrb.mxu3 %v10523_v45  ;;  %v13483_v41 = vld [vmem:[#allocation17 + $0xa74] sm:$0xf0]  ;;  %v13479_v58 = vld [vmem:[#allocation17 + $0xa5c] sm:$0xf]  ;;  %v10720_v57 = vld [vmem:[#allocation17 + $0xd20] sm:$0xf0] }
 0x333   :  { %v10102_v45 = vld [vmem:[#allocation17 + $0x818] sm:$0xf]  ;;  %v10391_v50 = vor.u32 %v13483_v41, %v10390_v15  ;;  %v10395_v56 = vor.u32 %v13479_v58, %v10392_v22  ;;  %v13640_v15 = vld [vmem:[#allocation17 + $0xf5c] sm:$0xf0]  ;;  %v13572_v41 = vld [vmem:[#allocation17 + $0xd44] sm:$0xf] }
 0x334   :  { %v10103_v8 = vor.u32 %v13411_v51, %v10102_v45  ;;  %v11008_v58 = vld [vmem:[#allocation17 + $0xf60] sm:$0xf0]  ;;  %v10755_v51 = vor.u32 %v13572_v41, %v10752_v42 }
 0x335   :  { %3675 = vmatpush.bf16.msrb.mxu0 %v10231_v61  ;;  %3688 = vmatpush.bf16.msra.mxu1 %v10487_v63  ;;  %v13471_v61 = vld [vmem:[#allocation17 + $0xa1c] sm:$0xf]  ;;  %v11011_v52 = vor.u32 %v13636_v43, %v11008_v58  ;;  %v13628_v60 = vld [vmem:[#allocation17 + $0xf04] sm:$0xf]  ;;  %v10878_v43 = vld [vmem:[#allocation17 + $0xe40] sm:$0xf] }
 0x336   :  { %3701 = vmatpush.bf16.msra.mxu2 %v10235_v3  ;;  %3714 = vmatpush.bf16.msrb.mxu3 %v10491_v4  ;;  %v2676_v63 = vpop.f32.mrf.mxu2  ;;  %v2689_v0 = vpop.f32.mrf.mxu3  ;;  %v10814_v3 = vld [vmem:[#allocation17 + $0xdc0] sm:$0xf]  ;;  %v10363_v14 = vor.u32 %v13471_v61, %v10360_v1  ;;  %v10976_v61 = vld [vmem:[#allocation17 + $0xf20] sm:$0xf0] }
 0x337   :  { %v13592_v4 = vld [vmem:[#allocation17 + $0xddc] sm:$0xf0]  ;;  %v10656_v30 = vld [vmem:[#allocation17 + $0xca0] sm:$0xf0] }
 0x338   :  { %v13608_v58 = vld [vmem:[#allocation17 + $0xe5c] sm:$0xf0] }
 0x339   :  { %3676 = vmatpush.bf16.msrb.mxu0 %v10199_v12  ;;  %3689 = vmatpush.bf16.msra.mxu1 %v10455_v54  ;;  %v13652_v12 = vld [vmem:[#allocation17 + $0xfc4] sm:$0xf] }
 0x33a   :  { %3702 = vmatpush.bf16.msra.mxu2 %v10203_v19  ;;  %3715 = vmatpush.bf16.msrb.mxu3 %v10459_v20  ;;  %v11072_v54 = vld [vmem:[#allocation17 + $0xfe0] sm:$0xf0]  ;;  %v10815_v19 = vor.u32 %v13592_v4, %v10814_v3  ;;  %v11071_v20 = vor.u32 %v13656_v6, %v11070_v5  ;;  %v10686_v3 = vld [vmem:[#allocation17 + $0xcc0] sm:$0xf]  ;;  %v10979_v6 = vor.u32 %v13628_v60, %v10976_v61 }
 0x33b   :  { %v11075_v25 = vor.u32 %v13652_v12, %v11072_v54  ;;  %v13560_v4 = vld [vmem:[#allocation17 + $0xcdc] sm:$0xf0]  ;;  %v10688_v12 = vld [vmem:[#allocation17 + $0xce0] sm:$0xf0] }
 0x33c   :  { %v13620_v54 = vld [vmem:[#allocation17 + $0xec4] sm:$0xf] }
 0x33d   :  { %3677 = vmatpush.bf16.msrb.mxu0 %v10167_v35  ;;  %3690 = vmatpush.bf16.msra.mxu1 %v10423_v36  ;;  %v11039_v35 = vor.u32 %v13648_v27, %v11038_v26  ;;  %v10750_v36 = vld [vmem:[#allocation17 + $0xd40] sm:$0xf]  ;;  %v13548_v26 = vld [vmem:[#allocation17 + $0xc84] sm:$0xf] }
 0x33e   :  { %3703 = vmatpush.bf16.msra.mxu2 %v10171_v39  ;;  %3716 = vmatpush.bf16.msrb.mxu3 %v10427_v40  ;;  %v11043_v39 = vor.u32 %v13644_v31, %v11040_v32  ;;  %v11006_v40 = vld [vmem:[#allocation17 + $0xf40] sm:$0xf]  ;;  %v10751_v22 = vor.u32 %v13576_v10, %v10750_v36  ;;  %v13612_v31 = vld [vmem:[#allocation17 + $0xe84] sm:$0xf]  ;;  %v10659_v41 = vor.u32 %v13548_v26, %v10656_v30  ;;  %v11046_v26 = vld [vmem:[#allocation17 + $0xf88] sm:$0xf] }
 0x33f   :  { %v11007_v45 = vor.u32 %v13640_v15, %v11006_v40  ;;  %v10912_v32 = vld [vmem:[#allocation17 + $0xea0] sm:$0xf0]  ;;  %v13544_v40 = vld [vmem:[#allocation17 + $0xc5c] sm:$0xf0]  ;;  %v10792_v30 = vld [vmem:[#allocation17 + $0xda8] sm:$0xf0] }
 0x340   :  { %v10915_v42 = vor.u32 %v13612_v31, %v10912_v32  ;;  %v13532_v61 = vld [vmem:[#allocation17 + $0xc04] sm:$0xf]  ;;  %v13645_v31 = vld [vmem:[#allocation17 + $0xf8c] sm:$0xf] }
 0x341   :  { %3678 = vmatpush.bf16.msrb.mxu0 %v10135_v49  ;;  %3691 = vmatpush.bf16.msra.mxu1 %v10391_v50  ;;  %v10718_v49 = vld [vmem:[#allocation17 + $0xd00] sm:$0xf]  ;;  %v11048_v32 = vld [vmem:[#allocation17 + $0xfa8] sm:$0xf0] }
 0x342   :  { %3704 = vmatpush.bf16.msra.mxu2 %v10139_v55  ;;  %3717 = vmatpush.bf16.msrb.mxu3 %v10395_v56  ;;  %v13568_v50 = vld [vmem:[#allocation17 + $0xd1c] sm:$0xf0]  ;;  %v13564_v56 = vld [vmem:[#allocation17 + $0xd04] sm:$0xf] }
 0x343   :  { %v13632_v55 = vld [vmem:[#allocation17 + $0xf1c] sm:$0xf0]  ;;  %v10719_v0 = vor.u32 %v13568_v50, %v10718_v49  ;;  %v10723_v5 = vor.u32 %v13564_v56, %v10720_v57  ;;  %v13604_v49 = vld [vmem:[#allocation17 + $0xe44] sm:$0xf] }
 0x344   :  { %v10975_v1 = vor.u32 %v13632_v55, %v10974_v53  ;;  %v10590_v50 = vld [vmem:[#allocation17 + $0xc00] sm:$0xf] }
 0x345   :  { %3679 = vmatpush.bf16.msrb.mxu0 %v10103_v8  ;;  %3692 = vmatpush.bf16.msra.mxu1 %v10359_v9  ;;  %v2700_v63 = vpop.f32.mrf.mxu0  ;;  %v13624_v8 = vld [vmem:[#allocation17 + $0xedc] sm:$0xf0]  ;;  %v13556_v9 = vld [vmem:[#allocation17 + $0xcc4] sm:$0xf] }
 0x346   :  { %3705 = vmatpush.bf16.msra.mxu2 %v10107_v13  ;;  %3718 = vmatpush.bf16.msrb.mxu3 %v10363_v14  ;;  %v10944_v13 = vld [vmem:[#allocation17 + $0xee0] sm:$0xf0]  ;;  %v10687_v14 = vor.u32 %v13560_v4, %v10686_v3  ;;  %v10691_v21 = vor.u32 %v13556_v9, %v10688_v12  ;;  %v13536_v53 = vld [vmem:[#allocation17 + $0xc1c] sm:$0xf0]  ;;  %v10822_v3 = vld [vmem:[#allocation17 + $0xdc8] sm:$0xf] }
 0x347   :  { %v10947_v23 = vor.u32 %v13620_v54, %v10944_v13  ;;  %v10846_v55 = vld [vmem:[#allocation17 + $0xe00] sm:$0xf]  ;;  %v13593_v4 = vld [vmem:[#allocation17 + $0xde4] sm:$0xf0]  ;;  %v10824_v12 = vld [vmem:[#allocation17 + $0xde8] sm:$0xf0] }
 0x348   :  { %3680 = vmatmul.bf16.vlgmr.msrb.gmra.mxu0 %v14769_v16  ;;  %3693 = vmatmul.bf16.vlgmr.msra.gmra.mxu1 %v14772_v18  ;;  %v13600_v56 = vld [vmem:[#allocation17 + $0xe1c] sm:$0xf0]  ;;  %v13653_v54 = vld [vmem:[#allocation17 + $0xfcc] sm:$0xf] }
 0x349   :  { %4505 = vmatpush.bf16.msra.mxu0 %v10815_v19  ;;  %4518 = vmatpush.bf16.msrb.mxu1 %v11071_v20  ;;  %v10654_v19 = vld [vmem:[#allocation17 + $0xc80] sm:$0xf]  ;;  %v10847_v9 = vor.u32 %v13600_v56, %v10846_v55  ;;  %v11080_v13 = vld [vmem:[#allocation17 + $0xfe8] sm:$0xf0]  ;;  %v13633_v55 = vld [vmem:[#allocation17 + $0xf24] sm:$0xf0] }
 0x34a   :  { %4531 = vmatpush.bf16.msrb.mxu2 %v10819_v24  ;;  %4544 = vmatpush.bf16.msra.mxu3 %v11075_v25  ;;  %v13552_v20 = vld [vmem:[#allocation17 + $0xc9c] sm:$0xf0]  ;;  %v13565_v56 = vld [vmem:[#allocation17 + $0xd0c] sm:$0xf] }
 0x34b   :  { %3706 = vmatmul.bf16.vlgmr.msra.gmra.mxu2 %v14769_v16  ;;  %3719 = vmatmul.bf16.vlgmr.msrb.gmra.mxu3 %v14772_v18  ;;  %v2713_v16 = vpop.f32.mrf.mxu1  ;;  %v2701_v18 = vadd.f32 %v2700_v63, %v14764_v48  ;;  %v10943_v48 = vor.u32 %v13624_v8, %v10942_v7  ;;  %v10910_v24 = vld [vmem:[#allocation17 + $0xe80] sm:$0xf]  ;;  %v10655_v10 = vor.u32 %v13552_v20, %v10654_v19  ;;  %v10592_v63 = vld [vmem:[#allocation17 + $0xc20] sm:$0xf0]  ;;  %v13589_v7 = vld [vmem:[#allocation17 + $0xdcc] sm:$0xf] }
 0x34c   :  { %v13616_v25 = vld [vmem:[#allocation17 + $0xe9c] sm:$0xf0]  ;;  %v10591_v8 = vor.u32 %v13536_v53, %v10590_v50  ;;  %v10823_v19 = vor.u32 %v13593_v4, %v10822_v3  ;;  %v13569_v50 = vld [vmem:[#allocation17 + $0xd24] sm:$0xf0] }
 0x34d   :  { %4506 = vmatpush.bf16.msra.mxu0 %v10783_v33  ;;  %4519 = vmatpush.bf16.msrb.mxu1 %v11039_v35  ;;  %v14809_v11 = vadd.f32 %v2713_v16, %v2701_v18  ;;  %v2702_v35 = vpop.f32.mrf.mxu0  ;;  %v13596_v16 = vld [vmem:[#allocation17 + $0xe04] sm:$0xf]  ;;  %v10982_v53 = vld [vmem:[#allocation17 + $0xf08] sm:$0xf] }
 0x34e   :  { %4532 = vmatpush.bf16.msrb.mxu2 %v10787_v37  ;;  %4545 = vmatpush.bf16.msra.mxu3 %v11043_v39  ;;  %v2726_v27 = vpop.f32.mrf.mxu2  ;;  %v2739_v28 = vpop.f32.mrf.mxu3  ;;  %v10911_v37 = vor.u32 %v13616_v25, %v10910_v24  ;;  %v10622_v39 = vld [vmem:[#allocation17 + $0xc40] sm:$0xf]  ;;  %v10827_v24 = vor.u32 %v13589_v7, %v10824_v12  ;;  %v11083_v25 = vor.u32 %v13653_v54, %v11080_v13  ;;  %v14818_v35 = vrot.slane %v14710_v47, 3  ;;  %v10694_v3 = vld [vmem:[#allocation17 + $0xcc8] sm:$0xf] }
 0x34f   :  { %v2727_v33 = vadd.f32 %v2726_v27, %v14766_v17  ;;  %v10880_v17 = vld [vmem:[#allocation17 + $0xe60] sm:$0xf0]  ;;  %v13649_v27 = vld [vmem:[#allocation17 + $0xfa4] sm:$0xf0]  ;;  %v10696_v54 = vld [vmem:[#allocation17 + $0xce8] sm:$0xf0] }
 0x350   :  { %v10883_v60 = vor.u32 %v13604_v49, %v10880_v17  ;;  %v10726_v17 = vld [vmem:[#allocation17 + $0xd08] sm:$0xf]  ;;  %v13621_v13 = vld [vmem:[#allocation17 + $0xecc] sm:$0xf] }
 0x351   :  { %4507 = vmatpush.bf16.msra.mxu0 %v10751_v22  ;;  %4520 = vmatpush.bf16.msrb.mxu1 %v11007_v45  ;;  %v14812_v15 = vadd.f32 %v2739_v28, %v2727_v33  ;;  %v13540_v22 = vld [vmem:[#allocation17 + $0xc44] sm:$0xf]  ;;  %v13581_v28 = vld [vmem:[#allocation17 + $0xd8c] sm:$0xf]  ;;  %v14815_v33 = vrot.slane %v14708_v46, 3 }
 0x352   :  { %4533 = vmatpush.bf16.msrb.mxu2 %v10755_v51  ;;  %4546 = vmatpush.bf16.msra.mxu3 %v11011_v52  ;;  %v10624_v45 = vld [vmem:[#allocation17 + $0xc60] sm:$0xf0]  ;;  %v10623_v51 = vor.u32 %v13544_v40, %v10622_v39  ;;  %v10879_v52 = vor.u32 %v13608_v58, %v10878_v43  ;;  %v13577_v39 = vld [vmem:[#allocation17 + $0xd64] sm:$0xf0]  ;;  %v10795_v40 = vor.u32 %v13581_v28, %v10792_v30  ;;  %v13573_v58 = vld [vmem:[#allocation17 + $0xd4c] sm:$0xf] }
 0x353   :  { %v2715_v36 = vpop.f32.mrf.mxu1  ;;  %v10627_v57 = vor.u32 %v13540_v22, %v10624_v45  ;;  %v13641_v43 = vld [vmem:[#allocation17 + $0xf64] sm:$0xf0]  ;;  %v10760_v46 = vld [vmem:[#allocation17 + $0xd68] sm:$0xf0] }
 0x354   :  { %v13637_v22 = vld [vmem:[#allocation17 + $0xf4c] sm:$0xf]  ;;  %v13561_v4 = vld [vmem:[#allocation17 + $0xce4] sm:$0xf0] }
 0x355   :  { %4508 = vmatpush.bf16.msra.mxu0 %v10719_v0  ;;  %4521 = vmatpush.bf16.msrb.mxu1 %v10975_v1  ;;  %v10848_v1 = vld [vmem:[#allocation17 + $0xe20] sm:$0xf0]  ;;  %v11016_v45 = vld [vmem:[#allocation17 + $0xf68] sm:$0xf0]  ;;  %v10950_v7 = vld [vmem:[#allocation17 + $0xec8] sm:$0xf] }
 0x356   :  { %4534 = vmatpush.bf16.msrb.mxu2 %v10723_v5  ;;  %4547 = vmatpush.bf16.msra.mxu3 %v10979_v6  ;;  %v2728_v18 = vpop.f32.mrf.mxu2  ;;  %v2741_v0 = vpop.f32.mrf.mxu3  ;;  %v11078_v5 = vld [vmem:[#allocation17 + $0xfc8] sm:$0xf] }
 0x357   :  { %v13657_v6 = vld [vmem:[#allocation17 + $0xfe4] sm:$0xf0]  ;;  %v10727_v0 = vor.u32 %v13569_v50, %v10726_v17  ;;  %v13605_v17 = vld [vmem:[#allocation17 + $0xe4c] sm:$0xf] }
 0x358   :  { %v11079_v20 = vor.u32 %v13657_v6, %v11078_v5  ;;  %v10888_v50 = vld [vmem:[#allocation17 + $0xe68] sm:$0xf0] }
 0x359   :  { %4509 = vmatpush.bf16.msra.mxu0 %v10687_v14  ;;  %4522 = vmatpush.bf16.msrb.mxu1 %v10943_v48  ;;  %v10595_v14 = vor.u32 %v13532_v61, %v10592_v63  ;;  %v10851_v48 = vor.u32 %v13596_v16, %v10848_v1  ;;  %v10984_v61 = vld [vmem:[#allocation17 + $0xf28] sm:$0xf0]  ;;  %v10983_v1 = vor.u32 %v13633_v55, %v10982_v53  ;;  %v13537_v55 = vld [vmem:[#allocation17 + $0xc24] sm:$0xf0] }
 0x35a   :  { %4535 = vmatpush.bf16.msrb.mxu2 %v10691_v21  ;;  %4548 = vmatpush.bf16.msra.mxu3 %v10947_v23  ;;  %v10790_v21 = vld [vmem:[#allocation17 + $0xd88] sm:$0xf] }
 0x35b   :  { %v13585_v23 = vld [vmem:[#allocation17 + $0xda4] sm:$0xf0] }
 0x35c   :  { %v10791_v36 = vor.u32 %v13585_v23, %v10790_v21  ;;  %v13553_v21 = vld [vmem:[#allocation17 + $0xca4] sm:$0xf0] }
 0x35d   :  { %4510 = vmatpush.bf16.msra.mxu0 %v10655_v10  ;;  %4523 = vmatpush.bf16.msrb.mxu1 %v10911_v37  ;;  %v11047_v10 = vor.u32 %v13649_v27, %v11046_v26  ;;  %v10758_v37 = vld [vmem:[#allocation17 + $0xd48] sm:$0xf]  ;;  %v13549_v27 = vld [vmem:[#allocation17 + $0xc8c] sm:$0xf] }
 0x35e   :  { %4536 = vmatpush.bf16.msrb.mxu2 %v10659_v41  ;;  %4549 = vmatpush.bf16.msra.mxu3 %v10915_v42  ;;  %v11051_v41 = vor.u32 %v13645_v31, %v11048_v32  ;;  %v11014_v42 = vld [vmem:[#allocation17 + $0xf48] sm:$0xf]  ;;  %v10759_v47 = vor.u32 %v13577_v39, %v10758_v37  ;;  %v13613_v31 = vld [vmem:[#allocation17 + $0xe8c] sm:$0xf] }
 0x35f   :  { %v11015_v49 = vor.u32 %v13641_v43, %v11014_v42  ;;  %v13617_v26 = vld [vmem:[#allocation17 + $0xea4] sm:$0xf0]  ;;  %v10920_v32 = vld [vmem:[#allocation17 + $0xea8] sm:$0xf0] }
 0x360   :  { %v13545_v42 = vld [vmem:[#allocation17 + $0xc64] sm:$0xf0] }
 0x361   :  { %4511 = vmatpush.bf16.msra.mxu0 %v10623_v51  ;;  %4524 = vmatpush.bf16.msrb.mxu1 %v10879_v52  ;;  %v10763_v51 = vor.u32 %v13573_v58, %v10760_v46  ;;  %v11019_v52 = vor.u32 %v13637_v22, %v11016_v45  ;;  %v10923_v46 = vor.u32 %v13613_v31, %v10920_v32  ;;  %v10886_v22 = vld [vmem:[#allocation17 + $0xe48] sm:$0xf]  ;;  %v13646_v31 = vld [vmem:[#allocation17 + $0xf94] sm:$0xf] }
 0x362   :  { %4537 = vmatpush.bf16.msrb.mxu2 %v10627_v57  ;;  %4550 = vmatpush.bf16.msra.mxu3 %v10883_v60  ;;  %v10728_v57 = vld [vmem:[#allocation17 + $0xd28] sm:$0xf0]  ;;  %v13609_v45 = vld [vmem:[#allocation17 + $0xe64] sm:$0xf0]  ;;  %v11056_v32 = vld [vmem:[#allocation17 + $0xfb0] sm:$0xf0] }
 0x363   :  { %v13629_v60 = vld [vmem:[#allocation17 + $0xf0c] sm:$0xf]  ;;  %v10731_v5 = vor.u32 %v13565_v56, %v10728_v57  ;;  %v10887_v53 = vor.u32 %v13609_v45, %v10886_v22  ;;  %v10854_v56 = vld [vmem:[#allocation17 + $0xe08] sm:$0xf]  ;;  %v10768_v22 = vld [vmem:[#allocation17 + $0xd70] sm:$0xf0] }
 0x364   :  { %v10987_v6 = vor.u32 %v13629_v60, %v10984_v61  ;;  %v13601_v57 = vld [vmem:[#allocation17 + $0xe24] sm:$0xf0]  ;;  %v10891_v60 = vor.u32 %v13605_v17, %v10888_v50  ;;  %v13533_v61 = vld [vmem:[#allocation17 + $0xc0c] sm:$0xf]  ;;  %v13638_v45 = vld [vmem:[#allocation17 + $0xf54] sm:$0xf] }
 0x365   :  { %4512 = vmatpush.bf16.msra.mxu0 %v10591_v8  ;;  %4525 = vmatpush.bf16.msrb.mxu1 %v10847_v9  ;;  %v3525_v63 = vpop.f32.mrf.mxu0  ;;  %v3538_v16 = vpop.f32.mrf.mxu1  ;;  %v13625_v8 = vld [vmem:[#allocation17 + $0xee4] sm:$0xf0]  ;;  %v13557_v9 = vld [vmem:[#allocation17 + $0xccc] sm:$0xf]  ;;  %v10734_v50 = vld [vmem:[#allocation17 + $0xd10] sm:$0xf] }
 0x366   :  { %4538 = vmatpush.bf16.msrb.mxu2 %v10595_v14  ;;  %4551 = vmatpush.bf16.msra.mxu3 %v10851_v48  ;;  %v3539_v18 = vadd.f32 %v3538_v16, %v3525_v63  ;;  %v10952_v14 = vld [vmem:[#allocation17 + $0xee8] sm:$0xf0]  ;;  %v10695_v48 = vor.u32 %v13561_v4, %v10694_v3  ;;  %v10699_v23 = vor.u32 %v13557_v9, %v10696_v54  ;;  %v10830_v3 = vld [vmem:[#allocation17 + $0xdd0] sm:$0xf]  ;;  %v10832_v54 = vld [vmem:[#allocation17 + $0xdf0] sm:$0xf0] }
 0x367   :  { %v10600_v63 = vld [vmem:[#allocation17 + $0xc28] sm:$0xf0]  ;;  %v13594_v4 = vld [vmem:[#allocation17 + $0xdec] sm:$0xf0]  ;;  %v10855_v9 = vor.u32 %v13601_v57, %v10854_v56  ;;  %v13566_v57 = vld [vmem:[#allocation17 + $0xd14] sm:$0xf] }
 0x368   :  { %4513 = vmatmul.bf16.vlgmr.msra.gmra.mxu0 %v14815_v33  ;;  %4526 = vmatmul.bf16.vlgmr.msrb.gmra.mxu1 %v14818_v35  ;;  %v14825_v12 = vadd.f32 %v3539_v18, %v14779_v62  ;;  %v10664_v62 = vld [vmem:[#allocation17 + $0xca8] sm:$0xf0]  ;;  %v13634_v56 = vld [vmem:[#allocation17 + $0xf2c] sm:$0xf0] }
 0x369   :  { %4557 = vmatpush.bf16.msrb.mxu0 %v10823_v19  ;;  %4570 = vmatpush.bf16.msra.mxu1 %v11079_v20  ;;  %v10951_v19 = vor.u32 %v13625_v8, %v10950_v7  ;;  %v10662_v20 = vld [vmem:[#allocation17 + $0xc88] sm:$0xf]  ;;  %v10667_v58 = vor.u32 %v13549_v27, %v10664_v62  ;;  %v13597_v16 = vld [vmem:[#allocation17 + $0xe0c] sm:$0xf]  ;;  %v13590_v7 = vld [vmem:[#allocation17 + $0xdd4] sm:$0xf] }
 0x36a   :  { %4583 = vmatpush.bf16.msra.mxu2 %v10827_v24  ;;  %4596 = vmatpush.bf16.msrb.mxu3 %v11083_v25  ;;  %v10955_v24 = vor.u32 %v13621_v13, %v10952_v14  ;;  %v10918_v25 = vld [vmem:[#allocation17 + $0xe88] sm:$0xf]  ;;  %v10663_v39 = vor.u32 %v13553_v21, %v10662_v20  ;;  %v13654_v13 = vld [vmem:[#allocation17 + $0xfd4] sm:$0xf]  ;;  %v10831_v20 = vor.u32 %v13594_v4, %v10830_v3  ;;  %v11054_v27 = vld [vmem:[#allocation17 + $0xf90] sm:$0xf] }
 0x36b   :  { %4539 = vmatmul.bf16.vlgmr.msrb.gmra.mxu2 %v14815_v33  ;;  %4552 = vmatmul.bf16.vlgmr.msra.gmra.mxu3 %v14818_v35  ;;  %v11088_v14 = vld [vmem:[#allocation17 + $0xff0] sm:$0xf0]  ;;  %v10702_v3 = vld [vmem:[#allocation17 + $0xcd0] sm:$0xf] }
 0x36c   :  { %v10800_v62 = vld [vmem:[#allocation17 + $0xdb0] sm:$0xf0]  ;;  %v13562_v4 = vld [vmem:[#allocation17 + $0xcec] sm:$0xf0] }
 0x36d   :  { %4558 = vmatpush.bf16.msrb.mxu0 %v10791_v36  ;;  %4571 = vmatpush.bf16.msra.mxu1 %v11047_v10  ;;  %v3527_v10 = vpop.f32.mrf.mxu0  ;;  %v3540_v37 = vpop.f32.mrf.mxu1 }
 0x36e   :  { %4584 = vmatpush.bf16.msra.mxu2 %v10795_v40  ;;  %4597 = vmatpush.bf16.msrb.mxu3 %v11051_v41  ;;  %v3551_v28 = vpop.f32.mrf.mxu2  ;;  %v3564_v30 = vpop.f32.mrf.mxu3  ;;  %v10919_v40 = vor.u32 %v13617_v26, %v10918_v25  ;;  %v10630_v41 = vld [vmem:[#allocation17 + $0xc48] sm:$0xf]  ;;  %v10835_v25 = vor.u32 %v13590_v7, %v10832_v54  ;;  %v11091_v26 = vor.u32 %v13654_v13, %v11088_v14  ;;  %v10766_v37 = vld [vmem:[#allocation17 + $0xd50] sm:$0xf]  ;;  %v10704_v13 = vld [vmem:[#allocation17 + $0xcf0] sm:$0xf0] }
 0x36f   :  { %v3565_v36 = vadd.f32 %v3564_v30, %v3551_v28  ;;  %v13650_v28 = vld [vmem:[#allocation17 + $0xfac] sm:$0xf0]  ;;  %v13582_v30 = vld [vmem:[#allocation17 + $0xd94] sm:$0xf] }
 0x370   :  { %v11055_v10 = vor.u32 %v13650_v28, %v11054_v27  ;;  %v10958_v7 = vld [vmem:[#allocation17 + $0xed0] sm:$0xf]  ;;  %v13622_v14 = vld [vmem:[#allocation17 + $0xed4] sm:$0xf] }
 0x371   :  { %4559 = vmatpush.bf16.msrb.mxu0 %v10759_v47  ;;  %4572 = vmatpush.bf16.msra.mxu1 %v11015_v49  ;;  %v14828_v43 = vadd.f32 %v3565_v36, %v14782_v29  ;;  %v13541_v47 = vld [vmem:[#allocation17 + $0xc4c] sm:$0xf]  ;;  %v13618_v27 = vld [vmem:[#allocation17 + $0xeac] sm:$0xf0]  ;;  %v13550_v28 = vld [vmem:[#allocation17 + $0xc94] sm:$0xf] }
 0x372   :  { %4585 = vmatpush.bf16.msra.mxu2 %v10763_v51  ;;  %4598 = vmatpush.bf16.msrb.mxu3 %v11019_v52  ;;  %v10632_v49 = vld [vmem:[#allocation17 + $0xc68] sm:$0xf0]  ;;  %v10598_v51 = vld [vmem:[#allocation17 + $0xc08] sm:$0xf]  ;;  %v10631_v52 = vor.u32 %v13545_v42, %v10630_v41  ;;  %v11059_v41 = vor.u32 %v13646_v31, %v11056_v32  ;;  %v11022_v42 = vld [vmem:[#allocation17 + $0xf50] sm:$0xf] }
 0x373   :  { %v10635_v29 = vor.u32 %v13541_v47, %v10632_v49  ;;  %v10599_v8 = vor.u32 %v13537_v55, %v10598_v51  ;;  %v11024_v47 = vld [vmem:[#allocation17 + $0xf70] sm:$0xf0]  ;;  %v13570_v51 = vld [vmem:[#allocation17 + $0xd2c] sm:$0xf0] }
 0x374   :  { %v10990_v55 = vld [vmem:[#allocation17 + $0xf10] sm:$0xf]  ;;  %v13614_v31 = vld [vmem:[#allocation17 + $0xe94] sm:$0xf] }
 0x375   :  { %4560 = vmatpush.bf16.msrb.mxu0 %v10727_v0  ;;  %4573 = vmatpush.bf16.msra.mxu1 %v10983_v1  ;;  %v10856_v1 = vld [vmem:[#allocation17 + $0xe28] sm:$0xf0]  ;;  %v10928_v32 = vld [vmem:[#allocation17 + $0xeb0] sm:$0xf0] }
 0x376   :  { %4586 = vmatpush.bf16.msra.mxu2 %v10731_v5  ;;  %4599 = vmatpush.bf16.msrb.mxu3 %v10987_v6  ;;  %v3553_v18 = vpop.f32.mrf.mxu2  ;;  %v3566_v0 = vpop.f32.mrf.mxu3  ;;  %v11086_v5 = vld [vmem:[#allocation17 + $0xfd0] sm:$0xf] }
 0x377   :  { %v13658_v6 = vld [vmem:[#allocation17 + $0xfec] sm:$0xf0]  ;;  %v10735_v0 = vor.u32 %v13570_v51, %v10734_v50  ;;  %v13606_v50 = vld [vmem:[#allocation17 + $0xe54] sm:$0xf] }
 0x378   :  { %v11087_v21 = vor.u32 %v13658_v6, %v11086_v5  ;;  %v10896_v51 = vld [vmem:[#allocation17 + $0xe70] sm:$0xf0] }
 0x379   :  { %4561 = vmatpush.bf16.msrb.mxu0 %v10695_v48  ;;  %4574 = vmatpush.bf16.msra.mxu1 %v10951_v19  ;;  %v10603_v48 = vor.u32 %v13533_v61, %v10600_v63  ;;  %v10859_v19 = vor.u32 %v13597_v16, %v10856_v1  ;;  %v10992_v61 = vld [vmem:[#allocation17 + $0xf30] sm:$0xf0]  ;;  %v10991_v1 = vor.u32 %v13634_v56, %v10990_v55  ;;  %v13538_v56 = vld [vmem:[#allocation17 + $0xc2c] sm:$0xf0] }
 0x37a   :  { %4587 = vmatpush.bf16.msra.mxu2 %v10699_v23  ;;  %4600 = vmatpush.bf16.msrb.mxu3 %v10955_v24  ;;  %v10798_v23 = vld [vmem:[#allocation17 + $0xd90] sm:$0xf] }
 0x37b   :  { %v13586_v24 = vld [vmem:[#allocation17 + $0xdac] sm:$0xf0] }
 0x37c   :  { %v10799_v36 = vor.u32 %v13586_v24, %v10798_v23  ;;  %v13554_v23 = vld [vmem:[#allocation17 + $0xcac] sm:$0xf0] }
 0x37d   :  { %4562 = vmatpush.bf16.msrb.mxu0 %v10663_v39  ;;  %4575 = vmatpush.bf16.msra.mxu1 %v10919_v40  ;;  %v13578_v39 = vld [vmem:[#allocation17 + $0xd6c] sm:$0xf0]  ;;  %v10803_v40 = vor.u32 %v13582_v30, %v10800_v62 }
 0x37e   :  { %4588 = vmatpush.bf16.msra.mxu2 %v10667_v58  ;;  %4601 = vmatpush.bf16.msrb.mxu3 %v10923_v46  ;;  %v13642_v58 = vld [vmem:[#allocation17 + $0xf6c] sm:$0xf0]  ;;  %v13574_v46 = vld [vmem:[#allocation17 + $0xd54] sm:$0xf]  ;;  %v10767_v49 = vor.u32 %v13578_v39, %v10766_v37 }
 0x37f   :  { %v11023_v17 = vor.u32 %v13642_v58, %v11022_v42  ;;  %v13546_v42 = vld [vmem:[#allocation17 + $0xc6c] sm:$0xf0] }
 0x381   :  { %4563 = vmatpush.bf16.msrb.mxu0 %v10631_v52  ;;  %4576 = vmatpush.bf16.msra.mxu1 %v10887_v53  ;;  %v10771_v52 = vor.u32 %v13574_v46, %v10768_v22  ;;  %v11027_v53 = vor.u32 %v13638_v45, %v11024_v47  ;;  %v10931_v22 = vor.u32 %v13614_v31, %v10928_v32  ;;  %v10894_v45 = vld [vmem:[#allocation17 + $0xe50] sm:$0xf]  ;;  %v13647_v31 = vld [vmem:[#allocation17 + $0xf9c] sm:$0xf] }
 0x382   :  { %4589 = vmatpush.bf16.msra.mxu2 %v10635_v29  ;;  %4602 = vmatpush.bf16.msrb.mxu3 %v10891_v60  ;;  %v10736_v29 = vld [vmem:[#allocation17 + $0xd30] sm:$0xf0]  ;;  %v13610_v47 = vld [vmem:[#allocation17 + $0xe6c] sm:$0xf0]  ;;  %v11064_v32 = vld [vmem:[#allocation17 + $0xfb8] sm:$0xf0] }
 0x383   :  { %v13630_v60 = vld [vmem:[#allocation17 + $0xf14] sm:$0xf]  ;;  %v10739_v5 = vor.u32 %v13566_v57, %v10736_v29  ;;  %v10895_v55 = vor.u32 %v13610_v47, %v10894_v45  ;;  %v10862_v57 = vld [vmem:[#allocation17 + $0xe10] sm:$0xf]  ;;  %v10776_v45 = vld [vmem:[#allocation17 + $0xd78] sm:$0xf0] }
 0x384   :  { %v10995_v6 = vor.u32 %v13630_v60, %v10992_v61  ;;  %v13602_v29 = vld [vmem:[#allocation17 + $0xe2c] sm:$0xf0]  ;;  %v10899_v60 = vor.u32 %v13606_v50, %v10896_v51  ;;  %v13534_v61 = vld [vmem:[#allocation17 + $0xc14] sm:$0xf]  ;;  %v13639_v47 = vld [vmem:[#allocation17 + $0xf5c] sm:$0xf] }
 0x385   :  { %4564 = vmatpush.bf16.msrb.mxu0 %v10599_v8  ;;  %4577 = vmatpush.bf16.msra.mxu1 %v10855_v9  ;;  %v3577_v63 = vpop.f32.mrf.mxu0  ;;  %v3590_v16 = vpop.f32.mrf.mxu1  ;;  %v13626_v8 = vld [vmem:[#allocation17 + $0xeec] sm:$0xf0]  ;;  %v13558_v9 = vld [vmem:[#allocation17 + $0xcd4] sm:$0xf]  ;;  %v10742_v51 = vld [vmem:[#allocation17 + $0xd18] sm:$0xf] }
 0x386   :  { %4590 = vmatpush.bf16.msra.mxu2 %v10603_v48  ;;  %4603 = vmatpush.bf16.msrb.mxu3 %v10859_v19  ;;  %v3591_v18 = vadd.f32 %v3590_v16, %v3577_v63  ;;  %v10960_v48 = vld [vmem:[#allocation17 + $0xef0] sm:$0xf0]  ;;  %v10703_v19 = vor.u32 %v13562_v4, %v10702_v3  ;;  %v10707_v24 = vor.u32 %v13558_v9, %v10704_v13  ;;  %v10838_v3 = vld [vmem:[#allocation17 + $0xdd8] sm:$0xf]  ;;  %v10840_v13 = vld [vmem:[#allocation17 + $0xdf8] sm:$0xf0] }
 0x387   :  { %v10608_v63 = vld [vmem:[#allocation17 + $0xc30] sm:$0xf0]  ;;  %v13595_v4 = vld [vmem:[#allocation17 + $0xdf4] sm:$0xf0]  ;;  %v10863_v9 = vor.u32 %v13602_v29, %v10862_v57  ;;  %v13567_v29 = vld [vmem:[#allocation17 + $0xd1c] sm:$0xf] }
 0x388   :  { %4565 = vmatmul.bf16.vlgmr.msrb.gmra.mxu0 %v14815_v33  ;;  %4578 = vmatmul.bf16.vlgmr.msra.gmra.mxu1 %v14818_v35  ;;  %v14835_v54 = vadd.f32 %v3591_v18, %v14789_v59  ;;  %v10672_v59 = vld [vmem:[#allocation17 + $0xcb0] sm:$0xf0]  ;;  %v13635_v57 = vld [vmem:[#allocation17 + $0xf34] sm:$0xf0] }
 0x389   :  { %4609 = vmatpush.bf16.msra.mxu0 %v10831_v20  ;;  %4622 = vmatpush.bf16.msrb.mxu1 %v11087_v21  ;;  %v10959_v20 = vor.u32 %v13626_v8, %v10958_v7  ;;  %v10670_v21 = vld [vmem:[#allocation17 + $0xc90] sm:$0xf]  ;;  %v10675_v46 = vor.u32 %v13550_v28, %v10672_v59  ;;  %v13598_v16 = vld [vmem:[#allocation17 + $0xe14] sm:$0xf]  ;;  %v13591_v7 = vld [vmem:[#allocation17 + $0xddc] sm:$0xf] }
 0x38a   :  { %4635 = vmatpush.bf16.msrb.mxu2 %v10835_v25  ;;  %4648 = vmatpush.bf16.msra.mxu3 %v11091_v26  ;;  %v10963_v25 = vor.u32 %v13622_v14, %v10960_v48  ;;  %v10926_v26 = vld [vmem:[#allocation17 + $0xe90] sm:$0xf]  ;;  %v10671_v39 = vor.u32 %v13554_v23, %v10670_v21  ;;  %v13655_v14 = vld [vmem:[#allocation17 + $0xfdc] sm:$0xf]  ;;  %v10839_v21 = vor.u32 %v13595_v4, %v10838_v3  ;;  %v11062_v28 = vld [vmem:[#allocation17 + $0xf98] sm:$0xf] }
 0x38b   :  { %4591 = vmatmul.bf16.vlgmr.msra.gmra.mxu2 %v14815_v33  ;;  %4604 = vmatmul.bf16.vlgmr.msrb.gmra.mxu3 %v14818_v35  ;;  %v11096_v48 = vld [vmem:[#allocation17 + $0xff8] sm:$0xf0]  ;;  %v10710_v3 = vld [vmem:[#allocation17 + $0xcd8] sm:$0xf] }
 0x38c   :  { %v10808_v59 = vld [vmem:[#allocation17 + $0xdb8] sm:$0xf0]  ;;  %v13563_v4 = vld [vmem:[#allocation17 + $0xcf4] sm:$0xf0] }
 0x38d   :  { %4610 = vmatpush.bf16.msra.mxu0 %v10799_v36  ;;  %4623 = vmatpush.bf16.msrb.mxu1 %v11055_v10  ;;  %v3579_v10 = vpop.f32.mrf.mxu0  ;;  %v3592_v37 = vpop.f32.mrf.mxu1 }
 0x38e   :  { %4636 = vmatpush.bf16.msrb.mxu2 %v10803_v40  ;;  %4649 = vmatpush.bf16.msra.mxu3 %v11059_v41  ;;  %v3603_v30 = vpop.f32.mrf.mxu2  ;;  %v3616_v62 = vpop.f32.mrf.mxu3  ;;  %v10927_v40 = vor.u32 %v13618_v27, %v10926_v26  ;;  %v10638_v41 = vld [vmem:[#allocation17 + $0xc50] sm:$0xf]  ;;  %v10843_v26 = vor.u32 %v13591_v7, %v10840_v13  ;;  %v11099_v27 = vor.u32 %v13655_v14, %v11096_v48  ;;  %v10774_v37 = vld [vmem:[#allocation17 + $0xd58] sm:$0xf]  ;;  %v10712_v14 = vld [vmem:[#allocation17 + $0xcf8] sm:$0xf0] }
 0x38f   :  { %v3617_v36 = vadd.f32 %v3616_v62, %v3603_v30  ;;  %v13651_v30 = vld [vmem:[#allocation17 + $0xfb4] sm:$0xf0]  ;;  %v13583_v62 = vld [vmem:[#allocation17 + $0xd9c] sm:$0xf] }
 0x390   :  { %v11063_v10 = vor.u32 %v13651_v30, %v11062_v28  ;;  %v10966_v7 = vld [vmem:[#allocation17 + $0xed8] sm:$0xf]  ;;  %v13623_v48 = vld [vmem:[#allocation17 + $0xedc] sm:$0xf] }
 0x391   :  { %4611 = vmatpush.bf16.msra.mxu0 %v10767_v49  ;;  %4624 = vmatpush.bf16.msrb.mxu1 %v11023_v17  ;;  %v14838_v58 = vadd.f32 %v3617_v36, %v14792_v34  ;;  %v13542_v49 = vld [vmem:[#allocation17 + $0xc54] sm:$0xf]  ;;  %v13619_v28 = vld [vmem:[#allocation17 + $0xeb4] sm:$0xf0]  ;;  %v13551_v30 = vld [vmem:[#allocation17 + $0xc9c] sm:$0xf] }
 0x392   :  { %4637 = vmatpush.bf16.msrb.mxu2 %v10771_v52  ;;  %4650 = vmatpush.bf16.msra.mxu3 %v11027_v53  ;;  %v10640_v17 = vld [vmem:[#allocation17 + $0xc70] sm:$0xf0]  ;;  %v10606_v52 = vld [vmem:[#allocation17 + $0xc10] sm:$0xf]  ;;  %v10639_v53 = vor.u32 %v13546_v42, %v10638_v41  ;;  %v11067_v41 = vor.u32 %v13647_v31, %v11064_v32  ;;  %v11030_v42 = vld [vmem:[#allocation17 + $0xf58] sm:$0xf] }
 0x393   :  { %v10643_v34 = vor.u32 %v13542_v49, %v10640_v17  ;;  %v10607_v8 = vor.u32 %v13538_v56, %v10606_v52  ;;  %v11032_v49 = vld [vmem:[#allocation17 + $0xf78] sm:$0xf0]  ;;  %v13571_v52 = vld [vmem:[#allocation17 + $0xd34] sm:$0xf0] }
 0x394   :  { %v10998_v56 = vld [vmem:[#allocation17 + $0xf18] sm:$0xf]  ;;  %v13615_v31 = vld [vmem:[#allocation17 + $0xe9c] sm:$0xf] }
 0x395   :  { %4612 = vmatpush.bf16.msra.mxu0 %v10735_v0  ;;  %4625 = vmatpush.bf16.msrb.mxu1 %v10991_v1  ;;  %v10864_v1 = vld [vmem:[#allocation17 + $0xe30] sm:$0xf0]  ;;  %v10936_v32 = vld [vmem:[#allocation17 + $0xeb8] sm:$0xf0] }
 0x396   :  { %4638 = vmatpush.bf16.msrb.mxu2 %v10739_v5  ;;  %4651 = vmatpush.bf16.msra.mxu3 %v10995_v6  ;;  %v3605_v18 = vpop.f32.mrf.mxu2  ;;  %v3618_v0 = vpop.f32.mrf.mxu3  ;;  %v11094_v5 = vld [vmem:[#allocation17 + $0xfd8] sm:$0xf] }
 0x397   :  { %v13659_v6 = vld [vmem:[#allocation17 + $0xff4] sm:$0xf0]  ;;  %v10743_v0 = vor.u32 %v13571_v52, %v10742_v51  ;;  %v13607_v51 = vld [vmem:[#allocation17 + $0xe5c] sm:$0xf] }
 0x398   :  { %v11095_v23 = vor.u32 %v13659_v6, %v11094_v5  ;;  %v10904_v52 = vld [vmem:[#allocation17 + $0xe78] sm:$0xf0] }
 0x399   :  { %4613 = vmatpush.bf16.msra.mxu0 %v10703_v19  ;;  %4626 = vmatpush.bf16.msrb.mxu1 %v10959_v20  ;;  %v10611_v19 = vor.u32 %v13534_v61, %v10608_v63  ;;  %v10867_v20 = vor.u32 %v13598_v16, %v10864_v1  ;;  %v11000_v61 = vld [vmem:[#allocation17 + $0xf38] sm:$0xf0]  ;;  %v10999_v1 = vor.u32 %v13635_v57, %v10998_v56  ;;  %v13539_v57 = vld [vmem:[#allocation17 + $0xc34] sm:$0xf0] }
 0x39a   :  { %4639 = vmatpush.bf16.msrb.mxu2 %v10707_v24  ;;  %4652 = vmatpush.bf16.msra.mxu3 %v10963_v25  ;;  %v10806_v24 = vld [vmem:[#allocation17 + $0xd98] sm:$0xf] }
 0x39b   :  { %v13587_v25 = vld [vmem:[#allocation17 + $0xdb4] sm:$0xf0] }
 0x39c   :  { %v10807_v36 = vor.u32 %v13587_v25, %v10806_v24  ;;  %v13555_v24 = vld [vmem:[#allocation17 + $0xcb4] sm:$0xf0] }
 0x39d   :  { %4614 = vmatpush.bf16.msra.mxu0 %v10671_v39  ;;  %4627 = vmatpush.bf16.msrb.mxu1 %v10927_v40  ;;  %v13579_v39 = vld [vmem:[#allocation17 + $0xd74] sm:$0xf0]  ;;  %v10811_v40 = vor.u32 %v13583_v62, %v10808_v59 }
 0x39e   :  { %4640 = vmatpush.bf16.msrb.mxu2 %v10675_v46  ;;  %4653 = vmatpush.bf16.msra.mxu3 %v10931_v22  ;;  %v13643_v46 = vld [vmem:[#allocation17 + $0xf74] sm:$0xf0]  ;;  %v13575_v22 = vld [vmem:[#allocation17 + $0xd5c] sm:$0xf]  ;;  %v10775_v17 = vor.u32 %v13579_v39, %v10774_v37 }
 0x39f   :  { %v11031_v50 = vor.u32 %v13643_v46, %v11030_v42  ;;  %v13547_v42 = vld [vmem:[#allocation17 + $0xc74] sm:$0xf0] }
 0x3a1   :  { %4615 = vmatpush.bf16.msra.mxu0 %v10639_v53  ;;  %4628 = vmatpush.bf16.msrb.mxu1 %v10895_v55  ;;  %v10779_v53 = vor.u32 %v13575_v22, %v10776_v45  ;;  %v11035_v55 = vor.u32 %v13639_v47, %v11032_v49  ;;  %v10939_v45 = vor.u32 %v13615_v31, %v10936_v32  ;;  %v10902_v47 = vld [vmem:[#allocation17 + $0xe58] sm:$0xf]  ;;  %v13772_v31 = vld [vmem:[#allocation17 + $0x1384] sm:$0xf] }
 0x3a2   :  { %4641 = vmatpush.bf16.msrb.mxu2 %v10643_v34  ;;  %4654 = vmatpush.bf16.msra.mxu3 %v10899_v60  ;;  %v10744_v34 = vld [vmem:[#allocation17 + $0xd38] sm:$0xf0]  ;;  %v13611_v49 = vld [vmem:[#allocation17 + $0xe74] sm:$0xf0]  ;;  %v11552_v32 = vld [vmem:[#allocation17 + $0x13a0] sm:$0xf0] }
 0x3a3   :  { %v13631_v60 = vld [vmem:[#allocation17 + $0xf1c] sm:$0xf]  ;;  %v10747_v5 = vor.u32 %v13567_v29, %v10744_v34  ;;  %v10903_v56 = vor.u32 %v13611_v49, %v10902_v47  ;;  %v10870_v29 = vld [vmem:[#allocation17 + $0xe18] sm:$0xf]  ;;  %v11264_v47 = vld [vmem:[#allocation17 + $0x1160] sm:$0xf0] }
 0x3a4   :  { %v11003_v6 = vor.u32 %v13631_v60, %v11000_v61  ;;  %v13603_v34 = vld [vmem:[#allocation17 + $0xe34] sm:$0xf0]  ;;  %v10907_v60 = vor.u32 %v13607_v51, %v10904_v52  ;;  %v13535_v61 = vld [vmem:[#allocation17 + $0xc1c] sm:$0xf]  ;;  %v13764_v49 = vld [vmem:[#allocation17 + $0x1344] sm:$0xf] }
 0x3a5   :  { %4616 = vmatpush.bf16.msra.mxu0 %v10607_v8  ;;  %4629 = vmatpush.bf16.msrb.mxu1 %v10863_v9  ;;  %v3629_v63 = vpop.f32.mrf.mxu0  ;;  %v3642_v16 = vpop.f32.mrf.mxu1  ;;  %v13627_v8 = vld [vmem:[#allocation17 + $0xef4] sm:$0xf0]  ;;  %v13559_v9 = vld [vmem:[#allocation17 + $0xcdc] sm:$0xf]  ;;  %v11230_v52 = vld [vmem:[#allocation17 + $0x1100] sm:$0xf] }
 0x3a6   :  { %4642 = vmatpush.bf16.msrb.mxu2 %v10611_v19  ;;  %4655 = vmatpush.bf16.msra.mxu3 %v10867_v20  ;;  %v3643_v18 = vadd.f32 %v3642_v16, %v3629_v63  ;;  %v10968_v19 = vld [vmem:[#allocation17 + $0xef8] sm:$0xf0]  ;;  %v10711_v20 = vor.u32 %v13563_v4, %v10710_v3  ;;  %v10715_v25 = vor.u32 %v13559_v9, %v10712_v14  ;;  %v11326_v3 = vld [vmem:[#allocation17 + $0x11c0] sm:$0xf]  ;;  %v11328_v14 = vld [vmem:[#allocation17 + $0x11e0] sm:$0xf0] }
 0x3a7   :  { %v10616_v63 = vld [vmem:[#allocation17 + $0xc38] sm:$0xf0]  ;;  %v13720_v4 = vld [vmem:[#allocation17 + $0x11dc] sm:$0xf0]  ;;  %v10871_v9 = vor.u32 %v13603_v34, %v10870_v29  ;;  %v13692_v34 = vld [vmem:[#allocation17 + $0x1104] sm:$0xf] }
 0x3a8   :  { %4617 = vmatmul.bf16.vlgmr.msra.gmra.mxu0 %v14815_v33  ;;  %4630 = vmatmul.bf16.vlgmr.msrb.gmra.mxu1 %v14818_v35  ;;  %v14845_v13 = vadd.f32 %v3643_v18, %v14799_v44  ;;  %v10680_v44 = vld [vmem:[#allocation17 + $0xcb8] sm:$0xf0]  ;;  %v13760_v29 = vld [vmem:[#allocation17 + $0x131c] sm:$0xf0] }
 0x3a9   :  { %4661 = vmatpush.bf16.msrb.mxu0 %v10839_v21  ;;  %4674 = vmatpush.bf16.msra.mxu1 %v11095_v23  ;;  %v10967_v21 = vor.u32 %v13627_v8, %v10966_v7  ;;  %v10678_v23 = vld [vmem:[#allocation17 + $0xc98] sm:$0xf]  ;;  %v10683_v22 = vor.u32 %v13551_v30, %v10680_v44  ;;  %v13599_v16 = vld [vmem:[#allocation17 + $0xe1c] sm:$0xf]  ;;  %v13716_v7 = vld [vmem:[#allocation17 + $0x11c4] sm:$0xf] }
 0x3aa   :  { %4687 = vmatpush.bf16.msra.mxu2 %v10843_v26  ;;  %4700 = vmatpush.bf16.msrb.mxu3 %v11099_v27  ;;  %v10971_v26 = vor.u32 %v13623_v48, %v10968_v19  ;;  %v10934_v27 = vld [vmem:[#allocation17 + $0xe98] sm:$0xf]  ;;  %v10679_v39 = vor.u32 %v13555_v24, %v10678_v23  ;;  %v13780_v48 = vld [vmem:[#allocation17 + $0x13c4] sm:$0xf]  ;;  %v11327_v23 = vor.u32 %v13720_v4, %v11326_v3  ;;  %v11550_v30 = vld [vmem:[#allocation17 + $0x1380] sm:$0xf] }
 0x3ab   :  { %4643 = vmatmul.bf16.vlgmr.msrb.gmra.mxu2 %v14815_v33  ;;  %4656 = vmatmul.bf16.vlgmr.msra.gmra.mxu3 %v14818_v35  ;;  %v11584_v19 = vld [vmem:[#allocation17 + $0x13e0] sm:$0xf0] }
 0x3ac   :  { %v11296_v44 = vld [vmem:[#allocation17 + $0x11a0] sm:$0xf0] }
 0x3ad   :  { %4662 = vmatpush.bf16.msrb.mxu0 %v10807_v36  ;;  %4675 = vmatpush.bf16.msra.mxu1 %v11063_v10  ;;  %v3631_v10 = vpop.f32.mrf.mxu0  ;;  %v3644_v37 = vpop.f32.mrf.mxu1 }
 0x3ae   :  { %4688 = vmatpush.bf16.msra.mxu2 %v10811_v40  ;;  %4701 = vmatpush.bf16.msrb.mxu3 %v11067_v41  ;;  %v3655_v62 = vpop.f32.mrf.mxu2  ;;  %v3668_v59 = vpop.f32.mrf.mxu3  ;;  %v10935_v40 = vor.u32 %v13619_v28, %v10934_v27  ;;  %v10646_v41 = vld [vmem:[#allocation17 + $0xc58] sm:$0xf]  ;;  %v11331_v27 = vor.u32 %v13716_v7, %v11328_v14  ;;  %v11587_v28 = vor.u32 %v13780_v48, %v11584_v19  ;;  %v11262_v37 = vld [vmem:[#allocation17 + $0x1140] sm:$0xf]  ;;  %v13684_v7 = vld [vmem:[#allocation17 + $0x10c4] sm:$0xf] }
 0x3af   :  { %v3669_v36 = vadd.f32 %v3668_v59, %v3655_v62  ;;  %v13776_v62 = vld [vmem:[#allocation17 + $0x139c] sm:$0xf0]  ;;  %v13708_v59 = vld [vmem:[#allocation17 + $0x1184] sm:$0xf] }
 0x3b0   :  { %v11551_v10 = vor.u32 %v13776_v62, %v11550_v30  ;;  %v13748_v14 = vld [vmem:[#allocation17 + $0x12c4] sm:$0xf] }
 0x3b1   :  { %4663 = vmatpush.bf16.msrb.mxu0 %v10775_v17  ;;  %4676 = vmatpush.bf16.msra.mxu1 %v11031_v50  ;;  %v14848_v46 = vadd.f32 %v3669_v36, %v14802_v38  ;;  %v13543_v17 = vld [vmem:[#allocation17 + $0xc5c] sm:$0xf]  ;;  %v11456_v48 = vld [vmem:[#allocation17 + $0x12e0] sm:$0xf0] }
 0x3b2   :  { %4689 = vmatpush.bf16.msra.mxu2 %v10779_v53  ;;  %4702 = vmatpush.bf16.msrb.mxu3 %v11035_v55  ;;  %v10648_v50 = vld [vmem:[#allocation17 + $0xc78] sm:$0xf0]  ;;  %v10614_v53 = vld [vmem:[#allocation17 + $0xc18] sm:$0xf]  ;;  %v10647_v55 = vor.u32 %v13547_v42, %v10646_v41  ;;  %v11555_v41 = vor.u32 %v13772_v31, %v11552_v32  ;;  %v11518_v42 = vld [vmem:[#allocation17 + $0x1340] sm:$0xf] }
 0x3b3   :  { %v10651_v38 = vor.u32 %v13543_v17, %v10648_v50  ;;  %v10615_v8 = vor.u32 %v13539_v57, %v10614_v53  ;;  %v11520_v17 = vld [vmem:[#allocation17 + $0x1360] sm:$0xf0]  ;;  %v13696_v53 = vld [vmem:[#allocation17 + $0x111c] sm:$0xf0] }
 0x3b4   :  { %v11486_v57 = vld [vmem:[#allocation17 + $0x1300] sm:$0xf] }
 0x3b5   :  { %4664 = vmatpush.bf16.msrb.mxu0 %v10743_v0  ;;  %4677 = vmatpush.bf16.msra.mxu1 %v10999_v1  ;;  %v10872_v1 = vld [vmem:[#allocation17 + $0xe38] sm:$0xf0] }
 0x3b6   :  { %4690 = vmatpush.bf16.msra.mxu2 %v10747_v5  ;;  %4703 = vmatpush.bf16.msrb.mxu3 %v11003_v6  ;;  %v3657_v18 = vpop.f32.mrf.mxu2  ;;  %v3670_v0 = vpop.f32.mrf.mxu3  ;;  %v11582_v5 = vld [vmem:[#allocation17 + $0x13c0] sm:$0xf] }
 0x3b7   :  { %v13784_v6 = vld [vmem:[#allocation17 + $0x13dc] sm:$0xf0]  ;;  %v11487_v18 = vor.u32 %v13760_v29, %v11486_v57 }
 0x3b8   :  { %v11583_v24 = vor.u32 %v13784_v6, %v11582_v5  ;;  %v11198_v0 = vld [vmem:[#allocation17 + $0x10c0] sm:$0xf] }
 0x3b9   :  { %4665 = vmatpush.bf16.msrb.mxu0 %v10711_v20  ;;  %4678 = vmatpush.bf16.msra.mxu1 %v10967_v21  ;;  %v10619_v20 = vor.u32 %v13535_v61, %v10616_v63  ;;  %v10875_v21 = vor.u32 %v13599_v16, %v10872_v1  ;;  %v11488_v61 = vld [vmem:[#allocation17 + $0x1320] sm:$0xf0]  ;;  %v11231_v16 = vor.u32 %v13696_v53, %v11230_v52  ;;  %v13688_v1 = vld [vmem:[#allocation17 + $0x10dc] sm:$0xf0] }
 0x3ba   :  { %4691 = vmatpush.bf16.msra.mxu2 %v10715_v25  ;;  %4704 = vmatpush.bf16.msrb.mxu3 %v10971_v26  ;;  %v11294_v25 = vld [vmem:[#allocation17 + $0x1180] sm:$0xf]  ;;  %v11199_v19 = vor.u32 %v13688_v1, %v11198_v0  ;;  %v11590_v0 = vld [vmem:[#allocation17 + $0x13c8] sm:$0xf] }
 0x3bb   :  { %v13712_v26 = vld [vmem:[#allocation17 + $0x119c] sm:$0xf0]  ;;  %v13785_v1 = vld [vmem:[#allocation17 + $0x13e4] sm:$0xf0] }
 0x3bc   :  { %v11295_v36 = vor.u32 %v13712_v26, %v11294_v25  ;;  %v11454_v5 = vld [vmem:[#allocation17 + $0x12c0] sm:$0xf]  ;;  %v11459_v25 = vor.u32 %v13748_v14, %v11456_v48  ;;  %v4851_v14 = vunpack.c.l.b16 %v14718_v2 }
 0x3bd   :  { %4666 = vmatpush.bf16.msrb.mxu0 %v10679_v39  ;;  %4679 = vmatpush.bf16.msra.mxu1 %v10935_v40  ;;  %v13704_v39 = vld [vmem:[#allocation17 + $0x115c] sm:$0xf0]  ;;  %v11299_v40 = vor.u32 %v13708_v59, %v11296_v44  ;;  %v13740_v59 = vld [vmem:[#allocation17 + $0x1284] sm:$0xf] }
 0x3be   :  { %4692 = vmatpush.bf16.msra.mxu2 %v10683_v22  ;;  %4705 = vmatpush.bf16.msrb.mxu3 %v10939_v45  ;;  %v13768_v22 = vld [vmem:[#allocation17 + $0x135c] sm:$0xf0]  ;;  %v13700_v45 = vld [vmem:[#allocation17 + $0x1144] sm:$0xf]  ;;  %v11263_v50 = vor.u32 %v13704_v39, %v11262_v37 }
 0x3bf   :  { %v11519_v51 = vor.u32 %v13768_v22, %v11518_v42  ;;  %v13752_v6 = vld [vmem:[#allocation17 + $0x12dc] sm:$0xf0]  ;;  %v11424_v44 = vld [vmem:[#allocation17 + $0x12a0] sm:$0xf0] }
 0x3c0   :  { %v11422_v26 = vld [vmem:[#allocation17 + $0x1280] sm:$0xf]  ;;  %v11427_v22 = vor.u32 %v13740_v59, %v11424_v44  ;;  %v13773_v59 = vld [vmem:[#allocation17 + $0x138c] sm:$0xf] }
 0x3c1   :  { %4667 = vmatpush.bf16.msrb.mxu0 %v10647_v55  ;;  %4680 = vmatpush.bf16.msra.mxu1 %v10903_v56  ;;  %v11267_v55 = vor.u32 %v13700_v45, %v11264_v47  ;;  %v11523_v56 = vor.u32 %v13764_v49, %v11520_v17  ;;  %v11134_v39 = vld [vmem:[#allocation17 + $0x1040] sm:$0xf]  ;;  %v13668_v49 = vld [vmem:[#allocation17 + $0x1044] sm:$0xf]  ;;  %v11560_v44 = vld [vmem:[#allocation17 + $0x13a8] sm:$0xf0] }
 0x3c2   :  { %4693 = vmatpush.bf16.msra.mxu2 %v10651_v38  ;;  %4706 = vmatpush.bf16.msrb.mxu3 %v10907_v60  ;;  %v11232_v38 = vld [vmem:[#allocation17 + $0x1120] sm:$0xf0]  ;;  %v11390_v45 = vld [vmem:[#allocation17 + $0x1240] sm:$0xf] }
 0x3c3   :  { %v13756_v60 = vld [vmem:[#allocation17 + $0x1304] sm:$0xf]  ;;  %v11235_v3 = vor.u32 %v13692_v34, %v11232_v38  ;;  %v13736_v47 = vld [vmem:[#allocation17 + $0x125c] sm:$0xf0] }
 0x3c4   :  { %v11491_v4 = vor.u32 %v13756_v60, %v11488_v61  ;;  %v11136_v17 = vld [vmem:[#allocation17 + $0x1060] sm:$0xf0]  ;;  %v11102_v52 = vld [vmem:[#allocation17 + $0x1000] sm:$0xf] }
 0x3c5   :  { %4668 = vmatpush.bf16.msrb.mxu0 %v10615_v8  ;;  %4681 = vmatpush.bf16.msra.mxu1 %v10871_v9  ;;  %v3681_v63 = vpop.f32.mrf.mxu0  ;;  %v11200_v9 = vld [vmem:[#allocation17 + $0x10e0] sm:$0xf0]  ;;  %v11358_v57 = vld [vmem:[#allocation17 + $0x1200] sm:$0xf] }
 0x3c6   :  { %4694 = vmatpush.bf16.msra.mxu2 %v10619_v20  ;;  %4707 = vmatpush.bf16.msrb.mxu3 %v10875_v21  ;;  %v11455_v20 = vor.u32 %v13752_v6, %v11454_v5  ;;  %v11166_v21 = vld [vmem:[#allocation17 + $0x1080] sm:$0xf]  ;;  %v13660_v38 = vld [vmem:[#allocation17 + $0x1004] sm:$0xf]  ;;  %v11336_v6 = vld [vmem:[#allocation17 + $0x11e8] sm:$0xf0] }
 0x3c7   :  { %v13728_v29 = vld [vmem:[#allocation17 + $0x121c] sm:$0xf0]  ;;  %v11104_v60 = vld [vmem:[#allocation17 + $0x1020] sm:$0xf0] }
 0x3c8   :  { %4669 = vmatmul.bf16.vlgmr.msrb.gmra.mxu0 %v14815_v33  ;;  %4682 = vmatmul.bf16.vlgmr.msra.gmra.mxu1 %v14818_v35  ;;  %v13724_v61 = vld [vmem:[#allocation17 + $0x1204] sm:$0xf]  ;;  %v11359_v5 = vor.u32 %v13728_v29, %v11358_v57  ;;  %v11107_v48 = vor.u32 %v13660_v38, %v11104_v60  ;;  %v11494_v57 = vld [vmem:[#allocation17 + $0x1308] sm:$0xf]  ;;  %v13757_v38 = vld [vmem:[#allocation17 + $0x130c] sm:$0xf] }
 0x3c9   :  { %5497 = vmatpush.bf16.msra.mxu0 %v11327_v23  ;;  %5510 = vmatpush.bf16.msrb.mxu1 %v11583_v24  ;;  %v13680_v23 = vld [vmem:[#allocation17 + $0x109c] sm:$0xf0]  ;;  %v11203_v24 = vor.u32 %v13684_v7, %v11200_v9  ;;  %v13781_v7 = vld [vmem:[#allocation17 + $0x13cc] sm:$0xf]  ;;  %v13761_v29 = vld [vmem:[#allocation17 + $0x1324] sm:$0xf0] }
 0x3ca   :  { %5523 = vmatpush.bf16.msrb.mxu2 %v11331_v27  ;;  %5536 = vmatpush.bf16.msra.mxu3 %v11587_v28  ;;  %v13744_v27 = vld [vmem:[#allocation17 + $0x129c] sm:$0xf0]  ;;  %v13676_v28 = vld [vmem:[#allocation17 + $0x1084] sm:$0xf]  ;;  %v11592_v9 = vld [vmem:[#allocation17 + $0x13e8] sm:$0xf0] }
 0x3cb   :  { %4695 = vmatmul.bf16.vlgmr.msra.gmra.mxu2 %v14815_v33  ;;  %4708 = vmatmul.bf16.vlgmr.msrb.gmra.mxu3 %v14818_v35  ;;  %v3694_v33 = vpop.f32.mrf.mxu1  ;;  %v11423_v37 = vor.u32 %v13744_v27, %v11422_v26  ;;  %v11595_v27 = vor.u32 %v13781_v7, %v11592_v9  ;;  %v11496_v60 = vld [vmem:[#allocation17 + $0x1328] sm:$0xf0] }
 0x3cc   :  { %v3695_v35 = vadd.f32 %v3694_v33, %v3681_v63  ;;  %v11208_v9 = vld [vmem:[#allocation17 + $0x10e8] sm:$0xf0] }
 0x3cd   :  { %5498 = vmatpush.bf16.msra.mxu0 %v11295_v36  ;;  %5511 = vmatpush.bf16.msrb.mxu1 %v11551_v10  ;;  %v3683_v32 = vpop.f32.mrf.mxu0  ;;  %v11167_v10 = vor.u32 %v13680_v23, %v11166_v21  ;;  %v11591_v23 = vor.u32 %v13785_v1, %v11590_v0  ;;  %v13689_v0 = vld [vmem:[#allocation17 + $0x10e4] sm:$0xf0] }
 0x3ce   :  { %5524 = vmatpush.bf16.msrb.mxu2 %v11299_v40  ;;  %5537 = vmatpush.bf16.msra.mxu3 %v11555_v41  ;;  %v14855_v8 = vadd.f32 %v3695_v35, %v14809_v11  ;;  %v3707_v30 = vpop.f32.mrf.mxu2  ;;  %v3720_v62 = vpop.f32.mrf.mxu3  ;;  %v11168_v11 = vld [vmem:[#allocation17 + $0x10a0] sm:$0xf0]  ;;  %v13672_v40 = vld [vmem:[#allocation17 + $0x105c] sm:$0xf0] }
 0x3cf   :  { %v3721_v31 = vadd.f32 %v3720_v62, %v3707_v30  ;;  %v11171_v42 = vor.u32 %v13676_v28, %v11168_v11  ;;  %v11135_v53 = vor.u32 %v13672_v40, %v11134_v39  ;;  %v11360_v35 = vld [vmem:[#allocation17 + $0x1220] sm:$0xf0]  ;;  %v11558_v28 = vld [vmem:[#allocation17 + $0x1388] sm:$0xf]  ;;  %v13709_v62 = vld [vmem:[#allocation17 + $0x118c] sm:$0xf]  ;;  %v11563_v40 = vor.u32 %v13773_v59, %v11560_v44 }
 0x3d0   :  { %v13777_v30 = vld [vmem:[#allocation17 + $0x13a4] sm:$0xf0]  ;;  %v11304_v11 = vld [vmem:[#allocation17 + $0x11a8] sm:$0xf0] }
 0x3d1   :  { %5499 = vmatpush.bf16.msra.mxu0 %v11263_v50  ;;  %5512 = vmatpush.bf16.msrb.mxu1 %v11519_v51  ;;  %v14858_v41 = vadd.f32 %v3721_v31, %v14812_v15  ;;  %v13732_v50 = vld [vmem:[#allocation17 + $0x1244] sm:$0xf]  ;;  %v11139_v15 = vor.u32 %v13668_v49, %v11136_v17  ;;  %v14862_v31 = vpack.c.b16 %v4851_v14, %v4851_v14  ;;  %v13765_v49 = vld [vmem:[#allocation17 + $0x134c] sm:$0xf] }
 0x3d2   :  { %5525 = vmatpush.bf16.msrb.mxu2 %v11267_v55  ;;  %5538 = vmatpush.bf16.msra.mxu3 %v11523_v56  ;;  %v11392_v51 = vld [vmem:[#allocation17 + $0x1260] sm:$0xf0]  ;;  %v11391_v55 = vor.u32 %v13736_v47, %v11390_v45  ;;  %v13664_v56 = vld [vmem:[#allocation17 + $0x101c] sm:$0xf0]  ;;  %v11307_v39 = vor.u32 %v13709_v62, %v11304_v11  ;;  %v13701_v45 = vld [vmem:[#allocation17 + $0x114c] sm:$0xf] }
 0x3d3   :  { %v3696_v36 = vpop.f32.mrf.mxu1  ;;  %v11395_v34 = vor.u32 %v13732_v50, %v11392_v51  ;;  %v11272_v47 = vld [vmem:[#allocation17 + $0x1168] sm:$0xf0] }
 0x3d4   :  { %v11559_v36 = vor.u32 %v13777_v30, %v11558_v28  ;;  %v11528_v17 = vld [vmem:[#allocation17 + $0x1368] sm:$0xf0] }
 0x3d5   :  { %5500 = vmatpush.bf16.msra.mxu0 %v11231_v16  ;;  %5513 = vmatpush.bf16.msrb.mxu1 %v11487_v18  ;;  %v11334_v16 = vld [vmem:[#allocation17 + $0x11c8] sm:$0xf]  ;;  %v13749_v14 = vld [vmem:[#allocation17 + $0x12cc] sm:$0xf] }
 0x3d6   :  { %5526 = vmatpush.bf16.msrb.mxu2 %v11235_v3  ;;  %5539 = vmatpush.bf16.msra.mxu3 %v11491_v4  ;;  %v3709_v63 = vpop.f32.mrf.mxu2  ;;  %v3722_v33 = vpop.f32.mrf.mxu3  ;;  %v13721_v18 = vld [vmem:[#allocation17 + $0x11e4] sm:$0xf0]  ;;  %v13717_v3 = vld [vmem:[#allocation17 + $0x11cc] sm:$0xf]  ;;  %v11103_v4 = vor.u32 %v13664_v56, %v11102_v52  ;;  %v11531_v56 = vor.u32 %v13765_v49, %v11528_v17 }
 0x3d7   :  { %v11335_v21 = vor.u32 %v13721_v18, %v11334_v16  ;;  %v11339_v26 = vor.u32 %v13717_v3, %v11336_v6  ;;  %v11238_v52 = vld [vmem:[#allocation17 + $0x1108] sm:$0xf]  ;;  %v11495_v16 = vor.u32 %v13761_v29, %v11494_v57  ;;  %v11499_v3 = vor.u32 %v13757_v38, %v11496_v60  ;;  %v13685_v6 = vld [vmem:[#allocation17 + $0x10cc] sm:$0xf] }
 0x3d8   :  { %v11206_v18 = vld [vmem:[#allocation17 + $0x10c8] sm:$0xf]  ;;  %v13677_v28 = vld [vmem:[#allocation17 + $0x108c] sm:$0xf] }
 0x3d9   :  { %5501 = vmatpush.bf16.msra.mxu0 %v11199_v19  ;;  %5514 = vmatpush.bf16.msrb.mxu1 %v11455_v20  ;;  %v11363_v19 = vor.u32 %v13724_v61, %v11360_v35  ;;  %v4852_v20 = vunpack.c.h.b16 %v14718_v2  ;;  %v13741_v11 = vld [vmem:[#allocation17 + $0x128c] sm:$0xf]  ;;  %v13737_v49 = vld [vmem:[#allocation17 + $0x1264] sm:$0xf0] }
 0x3da   :  { %5527 = vmatpush.bf16.msrb.mxu2 %v11203_v24  ;;  %5540 = vmatpush.bf16.msra.mxu3 %v11459_v25  ;;  %v11302_v24 = vld [vmem:[#allocation17 + $0x1188] sm:$0xf]  ;;  %v11432_v59 = vld [vmem:[#allocation17 + $0x12a8] sm:$0xf0] }
 0x3db   :  { %v13713_v25 = vld [vmem:[#allocation17 + $0x11a4] sm:$0xf0]  ;;  %v14864_v32 = vpack.c.b16 %v4852_v20, %v4852_v20  ;;  %v13669_v17 = vld [vmem:[#allocation17 + $0x104c] sm:$0xf] }
 0x3dc   :  { %v11303_v2 = vor.u32 %v13713_v25, %v11302_v24  ;;  %v11211_v24 = vor.u32 %v13685_v6, %v11208_v9  ;;  %v13665_v57 = vld [vmem:[#allocation17 + $0x1024] sm:$0xf0]  ;;  %v13661_v38 = vld [vmem:[#allocation17 + $0x100c] sm:$0xf]  ;;  %v11344_v6 = vld [vmem:[#allocation17 + $0x11f0] sm:$0xf0] }
 0x3dd   :  { %5502 = vmatpush.bf16.msra.mxu0 %v11167_v10  ;;  %5515 = vmatpush.bf16.msrb.mxu1 %v11423_v37  ;;  %v11270_v10 = vld [vmem:[#allocation17 + $0x1148] sm:$0xf]  ;;  %v11112_v60 = vld [vmem:[#allocation17 + $0x1028] sm:$0xf0]  ;;  %v13782_v9 = vld [vmem:[#allocation17 + $0x13d4] sm:$0xf] }
 0x3de   :  { %5528 = vmatpush.bf16.msrb.mxu2 %v11171_v42  ;;  %5541 = vmatpush.bf16.msra.mxu3 %v11427_v22  ;;  %v13705_v37 = vld [vmem:[#allocation17 + $0x1164] sm:$0xf0] }
 0x3df   :  { %v11526_v42 = vld [vmem:[#allocation17 + $0x1348] sm:$0xf]  ;;  %v11271_v50 = vor.u32 %v13705_v37, %v11270_v10 }
 0x3e0   :  { %v13769_v22 = vld [vmem:[#allocation17 + $0x1364] sm:$0xf0] }
 0x3e1   :  { %5503 = vmatpush.bf16.msra.mxu0 %v11135_v53  ;;  %5516 = vmatpush.bf16.msrb.mxu1 %v11391_v55  ;;  %v11527_v51 = vor.u32 %v13769_v22, %v11526_v42  ;;  %v13697_v53 = vld [vmem:[#allocation17 + $0x1124] sm:$0xf0]  ;;  %v11275_v55 = vor.u32 %v13701_v45, %v11272_v47  ;;  %v11435_v45 = vor.u32 %v13741_v11, %v11432_v59  ;;  %v11568_v11 = vld [vmem:[#allocation17 + $0x13b0] sm:$0xf0] }
 0x3e2   :  { %5529 = vmatpush.bf16.msrb.mxu2 %v11139_v15  ;;  %5542 = vmatpush.bf16.msra.mxu3 %v11395_v34  ;;  %v13693_v15 = vld [vmem:[#allocation17 + $0x110c] sm:$0xf]  ;;  %v11239_v35 = vor.u32 %v13697_v53, %v11238_v52  ;;  %v11398_v47 = vld [vmem:[#allocation17 + $0x1248] sm:$0xf] }
 0x3e3   :  { %v11240_v34 = vld [vmem:[#allocation17 + $0x1128] sm:$0xf0]  ;;  %v11110_v53 = vld [vmem:[#allocation17 + $0x1008] sm:$0xf] }
 0x3e4   :  { %v11243_v1 = vor.u32 %v13693_v15, %v11240_v34  ;;  %v11400_v52 = vld [vmem:[#allocation17 + $0x1268] sm:$0xf0]  ;;  %v11366_v29 = vld [vmem:[#allocation17 + $0x1208] sm:$0xf] }
 0x3e5   :  { %5504 = vmatpush.bf16.msra.mxu0 %v11103_v4  ;;  %5517 = vmatpush.bf16.msrb.mxu1 %v11359_v5  ;;  %v4514_v61 = vpop.f32.mrf.mxu0  ;;  %v4527_v63 = vpop.f32.mrf.mxu1  ;;  %v11462_v4 = vld [vmem:[#allocation17 + $0x12c8] sm:$0xf] }
 0x3e6   :  { %5530 = vmatpush.bf16.msrb.mxu2 %v11107_v48  ;;  %5543 = vmatpush.bf16.msra.mxu3 %v11363_v19  ;;  %v4528_v33 = vadd.f32 %v4527_v63, %v4514_v61  ;;  %v13753_v5 = vld [vmem:[#allocation17 + $0x12e4] sm:$0xf0]  ;;  %v11464_v48 = vld [vmem:[#allocation17 + $0x12e8] sm:$0xf0]  ;;  %v11207_v19 = vor.u32 %v13689_v0, %v11206_v18  ;;  %v13722_v18 = vld [vmem:[#allocation17 + $0x11ec] sm:$0xf0] }
 0x3e7   :  { %v11463_v20 = vor.u32 %v13753_v5, %v11462_v4  ;;  %v11467_v25 = vor.u32 %v13749_v14, %v11464_v48  ;;  %v13729_v15 = vld [vmem:[#allocation17 + $0x1224] sm:$0xf0]  ;;  %v13725_v61 = vld [vmem:[#allocation17 + $0x120c] sm:$0xf]  ;;  %v11598_v0 = vld [vmem:[#allocation17 + $0x13d0] sm:$0xf]  ;;  %v11111_v4 = vor.u32 %v13665_v57, %v11110_v53  ;;  %v11115_v48 = vor.u32 %v13661_v38, %v11112_v60 }
 0x3e8   :  { %5505 = vmatmul.bf16.vlgmr.msra.gmra.mxu0 %v14862_v31  ;;  %5518 = vmatmul.bf16.vlgmr.msrb.gmra.mxu1 %v14864_v32  ;;  %v14871_v7 = vadd.f32 %v4528_v33, %v14825_v12  ;;  %v11176_v12 = vld [vmem:[#allocation17 + $0x10a8] sm:$0xf0]  ;;  %v11367_v5 = vor.u32 %v13729_v15, %v11366_v29  ;;  %v11600_v14 = vld [vmem:[#allocation17 + $0x13f0] sm:$0xf0]  ;;  %v13762_v57 = vld [vmem:[#allocation17 + $0x132c] sm:$0xf0] }
 0x3e9   :  { %5549 = vmatpush.bf16.msrb.mxu0 %v11335_v21  ;;  %5562 = vmatpush.bf16.msra.mxu1 %v11591_v23  ;;  %v11174_v21 = vld [vmem:[#allocation17 + $0x1088] sm:$0xf]  ;;  %v11179_v22 = vor.u32 %v13677_v28, %v11176_v12  ;;  %v13778_v28 = vld [vmem:[#allocation17 + $0x13ac] sm:$0xf0]  ;;  %v13774_v12 = vld [vmem:[#allocation17 + $0x1394] sm:$0xf] }
 0x3ea   :  { %5575 = vmatpush.bf16.msra.mxu2 %v11339_v26  ;;  %5588 = vmatpush.bf16.msrb.mxu3 %v11595_v27  ;;  %v13681_v23 = vld [vmem:[#allocation17 + $0x10a4] sm:$0xf0]  ;;  %v13694_v29 = vld [vmem:[#allocation17 + $0x1114] sm:$0xf] }
 0x3eb   :  { %5531 = vmatmul.bf16.vlgmr.msrb.gmra.mxu2 %v14862_v31  ;;  %5544 = vmatmul.bf16.vlgmr.msra.gmra.mxu3 %v14864_v32  ;;  %v11430_v26 = vld [vmem:[#allocation17 + $0x1288] sm:$0xf]  ;;  %v11175_v10 = vor.u32 %v13681_v23, %v11174_v21  ;;  %v11310_v23 = vld [vmem:[#allocation17 + $0x1190] sm:$0xf]  ;;  %v11248_v15 = vld [vmem:[#allocation17 + $0x1130] sm:$0xf0] }
 0x3ec   :  { %v13745_v27 = vld [vmem:[#allocation17 + $0x12a4] sm:$0xf0] }
 0x3ed   :  { %5550 = vmatpush.bf16.msrb.mxu0 %v11303_v2  ;;  %5563 = vmatpush.bf16.msra.mxu1 %v11559_v36  ;;  %v4516_v2 = vpop.f32.mrf.mxu0  ;;  %v4529_v36 = vpop.f32.mrf.mxu1  ;;  %v11431_v37 = vor.u32 %v13745_v27, %v11430_v26  ;;  %v11603_v26 = vor.u32 %v13782_v9, %v11600_v14  ;;  %v11566_v27 = vld [vmem:[#allocation17 + $0x1390] sm:$0xf]  ;;  %v13750_v9 = vld [vmem:[#allocation17 + $0x12d4] sm:$0xf] }
 0x3ee   :  { %5576 = vmatpush.bf16.msra.mxu2 %v11307_v39  ;;  %5589 = vmatpush.bf16.msrb.mxu3 %v11563_v40  ;;  %v4540_v30 = vpop.f32.mrf.mxu2  ;;  %v4553_v62 = vpop.f32.mrf.mxu3  ;;  %v11142_v39 = vld [vmem:[#allocation17 + $0x1048] sm:$0xf]  ;;  %v11278_v2 = vld [vmem:[#allocation17 + $0x1150] sm:$0xf]  ;;  %v11472_v14 = vld [vmem:[#allocation17 + $0x12f0] sm:$0xf0] }
 0x3ef   :  { %v4554_v44 = vadd.f32 %v4553_v62, %v4540_v30  ;;  %v13673_v40 = vld [vmem:[#allocation17 + $0x1064] sm:$0xf0]  ;;  %v13710_v30 = vld [vmem:[#allocation17 + $0x1194] sm:$0xf]  ;;  %v13706_v36 = vld [vmem:[#allocation17 + $0x116c] sm:$0xf0] }
 0x3f0   :  { %v11312_v62 = vld [vmem:[#allocation17 + $0x11b0] sm:$0xf0] }
 0x3f1   :  { %5551 = vmatpush.bf16.msrb.mxu0 %v11271_v50  ;;  %5564 = vmatpush.bf16.msra.mxu1 %v11527_v51  ;;  %v14874_v42 = vadd.f32 %v4554_v44, %v14828_v43  ;;  %v11144_v50 = vld [vmem:[#allocation17 + $0x1068] sm:$0xf0]  ;;  %v11567_v44 = vor.u32 %v13778_v28, %v11566_v27  ;;  %v13678_v27 = vld [vmem:[#allocation17 + $0x1094] sm:$0xf] }
 0x3f2   :  { %5577 = vmatpush.bf16.msra.mxu2 %v11275_v55  ;;  %5590 = vmatpush.bf16.msrb.mxu3 %v11531_v56  ;;  %v13733_v51 = vld [vmem:[#allocation17 + $0x124c] sm:$0xf]  ;;  %v11143_v55 = vor.u32 %v13673_v40, %v11142_v39  ;;  %v11399_v56 = vor.u32 %v13737_v49, %v11398_v47  ;;  %v11147_v43 = vor.u32 %v13669_v17, %v11144_v50  ;;  %v11534_v39 = vld [vmem:[#allocation17 + $0x1350] sm:$0xf]  ;;  %v13766_v47 = vld [vmem:[#allocation17 + $0x1354] sm:$0xf] }
 0x3f3   :  { %v11403_v34 = vor.u32 %v13733_v51, %v11400_v52  ;;  %v13770_v40 = vld [vmem:[#allocation17 + $0x136c] sm:$0xf0]  ;;  %v11536_v49 = vld [vmem:[#allocation17 + $0x1370] sm:$0xf0]  ;;  %v11279_v17 = vor.u32 %v13706_v36, %v11278_v2 }
 0x3f4   :  { %v11535_v50 = vor.u32 %v13770_v40, %v11534_v39  ;;  %v11246_v51 = vld [vmem:[#allocation17 + $0x1110] sm:$0xf] }
 0x3f5   :  { %5552 = vmatpush.bf16.msrb.mxu0 %v11239_v35  ;;  %5565 = vmatpush.bf16.msra.mxu1 %v11495_v16  ;;  %v11368_v35 = vld [vmem:[#allocation17 + $0x1228] sm:$0xf0]  ;;  %v11342_v16 = vld [vmem:[#allocation17 + $0x11d0] sm:$0xf] }
 0x3f6   :  { %5578 = vmatpush.bf16.msra.mxu2 %v11243_v1  ;;  %5591 = vmatpush.bf16.msrb.mxu3 %v11499_v3  ;;  %v4542_v63 = vpop.f32.mrf.mxu2  ;;  %v4555_v33 = vpop.f32.mrf.mxu3  ;;  %v13786_v1 = vld [vmem:[#allocation17 + $0x13ec] sm:$0xf0]  ;;  %v13718_v3 = vld [vmem:[#allocation17 + $0x11d4] sm:$0xf] }
 0x3f7   :  { %v11599_v21 = vor.u32 %v13786_v1, %v11598_v0  ;;  %v13698_v52 = vld [vmem:[#allocation17 + $0x112c] sm:$0xf0] }
 0x3f8   :  { %v11247_v63 = vor.u32 %v13698_v52, %v11246_v51  ;;  %v11470_v1 = vld [vmem:[#allocation17 + $0x12d0] sm:$0xf]  ;;  %v11408_v51 = vld [vmem:[#allocation17 + $0x1270] sm:$0xf0] }
 0x3f9   :  { %5553 = vmatpush.bf16.msrb.mxu0 %v11207_v19  ;;  %5566 = vmatpush.bf16.msra.mxu1 %v11463_v20  ;;  %v11371_v19 = vor.u32 %v13725_v61, %v11368_v35  ;;  %v11343_v20 = vor.u32 %v13722_v18, %v11342_v16  ;;  %v11214_v35 = vld [vmem:[#allocation17 + $0x10d0] sm:$0xf]  ;;  %v11251_v18 = vor.u32 %v13694_v29, %v11248_v15 }
 0x3fa   :  { %5579 = vmatpush.bf16.msra.mxu2 %v11211_v24  ;;  %5592 = vmatpush.bf16.msrb.mxu3 %v11467_v25  ;;  %v13714_v24 = vld [vmem:[#allocation17 + $0x11ac] sm:$0xf0]  ;;  %v11347_v25 = vor.u32 %v13718_v3, %v11344_v6  ;;  %v11216_v6 = vld [vmem:[#allocation17 + $0x10f0] sm:$0xf0] }
 0x3fb   :  { %v11311_v59 = vor.u32 %v13714_v24, %v11310_v23  ;;  %v13690_v16 = vld [vmem:[#allocation17 + $0x10ec] sm:$0xf0]  ;;  %v11475_v24 = vor.u32 %v13750_v9, %v11472_v14  ;;  %v11608_v9 = vld [vmem:[#allocation17 + $0x13f8] sm:$0xf0] }
 0x3fc   :  { %v13754_v3 = vld [vmem:[#allocation17 + $0x12ec] sm:$0xf0] }
 0x3fd   :  { %5554 = vmatpush.bf16.msrb.mxu0 %v11175_v10  ;;  %5567 = vmatpush.bf16.msra.mxu1 %v11431_v37  ;;  %v11315_v10 = vor.u32 %v13710_v30, %v11312_v62  ;;  %v11571_v37 = vor.u32 %v13774_v12, %v11568_v11  ;;  %v13742_v62 = vld [vmem:[#allocation17 + $0x1294] sm:$0xf]  ;;  %v11118_v52 = vld [vmem:[#allocation17 + $0x1010] sm:$0xf] }
 0x3fe   :  { %5580 = vmatpush.bf16.msra.mxu2 %v11179_v22  ;;  %5593 = vmatpush.bf16.msrb.mxu3 %v11435_v45  ;;  %v13702_v22 = vld [vmem:[#allocation17 + $0x1154] sm:$0xf]  ;;  %v13730_v29 = vld [vmem:[#allocation17 + $0x122c] sm:$0xf0] }
 0x3ff   :  { %v11280_v45 = vld [vmem:[#allocation17 + $0x1170] sm:$0xf0] }
 0x400   :  { %v11283_v53 = vor.u32 %v13702_v22, %v11280_v45  ;;  %v11440_v12 = vld [vmem:[#allocation17 + $0x12b0] sm:$0xf0]  ;;  %v11406_v45 = vld [vmem:[#allocation17 + $0x1250] sm:$0xf] }
 0x401   :  { %5555 = vmatpush.bf16.msrb.mxu0 %v11143_v55  ;;  %5568 = vmatpush.bf16.msra.mxu1 %v11399_v56  ;;  %v11539_v55 = vor.u32 %v13766_v47, %v11536_v49  ;;  %v11502_v56 = vld [vmem:[#allocation17 + $0x1310] sm:$0xf]  ;;  %v11443_v22 = vor.u32 %v13742_v62, %v11440_v12  ;;  %v13670_v49 = vld [vmem:[#allocation17 + $0x1054] sm:$0xf]  ;;  %v11576_v62 = vld [vmem:[#allocation17 + $0x13b8] sm:$0xf0] }
 0x402   :  { %5581 = vmatpush.bf16.msra.mxu2 %v11147_v43  ;;  %5594 = vmatpush.bf16.msrb.mxu3 %v11403_v34  ;;  %v13758_v43 = vld [vmem:[#allocation17 + $0x1314] sm:$0xf]  ;;  %v11503_v33 = vor.u32 %v13762_v57, %v11502_v56  ;;  %v13738_v47 = vld [vmem:[#allocation17 + $0x126c] sm:$0xf0] }
 0x403   :  { %v11504_v34 = vld [vmem:[#allocation17 + $0x1330] sm:$0xf0]  ;;  %v13666_v56 = vld [vmem:[#allocation17 + $0x102c] sm:$0xf0] }
 0x404   :  { %v11507_v0 = vor.u32 %v13758_v43, %v11504_v34  ;;  %v11374_v57 = vld [vmem:[#allocation17 + $0x1210] sm:$0xf]  ;;  %v13662_v43 = vld [vmem:[#allocation17 + $0x1014] sm:$0xf] }
 0x405   :  { %5556 = vmatpush.bf16.msrb.mxu0 %v11111_v4  ;;  %5569 = vmatpush.bf16.msra.mxu1 %v11367_v5  ;;  %v4566_v38 = vpop.f32.mrf.mxu0  ;;  %v4579_v60 = vpop.f32.mrf.mxu1  ;;  %v13686_v4 = vld [vmem:[#allocation17 + $0x10d4] sm:$0xf] }
 0x406   :  { %5582 = vmatpush.bf16.msra.mxu2 %v11115_v48  ;;  %5595 = vmatpush.bf16.msrb.mxu3 %v11371_v19  ;;  %v4580_v61 = vadd.f32 %v4579_v60, %v4566_v38  ;;  %v11215_v48 = vor.u32 %v13690_v16, %v11214_v35  ;;  %v11471_v19 = vor.u32 %v13754_v3, %v11470_v1  ;;  %v11120_v34 = vld [vmem:[#allocation17 + $0x1030] sm:$0xf0]  ;;  %v13723_v35 = vld [vmem:[#allocation17 + $0x11f4] sm:$0xf0] }
 0x407   :  { %v11219_v23 = vor.u32 %v13686_v4, %v11216_v6  ;;  %v13726_v38 = vld [vmem:[#allocation17 + $0x1214] sm:$0xf]  ;;  %v11606_v16 = vld [vmem:[#allocation17 + $0x13d8] sm:$0xf]  ;;  %v11119_v1 = vor.u32 %v13666_v56, %v11118_v52  ;;  %v11375_v3 = vor.u32 %v13730_v29, %v11374_v57  ;;  %v11352_v4 = vld [vmem:[#allocation17 + $0x11f8] sm:$0xf0]  ;;  %v11123_v14 = vor.u32 %v13662_v43, %v11120_v34 }
 0x408   :  { %5557 = vmatmul.bf16.vlgmr.msrb.gmra.mxu0 %v14862_v31  ;;  %5570 = vmatmul.bf16.vlgmr.msra.gmra.mxu1 %v14864_v32  ;;  %v14881_v5 = vadd.f32 %v4580_v61, %v14835_v54  ;;  %v11184_v54 = vld [vmem:[#allocation17 + $0x10b0] sm:$0xf0]  ;;  %v13783_v6 = vld [vmem:[#allocation17 + $0x13dc] sm:$0xf]  ;;  %v13763_v56 = vld [vmem:[#allocation17 + $0x1334] sm:$0xf0] }
 0x409   :  { %5601 = vmatpush.bf16.msra.mxu0 %v11343_v20  ;;  %5614 = vmatpush.bf16.msrb.mxu1 %v11599_v21  ;;  %v11182_v20 = vld [vmem:[#allocation17 + $0x1090] sm:$0xf]  ;;  %v11187_v40 = vor.u32 %v13678_v27, %v11184_v54  ;;  %v13779_v27 = vld [vmem:[#allocation17 + $0x13b4] sm:$0xf0]  ;;  %v13775_v54 = vld [vmem:[#allocation17 + $0x139c] sm:$0xf] }
 0x40a   :  { %5627 = vmatpush.bf16.msrb.mxu2 %v11347_v25  ;;  %5640 = vmatpush.bf16.msra.mxu3 %v11603_v26  ;;  %v13682_v21 = vld [vmem:[#allocation17 + $0x10ac] sm:$0xf0]  ;;  %v13695_v57 = vld [vmem:[#allocation17 + $0x111c] sm:$0xf] }
 0x40b   :  { %5583 = vmatmul.bf16.vlgmr.msra.gmra.mxu2 %v14862_v31  ;;  %5596 = vmatmul.bf16.vlgmr.msrb.gmra.mxu3 %v14864_v32  ;;  %v11438_v25 = vld [vmem:[#allocation17 + $0x1290] sm:$0xf]  ;;  %v11183_v2 = vor.u32 %v13682_v21, %v11182_v20  ;;  %v11318_v21 = vld [vmem:[#allocation17 + $0x1198] sm:$0xf]  ;;  %v11256_v29 = vld [vmem:[#allocation17 + $0x1138] sm:$0xf0] }
 0x40c   :  { %v13746_v26 = vld [vmem:[#allocation17 + $0x12ac] sm:$0xf0] }
 0x40d   :  { %5602 = vmatpush.bf16.msra.mxu0 %v11311_v59  ;;  %5615 = vmatpush.bf16.msrb.mxu1 %v11567_v44  ;;  %v4568_v59 = vpop.f32.mrf.mxu0  ;;  %v4581_v44 = vpop.f32.mrf.mxu1  ;;  %v11439_v36 = vor.u32 %v13746_v26, %v11438_v25  ;;  %v11611_v25 = vor.u32 %v13783_v6, %v11608_v9  ;;  %v11574_v26 = vld [vmem:[#allocation17 + $0x1398] sm:$0xf]  ;;  %v13751_v6 = vld [vmem:[#allocation17 + $0x12dc] sm:$0xf] }
 0x40e   :  { %5628 = vmatpush.bf16.msrb.mxu2 %v11315_v10  ;;  %5641 = vmatpush.bf16.msra.mxu3 %v11571_v37  ;;  %v4592_v28 = vpop.f32.mrf.mxu2  ;;  %v4605_v30 = vpop.f32.mrf.mxu3  ;;  %v11150_v10 = vld [vmem:[#allocation17 + $0x1050] sm:$0xf]  ;;  %v11286_v59 = vld [vmem:[#allocation17 + $0x1158] sm:$0xf]  ;;  %v11480_v9 = vld [vmem:[#allocation17 + $0x12f8] sm:$0xf0] }
 0x40f   :  { %v4606_v11 = vadd.f32 %v4605_v30, %v4592_v28  ;;  %v13674_v37 = vld [vmem:[#allocation17 + $0x106c] sm:$0xf0]  ;;  %v13711_v28 = vld [vmem:[#allocation17 + $0x119c] sm:$0xf]  ;;  %v13707_v44 = vld [vmem:[#allocation17 + $0x1174] sm:$0xf0] }
 0x410   :  { %v11320_v30 = vld [vmem:[#allocation17 + $0x11b8] sm:$0xf0] }
 0x411   :  { %5603 = vmatpush.bf16.msra.mxu0 %v11279_v17  ;;  %5616 = vmatpush.bf16.msrb.mxu1 %v11535_v50  ;;  %v14884_v39 = vadd.f32 %v4606_v11, %v14838_v58  ;;  %v11152_v17 = vld [vmem:[#allocation17 + $0x1070] sm:$0xf0]  ;;  %v11575_v11 = vor.u32 %v13779_v27, %v11574_v26  ;;  %v13679_v26 = vld [vmem:[#allocation17 + $0x109c] sm:$0xf] }
 0x412   :  { %5629 = vmatpush.bf16.msrb.mxu2 %v11283_v53  ;;  %5642 = vmatpush.bf16.msra.mxu3 %v11539_v55  ;;  %v13734_v50 = vld [vmem:[#allocation17 + $0x1254] sm:$0xf]  ;;  %v11151_v53 = vor.u32 %v13674_v37, %v11150_v10  ;;  %v11407_v55 = vor.u32 %v13738_v47, %v11406_v45  ;;  %v11155_v58 = vor.u32 %v13670_v49, %v11152_v17  ;;  %v11542_v10 = vld [vmem:[#allocation17 + $0x1358] sm:$0xf]  ;;  %v13767_v45 = vld [vmem:[#allocation17 + $0x135c] sm:$0xf] }
 0x413   :  { %v11411_v15 = vor.u32 %v13734_v50, %v11408_v51  ;;  %v13771_v37 = vld [vmem:[#allocation17 + $0x1374] sm:$0xf0]  ;;  %v11544_v47 = vld [vmem:[#allocation17 + $0x1378] sm:$0xf0]  ;;  %v11287_v49 = vor.u32 %v13707_v44, %v11286_v59 }
 0x414   :  { %v11543_v17 = vor.u32 %v13771_v37, %v11542_v10  ;;  %v11254_v50 = vld [vmem:[#allocation17 + $0x1118] sm:$0xf] }
 0x415   :  { %5604 = vmatpush.bf16.msra.mxu0 %v11247_v63  ;;  %5617 = vmatpush.bf16.msrb.mxu1 %v11503_v33  ;;  %v11376_v63 = vld [vmem:[#allocation17 + $0x1230] sm:$0xf0]  ;;  %v11350_v33 = vld [vmem:[#allocation17 + $0x11d8] sm:$0xf] }
 0x416   :  { %5630 = vmatpush.bf16.msrb.mxu2 %v11251_v18  ;;  %5643 = vmatpush.bf16.msra.mxu3 %v11507_v0  ;;  %v4594_v60 = vpop.f32.mrf.mxu2  ;;  %v4607_v61 = vpop.f32.mrf.mxu3  ;;  %v13787_v18 = vld [vmem:[#allocation17 + $0x13f4] sm:$0xf0]  ;;  %v13719_v0 = vld [vmem:[#allocation17 + $0x11dc] sm:$0xf] }
 0x417   :  { %v11607_v20 = vor.u32 %v13787_v18, %v11606_v16  ;;  %v13699_v51 = vld [vmem:[#allocation17 + $0x1134] sm:$0xf0] }
 0x418   :  { %v11255_v60 = vor.u32 %v13699_v51, %v11254_v50  ;;  %v11478_v18 = vld [vmem:[#allocation17 + $0x12d8] sm:$0xf]  ;;  %v11416_v50 = vld [vmem:[#allocation17 + $0x1278] sm:$0xf0] }
 0x419   :  { %5605 = vmatpush.bf16.msra.mxu0 %v11215_v48  ;;  %5618 = vmatpush.bf16.msrb.mxu1 %v11471_v19  ;;  %v11379_v48 = vor.u32 %v13726_v38, %v11376_v63  ;;  %v11351_v19 = vor.u32 %v13723_v35, %v11350_v33  ;;  %v11222_v63 = vld [vmem:[#allocation17 + $0x10d8] sm:$0xf]  ;;  %v11259_v35 = vor.u32 %v13695_v57, %v11256_v29 }
 0x41a   :  { %5631 = vmatpush.bf16.msrb.mxu2 %v11219_v23  ;;  %5644 = vmatpush.bf16.msra.mxu3 %v11475_v24  ;;  %v13715_v23 = vld [vmem:[#allocation17 + $0x11b4] sm:$0xf0]  ;;  %v11355_v24 = vor.u32 %v13719_v0, %v11352_v4  ;;  %v11224_v4 = vld [vmem:[#allocation17 + $0x10f8] sm:$0xf0] }
 0x41b   :  { %v11319_v12 = vor.u32 %v13715_v23, %v11318_v21  ;;  %v13691_v33 = vld [vmem:[#allocation17 + $0x10f4] sm:$0xf0]  ;;  %v11483_v23 = vor.u32 %v13751_v6, %v11480_v9  ;;  %v12096_v6 = vld [vmem:[#allocation17 + $0x17e0] sm:$0xf0] }
 0x41c   :  { %v13755_v0 = vld [vmem:[#allocation17 + $0x12f4] sm:$0xf0] }
 0x41d   :  { %5606 = vmatpush.bf16.msra.mxu0 %v11183_v2  ;;  %5619 = vmatpush.bf16.msrb.mxu1 %v11439_v36  ;;  %v11323_v2 = vor.u32 %v13711_v28, %v11320_v30  ;;  %v11579_v36 = vor.u32 %v13775_v54, %v11576_v62  ;;  %v13743_v30 = vld [vmem:[#allocation17 + $0x129c] sm:$0xf]  ;;  %v11126_v51 = vld [vmem:[#allocation17 + $0x1018] sm:$0xf] }
 0x41e   :  { %5632 = vmatpush.bf16.msrb.mxu2 %v11187_v40  ;;  %5645 = vmatpush.bf16.msra.mxu3 %v11443_v22  ;;  %v13703_v40 = vld [vmem:[#allocation17 + $0x115c] sm:$0xf]  ;;  %v13731_v57 = vld [vmem:[#allocation17 + $0x1234] sm:$0xf0] }
 0x41f   :  { %v11288_v22 = vld [vmem:[#allocation17 + $0x1178] sm:$0xf0] }
 0x420   :  { %v11291_v52 = vor.u32 %v13703_v40, %v11288_v22  ;;  %v11448_v54 = vld [vmem:[#allocation17 + $0x12b8] sm:$0xf0]  ;;  %v11414_v22 = vld [vmem:[#allocation17 + $0x1258] sm:$0xf] }
 0x421   :  { %5607 = vmatpush.bf16.msra.mxu0 %v11151_v53  ;;  %5620 = vmatpush.bf16.msrb.mxu1 %v11407_v55  ;;  %v11547_v53 = vor.u32 %v13767_v45, %v11544_v47  ;;  %v11510_v55 = vld [vmem:[#allocation17 + $0x1318] sm:$0xf]  ;;  %v11451_v40 = vor.u32 %v13743_v30, %v11448_v54  ;;  %v13671_v47 = vld [vmem:[#allocation17 + $0x105c] sm:$0xf]  ;;  %v12064_v30 = vld [vmem:[#allocation17 + $0x17a0] sm:$0xf0] }
 0x422   :  { %5633 = vmatpush.bf16.msrb.mxu2 %v11155_v58  ;;  %5646 = vmatpush.bf16.msra.mxu3 %v11411_v15  ;;  %v13759_v58 = vld [vmem:[#allocation17 + $0x131c] sm:$0xf]  ;;  %v11511_v61 = vor.u32 %v13763_v56, %v11510_v55  ;;  %v13739_v45 = vld [vmem:[#allocation17 + $0x1274] sm:$0xf0] }
 0x423   :  { %v11512_v15 = vld [vmem:[#allocation17 + $0x1338] sm:$0xf0]  ;;  %v13667_v55 = vld [vmem:[#allocation17 + $0x1034] sm:$0xf0] }
 0x424   :  { %v11515_v16 = vor.u32 %v13759_v58, %v11512_v15  ;;  %v11382_v56 = vld [vmem:[#allocation17 + $0x1218] sm:$0xf]  ;;  %v13663_v58 = vld [vmem:[#allocation17 + $0x101c] sm:$0xf] }
 0x425   :  { %5608 = vmatpush.bf16.msra.mxu0 %v11119_v1  ;;  %5621 = vmatpush.bf16.msrb.mxu1 %v11375_v3  ;;  %v4618_v43 = vpop.f32.mrf.mxu0  ;;  %v4631_v34 = vpop.f32.mrf.mxu1  ;;  %v13687_v1 = vld [vmem:[#allocation17 + $0x10dc] sm:$0xf] }
 0x426   :  { %5634 = vmatpush.bf16.msrb.mxu2 %v11123_v14  ;;  %5647 = vmatpush.bf16.msra.mxu3 %v11379_v48  ;;  %v4632_v38 = vadd.f32 %v4631_v34, %v4618_v43  ;;  %v11223_v14 = vor.u32 %v13691_v33, %v11222_v63  ;;  %v11479_v48 = vor.u32 %v13755_v0, %v11478_v18  ;;  %v11128_v15 = vld [vmem:[#allocation17 + $0x1038] sm:$0xf0]  ;;  %v13848_v63 = vld [vmem:[#allocation17 + $0x15dc] sm:$0xf0] }
 0x427   :  { %v11227_v21 = vor.u32 %v13687_v1, %v11224_v4  ;;  %v13727_v43 = vld [vmem:[#allocation17 + $0x121c] sm:$0xf]  ;;  %v12094_v33 = vld [vmem:[#allocation17 + $0x17c0] sm:$0xf]  ;;  %v11127_v18 = vor.u32 %v13667_v55, %v11126_v51  ;;  %v11383_v0 = vor.u32 %v13731_v57, %v11382_v56  ;;  %v11840_v1 = vld [vmem:[#allocation17 + $0x15e0] sm:$0xf0]  ;;  %v11131_v9 = vor.u32 %v13663_v58, %v11128_v15 }
 0x428   :  { %5609 = vmatmul.bf16.vlgmr.msra.gmra.mxu0 %v14862_v31  ;;  %5622 = vmatmul.bf16.vlgmr.msrb.gmra.mxu1 %v14864_v32  ;;  %v14891_v3 = vadd.f32 %v4632_v38, %v14845_v13  ;;  %v11192_v13 = vld [vmem:[#allocation17 + $0x10b8] sm:$0xf0]  ;;  %v13908_v4 = vld [vmem:[#allocation17 + $0x17c4] sm:$0xf]  ;;  %v13888_v55 = vld [vmem:[#allocation17 + $0x171c] sm:$0xf0] }
 0x429   :  { %5653 = vmatpush.bf16.msrb.mxu0 %v11351_v19  ;;  %5666 = vmatpush.bf16.msra.mxu1 %v11607_v20  ;;  %v11190_v19 = vld [vmem:[#allocation17 + $0x1098] sm:$0xf]  ;;  %v11195_v37 = vor.u32 %v13679_v26, %v11192_v13  ;;  %v13904_v26 = vld [vmem:[#allocation17 + $0x179c] sm:$0xf0]  ;;  %v13900_v13 = vld [vmem:[#allocation17 + $0x1784] sm:$0xf] }
 0x42a   :  { %5679 = vmatpush.bf16.msra.mxu2 %v11355_v24  ;;  %5692 = vmatpush.bf16.msrb.mxu3 %v11611_v25  ;;  %v13683_v20 = vld [vmem:[#allocation17 + $0x10b4] sm:$0xf0]  ;;  %v13820_v56 = vld [vmem:[#allocation17 + $0x1504] sm:$0xf] }
 0x42b   :  { %5635 = vmatmul.bf16.vlgmr.msrb.gmra.mxu2 %v14862_v31  ;;  %5648 = vmatmul.bf16.vlgmr.msra.gmra.mxu3 %v14864_v32  ;;  %v11446_v24 = vld [vmem:[#allocation17 + $0x1298] sm:$0xf]  ;;  %v11191_v59 = vor.u32 %v13683_v20, %v11190_v19  ;;  %v11806_v20 = vld [vmem:[#allocation17 + $0x1580] sm:$0xf]  ;;  %v11744_v57 = vld [vmem:[#allocation17 + $0x1520] sm:$0xf0] }
 0x42c   :  { %v13747_v25 = vld [vmem:[#allocation17 + $0x12b4] sm:$0xf0] }
 0x42d   :  { %5654 = vmatpush.bf16.msrb.mxu0 %v11319_v12  ;;  %5667 = vmatpush.bf16.msra.mxu1 %v11575_v11  ;;  %v4620_v12 = vpop.f32.mrf.mxu0  ;;  %v4633_v11 = vpop.f32.mrf.mxu1  ;;  %v11447_v44 = vor.u32 %v13747_v25, %v11446_v24  ;;  %v12099_v24 = vor.u32 %v13908_v4, %v12096_v6  ;;  %v12062_v25 = vld [vmem:[#allocation17 + $0x1780] sm:$0xf]  ;;  %v13876_v4 = vld [vmem:[#allocation17 + $0x16c4] sm:$0xf] }
 0x42e   :  { %5680 = vmatpush.bf16.msra.mxu2 %v11323_v2  ;;  %5693 = vmatpush.bf16.msrb.mxu3 %v11579_v36  ;;  %v4644_v27 = vpop.f32.mrf.mxu2  ;;  %v4657_v28 = vpop.f32.mrf.mxu3  ;;  %v11158_v2 = vld [vmem:[#allocation17 + $0x1058] sm:$0xf]  ;;  %v11774_v12 = vld [vmem:[#allocation17 + $0x1540] sm:$0xf]  ;;  %v11968_v6 = vld [vmem:[#allocation17 + $0x16e0] sm:$0xf0] }
 0x42f   :  { %v4658_v62 = vadd.f32 %v4657_v28, %v4644_v27  ;;  %v13675_v36 = vld [vmem:[#allocation17 + $0x1074] sm:$0xf0]  ;;  %v13836_v27 = vld [vmem:[#allocation17 + $0x1584] sm:$0xf]  ;;  %v13832_v11 = vld [vmem:[#allocation17 + $0x155c] sm:$0xf0] }
 0x430   :  { %v11808_v28 = vld [vmem:[#allocation17 + $0x15a0] sm:$0xf0] }
 0x431   :  { %5655 = vmatpush.bf16.msrb.mxu0 %v11287_v49  ;;  %5668 = vmatpush.bf16.msra.mxu1 %v11543_v17  ;;  %v14894_v10 = vadd.f32 %v4658_v62, %v14848_v46  ;;  %v11160_v49 = vld [vmem:[#allocation17 + $0x1078] sm:$0xf0]  ;;  %v12063_v62 = vor.u32 %v13904_v26, %v12062_v25  ;;  %v13804_v25 = vld [vmem:[#allocation17 + $0x1484] sm:$0xf] }
 0x432   :  { %5681 = vmatpush.bf16.msra.mxu2 %v11291_v52  ;;  %5694 = vmatpush.bf16.msrb.mxu3 %v11547_v53  ;;  %v13735_v17 = vld [vmem:[#allocation17 + $0x125c] sm:$0xf]  ;;  %v11159_v52 = vor.u32 %v13675_v36, %v11158_v2  ;;  %v11415_v53 = vor.u32 %v13739_v45, %v11414_v22  ;;  %v11163_v46 = vor.u32 %v13671_v47, %v11160_v49  ;;  %v12030_v2 = vld [vmem:[#allocation17 + $0x1740] sm:$0xf]  ;;  %v13892_v22 = vld [vmem:[#allocation17 + $0x1744] sm:$0xf] }
 0x433   :  { %v11419_v29 = vor.u32 %v13735_v17, %v11416_v50  ;;  %v13896_v36 = vld [vmem:[#allocation17 + $0x175c] sm:$0xf0]  ;;  %v12032_v45 = vld [vmem:[#allocation17 + $0x1760] sm:$0xf0]  ;;  %v11775_v47 = vor.u32 %v13832_v11, %v11774_v12 }
 0x434   :  { %v12031_v49 = vor.u32 %v13896_v36, %v12030_v2  ;;  %v11742_v17 = vld [vmem:[#allocation17 + $0x1500] sm:$0xf] }
 0x435   :  { %5656 = vmatpush.bf16.msrb.mxu0 %v11255_v60  ;;  %5669 = vmatpush.bf16.msra.mxu1 %v11511_v61  ;;  %v11384_v60 = vld [vmem:[#allocation17 + $0x1238] sm:$0xf0]  ;;  %v11838_v61 = vld [vmem:[#allocation17 + $0x15c0] sm:$0xf] }
 0x436   :  { %5682 = vmatpush.bf16.msra.mxu2 %v11259_v35  ;;  %5695 = vmatpush.bf16.msrb.mxu3 %v11515_v16  ;;  %v4646_v34 = vpop.f32.mrf.mxu2  ;;  %v4659_v38 = vpop.f32.mrf.mxu3  ;;  %v13912_v35 = vld [vmem:[#allocation17 + $0x17dc] sm:$0xf0]  ;;  %v13844_v16 = vld [vmem:[#allocation17 + $0x15c4] sm:$0xf] }
 0x437   :  { %v12095_v19 = vor.u32 %v13912_v35, %v12094_v33  ;;  %v13824_v50 = vld [vmem:[#allocation17 + $0x151c] sm:$0xf0] }
 0x438   :  { %v11743_v34 = vor.u32 %v13824_v50, %v11742_v17  ;;  %v11966_v35 = vld [vmem:[#allocation17 + $0x16c0] sm:$0xf]  ;;  %v11904_v17 = vld [vmem:[#allocation17 + $0x1660] sm:$0xf0] }
 0x439   :  { %5657 = vmatpush.bf16.msrb.mxu0 %v11223_v14  ;;  %5670 = vmatpush.bf16.msra.mxu1 %v11479_v48  ;;  %v11387_v14 = vor.u32 %v13727_v43, %v11384_v60  ;;  %v11839_v48 = vor.u32 %v13848_v63, %v11838_v61  ;;  %v11710_v60 = vld [vmem:[#allocation17 + $0x14c0] sm:$0xf]  ;;  %v11747_v63 = vor.u32 %v13820_v56, %v11744_v57 }
 0x43a   :  { %5683 = vmatpush.bf16.msra.mxu2 %v11227_v21  ;;  %5696 = vmatpush.bf16.msrb.mxu3 %v11483_v23  ;;  %v13840_v21 = vld [vmem:[#allocation17 + $0x159c] sm:$0xf0]  ;;  %v11843_v23 = vor.u32 %v13844_v16, %v11840_v1  ;;  %v11712_v1 = vld [vmem:[#allocation17 + $0x14e0] sm:$0xf0] }
 0x43b   :  { %v11807_v54 = vor.u32 %v13840_v21, %v11806_v20  ;;  %v13816_v61 = vld [vmem:[#allocation17 + $0x14dc] sm:$0xf0]  ;;  %v11971_v21 = vor.u32 %v13876_v4, %v11968_v6  ;;  %v12104_v4 = vld [vmem:[#allocation17 + $0x17e8] sm:$0xf0] }
 0x43c   :  { %v13880_v16 = vld [vmem:[#allocation17 + $0x16dc] sm:$0xf0] }
 0x43d   :  { %5658 = vmatpush.bf16.msrb.mxu0 %v11191_v59  ;;  %5671 = vmatpush.bf16.msra.mxu1 %v11447_v44  ;;  %v11811_v59 = vor.u32 %v13836_v27, %v11808_v28  ;;  %v12067_v44 = vor.u32 %v13900_v13, %v12064_v30  ;;  %v13868_v28 = vld [vmem:[#allocation17 + $0x1684] sm:$0xf]  ;;  %v11614_v50 = vld [vmem:[#allocation17 + $0x1400] sm:$0xf] }
 0x43e   :  { %5684 = vmatpush.bf16.msra.mxu2 %v11195_v37  ;;  %5697 = vmatpush.bf16.msrb.mxu3 %v11451_v40  ;;  %v13828_v37 = vld [vmem:[#allocation17 + $0x1544] sm:$0xf]  ;;  %v13856_v56 = vld [vmem:[#allocation17 + $0x161c] sm:$0xf0] }
 0x43f   :  { %v11776_v40 = vld [vmem:[#allocation17 + $0x1560] sm:$0xf0] }
 0x440   :  { %v11779_v51 = vor.u32 %v13828_v37, %v11776_v40  ;;  %v11936_v13 = vld [vmem:[#allocation17 + $0x16a0] sm:$0xf0]  ;;  %v11902_v40 = vld [vmem:[#allocation17 + $0x1640] sm:$0xf] }
 0x441   :  { %5659 = vmatpush.bf16.msrb.mxu0 %v11159_v52  ;;  %5672 = vmatpush.bf16.msra.mxu1 %v11415_v53  ;;  %v12035_v52 = vor.u32 %v13892_v22, %v12032_v45  ;;  %v11998_v53 = vld [vmem:[#allocation17 + $0x1700] sm:$0xf]  ;;  %v11939_v37 = vor.u32 %v13868_v28, %v11936_v13  ;;  %v13796_v45 = vld [vmem:[#allocation17 + $0x1444] sm:$0xf]  ;;  %v12072_v28 = vld [vmem:[#allocation17 + $0x17a8] sm:$0xf0] }
 0x442   :  { %5685 = vmatpush.bf16.msra.mxu2 %v11163_v46  ;;  %5698 = vmatpush.bf16.msrb.mxu3 %v11419_v29  ;;  %v13884_v46 = vld [vmem:[#allocation17 + $0x1704] sm:$0xf]  ;;  %v11999_v38 = vor.u32 %v13888_v55, %v11998_v53  ;;  %v13864_v22 = vld [vmem:[#allocation17 + $0x165c] sm:$0xf0]  ;;  %v14907_v13 = vrot.slane %v14862_v31, 1 }
 0x443   :  { %v12000_v29 = vld [vmem:[#allocation17 + $0x1720] sm:$0xf0]  ;;  %v13792_v53 = vld [vmem:[#allocation17 + $0x141c] sm:$0xf0] }
 0x444   :  { %v12003_v33 = vor.u32 %v13884_v46, %v12000_v29  ;;  %v11870_v55 = vld [vmem:[#allocation17 + $0x1600] sm:$0xf]  ;;  %v13788_v46 = vld [vmem:[#allocation17 + $0x1404] sm:$0xf] }
 0x445   :  { %5660 = vmatpush.bf16.msrb.mxu0 %v11127_v18  ;;  %5673 = vmatpush.bf16.msra.mxu1 %v11383_v0  ;;  %v4670_v58 = vpop.f32.mrf.mxu0  ;;  %v4683_v15 = vpop.f32.mrf.mxu1  ;;  %v13812_v18 = vld [vmem:[#allocation17 + $0x14c4] sm:$0xf] }
 0x446   :  { %5686 = vmatpush.bf16.msra.mxu2 %v11131_v9  ;;  %5699 = vmatpush.bf16.msrb.mxu3 %v11387_v14  ;;  %v4684_v43 = vadd.f32 %v4683_v15, %v4670_v58  ;;  %v11711_v9 = vor.u32 %v13816_v61, %v11710_v60  ;;  %v11967_v14 = vor.u32 %v13880_v16, %v11966_v35  ;;  %v11616_v29 = vld [vmem:[#allocation17 + $0x1420] sm:$0xf0]  ;;  %v13849_v60 = vld [vmem:[#allocation17 + $0x15e4] sm:$0xf0] }
 0x447   :  { %v11715_v20 = vor.u32 %v13812_v18, %v11712_v1  ;;  %v13852_v58 = vld [vmem:[#allocation17 + $0x1604] sm:$0xf]  ;;  %v12102_v61 = vld [vmem:[#allocation17 + $0x17c8] sm:$0xf]  ;;  %v11615_v35 = vor.u32 %v13792_v53, %v11614_v50  ;;  %v11871_v16 = vor.u32 %v13856_v56, %v11870_v55  ;;  %v11848_v18 = vld [vmem:[#allocation17 + $0x15e8] sm:$0xf0]  ;;  %v11619_v6 = vor.u32 %v13788_v46, %v11616_v29 }
 0x448   :  { %5661 = vmatmul.bf16.vlgmr.msrb.gmra.mxu0 %v14862_v31  ;;  %5674 = vmatmul.bf16.vlgmr.msra.gmra.mxu1 %v14864_v32  ;;  %v14901_v0 = vadd.f32 %v4684_v43, %v14855_v8  ;;  %v11680_v8 = vld [vmem:[#allocation17 + $0x14a0] sm:$0xf0]  ;;  %v13909_v1 = vld [vmem:[#allocation17 + $0x17cc] sm:$0xf]  ;;  %v11750_v50 = vld [vmem:[#allocation17 + $0x1508] sm:$0xf] }
 0x449   :  { %6486 = vmatpush.bf16.msra.mxu0 %v11839_v48  ;;  %6499 = vmatpush.bf16.msrb.mxu1 %v12095_v19  ;;  %v11678_v48 = vld [vmem:[#allocation17 + $0x1480] sm:$0xf]  ;;  %v11683_v36 = vor.u32 %v13804_v25, %v11680_v8  ;;  %v13905_v25 = vld [vmem:[#allocation17 + $0x17a4] sm:$0xf0]  ;;  %v13901_v8 = vld [vmem:[#allocation17 + $0x178c] sm:$0xf] }
 0x44a   :  { %6512 = vmatpush.bf16.msrb.mxu2 %v11843_v23  ;;  %6525 = vmatpush.bf16.msra.mxu3 %v12099_v24  ;;  %v13808_v19 = vld [vmem:[#allocation17 + $0x149c] sm:$0xf0]  ;;  %v12006_v55 = vld [vmem:[#allocation17 + $0x1708] sm:$0xf]  ;;  %v13885_v46 = vld [vmem:[#allocation17 + $0x170c] sm:$0xf] }
 0x44b   :  { %5687 = vmatmul.bf16.vlgmr.msra.gmra.mxu2 %v14862_v31  ;;  %5700 = vmatmul.bf16.vlgmr.msrb.gmra.mxu3 %v14864_v32  ;;  %v11934_v23 = vld [vmem:[#allocation17 + $0x1680] sm:$0xf]  ;;  %v11679_v12 = vor.u32 %v13808_v19, %v11678_v48  ;;  %v11814_v19 = vld [vmem:[#allocation17 + $0x1588] sm:$0xf]  ;;  %v12008_v29 = vld [vmem:[#allocation17 + $0x1728] sm:$0xf0] }
 0x44c   :  { %v13872_v24 = vld [vmem:[#allocation17 + $0x169c] sm:$0xf0]  ;;  %v13889_v56 = vld [vmem:[#allocation17 + $0x1724] sm:$0xf0] }
 0x44d   :  { %6487 = vmatpush.bf16.msra.mxu0 %v11807_v54  ;;  %6500 = vmatpush.bf16.msrb.mxu1 %v12063_v62  ;;  %v4672_v54 = vpop.f32.mrf.mxu0  ;;  %v4685_v62 = vpop.f32.mrf.mxu1  ;;  %v11935_v11 = vor.u32 %v13872_v24, %v11934_v23  ;;  %v12107_v23 = vor.u32 %v13909_v1, %v12104_v4  ;;  %v12070_v24 = vld [vmem:[#allocation17 + $0x1788] sm:$0xf]  ;;  %v11720_v4 = vld [vmem:[#allocation17 + $0x14e8] sm:$0xf0] }
 0x44e   :  { %6513 = vmatpush.bf16.msrb.mxu2 %v11811_v59  ;;  %6526 = vmatpush.bf16.msra.mxu3 %v12067_v44  ;;  %v4696_v26 = vpop.f32.mrf.mxu2  ;;  %v4709_v27 = vpop.f32.mrf.mxu3  ;;  %v11646_v59 = vld [vmem:[#allocation17 + $0x1440] sm:$0xf]  ;;  %v12071_v62 = vor.u32 %v13905_v25, %v12070_v24  ;;  %v11942_v24 = vld [vmem:[#allocation17 + $0x1688] sm:$0xf] }
 0x44f   :  { %v4710_v30 = vadd.f32 %v4709_v27, %v4696_v26  ;;  %v13800_v44 = vld [vmem:[#allocation17 + $0x145c] sm:$0xf0]  ;;  %v13837_v26 = vld [vmem:[#allocation17 + $0x158c] sm:$0xf]  ;;  %v13873_v25 = vld [vmem:[#allocation17 + $0x16a4] sm:$0xf0] }
 0x450   :  { %v11816_v27 = vld [vmem:[#allocation17 + $0x15a8] sm:$0xf0] }
 0x451   :  { %6488 = vmatpush.bf16.msra.mxu0 %v11775_v47  ;;  %6501 = vmatpush.bf16.msrb.mxu1 %v12031_v49  ;;  %v14904_v2 = vadd.f32 %v4710_v30, %v14858_v41  ;;  %v11648_v47 = vld [vmem:[#allocation17 + $0x1460] sm:$0xf0]  ;;  %v14910_v30 = vrot.slane %v14864_v32, 1 }
 0x452   :  { %6514 = vmatpush.bf16.msrb.mxu2 %v11779_v51  ;;  %6527 = vmatpush.bf16.msra.mxu3 %v12035_v52  ;;  %v13860_v49 = vld [vmem:[#allocation17 + $0x1644] sm:$0xf]  ;;  %v11647_v51 = vor.u32 %v13800_v44, %v11646_v59  ;;  %v11903_v52 = vor.u32 %v13864_v22, %v11902_v40  ;;  %v11651_v41 = vor.u32 %v13796_v45, %v11648_v47  ;;  %v13829_v40 = vld [vmem:[#allocation17 + $0x154c] sm:$0xf] }
 0x453   :  { %v11907_v57 = vor.u32 %v13860_v49, %v11904_v17  ;;  %v11819_v59 = vor.u32 %v13837_v26, %v11816_v27  ;;  %v12075_v44 = vor.u32 %v13901_v8, %v12072_v28  ;;  %v11784_v22 = vld [vmem:[#allocation17 + $0x1568] sm:$0xf0] }
 0x454   :  { %v13893_v45 = vld [vmem:[#allocation17 + $0x174c] sm:$0xf] }
 0x455   :  { %6489 = vmatpush.bf16.msra.mxu0 %v11743_v34  ;;  %6502 = vmatpush.bf16.msrb.mxu1 %v11999_v38  ;;  %v11872_v34 = vld [vmem:[#allocation17 + $0x1620] sm:$0xf0]  ;;  %v11846_v38 = vld [vmem:[#allocation17 + $0x15c8] sm:$0xf]  ;;  %v12040_v47 = vld [vmem:[#allocation17 + $0x1768] sm:$0xf0] }
 0x456   :  { %6515 = vmatpush.bf16.msrb.mxu2 %v11747_v63  ;;  %6528 = vmatpush.bf16.msra.mxu3 %v12003_v33  ;;  %v4698_v15 = vpop.f32.mrf.mxu2  ;;  %v4711_v43 = vpop.f32.mrf.mxu3  ;;  %v13913_v63 = vld [vmem:[#allocation17 + $0x17e4] sm:$0xf0]  ;;  %v13845_v33 = vld [vmem:[#allocation17 + $0x15cc] sm:$0xf]  ;;  %v12043_v53 = vor.u32 %v13893_v45, %v12040_v47 }
 0x457   :  { %v12103_v48 = vor.u32 %v13913_v63, %v12102_v61  ;;  %v13817_v61 = vld [vmem:[#allocation17 + $0x14e4] sm:$0xf0]  ;;  %v13805_v26 = vld [vmem:[#allocation17 + $0x148c] sm:$0xf] }
 0x458   :  { %v13869_v28 = vld [vmem:[#allocation17 + $0x168c] sm:$0xf]  ;;  %v11910_v47 = vld [vmem:[#allocation17 + $0x1648] sm:$0xf] }
 0x459   :  { %6490 = vmatpush.bf16.msra.mxu0 %v11711_v9  ;;  %6503 = vmatpush.bf16.msrb.mxu1 %v11967_v14  ;;  %v11875_v9 = vor.u32 %v13852_v58, %v11872_v34  ;;  %v11847_v14 = vor.u32 %v13849_v60, %v11846_v38  ;;  %v12007_v38 = vor.u32 %v13889_v56, %v12006_v55  ;;  %v11718_v60 = vld [vmem:[#allocation17 + $0x14c8] sm:$0xf] }
 0x45a   :  { %6516 = vmatpush.bf16.msrb.mxu2 %v11715_v20  ;;  %6529 = vmatpush.bf16.msra.mxu3 %v11971_v21  ;;  %v13841_v20 = vld [vmem:[#allocation17 + $0x15a4] sm:$0xf0]  ;;  %v11851_v21 = vor.u32 %v13845_v33, %v11848_v18  ;;  %v12011_v33 = vor.u32 %v13885_v46, %v12008_v29  ;;  %v13813_v18 = vld [vmem:[#allocation17 + $0x14cc] sm:$0xf] }
 0x45b   :  { %v11815_v54 = vor.u32 %v13841_v20, %v11814_v19  ;;  %v11686_v19 = vld [vmem:[#allocation17 + $0x1488] sm:$0xf] }
 0x45c   :  { %v13809_v20 = vld [vmem:[#allocation17 + $0x14a4] sm:$0xf0] }
 0x45d   :  { %6491 = vmatpush.bf16.msra.mxu0 %v11679_v12  ;;  %6504 = vmatpush.bf16.msrb.mxu1 %v11935_v11  ;;  %v11782_v12 = vld [vmem:[#allocation17 + $0x1548] sm:$0xf] }
 0x45e   :  { %6517 = vmatpush.bf16.msrb.mxu2 %v11683_v36  ;;  %6530 = vmatpush.bf16.msra.mxu3 %v11939_v37  ;;  %v13833_v11 = vld [vmem:[#allocation17 + $0x1564] sm:$0xf0] }
 0x45f   :  { %v12038_v36 = vld [vmem:[#allocation17 + $0x1748] sm:$0xf]  ;;  %v11783_v49 = vor.u32 %v13833_v11, %v11782_v12 }
 0x460   :  { %v13897_v37 = vld [vmem:[#allocation17 + $0x1764] sm:$0xf0] }
 0x461   :  { %6492 = vmatpush.bf16.msra.mxu0 %v11647_v51  ;;  %6505 = vmatpush.bf16.msrb.mxu1 %v11903_v52  ;;  %v12039_v17 = vor.u32 %v13897_v37, %v12038_v36  ;;  %v13825_v51 = vld [vmem:[#allocation17 + $0x1524] sm:$0xf0]  ;;  %v11787_v52 = vor.u32 %v13829_v40, %v11784_v22 }
 0x462   :  { %6518 = vmatpush.bf16.msrb.mxu2 %v11651_v41  ;;  %6531 = vmatpush.bf16.msra.mxu3 %v11907_v57  ;;  %v13821_v41 = vld [vmem:[#allocation17 + $0x150c] sm:$0xf]  ;;  %v11751_v34 = vor.u32 %v13825_v51, %v11750_v50  ;;  %v11654_v36 = vld [vmem:[#allocation17 + $0x1448] sm:$0xf] }
 0x463   :  { %v11752_v57 = vld [vmem:[#allocation17 + $0x1528] sm:$0xf0]  ;;  %v13801_v37 = vld [vmem:[#allocation17 + $0x1464] sm:$0xf0] }
 0x464   :  { %v11755_v63 = vor.u32 %v13821_v41, %v11752_v57  ;;  %v11656_v50 = vld [vmem:[#allocation17 + $0x1468] sm:$0xf0]  ;;  %v11655_v55 = vor.u32 %v13801_v37, %v11654_v36  ;;  %v13793_v41 = vld [vmem:[#allocation17 + $0x1424] sm:$0xf0] }
 0x465   :  { %6493 = vmatpush.bf16.msra.mxu0 %v11615_v35  ;;  %6506 = vmatpush.bf16.msrb.mxu1 %v11871_v16  ;;  %v5506_v58 = vpop.f32.mrf.mxu0  ;;  %v5519_v15 = vpop.f32.mrf.mxu1  ;;  %v11974_v35 = vld [vmem:[#allocation17 + $0x16c8] sm:$0xf]  ;;  %v13861_v51 = vld [vmem:[#allocation17 + $0x164c] sm:$0xf] }
 0x466   :  { %6519 = vmatpush.bf16.msrb.mxu2 %v11619_v6  ;;  %6532 = vmatpush.bf16.msra.mxu3 %v11875_v9  ;;  %v5520_v43 = vadd.f32 %v5519_v15, %v5506_v58  ;;  %v13881_v16 = vld [vmem:[#allocation17 + $0x16e4] sm:$0xf0]  ;;  %v13877_v6 = vld [vmem:[#allocation17 + $0x16cc] sm:$0xf] }
 0x467   :  { %v11976_v9 = vld [vmem:[#allocation17 + $0x16e8] sm:$0xf0]  ;;  %v11878_v57 = vld [vmem:[#allocation17 + $0x1608] sm:$0xf] }
 0x468   :  { %6494 = vmatmul.bf16.vlgmr.msra.gmra.mxu0 %v14907_v13  ;;  %6507 = vmatmul.bf16.vlgmr.msrb.gmra.mxu1 %v14910_v30  ;;  %v14917_v1 = vadd.f32 %v5520_v43, %v14871_v7  ;;  %v11688_v7 = vld [vmem:[#allocation17 + $0x14a8] sm:$0xf0]  ;;  %v13857_v46 = vld [vmem:[#allocation17 + $0x1624] sm:$0xf0] }
 0x469   :  { %6538 = vmatpush.bf16.msrb.mxu0 %v11847_v14  ;;  %6551 = vmatpush.bf16.msra.mxu1 %v12103_v48  ;;  %v11719_v14 = vor.u32 %v13817_v61, %v11718_v60  ;;  %v11975_v48 = vor.u32 %v13881_v16, %v11974_v35  ;;  %v11691_v22 = vor.u32 %v13805_v26, %v11688_v7  ;;  %v13789_v58 = vld [vmem:[#allocation17 + $0x140c] sm:$0xf]  ;;  %v11854_v61 = vld [vmem:[#allocation17 + $0x15d0] sm:$0xf]  ;;  %v13846_v16 = vld [vmem:[#allocation17 + $0x15d4] sm:$0xf] }
 0x46a   :  { %6564 = vmatpush.bf16.msra.mxu2 %v11851_v21  ;;  %6577 = vmatpush.bf16.msrb.mxu3 %v12107_v23  ;;  %v11723_v21 = vor.u32 %v13813_v18, %v11720_v4  ;;  %v11979_v23 = vor.u32 %v13877_v6, %v11976_v9  ;;  %v11624_v15 = vld [vmem:[#allocation17 + $0x1428] sm:$0xf0]  ;;  %v13914_v35 = vld [vmem:[#allocation17 + $0x17ec] sm:$0xf0]  ;;  %v11879_v4 = vor.u32 %v13857_v46, %v11878_v57  ;;  %v11856_v6 = vld [vmem:[#allocation17 + $0x15f0] sm:$0xf0] }
 0x46b   :  { %6520 = vmatmul.bf16.vlgmr.msrb.gmra.mxu2 %v14907_v13  ;;  %6533 = vmatmul.bf16.vlgmr.msra.gmra.mxu3 %v14910_v30  ;;  %v13853_v43 = vld [vmem:[#allocation17 + $0x160c] sm:$0xf]  ;;  %v13910_v9 = vld [vmem:[#allocation17 + $0x17d4] sm:$0xf]  ;;  %v12014_v57 = vld [vmem:[#allocation17 + $0x1710] sm:$0xf] }
 0x46c   :  { %v11880_v60 = vld [vmem:[#allocation17 + $0x1628] sm:$0xf0]  ;;  %v13838_v7 = vld [vmem:[#allocation17 + $0x1594] sm:$0xf]  ;;  %v13890_v46 = vld [vmem:[#allocation17 + $0x172c] sm:$0xf0] }
 0x46d   :  { %6539 = vmatpush.bf16.msrb.mxu0 %v11815_v54  ;;  %6552 = vmatpush.bf16.msra.mxu1 %v12071_v62  ;;  %v11944_v54 = vld [vmem:[#allocation17 + $0x16a8] sm:$0xf0]  ;;  %v5508_v12 = vpop.f32.mrf.mxu0  ;;  %v5521_v11 = vpop.f32.mrf.mxu1 }
 0x46e   :  { %6565 = vmatpush.bf16.msra.mxu2 %v11819_v59  ;;  %6578 = vmatpush.bf16.msrb.mxu3 %v12075_v44  ;;  %v5532_v27 = vpop.f32.mrf.mxu2  ;;  %v5545_v8 = vpop.f32.mrf.mxu3  ;;  %v11687_v59 = vor.u32 %v13809_v20, %v11686_v19  ;;  %v11943_v44 = vor.u32 %v13873_v25, %v11942_v24  ;;  %v11947_v45 = vor.u32 %v13869_v28, %v11944_v54  ;;  %v13842_v24 = vld [vmem:[#allocation17 + $0x15ac] sm:$0xf0]  ;;  %v11824_v28 = vld [vmem:[#allocation17 + $0x15b0] sm:$0xf0] }
 0x46f   :  { %v5546_v62 = vadd.f32 %v5545_v8, %v5532_v27  ;;  %v11883_v19 = vor.u32 %v13853_v43, %v11880_v60  ;;  %v11859_v25 = vor.u32 %v13846_v16, %v11856_v6  ;;  %v12078_v27 = vld [vmem:[#allocation17 + $0x1790] sm:$0xf]  ;;  %v13902_v54 = vld [vmem:[#allocation17 + $0x1794] sm:$0xf]  ;;  %v11827_v36 = vor.u32 %v13838_v7, %v11824_v28 }
 0x470   :  { %v13906_v8 = vld [vmem:[#allocation17 + $0x17ac] sm:$0xf0]  ;;  %v13814_v6 = vld [vmem:[#allocation17 + $0x14d4] sm:$0xf] }
 0x471   :  { %6540 = vmatpush.bf16.msrb.mxu0 %v11783_v49  ;;  %6553 = vmatpush.bf16.msra.mxu1 %v12039_v17  ;;  %v14920_v40 = vadd.f32 %v5546_v62, %v14874_v42  ;;  %v13865_v49 = vld [vmem:[#allocation17 + $0x1664] sm:$0xf0]  ;;  %v13797_v17 = vld [vmem:[#allocation17 + $0x144c] sm:$0xf]  ;;  %v12080_v62 = vld [vmem:[#allocation17 + $0x17b0] sm:$0xf0]  ;;  %v12079_v11 = vor.u32 %v13906_v8, %v12078_v27 }
 0x472   :  { %6566 = vmatpush.bf16.msra.mxu2 %v11787_v52  ;;  %6579 = vmatpush.bf16.msrb.mxu3 %v12043_v53  ;;  %v11912_v52 = vld [vmem:[#allocation17 + $0x1668] sm:$0xf0]  ;;  %v11622_v53 = vld [vmem:[#allocation17 + $0x1408] sm:$0xf]  ;;  %v11911_v56 = vor.u32 %v13865_v49, %v11910_v47  ;;  %v11659_v42 = vor.u32 %v13797_v17, %v11656_v50  ;;  %v12083_v37 = vor.u32 %v13902_v54, %v12080_v62  ;;  %v13830_v47 = vld [vmem:[#allocation17 + $0x1554] sm:$0xf] }
 0x473   :  { %v11915_v29 = vor.u32 %v13861_v51, %v11912_v52  ;;  %v11623_v18 = vor.u32 %v13793_v41, %v11622_v53  ;;  %v11792_v49 = vld [vmem:[#allocation17 + $0x1570] sm:$0xf0]  ;;  %v11758_v53 = vld [vmem:[#allocation17 + $0x1510] sm:$0xf] }
 0x474   :  { %v13894_v17 = vld [vmem:[#allocation17 + $0x1754] sm:$0xf]  ;;  %v11950_v27 = vld [vmem:[#allocation17 + $0x1690] sm:$0xf] }
 0x475   :  { %6541 = vmatpush.bf16.msrb.mxu0 %v11751_v34  ;;  %6554 = vmatpush.bf16.msra.mxu1 %v12007_v38  ;;  %v12048_v50 = vld [vmem:[#allocation17 + $0x1770] sm:$0xf0]  ;;  %v13874_v8 = vld [vmem:[#allocation17 + $0x16ac] sm:$0xf0] }
 0x476   :  { %6567 = vmatpush.bf16.msra.mxu2 %v11755_v63  ;;  %6580 = vmatpush.bf16.msrb.mxu3 %v12011_v33  ;;  %v5534_v34 = vpop.f32.mrf.mxu2  ;;  %v5547_v38 = vpop.f32.mrf.mxu3  ;;  %v13850_v63 = vld [vmem:[#allocation17 + $0x15ec] sm:$0xf0]  ;;  %v12051_v41 = vor.u32 %v13894_v17, %v12048_v50  ;;  %v13806_v7 = vld [vmem:[#allocation17 + $0x1494] sm:$0xf] }
 0x477   :  { %v12110_v33 = vld [vmem:[#allocation17 + $0x17d0] sm:$0xf]  ;;  %v11855_v20 = vor.u32 %v13850_v63, %v11854_v61  ;;  %v12015_v61 = vor.u32 %v13890_v46, %v12014_v57  ;;  %v13870_v62 = vld [vmem:[#allocation17 + $0x1694] sm:$0xf] }
 0x478   :  { %v11726_v63 = vld [vmem:[#allocation17 + $0x14d0] sm:$0xf] }
 0x479   :  { %6542 = vmatpush.bf16.msrb.mxu0 %v11719_v14  ;;  %6555 = vmatpush.bf16.msra.mxu1 %v11975_v48  ;;  %v12112_v14 = vld [vmem:[#allocation17 + $0x17f0] sm:$0xf0]  ;;  %v11627_v48 = vor.u32 %v13789_v58, %v11624_v15  ;;  %v11918_v50 = vld [vmem:[#allocation17 + $0x1650] sm:$0xf] }
 0x47a   :  { %6568 = vmatpush.bf16.msra.mxu2 %v11723_v21  ;;  %6581 = vmatpush.bf16.msrb.mxu3 %v11979_v23  ;;  %v12111_v21 = vor.u32 %v13914_v35, %v12110_v33  ;;  %v11822_v23 = vld [vmem:[#allocation17 + $0x1590] sm:$0xf]  ;;  %v12115_v26 = vor.u32 %v13910_v9, %v12112_v14  ;;  %v13886_v58 = vld [vmem:[#allocation17 + $0x1714] sm:$0xf] }
 0x47b   :  { %v11823_v12 = vor.u32 %v13842_v24, %v11822_v23  ;;  %v12016_v15 = vld [vmem:[#allocation17 + $0x1730] sm:$0xf0]  ;;  %v13818_v33 = vld [vmem:[#allocation17 + $0x14ec] sm:$0xf0] }
 0x47c   :  { %v12019_v16 = vor.u32 %v13886_v58, %v12016_v15  ;;  %v11728_v14 = vld [vmem:[#allocation17 + $0x14f0] sm:$0xf0]  ;;  %v11694_v23 = vld [vmem:[#allocation17 + $0x1490] sm:$0xf] }
 0x47d   :  { %6543 = vmatpush.bf16.msrb.mxu0 %v11687_v59  ;;  %6556 = vmatpush.bf16.msra.mxu1 %v11943_v44  ;;  %v11790_v59 = vld [vmem:[#allocation17 + $0x1550] sm:$0xf] }
 0x47e   :  { %6569 = vmatpush.bf16.msra.mxu2 %v11691_v22  ;;  %6582 = vmatpush.bf16.msrb.mxu3 %v11947_v45  ;;  %v13834_v44 = vld [vmem:[#allocation17 + $0x156c] sm:$0xf0] }
 0x47f   :  { %v12046_v22 = vld [vmem:[#allocation17 + $0x1750] sm:$0xf]  ;;  %v11791_v51 = vor.u32 %v13834_v44, %v11790_v59 }
 0x480   :  { %v13898_v45 = vld [vmem:[#allocation17 + $0x176c] sm:$0xf0] }
 0x481   :  { %6544 = vmatpush.bf16.msrb.mxu0 %v11655_v55  ;;  %6557 = vmatpush.bf16.msra.mxu1 %v11911_v56  ;;  %v12047_v52 = vor.u32 %v13898_v45, %v12046_v22  ;;  %v13826_v55 = vld [vmem:[#allocation17 + $0x152c] sm:$0xf0]  ;;  %v11795_v56 = vor.u32 %v13830_v47, %v11792_v49 }
 0x482   :  { %6570 = vmatpush.bf16.msra.mxu2 %v11659_v42  ;;  %6583 = vmatpush.bf16.msrb.mxu3 %v11915_v29  ;;  %v13822_v42 = vld [vmem:[#allocation17 + $0x1514] sm:$0xf]  ;;  %v11759_v60 = vor.u32 %v13826_v55, %v11758_v53  ;;  %v13810_v24 = vld [vmem:[#allocation17 + $0x14ac] sm:$0xf0] }
 0x483   :  { %v11760_v29 = vld [vmem:[#allocation17 + $0x1530] sm:$0xf0]  ;;  %v11662_v22 = vld [vmem:[#allocation17 + $0x1450] sm:$0xf] }
 0x484   :  { %v11763_v35 = vor.u32 %v13822_v42, %v11760_v29  ;;  %v13802_v45 = vld [vmem:[#allocation17 + $0x146c] sm:$0xf0]  ;;  %v11664_v53 = vld [vmem:[#allocation17 + $0x1470] sm:$0xf0] }
 0x485   :  { %6545 = vmatpush.bf16.msrb.mxu0 %v11623_v18  ;;  %6558 = vmatpush.bf16.msra.mxu1 %v11879_v4  ;;  %v5558_v43 = vpop.f32.mrf.mxu0  ;;  %v5571_v34 = vpop.f32.mrf.mxu1  ;;  %v11982_v18 = vld [vmem:[#allocation17 + $0x16d0] sm:$0xf]  ;;  %v13862_v55 = vld [vmem:[#allocation17 + $0x1654] sm:$0xf]  ;;  %v11663_v57 = vor.u32 %v13802_v45, %v11662_v22 }
 0x486   :  { %6571 = vmatpush.bf16.msra.mxu2 %v11627_v48  ;;  %6584 = vmatpush.bf16.msrb.mxu3 %v11883_v19  ;;  %v5572_v38 = vadd.f32 %v5571_v34, %v5558_v43  ;;  %v13882_v4 = vld [vmem:[#allocation17 + $0x16ec] sm:$0xf0]  ;;  %v13878_v48 = vld [vmem:[#allocation17 + $0x16d4] sm:$0xf] }
 0x487   :  { %v11984_v19 = vld [vmem:[#allocation17 + $0x16f0] sm:$0xf0]  ;;  %v13794_v42 = vld [vmem:[#allocation17 + $0x142c] sm:$0xf0] }
 0x488   :  { %6546 = vmatmul.bf16.vlgmr.msrb.gmra.mxu0 %v14907_v13  ;;  %6559 = vmatmul.bf16.vlgmr.msra.gmra.mxu1 %v14910_v30  ;;  %v14927_v9 = vadd.f32 %v5572_v38, %v14881_v5  ;;  %v11696_v5 = vld [vmem:[#allocation17 + $0x14b0] sm:$0xf0]  ;;  %v11886_v29 = vld [vmem:[#allocation17 + $0x1610] sm:$0xf] }
 0x489   :  { %6590 = vmatpush.bf16.msra.mxu0 %v11855_v20  ;;  %6603 = vmatpush.bf16.msrb.mxu1 %v12111_v21  ;;  %v11727_v20 = vor.u32 %v13818_v33, %v11726_v63  ;;  %v11983_v21 = vor.u32 %v13882_v4, %v11982_v18  ;;  %v11699_v49 = vor.u32 %v13806_v7, %v11696_v5  ;;  %v13858_v58 = vld [vmem:[#allocation17 + $0x162c] sm:$0xf0]  ;;  %v13790_v43 = vld [vmem:[#allocation17 + $0x1414] sm:$0xf]  ;;  %v11862_v33 = vld [vmem:[#allocation17 + $0x15d8] sm:$0xf] }
 0x48a   :  { %6616 = vmatpush.bf16.msrb.mxu2 %v11859_v25  ;;  %6629 = vmatpush.bf16.msra.mxu3 %v12115_v26  ;;  %v11731_v25 = vor.u32 %v13814_v6, %v11728_v14  ;;  %v11987_v26 = vor.u32 %v13878_v48, %v11984_v19  ;;  %v11632_v34 = vld [vmem:[#allocation17 + $0x1430] sm:$0xf0]  ;;  %v13915_v18 = vld [vmem:[#allocation17 + $0x17f4] sm:$0xf0]  ;;  %v13847_v4 = vld [vmem:[#allocation17 + $0x15dc] sm:$0xf]  ;;  %v11887_v14 = vor.u32 %v13858_v58, %v11886_v29 }
 0x48b   :  { %6572 = vmatmul.bf16.vlgmr.msra.gmra.mxu2 %v14907_v13  ;;  %6585 = vmatmul.bf16.vlgmr.msrb.gmra.mxu3 %v14910_v30  ;;  %v13854_v38 = vld [vmem:[#allocation17 + $0x1614] sm:$0xf]  ;;  %v11864_v48 = vld [vmem:[#allocation17 + $0x15f8] sm:$0xf0]  ;;  %v12022_v29 = vld [vmem:[#allocation17 + $0x1718] sm:$0xf] }
 0x48c   :  { %v11888_v63 = vld [vmem:[#allocation17 + $0x1630] sm:$0xf0]  ;;  %v13911_v19 = vld [vmem:[#allocation17 + $0x17dc] sm:$0xf]  ;;  %v13891_v58 = vld [vmem:[#allocation17 + $0x1734] sm:$0xf0] }
 0x48d   :  { %6591 = vmatpush.bf16.msra.mxu0 %v11823_v12  ;;  %6604 = vmatpush.bf16.msrb.mxu1 %v12079_v11  ;;  %v11952_v12 = vld [vmem:[#allocation17 + $0x16b0] sm:$0xf0]  ;;  %v5560_v59 = vpop.f32.mrf.mxu0  ;;  %v5573_v44 = vpop.f32.mrf.mxu1  ;;  %v13839_v5 = vld [vmem:[#allocation17 + $0x159c] sm:$0xf] }
 0x48e   :  { %6617 = vmatpush.bf16.msrb.mxu2 %v11827_v36  ;;  %6630 = vmatpush.bf16.msra.mxu3 %v12083_v37  ;;  %v5584_v28 = vpop.f32.mrf.mxu2  ;;  %v5597_v54 = vpop.f32.mrf.mxu3  ;;  %v11695_v36 = vor.u32 %v13810_v24, %v11694_v23  ;;  %v11951_v37 = vor.u32 %v13874_v8, %v11950_v27  ;;  %v11955_v17 = vor.u32 %v13870_v62, %v11952_v12  ;;  %v13843_v27 = vld [vmem:[#allocation17 + $0x15b4] sm:$0xf0]  ;;  %v11832_v62 = vld [vmem:[#allocation17 + $0x15b8] sm:$0xf0] }
 0x48f   :  { %v5598_v11 = vadd.f32 %v5597_v54, %v5584_v28  ;;  %v11891_v23 = vor.u32 %v13854_v38, %v11888_v63  ;;  %v11867_v8 = vor.u32 %v13847_v4, %v11864_v48  ;;  %v12086_v28 = vld [vmem:[#allocation17 + $0x1798] sm:$0xf]  ;;  %v13903_v12 = vld [vmem:[#allocation17 + $0x179c] sm:$0xf]  ;;  %v11835_v22 = vor.u32 %v13839_v5, %v11832_v62 }
 0x490   :  { %v13907_v54 = vld [vmem:[#allocation17 + $0x17b4] sm:$0xf0]  ;;  %v13815_v48 = vld [vmem:[#allocation17 + $0x14dc] sm:$0xf] }
 0x491   :  { %6592 = vmatpush.bf16.msra.mxu0 %v11791_v51  ;;  %6605 = vmatpush.bf16.msrb.mxu1 %v12047_v52  ;;  %v14930_v47 = vadd.f32 %v5598_v11, %v14884_v39  ;;  %v13866_v51 = vld [vmem:[#allocation17 + $0x166c] sm:$0xf0]  ;;  %v13798_v52 = vld [vmem:[#allocation17 + $0x1454] sm:$0xf]  ;;  %v12088_v11 = vld [vmem:[#allocation17 + $0x17b8] sm:$0xf0]  ;;  %v12087_v44 = vor.u32 %v13907_v54, %v12086_v28 }
 0x492   :  { %6618 = vmatpush.bf16.msrb.mxu2 %v11795_v56  ;;  %6631 = vmatpush.bf16.msra.mxu3 %v12051_v41  ;;  %v11920_v56 = vld [vmem:[#allocation17 + $0x1670] sm:$0xf0]  ;;  %v11630_v41 = vld [vmem:[#allocation17 + $0x1410] sm:$0xf]  ;;  %v11919_v46 = vor.u32 %v13866_v51, %v11918_v50  ;;  %v11667_v39 = vor.u32 %v13798_v52, %v11664_v53  ;;  %v12091_v45 = vor.u32 %v13903_v12, %v12088_v11  ;;  %v13831_v50 = vld [vmem:[#allocation17 + $0x155c] sm:$0xf] }
 0x493   :  { %v11923_v15 = vor.u32 %v13862_v55, %v11920_v56  ;;  %v11631_v6 = vor.u32 %v13794_v42, %v11630_v41  ;;  %v11800_v51 = vld [vmem:[#allocation17 + $0x1578] sm:$0xf0]  ;;  %v11766_v41 = vld [vmem:[#allocation17 + $0x1518] sm:$0xf] }
 0x494   :  { %v13895_v52 = vld [vmem:[#allocation17 + $0x175c] sm:$0xf]  ;;  %v11958_v28 = vld [vmem:[#allocation17 + $0x1698] sm:$0xf] }
 0x495   :  { %6593 = vmatpush.bf16.msra.mxu0 %v11759_v60  ;;  %6606 = vmatpush.bf16.msrb.mxu1 %v12015_v61  ;;  %v12056_v53 = vld [vmem:[#allocation17 + $0x1778] sm:$0xf0]  ;;  %v13875_v54 = vld [vmem:[#allocation17 + $0x16b4] sm:$0xf0] }
 0x496   :  { %6619 = vmatpush.bf16.msrb.mxu2 %v11763_v35  ;;  %6632 = vmatpush.bf16.msra.mxu3 %v12019_v16  ;;  %v5586_v60 = vpop.f32.mrf.mxu2  ;;  %v5599_v61 = vpop.f32.mrf.mxu3  ;;  %v13851_v35 = vld [vmem:[#allocation17 + $0x15f4] sm:$0xf0]  ;;  %v12059_v42 = vor.u32 %v13895_v52, %v12056_v53  ;;  %v13807_v5 = vld [vmem:[#allocation17 + $0x149c] sm:$0xf] }
 0x497   :  { %v12118_v16 = vld [vmem:[#allocation17 + $0x17d8] sm:$0xf]  ;;  %v11863_v24 = vor.u32 %v13851_v35, %v11862_v33  ;;  %v12023_v33 = vor.u32 %v13891_v58, %v12022_v29  ;;  %v13871_v11 = vld [vmem:[#allocation17 + $0x169c] sm:$0xf] }
 0x498   :  { %v11734_v35 = vld [vmem:[#allocation17 + $0x14d8] sm:$0xf] }
 0x499   :  { %6594 = vmatpush.bf16.msra.mxu0 %v11727_v20  ;;  %6607 = vmatpush.bf16.msrb.mxu1 %v11983_v21  ;;  %v12120_v20 = vld [vmem:[#allocation17 + $0x17f8] sm:$0xf0]  ;;  %v11635_v21 = vor.u32 %v13790_v43, %v11632_v34  ;;  %v11926_v53 = vld [vmem:[#allocation17 + $0x1658] sm:$0xf] }
 0x49a   :  { %6620 = vmatpush.bf16.msrb.mxu2 %v11731_v25  ;;  %6633 = vmatpush.bf16.msra.mxu3 %v11987_v26  ;;  %v12119_v25 = vor.u32 %v13915_v18, %v12118_v16  ;;  %v11830_v26 = vld [vmem:[#allocation17 + $0x1598] sm:$0xf]  ;;  %v12123_v7 = vor.u32 %v13911_v19, %v12120_v20  ;;  %v13887_v43 = vld [vmem:[#allocation17 + $0x171c] sm:$0xf] }
 0x49b   :  { %v11831_v59 = vor.u32 %v13843_v27, %v11830_v26  ;;  %v12024_v34 = vld [vmem:[#allocation17 + $0x1738] sm:$0xf0]  ;;  %v13819_v16 = vld [vmem:[#allocation17 + $0x14f4] sm:$0xf0] }
 0x49c   :  { %v12027_v4 = vor.u32 %v13887_v43, %v12024_v34  ;;  %v11736_v20 = vld [vmem:[#allocation17 + $0x14f8] sm:$0xf0]  ;;  %v11702_v26 = vld [vmem:[#allocation17 + $0x1498] sm:$0xf] }
 0x49d   :  { %6595 = vmatpush.bf16.msra.mxu0 %v11695_v36  ;;  %6608 = vmatpush.bf16.msrb.mxu1 %v11951_v37  ;;  %v11798_v36 = vld [vmem:[#allocation17 + $0x1558] sm:$0xf] }
 0x49e   :  { %6621 = vmatpush.bf16.msrb.mxu2 %v11699_v49  ;;  %6634 = vmatpush.bf16.msra.mxu3 %v11955_v17  ;;  %v13835_v37 = vld [vmem:[#allocation17 + $0x1574] sm:$0xf0] }
 0x49f   :  { %v12054_v49 = vld [vmem:[#allocation17 + $0x1758] sm:$0xf]  ;;  %v11799_v55 = vor.u32 %v13835_v37, %v11798_v36 }
 0x4a0   :  { %v13899_v17 = vld [vmem:[#allocation17 + $0x1774] sm:$0xf0] }
 0x4a1   :  { %6596 = vmatpush.bf16.msra.mxu0 %v11663_v57  ;;  %6609 = vmatpush.bf16.msrb.mxu1 %v11919_v46  ;;  %v12055_v56 = vor.u32 %v13899_v17, %v12054_v49  ;;  %v13827_v57 = vld [vmem:[#allocation17 + $0x1534] sm:$0xf0]  ;;  %v11803_v46 = vor.u32 %v13831_v50, %v11800_v51 }
 0x4a2   :  { %6622 = vmatpush.bf16.msrb.mxu2 %v11667_v39  ;;  %6635 = vmatpush.bf16.msra.mxu3 %v11923_v15  ;;  %v13823_v39 = vld [vmem:[#allocation17 + $0x151c] sm:$0xf]  ;;  %v11767_v63 = vor.u32 %v13827_v57, %v11766_v41  ;;  %v13811_v27 = vld [vmem:[#allocation17 + $0x14b4] sm:$0xf0] }
 0x4a3   :  { %v11768_v15 = vld [vmem:[#allocation17 + $0x1538] sm:$0xf0]  ;;  %v11670_v49 = vld [vmem:[#allocation17 + $0x1458] sm:$0xf] }
 0x4a4   :  { %v11771_v18 = vor.u32 %v13823_v39, %v11768_v15  ;;  %v13803_v17 = vld [vmem:[#allocation17 + $0x1474] sm:$0xf0]  ;;  %v11672_v41 = vld [vmem:[#allocation17 + $0x1478] sm:$0xf0] }
 0x4a5   :  { %6597 = vmatpush.bf16.msra.mxu0 %v11631_v6  ;;  %6610 = vmatpush.bf16.msrb.mxu1 %v11887_v14  ;;  %v5610_v38 = vpop.f32.mrf.mxu0  ;;  %v5623_v60 = vpop.f32.mrf.mxu1  ;;  %v11990_v6 = vld [vmem:[#allocation17 + $0x16d8] sm:$0xf]  ;;  %v13863_v57 = vld [vmem:[#allocation17 + $0x165c] sm:$0xf]  ;;  %v11671_v29 = vor.u32 %v13803_v17, %v11670_v49 }
 0x4a6   :  { %6623 = vmatpush.bf16.msrb.mxu2 %v11635_v21  ;;  %6636 = vmatpush.bf16.msra.mxu3 %v11891_v23  ;;  %v5624_v61 = vadd.f32 %v5623_v60, %v5610_v38  ;;  %v13883_v14 = vld [vmem:[#allocation17 + $0x16f4] sm:$0xf0]  ;;  %v13879_v21 = vld [vmem:[#allocation17 + $0x16dc] sm:$0xf] }
 0x4a7   :  { %v11992_v23 = vld [vmem:[#allocation17 + $0x16f8] sm:$0xf0]  ;;  %v13795_v39 = vld [vmem:[#allocation17 + $0x1434] sm:$0xf0] }
 0x4a8   :  { %6598 = vmatmul.bf16.vlgmr.msra.gmra.mxu0 %v14907_v13  ;;  %6611 = vmatmul.bf16.vlgmr.msrb.gmra.mxu1 %v14910_v30  ;;  %v14937_v19 = vadd.f32 %v5624_v61, %v14891_v3  ;;  %v11704_v3 = vld [vmem:[#allocation17 + $0x14b8] sm:$0xf0]  ;;  %v11894_v15 = vld [vmem:[#allocation17 + $0x1618] sm:$0xf] }
 0x4a9   :  { %6642 = vmatpush.bf16.msrb.mxu0 %v11863_v24  ;;  %6655 = vmatpush.bf16.msra.mxu1 %v12119_v25  ;;  %v11735_v24 = vor.u32 %v13819_v16, %v11734_v35  ;;  %v11991_v25 = vor.u32 %v13883_v14, %v11990_v6  ;;  %v11707_v51 = vor.u32 %v13807_v5, %v11704_v3  ;;  %v13859_v43 = vld [vmem:[#allocation17 + $0x1634] sm:$0xf0]  ;;  %v13791_v38 = vld [vmem:[#allocation17 + $0x141c] sm:$0xf]  ;;  %v12350_v16 = vld [vmem:[#allocation17 + $0x19c0] sm:$0xf] }
 0x4aa   :  { %6668 = vmatpush.bf16.msra.mxu2 %v11867_v8  ;;  %6681 = vmatpush.bf16.msrb.mxu3 %v12123_v7  ;;  %v11739_v8 = vor.u32 %v13815_v48, %v11736_v20  ;;  %v11995_v7 = vor.u32 %v13879_v21, %v11992_v23  ;;  %v11640_v60 = vld [vmem:[#allocation17 + $0x1438] sm:$0xf0]  ;;  %v14040_v6 = vld [vmem:[#allocation17 + $0x1bdc] sm:$0xf0]  ;;  %v13972_v14 = vld [vmem:[#allocation17 + $0x19c4] sm:$0xf]  ;;  %v11895_v20 = vor.u32 %v13859_v43, %v11894_v15 }
 0x4ab   :  { %6624 = vmatmul.bf16.vlgmr.msrb.gmra.mxu2 %v14907_v13  ;;  %6637 = vmatmul.bf16.vlgmr.msra.gmra.mxu3 %v14910_v30  ;;  %v13855_v61 = vld [vmem:[#allocation17 + $0x161c] sm:$0xf]  ;;  %v12352_v21 = vld [vmem:[#allocation17 + $0x19e0] sm:$0xf0]  ;;  %v12510_v15 = vld [vmem:[#allocation17 + $0x1b00] sm:$0xf] }
 0x4ac   :  { %v11896_v35 = vld [vmem:[#allocation17 + $0x1638] sm:$0xf0]  ;;  %v14036_v23 = vld [vmem:[#allocation17 + $0x1bc4] sm:$0xf]  ;;  %v14016_v43 = vld [vmem:[#allocation17 + $0x1b1c] sm:$0xf0] }
 0x4ad   :  { %6643 = vmatpush.bf16.msrb.mxu0 %v11831_v59  ;;  %6656 = vmatpush.bf16.msra.mxu1 %v12087_v44  ;;  %v11960_v59 = vld [vmem:[#allocation17 + $0x16b8] sm:$0xf0]  ;;  %v5612_v36 = vpop.f32.mrf.mxu0  ;;  %v5625_v37 = vpop.f32.mrf.mxu1  ;;  %v13964_v3 = vld [vmem:[#allocation17 + $0x1984] sm:$0xf] }
 0x4ae   :  { %6669 = vmatpush.bf16.msra.mxu2 %v11835_v22  ;;  %6682 = vmatpush.bf16.msrb.mxu3 %v12091_v45  ;;  %v5636_v62 = vpop.f32.mrf.mxu2  ;;  %v5649_v12 = vpop.f32.mrf.mxu3  ;;  %v11703_v22 = vor.u32 %v13811_v27, %v11702_v26  ;;  %v11959_v45 = vor.u32 %v13875_v54, %v11958_v28  ;;  %v11963_v52 = vor.u32 %v13871_v11, %v11960_v59  ;;  %v13968_v28 = vld [vmem:[#allocation17 + $0x199c] sm:$0xf0]  ;;  %v12320_v11 = vld [vmem:[#allocation17 + $0x19a0] sm:$0xf0] }
 0x4af   :  { %v5650_v44 = vadd.f32 %v5649_v12, %v5636_v62  ;;  %v11899_v26 = vor.u32 %v13855_v61, %v11896_v35  ;;  %v12355_v54 = vor.u32 %v13972_v14, %v12352_v21  ;;  %v12574_v62 = vld [vmem:[#allocation17 + $0x1b80] sm:$0xf]  ;;  %v14028_v59 = vld [vmem:[#allocation17 + $0x1b84] sm:$0xf]  ;;  %v12323_v49 = vor.u32 %v13964_v3, %v12320_v11 }
 0x4b0   :  { %v14032_v12 = vld [vmem:[#allocation17 + $0x1b9c] sm:$0xf0]  ;;  %v12224_v21 = vld [vmem:[#allocation17 + $0x18e0] sm:$0xf0] }
 0x4b1   :  { %6644 = vmatpush.bf16.msrb.mxu0 %v11799_v55  ;;  %6657 = vmatpush.bf16.msra.mxu1 %v12055_v56  ;;  %v14940_v50 = vadd.f32 %v5650_v44, %v14894_v10  ;;  %v13867_v55 = vld [vmem:[#allocation17 + $0x1674] sm:$0xf0]  ;;  %v13799_v56 = vld [vmem:[#allocation17 + $0x145c] sm:$0xf]  ;;  %v12576_v44 = vld [vmem:[#allocation17 + $0x1ba0] sm:$0xf0]  ;;  %v12575_v37 = vor.u32 %v14032_v12, %v12574_v62 }
 0x4b2   :  { %6670 = vmatpush.bf16.msra.mxu2 %v11803_v46  ;;  %6683 = vmatpush.bf16.msrb.mxu3 %v12059_v42  ;;  %v11928_v46 = vld [vmem:[#allocation17 + $0x1678] sm:$0xf0]  ;;  %v11638_v42 = vld [vmem:[#allocation17 + $0x1418] sm:$0xf]  ;;  %v11927_v58 = vor.u32 %v13867_v55, %v11926_v53  ;;  %v11675_v10 = vor.u32 %v13799_v56, %v11672_v41  ;;  %v12579_v17 = vor.u32 %v14028_v59, %v12576_v44  ;;  %v13956_v53 = vld [vmem:[#allocation17 + $0x1944] sm:$0xf] }
 0x4b3   :  { %v11931_v34 = vor.u32 %v13863_v57, %v11928_v46  ;;  %v11639_v48 = vor.u32 %v13795_v39, %v11638_v42  ;;  %v12288_v55 = vld [vmem:[#allocation17 + $0x1960] sm:$0xf0]  ;;  %v12254_v42 = vld [vmem:[#allocation17 + $0x1900] sm:$0xf] }
 0x4b4   :  { %v14020_v56 = vld [vmem:[#allocation17 + $0x1b44] sm:$0xf]  ;;  %v12222_v35 = vld [vmem:[#allocation17 + $0x18c0] sm:$0xf] }
 0x4b5   :  { %6645 = vmatpush.bf16.msrb.mxu0 %v11767_v63  ;;  %6658 = vmatpush.bf16.msra.mxu1 %v12023_v33  ;;  %v12544_v41 = vld [vmem:[#allocation17 + $0x1b60] sm:$0xf0]  ;;  %v14008_v14 = vld [vmem:[#allocation17 + $0x1adc] sm:$0xf0] }
 0x4b6   :  { %6671 = vmatpush.bf16.msra.mxu2 %v11771_v18  ;;  %6684 = vmatpush.bf16.msrb.mxu3 %v12027_v4  ;;  %v5638_v63 = vpop.f32.mrf.mxu2  ;;  %v5651_v33 = vpop.f32.mrf.mxu3  ;;  %v13976_v18 = vld [vmem:[#allocation17 + $0x19dc] sm:$0xf0]  ;;  %v12547_v39 = vor.u32 %v14020_v56, %v12544_v41  ;;  %v13932_v62 = vld [vmem:[#allocation17 + $0x1884] sm:$0xf] }
 0x4b7   :  { %v12606_v4 = vld [vmem:[#allocation17 + $0x1bc0] sm:$0xf]  ;;  %v12351_v27 = vor.u32 %v13976_v18, %v12350_v16  ;;  %v12511_v33 = vor.u32 %v14016_v43, %v12510_v15  ;;  %v13996_v11 = vld [vmem:[#allocation17 + $0x1a84] sm:$0xf] }
 0x4b8   :  { %v13944_v16 = vld [vmem:[#allocation17 + $0x18dc] sm:$0xf0]  ;;  %v12448_v59 = vld [vmem:[#allocation17 + $0x1aa0] sm:$0xf0] }
 0x4b9   :  { %6646 = vmatpush.bf16.msrb.mxu0 %v11735_v24  ;;  %6659 = vmatpush.bf16.msra.mxu1 %v11991_v25  ;;  %v12608_v24 = vld [vmem:[#allocation17 + $0x1be0] sm:$0xf0]  ;;  %v11643_v25 = vor.u32 %v13791_v38, %v11640_v60  ;;  %v13992_v56 = vld [vmem:[#allocation17 + $0x1a5c] sm:$0xf0] }
 0x4ba   :  { %6672 = vmatpush.bf16.msra.mxu2 %v11739_v8  ;;  %6685 = vmatpush.bf16.msrb.mxu3 %v11995_v7  ;;  %v12607_v8 = vor.u32 %v14040_v6, %v12606_v4  ;;  %v12318_v7 = vld [vmem:[#allocation17 + $0x1980] sm:$0xf]  ;;  %v12611_v5 = vor.u32 %v14036_v23, %v12608_v24  ;;  %v14012_v38 = vld [vmem:[#allocation17 + $0x1b04] sm:$0xf] }
 0x4bb   :  { %v12319_v36 = vor.u32 %v13968_v28, %v12318_v7  ;;  %v12512_v60 = vld [vmem:[#allocation17 + $0x1b20] sm:$0xf0]  ;;  %v12478_v6 = vld [vmem:[#allocation17 + $0x1ac0] sm:$0xf] }
 0x4bc   :  { %v12515_v4 = vor.u32 %v14012_v38, %v12512_v60  ;;  %v14004_v23 = vld [vmem:[#allocation17 + $0x1ac4] sm:$0xf]  ;;  %v13920_v15 = vld [vmem:[#allocation17 + $0x181c] sm:$0xf0] }
 0x4bd   :  { %6647 = vmatpush.bf16.msrb.mxu0 %v11703_v22  ;;  %6660 = vmatpush.bf16.msra.mxu1 %v11959_v45  ;;  %v12286_v22 = vld [vmem:[#allocation17 + $0x1940] sm:$0xf]  ;;  %v12480_v24 = vld [vmem:[#allocation17 + $0x1ae0] sm:$0xf0] }
 0x4be   :  { %6673 = vmatpush.bf16.msra.mxu2 %v11707_v51  ;;  %6686 = vmatpush.bf16.msrb.mxu3 %v11963_v52  ;;  %v13960_v45 = vld [vmem:[#allocation17 + $0x195c] sm:$0xf0]  ;;  %v12483_v28 = vor.u32 %v14004_v23, %v12480_v24  ;;  %v13924_v41 = vld [vmem:[#allocation17 + $0x1844] sm:$0xf]  ;;  %v12616_v23 = vld [vmem:[#allocation17 + $0x1be8] sm:$0xf0] }
 0x4bf   :  { %v12542_v51 = vld [vmem:[#allocation17 + $0x1b40] sm:$0xf]  ;;  %v12287_v57 = vor.u32 %v13960_v45, %v12286_v22  ;;  %v13916_v38 = vld [vmem:[#allocation17 + $0x1804] sm:$0xf] }
 0x4c0   :  { %v14024_v52 = vld [vmem:[#allocation17 + $0x1b5c] sm:$0xf0]  ;;  %v12128_v60 = vld [vmem:[#allocation17 + $0x1820] sm:$0xf0] }
 0x4c1   :  { %6648 = vmatpush.bf16.msrb.mxu0 %v11671_v29  ;;  %6661 = vmatpush.bf16.msra.mxu1 %v11927_v58  ;;  %v12543_v46 = vor.u32 %v14024_v52, %v12542_v51  ;;  %v13952_v29 = vld [vmem:[#allocation17 + $0x191c] sm:$0xf0]  ;;  %v12291_v58 = vor.u32 %v13956_v53, %v12288_v55  ;;  %v12451_v53 = vor.u32 %v13996_v11, %v12448_v59  ;;  %v12584_v11 = vld [vmem:[#allocation17 + $0x1ba8] sm:$0xf0]  ;;  %v14953_v59 = vrot.slane %v14862_v31, 2 }
 0x4c2   :  { %6674 = vmatpush.bf16.msra.mxu2 %v11675_v10  ;;  %6687 = vmatpush.bf16.msrb.mxu3 %v11931_v34  ;;  %v13948_v10 = vld [vmem:[#allocation17 + $0x1904] sm:$0xf]  ;;  %v12255_v63 = vor.u32 %v13952_v29, %v12254_v42  ;;  %v12414_v55 = vld [vmem:[#allocation17 + $0x1a40] sm:$0xf]  ;;  %v12131_v24 = vor.u32 %v13916_v38, %v12128_v60  ;;  %v14013_v38 = vld [vmem:[#allocation17 + $0x1b0c] sm:$0xf] }
 0x4c3   :  { %v12256_v34 = vld [vmem:[#allocation17 + $0x1920] sm:$0xf0]  ;;  %v12126_v29 = vld [vmem:[#allocation17 + $0x1800] sm:$0xf]  ;;  %v12520_v60 = vld [vmem:[#allocation17 + $0x1b28] sm:$0xf0] }
 0x4c4   :  { %v12259_v18 = vor.u32 %v13948_v10, %v12256_v34  ;;  %v12416_v42 = vld [vmem:[#allocation17 + $0x1a60] sm:$0xf0]  ;;  %v12382_v43 = vld [vmem:[#allocation17 + $0x1a00] sm:$0xf] }
 0x4c5   :  { %6649 = vmatpush.bf16.msrb.mxu0 %v11639_v48  ;;  %6662 = vmatpush.bf16.msra.mxu1 %v11895_v20  ;;  %v5662_v61 = vpop.f32.mrf.mxu0  ;;  %v13940_v48 = vld [vmem:[#allocation17 + $0x18c4] sm:$0xf]  ;;  %v13984_v10 = vld [vmem:[#allocation17 + $0x1a1c] sm:$0xf0] }
 0x4c6   :  { %6675 = vmatpush.bf16.msra.mxu2 %v11643_v25  ;;  %6688 = vmatpush.bf16.msrb.mxu3 %v11899_v26  ;;  %v12223_v25 = vor.u32 %v13944_v16, %v12222_v35  ;;  %v12479_v26 = vor.u32 %v14008_v14, %v12478_v6  ;;  %v12227_v7 = vor.u32 %v13940_v48, %v12224_v21  ;;  %v13977_v35 = vld [vmem:[#allocation17 + $0x19e4] sm:$0xf0]  ;;  %v12360_v48 = vld [vmem:[#allocation17 + $0x19e8] sm:$0xf0] }
 0x4c7   :  { %v12614_v16 = vld [vmem:[#allocation17 + $0x1bc8] sm:$0xf]  ;;  %v12127_v6 = vor.u32 %v13920_v15, %v12126_v29  ;;  %v12383_v14 = vor.u32 %v13984_v10, %v12382_v43  ;;  %v14037_v21 = vld [vmem:[#allocation17 + $0x1bcc] sm:$0xf] }
 0x4c8   :  { %6650 = vmatmul.bf16.vlgmr.msrb.gmra.mxu0 %v14907_v13  ;;  %6663 = vmatmul.bf16.vlgmr.msra.gmra.mxu1 %v14910_v30  ;;  %v12262_v29 = vld [vmem:[#allocation17 + $0x1908] sm:$0xf] }
 0x4c9   :  { %7475 = vmatpush.bf16.msra.mxu0 %v12351_v27  ;;  %7488 = vmatpush.bf16.msrb.mxu1 %v12607_v8  ;;  %v12190_v27 = vld [vmem:[#allocation17 + $0x1880] sm:$0xf]  ;;  %v12518_v43 = vld [vmem:[#allocation17 + $0x1b08] sm:$0xf] }
 0x4ca   :  { %7501 = vmatpush.bf16.msrb.mxu2 %v12355_v54  ;;  %7514 = vmatpush.bf16.msra.mxu3 %v12611_v5  ;;  %v13936_v8 = vld [vmem:[#allocation17 + $0x189c] sm:$0xf0]  ;;  %v14017_v10 = vld [vmem:[#allocation17 + $0x1b24] sm:$0xf0] }
 0x4cb   :  { %6676 = vmatmul.bf16.vlgmr.msra.gmra.mxu2 %v14907_v13  ;;  %6689 = vmatmul.bf16.vlgmr.msrb.gmra.mxu3 %v14910_v30  ;;  %v5675_v13 = vpop.f32.mrf.mxu1  ;;  %v12446_v54 = vld [vmem:[#allocation17 + $0x1a80] sm:$0xf]  ;;  %v12191_v22 = vor.u32 %v13936_v8, %v12190_v27  ;;  %v12326_v8 = vld [vmem:[#allocation17 + $0x1988] sm:$0xf] }
 0x4cc   :  { %v5676_v30 = vadd.f32 %v5675_v13, %v5662_v61  ;;  %v14000_v5 = vld [vmem:[#allocation17 + $0x1a9c] sm:$0xf0]  ;;  %v13980_v61 = vld [vmem:[#allocation17 + $0x1a04] sm:$0xf] }
 0x4cd   :  { %7476 = vmatpush.bf16.msra.mxu0 %v12319_v36  ;;  %7489 = vmatpush.bf16.msrb.mxu1 %v12575_v37  ;;  %v5664_v36 = vpop.f32.mrf.mxu0  ;;  %v12447_v45 = vor.u32 %v14000_v5, %v12446_v54  ;;  %v12619_v54 = vor.u32 %v14037_v21, %v12616_v23  ;;  %v12582_v5 = vld [vmem:[#allocation17 + $0x1b88] sm:$0xf]  ;;  %v14005_v21 = vld [vmem:[#allocation17 + $0x1acc] sm:$0xf] }
 0x4ce   :  { %7502 = vmatpush.bf16.msrb.mxu2 %v12323_v49  ;;  %7515 = vmatpush.bf16.msra.mxu3 %v12579_v17  ;;  %v14947_v20 = vadd.f32 %v5676_v30, %v14901_v0  ;;  %v5688_v12 = vpop.f32.mrf.mxu2  ;;  %v5701_v3 = vpop.f32.mrf.mxu3  ;;  %v12192_v0 = vld [vmem:[#allocation17 + $0x18a0] sm:$0xf0]  ;;  %v12158_v49 = vld [vmem:[#allocation17 + $0x1840] sm:$0xf]  ;;  %v12488_v23 = vld [vmem:[#allocation17 + $0x1ae8] sm:$0xf0] }
 0x4cf   :  { %v5702_v44 = vadd.f32 %v5701_v3, %v5688_v12  ;;  %v13928_v17 = vld [vmem:[#allocation17 + $0x185c] sm:$0xf0]  ;;  %v12195_v52 = vor.u32 %v13932_v62, %v12192_v0  ;;  %v14033_v62 = vld [vmem:[#allocation17 + $0x1ba4] sm:$0xf0]  ;;  %v13965_v12 = vld [vmem:[#allocation17 + $0x198c] sm:$0xf] }
 0x4d0   :  { %v12328_v3 = vld [vmem:[#allocation17 + $0x19a8] sm:$0xf0] }
 0x4d1   :  { %7477 = vmatpush.bf16.msra.mxu0 %v12287_v57  ;;  %7490 = vmatpush.bf16.msrb.mxu1 %v12543_v46  ;;  %v14950_v51 = vadd.f32 %v5702_v44, %v14904_v2  ;;  %v12160_v57 = vld [vmem:[#allocation17 + $0x1860] sm:$0xf0]  ;;  %v14029_v0 = vld [vmem:[#allocation17 + $0x1b8c] sm:$0xf]  ;;  %v14956_v44 = vrot.slane %v14864_v32, 2 }
 0x4d2   :  { %7503 = vmatpush.bf16.msrb.mxu2 %v12291_v58  ;;  %7516 = vmatpush.bf16.msra.mxu3 %v12547_v39  ;;  %v13988_v46 = vld [vmem:[#allocation17 + $0x1a44] sm:$0xf]  ;;  %v12159_v58 = vor.u32 %v13928_v17, %v12158_v49  ;;  %v12415_v39 = vor.u32 %v13992_v56, %v12414_v55  ;;  %v12163_v2 = vor.u32 %v13924_v41, %v12160_v57  ;;  %v13957_v55 = vld [vmem:[#allocation17 + $0x194c] sm:$0xf] }
 0x4d3   :  { %v5677_v37 = vpop.f32.mrf.mxu1  ;;  %v12419_v34 = vor.u32 %v13988_v46, %v12416_v42  ;;  %v12331_v49 = vor.u32 %v13965_v12, %v12328_v3  ;;  %v12587_v17 = vor.u32 %v14029_v0, %v12584_v11  ;;  %v12296_v56 = vld [vmem:[#allocation17 + $0x1968] sm:$0xf0] }
 0x4d4   :  { %v12583_v37 = vor.u32 %v14033_v62, %v12582_v5  ;;  %v14021_v41 = vld [vmem:[#allocation17 + $0x1b4c] sm:$0xf] }
 0x4d5   :  { %7478 = vmatpush.bf16.msra.mxu0 %v12255_v63  ;;  %7491 = vmatpush.bf16.msrb.mxu1 %v12511_v33  ;;  %v12384_v63 = vld [vmem:[#allocation17 + $0x1a20] sm:$0xf0]  ;;  %v12358_v33 = vld [vmem:[#allocation17 + $0x19c8] sm:$0xf]  ;;  %v12552_v57 = vld [vmem:[#allocation17 + $0x1b68] sm:$0xf0] }
 0x4d6   :  { %7504 = vmatpush.bf16.msrb.mxu2 %v12259_v18  ;;  %7517 = vmatpush.bf16.msra.mxu3 %v12515_v4  ;;  %v5690_v13 = vpop.f32.mrf.mxu2  ;;  %v5703_v30 = vpop.f32.mrf.mxu3  ;;  %v14041_v18 = vld [vmem:[#allocation17 + $0x1be4] sm:$0xf0]  ;;  %v13973_v4 = vld [vmem:[#allocation17 + $0x19cc] sm:$0xf]  ;;  %v12555_v15 = vor.u32 %v14021_v41, %v12552_v57 }
 0x4d7   :  { %v12615_v27 = vor.u32 %v14041_v18, %v12614_v16  ;;  %v12523_v18 = vor.u32 %v14013_v38, %v12520_v60  ;;  %v13933_v5 = vld [vmem:[#allocation17 + $0x188c] sm:$0xf] }
 0x4d8   :  { %v12200_v3 = vld [vmem:[#allocation17 + $0x18a8] sm:$0xf0] }
 0x4d9   :  { %7479 = vmatpush.bf16.msra.mxu0 %v12223_v25  ;;  %7492 = vmatpush.bf16.msrb.mxu1 %v12479_v26  ;;  %v12387_v25 = vor.u32 %v13980_v61, %v12384_v63  ;;  %v12359_v26 = vor.u32 %v13977_v35, %v12358_v33  ;;  %v12519_v63 = vor.u32 %v14017_v10, %v12518_v43  ;;  %v12230_v33 = vld [vmem:[#allocation17 + $0x18c8] sm:$0xf]  ;;  %v13997_v0 = vld [vmem:[#allocation17 + $0x1a8c] sm:$0xf] }
 0x4da   :  { %7505 = vmatpush.bf16.msrb.mxu2 %v12227_v7  ;;  %7518 = vmatpush.bf16.msra.mxu3 %v12483_v28  ;;  %v13969_v7 = vld [vmem:[#allocation17 + $0x19a4] sm:$0xf0]  ;;  %v12363_v28 = vor.u32 %v13973_v4, %v12360_v48  ;;  %v12232_v48 = vld [vmem:[#allocation17 + $0x18e8] sm:$0xf0] }
 0x4db   :  { %v12327_v36 = vor.u32 %v13969_v7, %v12326_v8  ;;  %v13945_v35 = vld [vmem:[#allocation17 + $0x18e4] sm:$0xf0]  ;;  %v12491_v7 = vor.u32 %v14005_v21, %v12488_v23  ;;  %v12456_v11 = vld [vmem:[#allocation17 + $0x1aa8] sm:$0xf0]  ;;  %v12368_v23 = vld [vmem:[#allocation17 + $0x19f0] sm:$0xf0] }
 0x4dc   :  { %v12486_v4 = vld [vmem:[#allocation17 + $0x1ac8] sm:$0xf]  ;;  %v13925_v41 = vld [vmem:[#allocation17 + $0x184c] sm:$0xf] }
 0x4dd   :  { %7480 = vmatpush.bf16.msra.mxu0 %v12191_v22  ;;  %7493 = vmatpush.bf16.msrb.mxu1 %v12447_v45  ;;  %v12294_v22 = vld [vmem:[#allocation17 + $0x1948] sm:$0xf]  ;;  %v12168_v57 = vld [vmem:[#allocation17 + $0x1868] sm:$0xf0] }
 0x4de   :  { %7506 = vmatpush.bf16.msrb.mxu2 %v12195_v52  ;;  %7519 = vmatpush.bf16.msra.mxu3 %v12451_v53  ;;  %v13961_v45 = vld [vmem:[#allocation17 + $0x1964] sm:$0xf0]  ;;  %v13917_v38 = vld [vmem:[#allocation17 + $0x180c] sm:$0xf] }
 0x4df   :  { %v12550_v52 = vld [vmem:[#allocation17 + $0x1b48] sm:$0xf]  ;;  %v12295_v46 = vor.u32 %v13961_v45, %v12294_v22  ;;  %v12136_v60 = vld [vmem:[#allocation17 + $0x1828] sm:$0xf0] }
 0x4e0   :  { %v14025_v53 = vld [vmem:[#allocation17 + $0x1b64] sm:$0xf0] }
 0x4e1   :  { %7481 = vmatpush.bf16.msra.mxu0 %v12159_v58  ;;  %7494 = vmatpush.bf16.msrb.mxu1 %v12415_v39  ;;  %v12551_v42 = vor.u32 %v14025_v53, %v12550_v52  ;;  %v13953_v58 = vld [vmem:[#allocation17 + $0x1924] sm:$0xf0]  ;;  %v12299_v39 = vor.u32 %v13957_v55, %v12296_v56  ;;  %v12203_v52 = vor.u32 %v13933_v5, %v12200_v3 }
 0x4e2   :  { %7507 = vmatpush.bf16.msrb.mxu2 %v12163_v2  ;;  %7520 = vmatpush.bf16.msra.mxu3 %v12419_v34  ;;  %v13949_v2 = vld [vmem:[#allocation17 + $0x190c] sm:$0xf]  ;;  %v12263_v30 = vor.u32 %v13953_v58, %v12262_v29  ;;  %v12459_v53 = vor.u32 %v13997_v0, %v12456_v11  ;;  %v12422_v55 = vld [vmem:[#allocation17 + $0x1a48] sm:$0xf]  ;;  %v12590_v0 = vld [vmem:[#allocation17 + $0x1b90] sm:$0xf] }
 0x4e3   :  { %v12264_v34 = vld [vmem:[#allocation17 + $0x1928] sm:$0xf0]  ;;  %v13993_v56 = vld [vmem:[#allocation17 + $0x1a64] sm:$0xf0]  ;;  %v14034_v11 = vld [vmem:[#allocation17 + $0x1bac] sm:$0xf0] }
 0x4e4   :  { %v12267_v16 = vor.u32 %v13949_v2, %v12264_v34  ;;  %v12134_v29 = vld [vmem:[#allocation17 + $0x1808] sm:$0xf]  ;;  %v12171_v2 = vor.u32 %v13925_v41, %v12168_v57  ;;  %v12558_v41 = vld [vmem:[#allocation17 + $0x1b50] sm:$0xf] }
 0x4e5   :  { %7482 = vmatpush.bf16.msra.mxu0 %v12127_v6  ;;  %7495 = vmatpush.bf16.msrb.mxu1 %v12383_v14  ;;  %v14962_v61 = vpop.f32.mrf.mxu0  ;;  %v14964_v13 = vpop.f32.mrf.mxu1  ;;  %v14009_v6 = vld [vmem:[#allocation17 + $0x1ae4] sm:$0xf0]  ;;  %v13941_v14 = vld [vmem:[#allocation17 + $0x18cc] sm:$0xf]  ;;  %v14026_v57 = vld [vmem:[#allocation17 + $0x1b6c] sm:$0xf0] }
 0x4e6   :  { %7508 = vmatpush.bf16.msrb.mxu2 %v12131_v24  ;;  %7521 = vmatpush.bf16.msra.mxu3 %v12387_v25  ;;  %v12231_v24 = vor.u32 %v13945_v35, %v12230_v33  ;;  %v12487_v25 = vor.u32 %v14009_v6, %v12486_v4  ;;  %v12235_v8 = vor.u32 %v13941_v14, %v12232_v48  ;;  %v12390_v43 = vld [vmem:[#allocation17 + $0x1a08] sm:$0xf]  ;;  %v12392_v35 = vld [vmem:[#allocation17 + $0x1a28] sm:$0xf0]  ;;  %v12622_v4 = vld [vmem:[#allocation17 + $0x1bd0] sm:$0xf] }
 0x4e7   :  { %v13985_v10 = vld [vmem:[#allocation17 + $0x1a24] sm:$0xf0]  ;;  %v14042_v6 = vld [vmem:[#allocation17 + $0x1bec] sm:$0xf0]  ;;  %v13974_v14 = vld [vmem:[#allocation17 + $0x19d4] sm:$0xf] }
 0x4e8   :  { %7483 = vmatmul.bf16.vlgmr.msra.gmra.mxu0 %v14953_v59  ;;  %7496 = vmatmul.bf16.vlgmr.msrb.gmra.mxu1 %v14956_v44  ;;  %v12391_v21 = vor.u32 %v13985_v10, %v12390_v43  ;;  %v12371_v5 = vor.u32 %v13974_v14, %v12368_v23  ;;  %v12270_v43 = vld [vmem:[#allocation17 + $0x1910] sm:$0xf] }
 0x4e9   :  { %7527 = vmatpush.bf16.msrb.mxu0 %v12359_v26  ;;  %7540 = vmatpush.bf16.msra.mxu1 %v12615_v27  ;;  %v12198_v26 = vld [vmem:[#allocation17 + $0x1888] sm:$0xf]  ;;  %v13954_v10 = vld [vmem:[#allocation17 + $0x192c] sm:$0xf0] }
 0x4ea   :  { %7553 = vmatpush.bf16.msra.mxu2 %v12363_v28  ;;  %7566 = vmatpush.bf16.msrb.mxu3 %v12619_v54  ;;  %v13937_v27 = vld [vmem:[#allocation17 + $0x18a4] sm:$0xf0] }
 0x4eb   :  { %7509 = vmatmul.bf16.vlgmr.msrb.gmra.mxu2 %v14953_v59  ;;  %7522 = vmatmul.bf16.vlgmr.msra.gmra.mxu3 %v14956_v44  ;;  %v12454_v28 = vld [vmem:[#allocation17 + $0x1a88] sm:$0xf]  ;;  %v12199_v22 = vor.u32 %v13937_v27, %v12198_v26  ;;  %v12139_v26 = vor.u32 %v13917_v38, %v12136_v60  ;;  %v12526_v38 = vld [vmem:[#allocation17 + $0x1b10] sm:$0xf] }
 0x4ec   :  { %v14001_v54 = vld [vmem:[#allocation17 + $0x1aa4] sm:$0xf0]  ;;  %v14018_v60 = vld [vmem:[#allocation17 + $0x1b2c] sm:$0xf0] }
 0x4ed   :  { %7528 = vmatpush.bf16.msrb.mxu0 %v12327_v36  ;;  %7541 = vmatpush.bf16.msra.mxu1 %v12583_v37  ;;  %v6497_v36 = vpop.f32.mrf.mxu0  ;;  %v6510_v37 = vpop.f32.mrf.mxu1  ;;  %v12455_v45 = vor.u32 %v14001_v54, %v12454_v28  ;;  %v12334_v28 = vld [vmem:[#allocation17 + $0x1990] sm:$0xf]  ;;  %v12527_v14 = vor.u32 %v14018_v60, %v12526_v38  ;;  %v12176_v38 = vld [vmem:[#allocation17 + $0x1870] sm:$0xf0] }
 0x4ee   :  { %7554 = vmatpush.bf16.msra.mxu2 %v12331_v49  ;;  %7567 = vmatpush.bf16.msrb.mxu3 %v12587_v17  ;;  %v14966_v62 = vpop.f32.mrf.mxu2  ;;  %v14968_v12 = vpop.f32.mrf.mxu3  ;;  %v12166_v49 = vld [vmem:[#allocation17 + $0x1848] sm:$0xf]  ;;  %v13970_v54 = vld [vmem:[#allocation17 + $0x19ac] sm:$0xf0]  ;;  %v13966_v36 = vld [vmem:[#allocation17 + $0x1994] sm:$0xf] }
 0x4ef   :  { %v13929_v17 = vld [vmem:[#allocation17 + $0x1864] sm:$0xf0]  ;;  %v12336_v37 = vld [vmem:[#allocation17 + $0x19b0] sm:$0xf0] }
 0x4f0   :  { %v12167_v58 = vor.u32 %v13929_v17, %v12166_v49  ;;  %v12335_v49 = vor.u32 %v13970_v54, %v12334_v28  ;;  %v12591_v17 = vor.u32 %v14034_v11, %v12590_v0  ;;  %v14006_v28 = vld [vmem:[#allocation17 + $0x1ad4] sm:$0xf]  ;;  %v12206_v0 = vld [vmem:[#allocation17 + $0x1890] sm:$0xf] }
 0x4f1   :  { %7529 = vmatpush.bf16.msrb.mxu0 %v12295_v46  ;;  %7542 = vmatpush.bf16.msra.mxu1 %v12551_v42  ;;  %v13989_v46 = vld [vmem:[#allocation17 + $0x1a4c] sm:$0xf]  ;;  %v12496_v54 = vld [vmem:[#allocation17 + $0x1af0] sm:$0xf0]  ;;  %v13938_v11 = vld [vmem:[#allocation17 + $0x18ac] sm:$0xf0] }
 0x4f2   :  { %7555 = vmatpush.bf16.msra.mxu2 %v12299_v39  ;;  %7568 = vmatpush.bf16.msrb.mxu3 %v12555_v15  ;;  %v12424_v42 = vld [vmem:[#allocation17 + $0x1a68] sm:$0xf0]  ;;  %v12423_v39 = vor.u32 %v13993_v56, %v12422_v55  ;;  %v13921_v15 = vld [vmem:[#allocation17 + $0x1824] sm:$0xf0]  ;;  %v12339_v55 = vor.u32 %v13966_v36, %v12336_v37  ;;  %v12499_v37 = vor.u32 %v14006_v28, %v12496_v54  ;;  %v13990_v60 = vld [vmem:[#allocation17 + $0x1a54] sm:$0xf] }
 0x4f3   :  { %v12427_v34 = vor.u32 %v13989_v46, %v12424_v42  ;;  %v12135_v48 = vor.u32 %v13921_v15, %v12134_v29  ;;  %v13958_v46 = vld [vmem:[#allocation17 + $0x1954] sm:$0xf]  ;;  %v12559_v15 = vor.u32 %v14026_v57, %v12558_v41  ;;  %v14043_v28 = vld [vmem:[#allocation17 + $0x1bf4] sm:$0xf0]  ;;  %v13975_v54 = vld [vmem:[#allocation17 + $0x19dc] sm:$0xf] }
 0x4f4   :  { %v12304_v42 = vld [vmem:[#allocation17 + $0x1970] sm:$0xf0] }
 0x4f5   :  { %7530 = vmatpush.bf16.msrb.mxu0 %v12263_v30  ;;  %7543 = vmatpush.bf16.msra.mxu1 %v12519_v63  ;;  %v13981_v30 = vld [vmem:[#allocation17 + $0x1a0c] sm:$0xf]  ;;  %v14022_v29 = vld [vmem:[#allocation17 + $0x1b54] sm:$0xf] }
 0x4f6   :  { %7556 = vmatpush.bf16.msra.mxu2 %v12267_v16  ;;  %7569 = vmatpush.bf16.msrb.mxu3 %v12523_v18  ;;  %v6523_v63 = vpop.f32.mrf.mxu2  ;;  %v6536_v33 = vpop.f32.mrf.mxu3  ;;  %v12366_v16 = vld [vmem:[#allocation17 + $0x19d0] sm:$0xf]  ;;  %v12395_v27 = vor.u32 %v13981_v30, %v12392_v35  ;;  %v13950_v30 = vld [vmem:[#allocation17 + $0x1914] sm:$0xf] }
 0x4f7   :  { %v13978_v18 = vld [vmem:[#allocation17 + $0x19ec] sm:$0xf0]  ;;  %v12272_v63 = vld [vmem:[#allocation17 + $0x1930] sm:$0xf0] }
 0x4f8   :  { %v14014_v33 = vld [vmem:[#allocation17 + $0x1b14] sm:$0xf]  ;;  %v12275_v23 = vor.u32 %v13950_v30, %v12272_v63  ;;  %v12142_v63 = vld [vmem:[#allocation17 + $0x1810] sm:$0xf] }
 0x4f9   :  { %7531 = vmatpush.bf16.msrb.mxu0 %v12231_v24  ;;  %7544 = vmatpush.bf16.msra.mxu1 %v12487_v25  ;;  %v14038_v24 = vld [vmem:[#allocation17 + $0x1bd4] sm:$0xf] }
 0x4fa   :  { %7557 = vmatpush.bf16.msra.mxu2 %v12235_v8  ;;  %7570 = vmatpush.bf16.msrb.mxu3 %v12491_v7  ;;  %v12624_v25 = vld [vmem:[#allocation17 + $0x1bf0] sm:$0xf0]  ;;  %v12367_v8 = vor.u32 %v13978_v18, %v12366_v16  ;;  %v12623_v7 = vor.u32 %v14042_v6, %v12622_v4  ;;  %v12271_v6 = vor.u32 %v13954_v10, %v12270_v43  ;;  %v12430_v10 = vld [vmem:[#allocation17 + $0x1a50] sm:$0xf] }
 0x4fb   :  { %v12627_v3 = vor.u32 %v14038_v24, %v12624_v25  ;;  %v12528_v35 = vld [vmem:[#allocation17 + $0x1b30] sm:$0xf0]  ;;  %v12494_v25 = vld [vmem:[#allocation17 + $0x1ad0] sm:$0xf] }
 0x4fc   :  { %v12531_v24 = vor.u32 %v14014_v33, %v12528_v35  ;;  %v12432_v30 = vld [vmem:[#allocation17 + $0x1a70] sm:$0xf0] }
 0x4fd   :  { %7532 = vmatpush.bf16.msrb.mxu0 %v12199_v22  ;;  %7545 = vmatpush.bf16.msra.mxu1 %v12455_v45  ;;  %v14030_v22 = vld [vmem:[#allocation17 + $0x1b94] sm:$0xf] }
 0x4fe   :  { %7558 = vmatpush.bf16.msra.mxu2 %v12203_v52  ;;  %7571 = vmatpush.bf16.msrb.mxu3 %v12459_v53  ;;  %v12592_v45 = vld [vmem:[#allocation17 + $0x1bb0] sm:$0xf0]  ;;  %v12302_v52 = vld [vmem:[#allocation17 + $0x1950] sm:$0xf] }
 0x4ff   :  { %v13962_v53 = vld [vmem:[#allocation17 + $0x196c] sm:$0xf0]  ;;  %v12595_v56 = vor.u32 %v14030_v22, %v12592_v45 }
 0x500   :  { %v12462_v22 = vld [vmem:[#allocation17 + $0x1a90] sm:$0xf] }
 0x501   :  { %7533 = vmatpush.bf16.msrb.mxu0 %v12167_v58  ;;  %7546 = vmatpush.bf16.msra.mxu1 %v12423_v39  ;;  %v12560_v58 = vld [vmem:[#allocation17 + $0x1b70] sm:$0xf0]  ;;  %v12303_v39 = vor.u32 %v13962_v53, %v12302_v52  ;;  %v14002_v45 = vld [vmem:[#allocation17 + $0x1aac] sm:$0xf0] }
 0x502   :  { %7559 = vmatpush.bf16.msra.mxu2 %v12171_v2  ;;  %7572 = vmatpush.bf16.msrb.mxu3 %v12427_v34  ;;  %v12307_v2 = vor.u32 %v13958_v46, %v12304_v42  ;;  %v12563_v34 = vor.u32 %v14022_v29, %v12560_v58  ;;  %v13998_v53 = vld [vmem:[#allocation17 + $0x1a94] sm:$0xf]  ;;  %v12207_v46 = vor.u32 %v13938_v11, %v12206_v0  ;;  %v12174_v29 = vld [vmem:[#allocation17 + $0x1850] sm:$0xf]  ;;  %v12376_v0 = vld [vmem:[#allocation17 + $0x19f8] sm:$0xf0] }
 0x503   :  { %v12463_v42 = vor.u32 %v14002_v45, %v12462_v22  ;;  %v13930_v58 = vld [vmem:[#allocation17 + $0x186c] sm:$0xf0]  ;;  %v14039_v11 = vld [vmem:[#allocation17 + $0x1bdc] sm:$0xf] }
 0x504   :  { %v12175_v33 = vor.u32 %v13930_v58, %v12174_v29 }
 0x505   :  { %7534 = vmatpush.bf16.msrb.mxu0 %v12135_v48  ;;  %7547 = vmatpush.bf16.msra.mxu1 %v12391_v21  ;;  %v6547_v16 = vpop.f32.mrf.mxu0  ;;  %v6560_v18 = vpop.f32.mrf.mxu1  ;;  %v12238_v48 = vld [vmem:[#allocation17 + $0x18d0] sm:$0xf] }
 0x506   :  { %7560 = vmatpush.bf16.msra.mxu2 %v12139_v26  ;;  %7573 = vmatpush.bf16.msrb.mxu3 %v12395_v27  ;;  %v6561_v4 = vadd.f32 %v6560_v18, %v6547_v16  ;;  %v13946_v21 = vld [vmem:[#allocation17 + $0x18ec] sm:$0xf0]  ;;  %v13942_v27 = vld [vmem:[#allocation17 + $0x18d4] sm:$0xf] }
 0x507   :  { %v14010_v26 = vld [vmem:[#allocation17 + $0x1aec] sm:$0xf0] }
 0x508   :  { %7535 = vmatmul.bf16.vlgmr.msrb.gmra.mxu0 %v14953_v59  ;;  %7548 = vmatmul.bf16.vlgmr.msra.gmra.mxu1 %v14956_v44  ;;  %v13922_v16 = vld [vmem:[#allocation17 + $0x182c] sm:$0xf0] }
 0x509   :  { %7579 = vmatpush.bf16.msra.mxu0 %v12367_v8  ;;  %7592 = vmatpush.bf16.msrb.mxu1 %v12623_v7  ;;  %v14975_v8 = vadd.f32 %v6561_v4, %v14927_v9  ;;  %v12240_v7 = vld [vmem:[#allocation17 + $0x18f0] sm:$0xf0]  ;;  %v12398_v18 = vld [vmem:[#allocation17 + $0x1a10] sm:$0xf] }
 0x50a   :  { %7605 = vmatpush.bf16.msrb.mxu2 %v12371_v5  ;;  %7618 = vmatpush.bf16.msra.mxu3 %v12627_v3  ;;  %v12239_v5 = vor.u32 %v13946_v21, %v12238_v48  ;;  %v12495_v3 = vor.u32 %v14010_v26, %v12494_v25  ;;  %v12243_v36 = vor.u32 %v13942_v27, %v12240_v7  ;;  %v12208_v9 = vld [vmem:[#allocation17 + $0x18b0] sm:$0xf0]  ;;  %v13986_v4 = vld [vmem:[#allocation17 + $0x1a2c] sm:$0xf0]  ;;  %v12374_v26 = vld [vmem:[#allocation17 + $0x19d8] sm:$0xf] }
 0x50b   :  { %7561 = vmatmul.bf16.vlgmr.msra.gmra.mxu2 %v14953_v59  ;;  %7574 = vmatmul.bf16.vlgmr.msrb.gmra.mxu3 %v14956_v44  ;;  %v12144_v48 = vld [vmem:[#allocation17 + $0x1830] sm:$0xf0]  ;;  %v13979_v27 = vld [vmem:[#allocation17 + $0x19f4] sm:$0xf0] }
 0x50c   :  { %v13982_v21 = vld [vmem:[#allocation17 + $0x1a14] sm:$0xf]  ;;  %v12630_v7 = vld [vmem:[#allocation17 + $0x1bd8] sm:$0xf]  ;;  %v12375_v45 = vor.u32 %v13979_v27, %v12374_v26 }
 0x50d   :  { %7580 = vmatpush.bf16.msra.mxu0 %v12335_v49  ;;  %7593 = vmatpush.bf16.msrb.mxu1 %v12591_v17  ;;  %v13934_v49 = vld [vmem:[#allocation17 + $0x1894] sm:$0xf]  ;;  %v6549_v41 = vpop.f32.mrf.mxu0  ;;  %v6562_v57 = vpop.f32.mrf.mxu1 }
 0x50e   :  { %7606 = vmatpush.bf16.msrb.mxu2 %v12339_v55  ;;  %7619 = vmatpush.bf16.msra.mxu3 %v12595_v56  ;;  %v6573_v17 = vpop.f32.mrf.mxu2  ;;  %v6586_v52 = vpop.f32.mrf.mxu3  ;;  %v12464_v55 = vld [vmem:[#allocation17 + $0x1ab0] sm:$0xf0]  ;;  %v13967_v41 = vld [vmem:[#allocation17 + $0x199c] sm:$0xf] }
 0x50f   :  { %v6587_v56 = vadd.f32 %v6586_v52, %v6573_v17  ;;  %v12467_v43 = vor.u32 %v13998_v53, %v12464_v55  ;;  %v12400_v25 = vld [vmem:[#allocation17 + $0x1a30] sm:$0xf0]  ;;  %v12342_v17 = vld [vmem:[#allocation17 + $0x1998] sm:$0xf]  ;;  %v12344_v57 = vld [vmem:[#allocation17 + $0x19b8] sm:$0xf0] }
 0x510   :  { %v12403_v22 = vor.u32 %v13982_v21, %v12400_v25  ;;  %v13971_v52 = vld [vmem:[#allocation17 + $0x19b4] sm:$0xf0]  ;;  %v13951_v21 = vld [vmem:[#allocation17 + $0x191c] sm:$0xf] }
 0x511   :  { %7581 = vmatpush.bf16.msra.mxu0 %v12303_v39  ;;  %7594 = vmatpush.bf16.msrb.mxu1 %v12559_v15  ;;  %v14978_v39 = vadd.f32 %v6587_v56, %v14930_v47  ;;  %v12211_v15 = vor.u32 %v13934_v49, %v12208_v9  ;;  %v12631_v49 = vor.u32 %v14043_v28, %v12630_v7  ;;  %v12598_v55 = vld [vmem:[#allocation17 + $0x1b98] sm:$0xf]  ;;  %v12536_v25 = vld [vmem:[#allocation17 + $0x1b38] sm:$0xf0] }
 0x512   :  { %7607 = vmatpush.bf16.msrb.mxu2 %v12307_v2  ;;  %7620 = vmatpush.bf16.msra.mxu3 %v12563_v34  ;;  %v13994_v2 = vld [vmem:[#allocation17 + $0x1a6c] sm:$0xf0]  ;;  %v13926_v34 = vld [vmem:[#allocation17 + $0x1854] sm:$0xf]  ;;  %v12379_v9 = vor.u32 %v13975_v54, %v12376_v0  ;;  %v14035_v56 = vld [vmem:[#allocation17 + $0x1bb4] sm:$0xf0]  ;;  %v12343_v29 = vor.u32 %v13971_v52, %v12342_v17 }
 0x513   :  { %v12431_v35 = vor.u32 %v13994_v2, %v12430_v10  ;;  %v12179_v47 = vor.u32 %v13926_v34, %v12176_v38  ;;  %v12599_v58 = vor.u32 %v14035_v56, %v12598_v55  ;;  %v12347_v10 = vor.u32 %v13967_v41, %v12344_v57  ;;  %v12566_v34 = vld [vmem:[#allocation17 + $0x1b58] sm:$0xf]  ;;  %v14007_v17 = vld [vmem:[#allocation17 + $0x1adc] sm:$0xf] }
 0x514   :  { %v14027_v38 = vld [vmem:[#allocation17 + $0x1b74] sm:$0xf0]  ;;  %v12504_v52 = vld [vmem:[#allocation17 + $0x1af8] sm:$0xf0] }
 0x515   :  { %7582 = vmatpush.bf16.msra.mxu0 %v12271_v6  ;;  %7595 = vmatpush.bf16.msrb.mxu1 %v12527_v14  ;;  %v12435_v6 = vor.u32 %v13990_v60, %v12432_v30  ;;  %v13918_v14 = vld [vmem:[#allocation17 + $0x1814] sm:$0xf]  ;;  %v13959_v60 = vld [vmem:[#allocation17 + $0x195c] sm:$0xf]  ;;  %v12214_v55 = vld [vmem:[#allocation17 + $0x1898] sm:$0xf]  ;;  %v12507_v57 = vor.u32 %v14007_v17, %v12504_v52 }
 0x516   :  { %7608 = vmatpush.bf16.msrb.mxu2 %v12275_v23  ;;  %7621 = vmatpush.bf16.msra.mxu3 %v12531_v24  ;;  %v6575_v23 = vpop.f32.mrf.mxu2  ;;  %v6588_v24 = vpop.f32.mrf.mxu3  ;;  %v12312_v30 = vld [vmem:[#allocation17 + $0x1978] sm:$0xf0]  ;;  %v13939_v56 = vld [vmem:[#allocation17 + $0x18b4] sm:$0xf0]  ;;  %v14168_v17 = vld [vmem:[#allocation17 + $0x1fdc] sm:$0xf0] }
 0x517   :  { %v12280_v23 = vld [vmem:[#allocation17 + $0x1938] sm:$0xf0]  ;;  %v14100_v52 = vld [vmem:[#allocation17 + $0x1dc4] sm:$0xf] }
 0x518   :  { %v14015_v24 = vld [vmem:[#allocation17 + $0x1b1c] sm:$0xf]  ;;  %v12283_v0 = vor.u32 %v13951_v21, %v12280_v23  ;;  %v12150_v23 = vld [vmem:[#allocation17 + $0x1818] sm:$0xf] }
 0x519   :  { %7583 = vmatpush.bf16.msra.mxu0 %v12239_v5  ;;  %7596 = vmatpush.bf16.msrb.mxu1 %v12495_v3  ;;  %v12143_v5 = vor.u32 %v13922_v16, %v12142_v63  ;;  %v12399_v3 = vor.u32 %v13986_v4, %v12398_v18  ;;  %v14023_v63 = vld [vmem:[#allocation17 + $0x1b5c] sm:$0xf]  ;;  %v12567_v16 = vor.u32 %v14027_v38, %v12566_v34  ;;  %v12278_v18 = vld [vmem:[#allocation17 + $0x1918] sm:$0xf] }
 0x51a   :  { %7609 = vmatpush.bf16.msrb.mxu2 %v12243_v36  ;;  %7622 = vmatpush.bf16.msra.mxu3 %v12499_v37  ;;  %v12632_v36 = vld [vmem:[#allocation17 + $0x1bf8] sm:$0xf0]  ;;  %v12147_v37 = vor.u32 %v13918_v14, %v12144_v48  ;;  %v13955_v4 = vld [vmem:[#allocation17 + $0x1934] sm:$0xf0] }
 0x51b   :  { %v12635_v53 = vor.u32 %v14039_v11, %v12632_v36  ;;  %v12534_v14 = vld [vmem:[#allocation17 + $0x1b18] sm:$0xf]  ;;  %v12279_v28 = vor.u32 %v13955_v4, %v12278_v18  ;;  %v12539_v11 = vor.u32 %v14015_v24, %v12536_v25  ;;  %v12440_v21 = vld [vmem:[#allocation17 + $0x1a78] sm:$0xf0] }
 0x51c   :  { %v14019_v48 = vld [vmem:[#allocation17 + $0x1b34] sm:$0xf0] }
 0x51d   :  { %7584 = vmatpush.bf16.msra.mxu0 %v12207_v46  ;;  %7597 = vmatpush.bf16.msrb.mxu1 %v12463_v42  ;;  %v14031_v46 = vld [vmem:[#allocation17 + $0x1b9c] sm:$0xf]  ;;  %v12535_v54 = vor.u32 %v14019_v48, %v12534_v14  ;;  %v12502_v36 = vld [vmem:[#allocation17 + $0x1ad8] sm:$0xf] }
 0x51e   :  { %7610 = vmatpush.bf16.msrb.mxu2 %v12211_v15  ;;  %7623 = vmatpush.bf16.msra.mxu3 %v12467_v43  ;;  %v12600_v42 = vld [vmem:[#allocation17 + $0x1bb8] sm:$0xf0]  ;;  %v12310_v15 = vld [vmem:[#allocation17 + $0x1958] sm:$0xf] }
 0x51f   :  { %v13963_v43 = vld [vmem:[#allocation17 + $0x1974] sm:$0xf0]  ;;  %v12603_v2 = vor.u32 %v14031_v46, %v12600_v42  ;;  %v12184_v14 = vld [vmem:[#allocation17 + $0x1878] sm:$0xf0] }
 0x520   :  { %v12470_v46 = vld [vmem:[#allocation17 + $0x1a98] sm:$0xf]  ;;  %v13991_v48 = vld [vmem:[#allocation17 + $0x1a5c] sm:$0xf] }
 0x521   :  { %7585 = vmatpush.bf16.msra.mxu0 %v12175_v33  ;;  %7598 = vmatpush.bf16.msrb.mxu1 %v12431_v35  ;;  %v12568_v33 = vld [vmem:[#allocation17 + $0x1b78] sm:$0xf0]  ;;  %v12311_v35 = vor.u32 %v13963_v43, %v12310_v15  ;;  %v14003_v42 = vld [vmem:[#allocation17 + $0x1ab4] sm:$0xf0] }
 0x522   :  { %7611 = vmatpush.bf16.msrb.mxu2 %v12179_v47  ;;  %7624 = vmatpush.bf16.msra.mxu3 %v12435_v6  ;;  %v12315_v47 = vor.u32 %v13959_v60, %v12312_v30  ;;  %v12571_v6 = vor.u32 %v14023_v63, %v12568_v33  ;;  %v13999_v43 = vld [vmem:[#allocation17 + $0x1a9c] sm:$0xf]  ;;  %v12215_v60 = vor.u32 %v13939_v56, %v12214_v55  ;;  %v12182_v63 = vld [vmem:[#allocation17 + $0x1858] sm:$0xf]  ;;  %v12864_v55 = vld [vmem:[#allocation17 + $0x1de0] sm:$0xf0] }
 0x523   :  { %v12471_v30 = vor.u32 %v14003_v42, %v12470_v46  ;;  %v13931_v33 = vld [vmem:[#allocation17 + $0x1874] sm:$0xf0]  ;;  %v14164_v56 = vld [vmem:[#allocation17 + $0x1fc4] sm:$0xf] }
 0x524   :  { %v12438_v4 = vld [vmem:[#allocation17 + $0x1a58] sm:$0xf]  ;;  %v12183_v24 = vor.u32 %v13931_v33, %v12182_v63 }
 0x525   :  { %7586 = vmatpush.bf16.msra.mxu0 %v12143_v5  ;;  %7599 = vmatpush.bf16.msrb.mxu1 %v12399_v3  ;;  %v6599_v26 = vpop.f32.mrf.mxu0  ;;  %v6612_v27 = vpop.f32.mrf.mxu1  ;;  %v12246_v5 = vld [vmem:[#allocation17 + $0x18d8] sm:$0xf] }
 0x526   :  { %7612 = vmatpush.bf16.msrb.mxu2 %v12147_v37  ;;  %7625 = vmatpush.bf16.msra.mxu3 %v12403_v22  ;;  %v6613_v7 = vadd.f32 %v6612_v27, %v6599_v26  ;;  %v13947_v3 = vld [vmem:[#allocation17 + $0x18f4] sm:$0xf0]  ;;  %v13943_v22 = vld [vmem:[#allocation17 + $0x18dc] sm:$0xf] }
 0x527   :  { %v14011_v37 = vld [vmem:[#allocation17 + $0x1af4] sm:$0xf0] }
 0x528   :  { %7587 = vmatmul.bf16.vlgmr.msra.gmra.mxu0 %v14953_v59  ;;  %7600 = vmatmul.bf16.vlgmr.msrb.gmra.mxu1 %v14956_v44  ;;  %v13923_v26 = vld [vmem:[#allocation17 + $0x1834] sm:$0xf0] }
 0x529   :  { %7631 = vmatpush.bf16.msrb.mxu0 %v12375_v45  ;;  %7644 = vmatpush.bf16.msra.mxu1 %v12631_v49  ;;  %v14985_v45 = vadd.f32 %v6613_v7, %v14937_v19  ;;  %v12248_v49 = vld [vmem:[#allocation17 + $0x18f8] sm:$0xf0]  ;;  %v12406_v27 = vld [vmem:[#allocation17 + $0x1a18] sm:$0xf] }
 0x52a   :  { %7657 = vmatpush.bf16.msra.mxu2 %v12379_v9  ;;  %7670 = vmatpush.bf16.msrb.mxu3 %v12635_v53  ;;  %v12247_v9 = vor.u32 %v13947_v3, %v12246_v5  ;;  %v12503_v53 = vor.u32 %v14011_v37, %v12502_v36  ;;  %v12251_v41 = vor.u32 %v13943_v22, %v12248_v49  ;;  %v12216_v19 = vld [vmem:[#allocation17 + $0x18b8] sm:$0xf0]  ;;  %v13987_v7 = vld [vmem:[#allocation17 + $0x1a34] sm:$0xf0]  ;;  %v12862_v37 = vld [vmem:[#allocation17 + $0x1dc0] sm:$0xf] }
 0x52b   :  { %7613 = vmatmul.bf16.vlgmr.msrb.gmra.mxu2 %v14953_v59  ;;  %7626 = vmatmul.bf16.vlgmr.msra.gmra.mxu3 %v14956_v44  ;;  %v12152_v5 = vld [vmem:[#allocation17 + $0x1838] sm:$0xf0]  ;;  %v14104_v22 = vld [vmem:[#allocation17 + $0x1ddc] sm:$0xf0] }
 0x52c   :  { %v13983_v3 = vld [vmem:[#allocation17 + $0x1a1c] sm:$0xf]  ;;  %v13118_v49 = vld [vmem:[#allocation17 + $0x1fc0] sm:$0xf]  ;;  %v12863_v42 = vor.u32 %v14104_v22, %v12862_v37 }
 0x52d   :  { %7632 = vmatpush.bf16.msrb.mxu0 %v12343_v29  ;;  %7645 = vmatpush.bf16.msra.mxu1 %v12599_v58  ;;  %v13935_v29 = vld [vmem:[#allocation17 + $0x189c] sm:$0xf]  ;;  %v6601_v34 = vpop.f32.mrf.mxu0  ;;  %v6614_v38 = vpop.f32.mrf.mxu1 }
 0x52e   :  { %7658 = vmatpush.bf16.msra.mxu2 %v12347_v10  ;;  %7671 = vmatpush.bf16.msrb.mxu3 %v12603_v2  ;;  %v6625_v58 = vpop.f32.mrf.mxu2  ;;  %v6638_v15 = vpop.f32.mrf.mxu3  ;;  %v12472_v10 = vld [vmem:[#allocation17 + $0x1ab8] sm:$0xf0]  ;;  %v14092_v34 = vld [vmem:[#allocation17 + $0x1d84] sm:$0xf] }
 0x52f   :  { %v6639_v2 = vadd.f32 %v6638_v15, %v6625_v58  ;;  %v12475_v18 = vor.u32 %v13999_v43, %v12472_v10  ;;  %v12408_v36 = vld [vmem:[#allocation17 + $0x1a38] sm:$0xf0]  ;;  %v12830_v58 = vld [vmem:[#allocation17 + $0x1d80] sm:$0xf]  ;;  %v12832_v38 = vld [vmem:[#allocation17 + $0x1da0] sm:$0xf0] }
 0x530   :  { %v12411_v46 = vor.u32 %v13983_v3, %v12408_v36  ;;  %v14096_v15 = vld [vmem:[#allocation17 + $0x1d9c] sm:$0xf0]  ;;  %v14076_v3 = vld [vmem:[#allocation17 + $0x1d04] sm:$0xf] }
 0x531   :  { %7633 = vmatpush.bf16.msrb.mxu0 %v12311_v35  ;;  %7646 = vmatpush.bf16.msra.mxu1 %v12567_v16  ;;  %v14988_v35 = vadd.f32 %v6639_v2, %v14940_v50  ;;  %v12219_v16 = vor.u32 %v13935_v29, %v12216_v19  ;;  %v13119_v29 = vor.u32 %v14168_v17, %v13118_v49  ;;  %v13086_v10 = vld [vmem:[#allocation17 + $0x1f80] sm:$0xf]  ;;  %v13024_v36 = vld [vmem:[#allocation17 + $0x1f20] sm:$0xf0] }
 0x532   :  { %7659 = vmatpush.bf16.msra.mxu2 %v12315_v47  ;;  %7672 = vmatpush.bf16.msrb.mxu3 %v12571_v6  ;;  %v13995_v47 = vld [vmem:[#allocation17 + $0x1a74] sm:$0xf0]  ;;  %v13927_v6 = vld [vmem:[#allocation17 + $0x185c] sm:$0xf]  ;;  %v12867_v19 = vor.u32 %v14100_v52, %v12864_v55  ;;  %v14160_v2 = vld [vmem:[#allocation17 + $0x1f9c] sm:$0xf0]  ;;  %v12831_v63 = vor.u32 %v14096_v15, %v12830_v58 }
 0x533   :  { %v12439_v25 = vor.u32 %v13995_v47, %v12438_v4  ;;  %v12187_v50 = vor.u32 %v13927_v6, %v12184_v14  ;;  %v13087_v33 = vor.u32 %v14160_v2, %v13086_v10  ;;  %v12835_v4 = vor.u32 %v14092_v34, %v12832_v38  ;;  %v13054_v6 = vld [vmem:[#allocation17 + $0x1f40] sm:$0xf] }
 0x534   :  { %v14152_v14 = vld [vmem:[#allocation17 + $0x1f5c] sm:$0xf0] }
 0x535   :  { %7634 = vmatpush.bf16.msrb.mxu0 %v12279_v28  ;;  %7647 = vmatpush.bf16.msra.mxu1 %v12535_v54  ;;  %v12443_v28 = vor.u32 %v13991_v48, %v12440_v21  ;;  %v13919_v54 = vld [vmem:[#allocation17 + $0x181c] sm:$0xf]  ;;  %v14084_v48 = vld [vmem:[#allocation17 + $0x1d44] sm:$0xf]  ;;  %v12734_v17 = vld [vmem:[#allocation17 + $0x1cc0] sm:$0xf] }
 0x536   :  { %7660 = vmatpush.bf16.msra.mxu2 %v12283_v0  ;;  %7673 = vmatpush.bf16.msrb.mxu3 %v12539_v11  ;;  %v6627_v0 = vpop.f32.mrf.mxu2  ;;  %v6640_v11 = vpop.f32.mrf.mxu3  ;;  %v12800_v21 = vld [vmem:[#allocation17 + $0x1d60] sm:$0xf0]  ;;  %v14072_v52 = vld [vmem:[#allocation17 + $0x1cdc] sm:$0xf0] }
 0x537   :  { %v12768_v0 = vld [vmem:[#allocation17 + $0x1d20] sm:$0xf0]  ;;  %v12990_v55 = vld [vmem:[#allocation17 + $0x1ec0] sm:$0xf]  ;;  %v12735_v58 = vor.u32 %v14072_v52, %v12734_v17 }
 0x538   :  { %v14140_v11 = vld [vmem:[#allocation17 + $0x1f04] sm:$0xf]  ;;  %v12958_v34 = vld [vmem:[#allocation17 + $0x1e80] sm:$0xf] }
 0x539   :  { %7635 = vmatpush.bf16.msrb.mxu0 %v12247_v9  ;;  %7648 = vmatpush.bf16.msra.mxu1 %v12503_v53  ;;  %v12151_v9 = vor.u32 %v13923_v26, %v12150_v23  ;;  %v12407_v53 = vor.u32 %v13987_v7, %v12406_v27  ;;  %v14148_v23 = vld [vmem:[#allocation17 + $0x1f44] sm:$0xf]  ;;  %v13055_v26 = vor.u32 %v14152_v14, %v13054_v6  ;;  %v12766_v27 = vld [vmem:[#allocation17 + $0x1d00] sm:$0xf] }
 0x53a   :  { %7661 = vmatpush.bf16.msra.mxu2 %v12251_v41  ;;  %7674 = vmatpush.bf16.msrb.mxu3 %v12507_v57  ;;  %v13120_v41 = vld [vmem:[#allocation17 + $0x1fe0] sm:$0xf0]  ;;  %v12155_v57 = vor.u32 %v13919_v54, %v12152_v5  ;;  %v14080_v7 = vld [vmem:[#allocation17 + $0x1d1c] sm:$0xf0] }
 0x53b   :  { %v13123_v43 = vor.u32 %v14164_v56, %v13120_v41  ;;  %v13022_v54 = vld [vmem:[#allocation17 + $0x1f00] sm:$0xf]  ;;  %v12767_v22 = vor.u32 %v14080_v7, %v12766_v27  ;;  %v14068_v41 = vld [vmem:[#allocation17 + $0x1cc4] sm:$0xf] }
 0x53c   :  { %v14144_v5 = vld [vmem:[#allocation17 + $0x1f1c] sm:$0xf0]  ;;  %v14052_v7 = vld [vmem:[#allocation17 + $0x1c44] sm:$0xf] }
 0x53d   :  { %7636 = vmatpush.bf16.msrb.mxu0 %v12215_v60  ;;  %7649 = vmatpush.bf16.msra.mxu1 %v12471_v30  ;;  %v14156_v60 = vld [vmem:[#allocation17 + $0x1f84] sm:$0xf]  ;;  %v13023_v49 = vor.u32 %v14144_v5, %v13022_v54  ;;  %v14136_v56 = vld [vmem:[#allocation17 + $0x1edc] sm:$0xf0] }
 0x53e   :  { %7662 = vmatpush.bf16.msra.mxu2 %v12219_v16  ;;  %7675 = vmatpush.bf16.msrb.mxu3 %v12475_v18  ;;  %v13088_v30 = vld [vmem:[#allocation17 + $0x1fa0] sm:$0xf0]  ;;  %v12798_v16 = vld [vmem:[#allocation17 + $0x1d40] sm:$0xf]  ;;  %v12991_v15 = vor.u32 %v14136_v56, %v12990_v55  ;;  %v14105_v55 = vld [vmem:[#allocation17 + $0x1de4] sm:$0xf0] }
 0x53f   :  { %v14088_v18 = vld [vmem:[#allocation17 + $0x1d5c] sm:$0xf0]  ;;  %v13091_v47 = vor.u32 %v14156_v60, %v13088_v30  ;;  %v14060_v60 = vld [vmem:[#allocation17 + $0x1c84] sm:$0xf]  ;;  %v13126_v56 = vld [vmem:[#allocation17 + $0x1fc8] sm:$0xf] }
 0x540   :  { %v14128_v38 = vld [vmem:[#allocation17 + $0x1e9c] sm:$0xf0]  ;;  %v12928_v54 = vld [vmem:[#allocation17 + $0x1e60] sm:$0xf0] }
 0x541   :  { %7637 = vmatpush.bf16.msrb.mxu0 %v12183_v24  ;;  %7650 = vmatpush.bf16.msra.mxu1 %v12439_v25  ;;  %v13056_v24 = vld [vmem:[#allocation17 + $0x1f60] sm:$0xf0]  ;;  %v12799_v25 = vor.u32 %v14088_v18, %v12798_v16  ;;  %v12959_v14 = vor.u32 %v14128_v38, %v12958_v34  ;;  %v14120_v27 = vld [vmem:[#allocation17 + $0x1e5c] sm:$0xf0]  ;;  %v12838_v38 = vld [vmem:[#allocation17 + $0x1d88] sm:$0xf] }
 0x542   :  { %7663 = vmatpush.bf16.msra.mxu2 %v12187_v50  ;;  %7676 = vmatpush.bf16.msrb.mxu3 %v12443_v28  ;;  %v12803_v50 = vor.u32 %v14084_v48, %v12800_v21  ;;  %v13059_v28 = vor.u32 %v14148_v23, %v13056_v24  ;;  %v12960_v16 = vld [vmem:[#allocation17 + $0x1ea0] sm:$0xf0]  ;;  %v12670_v48 = vld [vmem:[#allocation17 + $0x1c40] sm:$0xf] }
 0x543   :  { %v14056_v21 = vld [vmem:[#allocation17 + $0x1c5c] sm:$0xf0] }
 0x544   :  { %v12638_v5 = vld [vmem:[#allocation17 + $0x1c00] sm:$0xf] }
 0x545   :  { %7638 = vmatpush.bf16.msrb.mxu0 %v12151_v9  ;;  %7651 = vmatpush.bf16.msra.mxu1 %v12407_v53  ;;  %v6651_v37 = vpop.f32.mrf.mxu0  ;;  %v12771_v9 = vor.u32 %v14076_v3, %v12768_v0  ;;  %v13027_v53 = vor.u32 %v14140_v11, %v13024_v36  ;;  %v12671_v3 = vor.u32 %v14056_v21, %v12670_v48  ;;  %v14048_v11 = vld [vmem:[#allocation17 + $0x1c1c] sm:$0xf0] }
 0x546   :  { %7664 = vmatpush.bf16.msra.mxu2 %v12155_v57  ;;  %7677 = vmatpush.bf16.msrb.mxu3 %v12411_v46  ;;  %v12736_v46 = vld [vmem:[#allocation17 + $0x1ce0] sm:$0xf0]  ;;  %v12894_v36 = vld [vmem:[#allocation17 + $0x1e00] sm:$0xf] }
 0x547   :  { %v12739_v10 = vor.u32 %v14068_v41, %v12736_v46  ;;  %v14169_v41 = vld [vmem:[#allocation17 + $0x1fe4] sm:$0xf0]  ;;  %v14101_v46 = vld [vmem:[#allocation17 + $0x1dcc] sm:$0xf] }
 0x548   :  { %7639 = vmatmul.bf16.vlgmr.msrb.gmra.mxu0 %v14953_v59  ;;  %7652 = vmatmul.bf16.vlgmr.msra.gmra.mxu1 %v14956_v44  ;;  %v13127_v34 = vor.u32 %v14169_v41, %v13126_v56  ;;  %v12742_v41 = vld [vmem:[#allocation17 + $0x1cc8] sm:$0xf] }
 0x549   :  { %8464 = vmatpush.bf16.msra.mxu0 %v12863_v42  ;;  %8477 = vmatpush.bf16.msrb.mxu1 %v13119_v29  ;;  %v14132_v42 = vld [vmem:[#allocation17 + $0x1ec4] sm:$0xf] }
 0x54a   :  { %8490 = vmatpush.bf16.msrb.mxu2 %v12867_v19  ;;  %8503 = vmatpush.bf16.msra.mxu3 %v13123_v43  ;;  %v12992_v29 = vld [vmem:[#allocation17 + $0x1ee0] sm:$0xf0]  ;;  %v12702_v19 = vld [vmem:[#allocation17 + $0x1c80] sm:$0xf] }
 0x54b   :  { %7665 = vmatmul.bf16.vlgmr.msra.gmra.mxu2 %v14953_v59  ;;  %7678 = vmatmul.bf16.vlgmr.msrb.gmra.mxu3 %v14956_v44  ;;  %v6664_v59 = vpop.f32.mrf.mxu1  ;;  %v14064_v43 = vld [vmem:[#allocation17 + $0x1c9c] sm:$0xf0]  ;;  %v12995_v2 = vor.u32 %v14132_v42, %v12992_v29  ;;  %v12639_v42 = vor.u32 %v14048_v11, %v12638_v5  ;;  %v13064_v5 = vld [vmem:[#allocation17 + $0x1f68] sm:$0xf0]  ;;  %v12774_v11 = vld [vmem:[#allocation17 + $0x1d08] sm:$0xf] }
 0x54c   :  { %v6665_v44 = vadd.f32 %v6664_v59, %v6651_v37  ;;  %v12703_v6 = vor.u32 %v14064_v43, %v12702_v19  ;;  %v14112_v37 = vld [vmem:[#allocation17 + $0x1e1c] sm:$0xf0]  ;;  %v13128_v19 = vld [vmem:[#allocation17 + $0x1fe8] sm:$0xf0] }
 0x54d   :  { %8465 = vmatpush.bf16.msra.mxu0 %v12831_v63  ;;  %8478 = vmatpush.bf16.msrb.mxu1 %v13087_v33  ;;  %v14124_v33 = vld [vmem:[#allocation17 + $0x1e84] sm:$0xf]  ;;  %v12895_v29 = vor.u32 %v14112_v37, %v12894_v36  ;;  %v14081_v36 = vld [vmem:[#allocation17 + $0x1d24] sm:$0xf0] }
 0x54e   :  { %8491 = vmatpush.bf16.msrb.mxu2 %v12835_v4  ;;  %8504 = vmatpush.bf16.msra.mxu3 %v13091_v47  ;;  %v14995_v57 = vadd.f32 %v6665_v44, %v14947_v20  ;;  %v6677_v30 = vpop.f32.mrf.mxu2  ;;  %v6690_v63 = vpop.f32.mrf.mxu3  ;;  %v12704_v20 = vld [vmem:[#allocation17 + $0x1ca0] sm:$0xf0] }
 0x54f   :  { %v6691_v18 = vadd.f32 %v6690_v63, %v6677_v30  ;;  %v6653_v4 = vpop.f32.mrf.mxu0  ;;  %v12707_v24 = vor.u32 %v14060_v60, %v12704_v20  ;;  %v14044_v44 = vld [vmem:[#allocation17 + $0x1c04] sm:$0xf]  ;;  %v14097_v60 = vld [vmem:[#allocation17 + $0x1da4] sm:$0xf0] }
 0x550   :  { %v13094_v20 = vld [vmem:[#allocation17 + $0x1f88] sm:$0xf]  ;;  %v14157_v4 = vld [vmem:[#allocation17 + $0x1f8c] sm:$0xf]  ;;  %v12839_v48 = vor.u32 %v14097_v60, %v12838_v38 }
 0x551   :  { %8466 = vmatpush.bf16.msra.mxu0 %v12799_v25  ;;  %8479 = vmatpush.bf16.msrb.mxu1 %v13055_v26  ;;  %v14998_v23 = vadd.f32 %v6691_v18, %v14950_v51  ;;  %v12963_v25 = vor.u32 %v14124_v33, %v12960_v16  ;;  %v12926_v26 = vld [vmem:[#allocation17 + $0x1e40] sm:$0xf]  ;;  %v14161_v33 = vld [vmem:[#allocation17 + $0x1fa4] sm:$0xf0]  ;;  %v14093_v16 = vld [vmem:[#allocation17 + $0x1d8c] sm:$0xf] }
 0x552   :  { %8492 = vmatpush.bf16.msrb.mxu2 %v12803_v50  ;;  %8505 = vmatpush.bf16.msra.mxu3 %v13059_v28  ;;  %v12672_v50 = vld [vmem:[#allocation17 + $0x1c60] sm:$0xf0]  ;;  %v12927_v0 = vor.u32 %v14120_v27, %v12926_v26  ;;  %v12840_v18 = vld [vmem:[#allocation17 + $0x1da8] sm:$0xf0]  ;;  %v13095_v21 = vor.u32 %v14161_v33, %v13094_v20 }
 0x553   :  { %v6666_v47 = vpop.f32.mrf.mxu1  ;;  %v14116_v28 = vld [vmem:[#allocation17 + $0x1e44] sm:$0xf]  ;;  %v12675_v51 = vor.u32 %v14052_v7, %v12672_v50  ;;  %v12843_v26 = vor.u32 %v14093_v16, %v12840_v18  ;;  %v13062_v7 = vld [vmem:[#allocation17 + $0x1f48] sm:$0xf] }
 0x554   :  { %v12931_v59 = vor.u32 %v14116_v28, %v12928_v54  ;;  %v13096_v47 = vld [vmem:[#allocation17 + $0x1fa8] sm:$0xf0]  ;;  %v14153_v50 = vld [vmem:[#allocation17 + $0x1f64] sm:$0xf0] }
 0x555   :  { %8467 = vmatpush.bf16.msra.mxu0 %v12767_v22  ;;  %8480 = vmatpush.bf16.msrb.mxu1 %v13023_v49  ;;  %v12640_v22 = vld [vmem:[#allocation17 + $0x1c20] sm:$0xf0]  ;;  %v13099_v27 = vor.u32 %v14157_v4, %v13096_v47  ;;  %v14085_v28 = vld [vmem:[#allocation17 + $0x1d4c] sm:$0xf]  ;;  %v12966_v16 = vld [vmem:[#allocation17 + $0x1e88] sm:$0xf] }
 0x556   :  { %8493 = vmatpush.bf16.msrb.mxu2 %v12771_v9  ;;  %8506 = vmatpush.bf16.msra.mxu3 %v13027_v53  ;;  %v14108_v49 = vld [vmem:[#allocation17 + $0x1e04] sm:$0xf]  ;;  %v6679_v17 = vpop.f32.mrf.mxu2  ;;  %v6692_v52 = vpop.f32.mrf.mxu3  ;;  %v12870_v53 = vld [vmem:[#allocation17 + $0x1dc8] sm:$0xf]  ;;  %v12643_v43 = vor.u32 %v14044_v44, %v12640_v22  ;;  %v14149_v54 = vld [vmem:[#allocation17 + $0x1f4c] sm:$0xf] }
 0x557   :  { %v12896_v9 = vld [vmem:[#allocation17 + $0x1e20] sm:$0xf0]  ;;  %v14145_v44 = vld [vmem:[#allocation17 + $0x1f24] sm:$0xf0]  ;;  %v14077_v22 = vld [vmem:[#allocation17 + $0x1d0c] sm:$0xf] }
 0x558   :  { %v14141_v17 = vld [vmem:[#allocation17 + $0x1f0c] sm:$0xf]  ;;  %v14129_v18 = vld [vmem:[#allocation17 + $0x1ea4] sm:$0xf0] }
 0x559   :  { %8468 = vmatpush.bf16.msra.mxu0 %v12735_v58  ;;  %8481 = vmatpush.bf16.msrb.mxu1 %v12991_v15  ;;  %v12872_v58 = vld [vmem:[#allocation17 + $0x1de8] sm:$0xf0] }
 0x55a   :  { %8494 = vmatpush.bf16.msrb.mxu2 %v12739_v10  ;;  %8507 = vmatpush.bf16.msra.mxu3 %v12995_v2  ;;  %v14165_v15 = vld [vmem:[#allocation17 + $0x1fcc] sm:$0xf]  ;;  %v12899_v10 = vor.u32 %v14108_v49, %v12896_v9  ;;  %v12871_v2 = vor.u32 %v14105_v55, %v12870_v53  ;;  %v12875_v30 = vor.u32 %v14101_v46, %v12872_v58  ;;  %v14073_v46 = vld [vmem:[#allocation17 + $0x1ce4] sm:$0xf0] }
 0x55b   :  { %v13131_v63 = vor.u32 %v14165_v15, %v13128_v19  ;;  %v12776_v49 = vld [vmem:[#allocation17 + $0x1d28] sm:$0xf0]  ;;  %v12775_v55 = vor.u32 %v14081_v36, %v12774_v11  ;;  %v12998_v58 = vld [vmem:[#allocation17 + $0x1ec8] sm:$0xf]  ;;  %v12743_v38 = vor.u32 %v14073_v46, %v12742_v41  ;;  %v12878_v46 = vld [vmem:[#allocation17 + $0x1dd0] sm:$0xf] }
 0x55c   :  { %v14137_v15 = vld [vmem:[#allocation17 + $0x1ee4] sm:$0xf0]  ;;  %v14069_v19 = vld [vmem:[#allocation17 + $0x1ccc] sm:$0xf] }
 0x55d   :  { %8469 = vmatpush.bf16.msra.mxu0 %v12703_v6  ;;  %8482 = vmatpush.bf16.msrb.mxu1 %v12959_v14  ;;  %v15001_v6 = vrot.slane %v14862_v31, 3  ;;  %v15004_v14 = vrot.slane %v14864_v32, 3  ;;  %v12808_v31 = vld [vmem:[#allocation17 + $0x1d68] sm:$0xf0]  ;;  %v6509_v32 = vadd.f32 %v14964_v13, %v14962_v61  ;;  %v12999_v60 = vor.u32 %v14137_v15, %v12998_v58  ;;  %v14170_v58 = vld [vmem:[#allocation17 + $0x1fec] sm:$0xf0] }
 0x55e   :  { %8495 = vmatpush.bf16.msrb.mxu2 %v12707_v24  ;;  %8508 = vmatpush.bf16.msra.mxu3 %v12963_v25  ;;  %v12806_v24 = vld [vmem:[#allocation17 + $0x1d48] sm:$0xf]  ;;  %v12811_v37 = vor.u32 %v14085_v28, %v12808_v31  ;;  %v13032_v61 = vld [vmem:[#allocation17 + $0x1f28] sm:$0xf0]  ;;  %v14102_v15 = vld [vmem:[#allocation17 + $0x1dd4] sm:$0xf] }
 0x55f   :  { %v14089_v25 = vld [vmem:[#allocation17 + $0x1d64] sm:$0xf0]  ;;  %v6694_v13 = vadd.f32 %v6509_v32, %v14917_v1  ;;  %v14133_v1 = vld [vmem:[#allocation17 + $0x1ecc] sm:$0xf] }
 0x560   :  { %v14061_v4 = vld [vmem:[#allocation17 + $0x1c8c] sm:$0xf]  ;;  %v12678_v28 = vld [vmem:[#allocation17 + $0x1c48] sm:$0xf] }
 0x561   :  { %8470 = vmatpush.bf16.msra.mxu0 %v12671_v3  ;;  %8483 = vmatpush.bf16.msrb.mxu1 %v12927_v0  ;;  %v12807_v3 = vor.u32 %v14089_v25, %v12806_v24  ;;  %v13063_v0 = vor.u32 %v14153_v50, %v13062_v7  ;;  %v14125_v24 = vld [vmem:[#allocation17 + $0x1e8c] sm:$0xf]  ;;  %v12967_v50 = vor.u32 %v14129_v18, %v12966_v16  ;;  %v14057_v31 = vld [vmem:[#allocation17 + $0x1c64] sm:$0xf0] }
 0x562   :  { %8496 = vmatpush.bf16.msrb.mxu2 %v12675_v51  ;;  %8509 = vmatpush.bf16.msra.mxu3 %v12931_v59  ;;  %v13067_v51 = vor.u32 %v14149_v54, %v13064_v5  ;;  %v13030_v59 = vld [vmem:[#allocation17 + $0x1f08] sm:$0xf]  ;;  %v12968_v25 = vld [vmem:[#allocation17 + $0x1ea8] sm:$0xf0] }
 0x563   :  { %v13031_v56 = vor.u32 %v14145_v44, %v13030_v59  ;;  %v12971_v32 = vor.u32 %v14125_v24, %v12968_v25  ;;  %v14053_v11 = vld [vmem:[#allocation17 + $0x1c4c] sm:$0xf]  ;;  %v12679_v59 = vor.u32 %v14057_v31, %v12678_v28  ;;  %v14158_v24 = vld [vmem:[#allocation17 + $0x1f94] sm:$0xf]  ;;  %v13070_v28 = vld [vmem:[#allocation17 + $0x1f50] sm:$0xf] }
 0x564   :  { %v12680_v36 = vld [vmem:[#allocation17 + $0x1c68] sm:$0xf0]  ;;  %v13104_v25 = vld [vmem:[#allocation17 + $0x1fb0] sm:$0xf0]  ;;  %v14154_v31 = vld [vmem:[#allocation17 + $0x1f6c] sm:$0xf0] }
 0x565   :  { %8471 = vmatpush.bf16.msra.mxu0 %v12639_v42  ;;  %8484 = vmatpush.bf16.msrb.mxu1 %v12895_v29  ;;  %v7484_v52 = vpop.f32.mrf.mxu0  ;;  %v7497_v9 = vpop.f32.mrf.mxu1  ;;  %v12779_v42 = vor.u32 %v14077_v22, %v12776_v49  ;;  %v13035_v29 = vor.u32 %v14141_v17, %v13032_v61  ;;  %v14049_v22 = vld [vmem:[#allocation17 + $0x1c24] sm:$0xf0]  ;;  %v12683_v61 = vor.u32 %v14053_v11, %v12680_v36  ;;  %v12904_v41 = vld [vmem:[#allocation17 + $0x1e28] sm:$0xf0] }
 0x566   :  { %8497 = vmatpush.bf16.msrb.mxu2 %v12643_v43  ;;  %8510 = vmatpush.bf16.msra.mxu3 %v12899_v10  ;;  %v7498_v53 = vadd.f32 %v7497_v9, %v7484_v52  ;;  %v12744_v10 = vld [vmem:[#allocation17 + $0x1ce8] sm:$0xf0]  ;;  %v12902_v49 = vld [vmem:[#allocation17 + $0x1e08] sm:$0xf]  ;;  %v13071_v36 = vor.u32 %v14154_v31, %v13070_v28 }
 0x567   :  { %v12747_v20 = vor.u32 %v14069_v19, %v12744_v10  ;;  %v14113_v17 = vld [vmem:[#allocation17 + $0x1e24] sm:$0xf0]  ;;  %v14045_v52 = vld [vmem:[#allocation17 + $0x1c0c] sm:$0xf] }
 0x568   :  { %8472 = vmatmul.bf16.vlgmr.msra.gmra.mxu0 %v15001_v6  ;;  %8485 = vmatmul.bf16.vlgmr.msrb.gmra.mxu1 %v15004_v14  ;;  %v15013_v43 = vadd.f32 %v7498_v53, %v6694_v13  ;;  %v12648_v9 = vld [vmem:[#allocation17 + $0x1c28] sm:$0xf0]  ;;  %v12903_v10 = vor.u32 %v14113_v17, %v12902_v49  ;;  %v14078_v49 = vld [vmem:[#allocation17 + $0x1d14] sm:$0xf] }
 0x569   :  { %8516 = vmatpush.bf16.msrb.mxu0 %v12871_v2  ;;  %8529 = vmatpush.bf16.msra.mxu1 %v13127_v34  ;;  %v13000_v2 = vld [vmem:[#allocation17 + $0x1ee8] sm:$0xf0]  ;;  %v6535_v34 = vadd.f32 %v14968_v12, %v14966_v62  ;;  %v12784_v17 = vld [vmem:[#allocation17 + $0x1d30] sm:$0xf0] }
 0x56a   :  { %8542 = vmatpush.bf16.msra.mxu2 %v12875_v30  ;;  %8555 = vmatpush.bf16.msrb.mxu3 %v13131_v63  ;;  %v12710_v30 = vld [vmem:[#allocation17 + $0x1c88] sm:$0xf]  ;;  %v13003_v33 = vor.u32 %v14133_v1, %v13000_v2  ;;  %v14109_v53 = vld [vmem:[#allocation17 + $0x1e0c] sm:$0xf]  ;;  %v12880_v1 = vld [vmem:[#allocation17 + $0x1df0] sm:$0xf0] }
 0x56b   :  { %8498 = vmatmul.bf16.vlgmr.msrb.gmra.mxu2 %v15001_v6  ;;  %8511 = vmatmul.bf16.vlgmr.msra.gmra.mxu3 %v15004_v14  ;;  %v14065_v63 = vld [vmem:[#allocation17 + $0x1ca4] sm:$0xf0]  ;;  %v6695_v62 = vadd.f32 %v6535_v34, %v14920_v40  ;;  %v14117_v40 = vld [vmem:[#allocation17 + $0x1e4c] sm:$0xf]  ;;  %v14166_v2 = vld [vmem:[#allocation17 + $0x1fd4] sm:$0xf]  ;;  %v12883_v16 = vor.u32 %v14102_v15, %v12880_v1 }
 0x56c   :  { %v12711_v7 = vor.u32 %v14065_v63, %v12710_v30  ;;  %v13136_v34 = vld [vmem:[#allocation17 + $0x1ff0] sm:$0xf0]  ;;  %v14138_v15 = vld [vmem:[#allocation17 + $0x1eec] sm:$0xf0] }
 0x56d   :  { %8517 = vmatpush.bf16.msrb.mxu0 %v12839_v48  ;;  %8530 = vmatpush.bf16.msra.mxu1 %v13095_v21  ;;  %v12712_v21 = vld [vmem:[#allocation17 + $0x1ca8] sm:$0xf0]  ;;  %v13139_v18 = vor.u32 %v14166_v2, %v13136_v34  ;;  %v12752_v1 = vld [vmem:[#allocation17 + $0x1cf0] sm:$0xf0] }
 0x56e   :  { %8543 = vmatpush.bf16.msra.mxu2 %v12843_v26  ;;  %8556 = vmatpush.bf16.msrb.mxu3 %v13099_v27  ;;  %v7510_v47 = vpop.f32.mrf.mxu2  ;;  %v7523_v48 = vpop.f32.mrf.mxu3  ;;  %v12715_v5 = vor.u32 %v14061_v4, %v12712_v21  ;;  %v13102_v4 = vld [vmem:[#allocation17 + $0x1f90] sm:$0xf]  ;;  %v12848_v21 = vld [vmem:[#allocation17 + $0x1db0] sm:$0xf0] }
 0x56f   :  { %v7524_v12 = vadd.f32 %v7523_v48, %v7510_v47  ;;  %v7486_v26 = vpop.f32.mrf.mxu0  ;;  %v7499_v27 = vpop.f32.mrf.mxu1  ;;  %v14162_v47 = vld [vmem:[#allocation17 + $0x1fac] sm:$0xf0]  ;;  %v14094_v48 = vld [vmem:[#allocation17 + $0x1d94] sm:$0xf] }
 0x570   :  { %v12814_v26 = vld [vmem:[#allocation17 + $0x1d50] sm:$0xf]  ;;  %v14134_v2 = vld [vmem:[#allocation17 + $0x1ed4] sm:$0xf] }
 0x571   :  { %8518 = vmatpush.bf16.msrb.mxu0 %v12807_v3  ;;  %8531 = vmatpush.bf16.msra.mxu1 %v13063_v0  ;;  %v15018_v54 = vadd.f32 %v7524_v12, %v6695_v62  ;;  %v12934_v3 = vld [vmem:[#allocation17 + $0x1e48] sm:$0xf]  ;;  %v13103_v12 = vor.u32 %v14162_v47, %v13102_v4  ;;  %v14090_v27 = vld [vmem:[#allocation17 + $0x1d6c] sm:$0xf0]  ;;  %v13008_v34 = vld [vmem:[#allocation17 + $0x1ef0] sm:$0xf0] }
 0x572   :  { %8544 = vmatpush.bf16.msra.mxu2 %v12811_v37  ;;  %8557 = vmatpush.bf16.msrb.mxu3 %v13067_v51  ;;  %v14121_v0 = vld [vmem:[#allocation17 + $0x1e64] sm:$0xf0]  ;;  %v12936_v37 = vld [vmem:[#allocation17 + $0x1e68] sm:$0xf0]  ;;  %v12815_v11 = vor.u32 %v14090_v27, %v12814_v26  ;;  %v14062_v4 = vld [vmem:[#allocation17 + $0x1c94] sm:$0xf] }
 0x573   :  { %v12646_v51 = vld [vmem:[#allocation17 + $0x1c08] sm:$0xf]  ;;  %v12935_v44 = vor.u32 %v14121_v0, %v12934_v3  ;;  %v12939_v13 = vor.u32 %v14117_v40, %v12936_v37  ;;  %v14150_v3 = vld [vmem:[#allocation17 + $0x1f54] sm:$0xf]  ;;  %v12782_v40 = vld [vmem:[#allocation17 + $0x1d10] sm:$0xf] }
 0x574   :  { %v12647_v19 = vor.u32 %v14049_v22, %v12646_v51  ;;  %v13072_v0 = vld [vmem:[#allocation17 + $0x1f70] sm:$0xf0]  ;;  %v14082_v37 = vld [vmem:[#allocation17 + $0x1d2c] sm:$0xf0] }
 0x575   :  { %8519 = vmatpush.bf16.msrb.mxu0 %v12775_v55  ;;  %8532 = vmatpush.bf16.msra.mxu1 %v13031_v56  ;;  %v14146_v22 = vld [vmem:[#allocation17 + $0x1f2c] sm:$0xf0] }
 0x576   :  { %8545 = vmatpush.bf16.msra.mxu2 %v12779_v42  ;;  %8558 = vmatpush.bf16.msrb.mxu3 %v13035_v29  ;;  %v7512_v55 = vpop.f32.mrf.mxu2  ;;  %v7525_v56 = vpop.f32.mrf.mxu3  ;;  %v14106_v42 = vld [vmem:[#allocation17 + $0x1dec] sm:$0xf0] }
 0x577   :  { %v13134_v29 = vld [vmem:[#allocation17 + $0x1fd0] sm:$0xf]  ;;  %v12879_v30 = vor.u32 %v14106_v42, %v12878_v46  ;;  %v12783_v55 = vor.u32 %v14082_v37, %v12782_v40  ;;  %v12787_v42 = vor.u32 %v14078_v49, %v12784_v17  ;;  %v12944_v40 = vld [vmem:[#allocation17 + $0x1e70] sm:$0xf0] }
 0x578   :  { %v13135_v63 = vor.u32 %v14170_v58, %v13134_v29  ;;  %v14074_v46 = vld [vmem:[#allocation17 + $0x1cec] sm:$0xf0] }
 0x579   :  { %8520 = vmatpush.bf16.msrb.mxu0 %v12743_v38  ;;  %8533 = vmatpush.bf16.msra.mxu1 %v12999_v60  ;;  %v12651_v38 = vor.u32 %v14045_v52, %v12648_v9  ;;  %v12907_v60 = vor.u32 %v14109_v53, %v12904_v41  ;;  %v12750_v41 = vld [vmem:[#allocation17 + $0x1cd0] sm:$0xf] }
 0x57a   :  { %8546 = vmatpush.bf16.msra.mxu2 %v12747_v20  ;;  %8559 = vmatpush.bf16.msrb.mxu3 %v13003_v33  ;;  %v12846_v20 = vld [vmem:[#allocation17 + $0x1d90] sm:$0xf] }
 0x57b   :  { %v14098_v33 = vld [vmem:[#allocation17 + $0x1dac] sm:$0xf0] }
 0x57c   :  { %v12847_v62 = vor.u32 %v14098_v33, %v12846_v20  ;;  %v13006_v58 = vld [vmem:[#allocation17 + $0x1ed0] sm:$0xf]  ;;  %v13011_v33 = vor.u32 %v14134_v2, %v13008_v34  ;;  %v13144_v2 = vld [vmem:[#allocation17 + $0x1ff8] sm:$0xf0] }
 0x57d   :  { %8521 = vmatpush.bf16.msrb.mxu0 %v12711_v7  ;;  %8534 = vmatpush.bf16.msra.mxu1 %v12967_v50  ;;  %v12851_v7 = vor.u32 %v14094_v48, %v12848_v21  ;;  %v13107_v50 = vor.u32 %v14158_v24, %v13104_v25  ;;  %v14126_v21 = vld [vmem:[#allocation17 + $0x1e94] sm:$0xf]  ;;  %v12654_v37 = vld [vmem:[#allocation17 + $0x1c10] sm:$0xf] }
 0x57e   :  { %8547 = vmatpush.bf16.msra.mxu2 %v12715_v5  ;;  %8560 = vmatpush.bf16.msrb.mxu3 %v12971_v32  ;;  %v14086_v5 = vld [vmem:[#allocation17 + $0x1d54] sm:$0xf]  ;;  %v14114_v49 = vld [vmem:[#allocation17 + $0x1e2c] sm:$0xf0] }
 0x57f   :  { %v12816_v32 = vld [vmem:[#allocation17 + $0x1d70] sm:$0xf0] }
 0x580   :  { %v12819_v51 = vor.u32 %v14086_v5, %v12816_v32  ;;  %v12976_v24 = vld [vmem:[#allocation17 + $0x1eb0] sm:$0xf0]  ;;  %v12942_v32 = vld [vmem:[#allocation17 + $0x1e50] sm:$0xf] }
 0x581   :  { %8522 = vmatpush.bf16.msrb.mxu0 %v12679_v59  ;;  %8535 = vmatpush.bf16.msra.mxu1 %v12935_v44  ;;  %v13075_v59 = vor.u32 %v14150_v3, %v13072_v0  ;;  %v13038_v44 = vld [vmem:[#allocation17 + $0x1f10] sm:$0xf]  ;;  %v12979_v5 = vor.u32 %v14126_v21, %v12976_v24  ;;  %v14054_v0 = vld [vmem:[#allocation17 + $0x1c54] sm:$0xf]  ;;  %v13112_v21 = vld [vmem:[#allocation17 + $0x1fb8] sm:$0xf0] }
 0x582   :  { %8548 = vmatpush.bf16.msra.mxu2 %v12683_v61  ;;  %8561 = vmatpush.bf16.msrb.mxu3 %v12939_v13  ;;  %v14142_v61 = vld [vmem:[#allocation17 + $0x1f14] sm:$0xf]  ;;  %v13039_v56 = vor.u32 %v14146_v22, %v13038_v44  ;;  %v14122_v3 = vld [vmem:[#allocation17 + $0x1e6c] sm:$0xf0] }
 0x583   :  { %v13040_v13 = vld [vmem:[#allocation17 + $0x1f30] sm:$0xf0]  ;;  %v14050_v44 = vld [vmem:[#allocation17 + $0x1c2c] sm:$0xf0] }
 0x584   :  { %v13043_v29 = vor.u32 %v14142_v61, %v13040_v13  ;;  %v12910_v22 = vld [vmem:[#allocation17 + $0x1e10] sm:$0xf]  ;;  %v14046_v61 = vld [vmem:[#allocation17 + $0x1c14] sm:$0xf] }
 0x585   :  { %8523 = vmatpush.bf16.msrb.mxu0 %v12647_v19  ;;  %8536 = vmatpush.bf16.msra.mxu1 %v12903_v10  ;;  %v7536_v52 = vpop.f32.mrf.mxu0  ;;  %v7549_v9 = vpop.f32.mrf.mxu1  ;;  %v14070_v19 = vld [vmem:[#allocation17 + $0x1cd4] sm:$0xf] }
 0x586   :  { %8549 = vmatpush.bf16.msra.mxu2 %v12651_v38  ;;  %8562 = vmatpush.bf16.msrb.mxu3 %v12907_v60  ;;  %v7550_v53 = vadd.f32 %v7549_v9, %v7536_v52  ;;  %v12751_v38 = vor.u32 %v14074_v46, %v12750_v41  ;;  %v13007_v60 = vor.u32 %v14138_v15, %v13006_v58  ;;  %v12656_v13 = vld [vmem:[#allocation17 + $0x1c30] sm:$0xf0]  ;;  %v14107_v41 = vld [vmem:[#allocation17 + $0x1df4] sm:$0xf0] }
 0x587   :  { %v12755_v20 = vor.u32 %v14070_v19, %v12752_v1  ;;  %v14110_v52 = vld [vmem:[#allocation17 + $0x1e14] sm:$0xf]  ;;  %v13142_v46 = vld [vmem:[#allocation17 + $0x1fd8] sm:$0xf]  ;;  %v12655_v58 = vor.u32 %v14050_v44, %v12654_v37  ;;  %v12911_v15 = vor.u32 %v14114_v49, %v12910_v22  ;;  %v12888_v19 = vld [vmem:[#allocation17 + $0x1df8] sm:$0xf0]  ;;  %v12659_v34 = vor.u32 %v14046_v61, %v12656_v13 }
 0x588   :  { %8524 = vmatmul.bf16.vlgmr.msrb.gmra.mxu0 %v15001_v6  ;;  %8537 = vmatmul.bf16.vlgmr.msra.gmra.mxu1 %v15004_v14  ;;  %v15025_v10 = vadd.f32 %v7550_v53, %v14975_v8  ;;  %v12720_v8 = vld [vmem:[#allocation17 + $0x1cb0] sm:$0xf0]  ;;  %v14167_v1 = vld [vmem:[#allocation17 + $0x1fdc] sm:$0xf]  ;;  %v14147_v44 = vld [vmem:[#allocation17 + $0x1f34] sm:$0xf0] }
 0x589   :  { %8568 = vmatpush.bf16.msra.mxu0 %v12879_v30  ;;  %8581 = vmatpush.bf16.msrb.mxu1 %v13135_v63  ;;  %v12718_v30 = vld [vmem:[#allocation17 + $0x1c90] sm:$0xf]  ;;  %v12723_v31 = vor.u32 %v14062_v4, %v12720_v8  ;;  %v14163_v4 = vld [vmem:[#allocation17 + $0x1fb4] sm:$0xf0]  ;;  %v14159_v8 = vld [vmem:[#allocation17 + $0x1f9c] sm:$0xf] }
 0x58a   :  { %8594 = vmatpush.bf16.msrb.mxu2 %v12883_v16  ;;  %8607 = vmatpush.bf16.msra.mxu3 %v13139_v18  ;;  %v14066_v63 = vld [vmem:[#allocation17 + $0x1cac] sm:$0xf0]  ;;  %v14079_v22 = vld [vmem:[#allocation17 + $0x1d1c] sm:$0xf] }
 0x58b   :  { %8550 = vmatmul.bf16.vlgmr.msra.gmra.mxu2 %v15001_v6  ;;  %8563 = vmatmul.bf16.vlgmr.msrb.gmra.mxu3 %v15004_v14  ;;  %v12974_v16 = vld [vmem:[#allocation17 + $0x1e90] sm:$0xf]  ;;  %v12719_v26 = vor.u32 %v14066_v63, %v12718_v30  ;;  %v12854_v63 = vld [vmem:[#allocation17 + $0x1d98] sm:$0xf]  ;;  %v12792_v49 = vld [vmem:[#allocation17 + $0x1d38] sm:$0xf0] }
 0x58c   :  { %v14130_v18 = vld [vmem:[#allocation17 + $0x1eac] sm:$0xf0] }
 0x58d   :  { %8569 = vmatpush.bf16.msra.mxu0 %v12847_v62  ;;  %8582 = vmatpush.bf16.msrb.mxu1 %v13103_v12  ;;  %v7538_v62 = vpop.f32.mrf.mxu0  ;;  %v7551_v12 = vpop.f32.mrf.mxu1  ;;  %v12975_v27 = vor.u32 %v14130_v18, %v12974_v16  ;;  %v13147_v16 = vor.u32 %v14167_v1, %v13144_v2  ;;  %v13110_v18 = vld [vmem:[#allocation17 + $0x1f98] sm:$0xf]  ;;  %v14135_v1 = vld [vmem:[#allocation17 + $0x1edc] sm:$0xf] }
 0x58e   :  { %8595 = vmatpush.bf16.msrb.mxu2 %v12851_v7  ;;  %8608 = vmatpush.bf16.msra.mxu3 %v13107_v50  ;;  %v7562_v47 = vpop.f32.mrf.mxu2  ;;  %v7575_v48 = vpop.f32.mrf.mxu3  ;;  %v12686_v7 = vld [vmem:[#allocation17 + $0x1c50] sm:$0xf]  ;;  %v12822_v62 = vld [vmem:[#allocation17 + $0x1d58] sm:$0xf]  ;;  %v13016_v2 = vld [vmem:[#allocation17 + $0x1ef8] sm:$0xf0] }
 0x58f   :  { %v7576_v25 = vadd.f32 %v7575_v48, %v7562_v47  ;;  %v14058_v50 = vld [vmem:[#allocation17 + $0x1c6c] sm:$0xf0]  ;;  %v14095_v47 = vld [vmem:[#allocation17 + $0x1d9c] sm:$0xf]  ;;  %v14091_v12 = vld [vmem:[#allocation17 + $0x1d74] sm:$0xf0] }
 0x590   :  { %v12856_v48 = vld [vmem:[#allocation17 + $0x1db8] sm:$0xf0] }
 0x591   :  { %8570 = vmatpush.bf16.msra.mxu0 %v12815_v11  ;;  %8583 = vmatpush.bf16.msrb.mxu1 %v13071_v36  ;;  %v15028_v28 = vadd.f32 %v7576_v25, %v14978_v39  ;;  %v12688_v11 = vld [vmem:[#allocation17 + $0x1c70] sm:$0xf0]  ;;  %v13111_v25 = vor.u32 %v14163_v4, %v13110_v18  ;;  %v14063_v18 = vld [vmem:[#allocation17 + $0x1c9c] sm:$0xf] }
 0x592   :  { %8596 = vmatpush.bf16.msrb.mxu2 %v12819_v51  ;;  %8609 = vmatpush.bf16.msra.mxu3 %v13075_v59  ;;  %v14118_v36 = vld [vmem:[#allocation17 + $0x1e54] sm:$0xf]  ;;  %v12687_v51 = vor.u32 %v14058_v50, %v12686_v7  ;;  %v12943_v59 = vor.u32 %v14122_v3, %v12942_v32  ;;  %v12691_v39 = vor.u32 %v14054_v0, %v12688_v11  ;;  %v13078_v7 = vld [vmem:[#allocation17 + $0x1f58] sm:$0xf]  ;;  %v14151_v32 = vld [vmem:[#allocation17 + $0x1f5c] sm:$0xf] }
 0x593   :  { %v12947_v17 = vor.u32 %v14118_v36, %v12944_v40  ;;  %v14155_v50 = vld [vmem:[#allocation17 + $0x1f74] sm:$0xf0]  ;;  %v13080_v3 = vld [vmem:[#allocation17 + $0x1f78] sm:$0xf0]  ;;  %v12823_v0 = vor.u32 %v14091_v12, %v12822_v62 }
 0x594   :  { %v13079_v11 = vor.u32 %v14155_v50, %v13078_v7  ;;  %v12790_v36 = vld [vmem:[#allocation17 + $0x1d18] sm:$0xf] }
 0x595   :  { %8571 = vmatpush.bf16.msra.mxu0 %v12783_v55  ;;  %8584 = vmatpush.bf16.msrb.mxu1 %v13039_v56  ;;  %v12912_v55 = vld [vmem:[#allocation17 + $0x1e30] sm:$0xf0]  ;;  %v12886_v56 = vld [vmem:[#allocation17 + $0x1dd8] sm:$0xf] }
 0x596   :  { %8597 = vmatpush.bf16.msrb.mxu2 %v12787_v42  ;;  %8610 = vmatpush.bf16.msra.mxu3 %v13043_v29  ;;  %v7564_v9 = vpop.f32.mrf.mxu2  ;;  %v7577_v53 = vpop.f32.mrf.mxu3  ;;  %v14171_v42 = vld [vmem:[#allocation17 + $0x1ff4] sm:$0xf0]  ;;  %v14103_v29 = vld [vmem:[#allocation17 + $0x1ddc] sm:$0xf] }
 0x597   :  { %v13143_v30 = vor.u32 %v14171_v42, %v13142_v46  ;;  %v14083_v40 = vld [vmem:[#allocation17 + $0x1d34] sm:$0xf0] }
 0x598   :  { %v12791_v9 = vor.u32 %v14083_v40, %v12790_v36  ;;  %v13014_v42 = vld [vmem:[#allocation17 + $0x1ed8] sm:$0xf]  ;;  %v12952_v36 = vld [vmem:[#allocation17 + $0x1e78] sm:$0xf0] }
 0x599   :  { %8572 = vmatpush.bf16.msra.mxu0 %v12751_v38  ;;  %8585 = vmatpush.bf16.msrb.mxu1 %v13007_v60  ;;  %v12915_v38 = vor.u32 %v14110_v52, %v12912_v55  ;;  %v12887_v60 = vor.u32 %v14107_v41, %v12886_v56  ;;  %v12758_v55 = vld [vmem:[#allocation17 + $0x1cd8] sm:$0xf]  ;;  %v12795_v41 = vor.u32 %v14079_v22, %v12792_v49 }
 0x59a   :  { %8598 = vmatpush.bf16.msrb.mxu2 %v12755_v20  ;;  %8611 = vmatpush.bf16.msra.mxu3 %v13011_v33  ;;  %v14099_v20 = vld [vmem:[#allocation17 + $0x1db4] sm:$0xf0]  ;;  %v12891_v33 = vor.u32 %v14103_v29, %v12888_v19  ;;  %v12760_v19 = vld [vmem:[#allocation17 + $0x1cf8] sm:$0xf0] }
 0x59b   :  { %v12855_v24 = vor.u32 %v14099_v20, %v12854_v63  ;;  %v14075_v56 = vld [vmem:[#allocation17 + $0x1cf4] sm:$0xf0]  ;;  %v13019_v20 = vor.u32 %v14135_v1, %v13016_v2  ;;  %v8743_v1 = vld [vmem:[%s15467_s12 + $0xe8] sm:$0xff]  ;;  %v8726_v2 = vld [vmem:[%s15467_s12 + $0x60] sm:$0xff] }
 0x59c   :  { %v14139_v29 = vld [vmem:[#allocation17 + $0x1ef4] sm:$0xf0] }
 0x59d   :  { %8573 = vmatpush.bf16.msra.mxu0 %v12719_v26  ;;  %8586 = vmatpush.bf16.msrb.mxu1 %v12975_v27  ;;  %v12859_v26 = vor.u32 %v14095_v47, %v12856_v48  ;;  %v13115_v27 = vor.u32 %v14159_v8, %v13112_v21  ;;  %v14127_v48 = vld [vmem:[#allocation17 + $0x1e9c] sm:$0xf]  ;;  %v14115_v49 = vld [vmem:[#allocation17 + $0x1e34] sm:$0xf0] }
 0x59e   :  { %8599 = vmatpush.bf16.msrb.mxu2 %v12723_v31  ;;  %8612 = vmatpush.bf16.msra.mxu3 %v12979_v5  ;;  %v14087_v31 = vld [vmem:[#allocation17 + $0x1d5c] sm:$0xf] }
 0x59f   :  { %v12824_v5 = vld [vmem:[#allocation17 + $0x1d78] sm:$0xf0] }
 0x5a0   :  { %v12827_v37 = vor.u32 %v14087_v31, %v12824_v5  ;;  %v12984_v8 = vld [vmem:[#allocation17 + $0x1eb8] sm:$0xf0]  ;;  %v12950_v5 = vld [vmem:[#allocation17 + $0x1e58] sm:$0xf] }
 0x5a1   :  { %8574 = vmatpush.bf16.msra.mxu0 %v12687_v51  ;;  %8587 = vmatpush.bf16.msrb.mxu1 %v12943_v59  ;;  %v13083_v51 = vor.u32 %v14151_v32, %v13080_v3  ;;  %v13046_v59 = vld [vmem:[#allocation17 + $0x1f18] sm:$0xf]  ;;  %v12987_v31 = vor.u32 %v14127_v48, %v12984_v8  ;;  %v14055_v3 = vld [vmem:[#allocation17 + $0x1c5c] sm:$0xf] }
 0x5a2   :  { %8600 = vmatpush.bf16.msrb.mxu2 %v12691_v39  ;;  %8613 = vmatpush.bf16.msra.mxu3 %v12947_v17  ;;  %v14143_v39 = vld [vmem:[#allocation17 + $0x1f1c] sm:$0xf]  ;;  %v13047_v53 = vor.u32 %v14147_v44, %v13046_v59  ;;  %v14123_v32 = vld [vmem:[#allocation17 + $0x1e74] sm:$0xf0] }
 0x5a3   :  { %v13048_v17 = vld [vmem:[#allocation17 + $0x1f38] sm:$0xf0]  ;;  %v14051_v59 = vld [vmem:[#allocation17 + $0x1c34] sm:$0xf0] }
 0x5a4   :  { %v13051_v46 = vor.u32 %v14143_v39, %v13048_v17  ;;  %v14047_v39 = vld [vmem:[#allocation17 + $0x1c1c] sm:$0xf]  ;;  %v8721_v48 = vld [vmem:[%s15467_s12 + $0x38] sm:$0xff] }
 0x5a5   :  { %8575 = vmatpush.bf16.msra.mxu0 %v12655_v58  ;;  %8588 = vmatpush.bf16.msrb.mxu1 %v12911_v15  ;;  %v7588_v61 = vpop.f32.mrf.mxu0  ;;  %v7601_v13 = vpop.f32.mrf.mxu1  ;;  %v14071_v58 = vld [vmem:[#allocation17 + $0x1cdc] sm:$0xf]  ;;  %v8737_v8 = vld [vmem:[%s15467_s12 + $0xb8] sm:$0xff] }
 0x5a6   :  { %8601 = vmatpush.bf16.msrb.mxu2 %v12659_v34  ;;  %8614 = vmatpush.bf16.msra.mxu3 %v12915_v38  ;;  %v7602_v52 = vadd.f32 %v7601_v13, %v7588_v61  ;;  %v12759_v34 = vor.u32 %v14075_v56, %v12758_v55  ;;  %v13015_v38 = vor.u32 %v14139_v29, %v13014_v42  ;;  %v12664_v13 = vld [vmem:[#allocation17 + $0x1c38] sm:$0xf0]  ;;  %v8745_v42 = vld [vmem:[%s15467_s12 + $0xf8] sm:$0xff]  ;;  %v8728_v29 = vld [vmem:[%s15467_s12 + $0x70] sm:$0xff] }
 0x5a7   :  { %v12763_v63 = vor.u32 %v14071_v58, %v12760_v19  ;;  %v12667_v56 = vor.u32 %v14047_v39, %v12664_v13  ;;  %v8744_v58 = vld [vmem:[%s15467_s12 + $0xf0] sm:$0xff]  ;;  %v8727_v19 = vld [vmem:[%s15467_s12 + $0x68] sm:$0xff]  ;;  %v8773_v13 = vld [vmem:[%s15467_s12 + $0x1d8] sm:$0xff] }
 0x5a8   :  { %8576 = vmatmul.bf16.vlgmr.msra.gmra.mxu0 %v15001_v6  ;;  %8589 = vmatmul.bf16.vlgmr.msrb.gmra.mxu1 %v15004_v14  ;;  %v15035_v15 = vadd.f32 %v7602_v52, %v14985_v45  ;;  %v12728_v45 = vld [vmem:[#allocation17 + $0x1cb8] sm:$0xf0]  ;;  %v8716_v39 = vld [vmem:[%s15467_s12 + $0x10] sm:$0xff] }
 0x5a9   :  { %8620 = vmatpush.bf16.msrb.mxu0 %v12887_v60  ;;  %8633 = vmatpush.bf16.msra.mxu1 %v13143_v30  ;;  %v12726_v60 = vld [vmem:[#allocation17 + $0x1c98] sm:$0xf]  ;;  %v12731_v50 = vor.u32 %v14063_v18, %v12728_v45  ;;  %v14111_v52 = vld [vmem:[#allocation17 + $0x1e1c] sm:$0xf]  ;;  %v8739_v18 = vld [vmem:[%s15467_s12 + $0xc8] sm:$0xff] }
 0x5aa   :  { %8646 = vmatpush.bf16.msra.mxu2 %v12891_v33  ;;  %8659 = vmatpush.bf16.msrb.mxu3 %v13147_v16  ;;  %v14067_v30 = vld [vmem:[#allocation17 + $0x1cb4] sm:$0xf0] }
 0x5ab   :  { %8602 = vmatmul.bf16.vlgmr.msrb.gmra.mxu2 %v15001_v6  ;;  %8615 = vmatmul.bf16.vlgmr.msra.gmra.mxu3 %v15004_v14  ;;  %v12982_v33 = vld [vmem:[#allocation17 + $0x1e98] sm:$0xf]  ;;  %v12727_v62 = vor.u32 %v14067_v30, %v12726_v60 }
 0x5ac   :  { %v14131_v16 = vld [vmem:[#allocation17 + $0x1eb4] sm:$0xf0] }
 0x5ad   :  { %8621 = vmatpush.bf16.msrb.mxu0 %v12855_v24  ;;  %8634 = vmatpush.bf16.msra.mxu1 %v13111_v25  ;;  %v7590_v24 = vpop.f32.mrf.mxu0  ;;  %v7603_v25 = vpop.f32.mrf.mxu1  ;;  %v12983_v12 = vor.u32 %v14131_v16, %v12982_v33  ;;  %v8723_v16 = vld [vmem:[%s15467_s12 + $0x48] sm:$0xff] }
 0x5ae   :  { %8647 = vmatpush.bf16.msra.mxu2 %v12859_v26  ;;  %8660 = vmatpush.bf16.msrb.mxu3 %v13115_v27  ;;  %v7614_v4 = vpop.f32.mrf.mxu2  ;;  %v7627_v47 = vpop.f32.mrf.mxu3  ;;  %v12694_v26 = vld [vmem:[#allocation17 + $0x1c58] sm:$0xf] }
 0x5af   :  { %v7628_v21 = vadd.f32 %v7627_v47, %v7614_v4  ;;  %v14059_v27 = vld [vmem:[#allocation17 + $0x1c74] sm:$0xf0]  ;;  %v8722_v4 = vld [vmem:[%s15467_s12 + $0x40] sm:$0xff] }
 0x5b0   :  { %v12695_v40 = vor.u32 %v14059_v27, %v12694_v26  ;;  %v8738_v47 = vld [vmem:[%s15467_s12 + $0xc0] sm:$0xff]  ;;  %v8736_v26 = vld [vmem:[%s15467_s12 + $0xb0] sm:$0xff] }
 0x5b1   :  { %8622 = vmatpush.bf16.msrb.mxu0 %v12823_v0  ;;  %8635 = vmatpush.bf16.msra.mxu1 %v13079_v11  ;;  %v15038_v7 = vadd.f32 %v7628_v21, %v14988_v35  ;;  %v12696_v0 = vld [vmem:[#allocation17 + $0x1c78] sm:$0xf0]  ;;  %v12918_v35 = vld [vmem:[#allocation17 + $0x1e18] sm:$0xf]  ;;  %v8760_v27 = vld [vmem:[%s15467_s12 + $0x170] sm:$0xff] }
 0x5b2   :  { %8648 = vmatpush.bf16.msra.mxu2 %v12827_v37  ;;  %8661 = vmatpush.bf16.msrb.mxu3 %v13083_v51  ;;  %v14119_v11 = vld [vmem:[#allocation17 + $0x1e5c] sm:$0xf]  ;;  %v12951_v37 = vor.u32 %v14123_v32, %v12950_v5  ;;  %v12662_v51 = vld [vmem:[#allocation17 + $0x1c18] sm:$0xf]  ;;  %v12699_v44 = vor.u32 %v14055_v3, %v12696_v0  ;;  %v12919_v55 = vor.u32 %v14115_v49, %v12918_v35  ;;  %v8735_v5 = vld [vmem:[%s15467_s12 + $0xa8] sm:$0xff] }
 0x5b3   :  { %v12955_v22 = vor.u32 %v14119_v11, %v12952_v36  ;;  %v8761_v21 = vld [vmem:[%s15467_s12 + $0x178] sm:$0xff]  ;;  %v8759_v32 = vld [vmem:[%s15467_s12 + $0x168] sm:$0xff]  ;;  %v8718_v0 = vld [vmem:[%s15467_s12 + $0x20] sm:$0xff] }
 0x5b4   :  { %v8777_v3 = vld [vmem:[%s15467_s12 + $0x1f8] sm:$0xff]  ;;  %v8734_v11 = vld [vmem:[%s15467_s12 + $0xa0] sm:$0xff]  ;;  %v8756_v35 = vld [vmem:[%s15467_s12 + $0x150] sm:$0xff] }
 0x5b5   :  { %8623 = vmatpush.bf16.msrb.mxu0 %v12791_v9  ;;  %8636 = vmatpush.bf16.msra.mxu1 %v13047_v53  ;;  %v12920_v9 = vld [vmem:[#allocation17 + $0x1e38] sm:$0xf0]  ;;  %v12663_v53 = vor.u32 %v14051_v59, %v12662_v51  ;;  %v8757_v36 = vld [vmem:[%s15467_s12 + $0x158] sm:$0xff] }
 0x5b6   :  { %8649 = vmatpush.bf16.msra.mxu2 %v12795_v41  ;;  %8662 = vmatpush.bf16.msrb.mxu3 %v13051_v46  ;;  %v7616_v17 = vpop.f32.mrf.mxu2  ;;  %v7629_v61 = vpop.f32.mrf.mxu3  ;;  %v12923_v41 = vor.u32 %v14111_v52, %v12920_v9  ;;  %v8729_v46 = vld [vmem:[%s15467_s12 + $0x78] sm:$0xff]  ;;  %v8774_v49 = vld [vmem:[%s15467_s12 + $0x1e0] sm:$0xff]  ;;  %v8715_v52 = vld [vmem:[%s15467_s12 + $0x8] sm:$0xff] }
 0x5b7   :  { %v8717_v59 = vld [vmem:[%s15467_s12 + $0x18] sm:$0xff]  ;;  %v8732_v17 = vld [vmem:[%s15467_s12 + $0x90] sm:$0xff]  ;;  %v8755_v61 = vld [vmem:[%s15467_s12 + $0x148] sm:$0xff] }
 0x5b8   :  { %v8731_v9 = vld [vmem:[%s15467_s12 + $0x88] sm:$0xff] }
 0x5b9   :  { %8624 = vmatpush.bf16.msrb.mxu0 %v12759_v34  ;;  %8637 = vmatpush.bf16.msra.mxu1 %v13015_v38  ;;  %v8741_v34 = vld [vmem:[%s15467_s12 + $0xd8] sm:$0xff] }
 0x5ba   :  { %8650 = vmatpush.bf16.msra.mxu2 %v12763_v63  ;;  %8663 = vmatpush.bf16.msrb.mxu3 %v13019_v20  ;;  %v8724_v63 = vld [vmem:[%s15467_s12 + $0x50] sm:$0xff] }
 0x5bb   :  { %v8740_v20 = vld [vmem:[%s15467_s12 + $0xd0] sm:$0xff] }
 0x5bd   :  { %8625 = vmatpush.bf16.msrb.mxu0 %v12727_v62  ;;  %8638 = vmatpush.bf16.msra.mxu1 %v12983_v12  ;;  %v8720_v12 = vld [vmem:[%s15467_s12 + $0x30] sm:$0xff] }
 0x5be   :  { %8651 = vmatpush.bf16.msra.mxu2 %v12731_v50  ;;  %8664 = vmatpush.bf16.msrb.mxu3 %v12987_v31  ;;  %v8719_v31 = vld [vmem:[%s15467_s12 + $0x28] sm:$0xff] }
 0x5c1   :  { %8626 = vmatpush.bf16.msrb.mxu0 %v12695_v40  ;;  %8639 = vmatpush.bf16.msra.mxu1 %v12951_v37  ;;  %v8776_v40 = vld [vmem:[%s15467_s12 + $0x1f0] sm:$0xff] }
 0x5c2   :  { %8652 = vmatpush.bf16.msra.mxu2 %v12699_v44  ;;  %8665 = vmatpush.bf16.msrb.mxu3 %v12955_v22  ;;  %v8733_v44 = vld [vmem:[%s15467_s12 + $0x98] sm:$0xff]  ;;  %v8775_v22 = vld [vmem:[%s15467_s12 + $0x1e8] sm:$0xff] }
 0x5c5   :  { %8627 = vmatpush.bf16.msrb.mxu0 %v12663_v53  ;;  %8640 = vmatpush.bf16.msra.mxu1 %v12919_v55  ;;  %v7640_v38 = vpop.f32.mrf.mxu0  ;;  %v7653_v60 = vpop.f32.mrf.mxu1  ;;  %v8754_v53 = vld [vmem:[%s15467_s12 + $0x140] sm:$0xff]  ;;  %v8772_v55 = vld [vmem:[%s15467_s12 + $0x1d0] sm:$0xff] }
 0x5c6   :  { %8653 = vmatpush.bf16.msra.mxu2 %v12667_v56  ;;  %8666 = vmatpush.bf16.msrb.mxu3 %v12923_v41  ;;  %v7654_v30 = vadd.f32 %v7653_v60, %v7640_v38  ;;  %v8714_v56 = vld [vmem:[%s15467_s12] sm:$0xff] }
 0x5c7   :  { %v8730_v41 = vld [vmem:[%s15467_s12 + $0x80] sm:$0xff] }
 0x5c8   :  { %8628 = vmatmul.bf16.vlgmr.msrb.gmra.mxu0 %v15001_v6  ;;  %8641 = vmatmul.bf16.vlgmr.msra.gmra.mxu1 %v15004_v14  ;;  %v15081_v33 = vadd.f32 %v7654_v30, %v14995_v57  ;;  %v8749_v30 = vld [vmem:[%s15467_s12 + $0x118] sm:$0xff] }
 0x5c9   :  { %8846 = vmatpush.msra.mxu0 %v8729_v46  ;;  %8866 = vmatpush.msrb.mxu1 %v8745_v42  ;;  %v8753_v46 = vld [vmem:[%s15467_s12 + $0x138] sm:$0xff]  ;;  %v8771_v42 = vld [vmem:[%s15467_s12 + $0x1c8] sm:$0xff] }
 0x5ca   :  { %8654 = vmatmul.bf16.vlgmr.msra.gmra.mxu2 %v15001_v6  ;;  %8667 = vmatmul.bf16.vlgmr.msrb.gmra.mxu3 %v15004_v14  ;;  %v8742_v6 = vld [vmem:[%s15467_s12 + $0xe0] sm:$0xff]  ;;  %v8725_v14 = vld [vmem:[%s15467_s12 + $0x58] sm:$0xff] }
 0x5cb   :  { %8847 = vmatpush.msra.mxu0 %v8728_v29  ;;  %8867 = vmatpush.msrb.mxu1 %v8744_v58  ;;  %v8752_v29 = vld [vmem:[%s15467_s12 + $0x130] sm:$0xff]  ;;  %v8770_v58 = vld [vmem:[%s15467_s12 + $0x1c0] sm:$0xff] }
 0x5cc   :  { %8886 = vmatpush.msrb.mxu2 %v8761_v21  ;;  %8906 = vmatpush.msra.mxu3 %v8777_v3  ;;  %v8746_v21 = vld [vmem:[%s15467_s12 + $0x100] sm:$0xff] }
 0x5cd   :  { %8848 = vmatpush.msra.mxu0 %v8727_v19  ;;  %8868 = vmatpush.msrb.mxu1 %v8743_v1  ;;  %v7642_v25 = vpop.f32.mrf.mxu0  ;;  %v7655_v62 = vpop.f32.mrf.mxu1  ;;  %v8751_v19 = vld [vmem:[%s15467_s12 + $0x128] sm:$0xff] }
 0x5ce   :  { %v7666_v57 = vpop.f32.mrf.mxu2  ;;  %v7679_v45 = vpop.f32.mrf.mxu3  ;;  %8887 = vmatpush.msrb.mxu2 %v8760_v27  ;;  %8907 = vmatpush.msra.mxu3 %v8776_v40  ;;  %v15203_v1 = vld [vmem:[#allocation19] sm:$0xff]  ;;  %v8792_v27 = vld [vmem:[%s15467_s12 + $0x270] sm:$0xff]  ;;  %v8789_v40 = vld [vmem:[%s15467_s12 + $0x258] sm:$0xff] }
 0x5cf   :  { %8849 = vmatpush.msra.mxu0 %v8726_v2  ;;  %8869 = vmatpush.msrb.mxu1 %v8742_v6  ;;  %v7680_v24 = vadd.f32 %v7679_v45, %v7666_v57  ;;  %v8750_v2 = vld [vmem:[%s15467_s12 + $0x120] sm:$0xff]  ;;  %v8769_v6 = vld [vmem:[%s15467_s12 + $0x1b8] sm:$0xff]  ;;  %v8682_v60 = vperm.slane %v15203_v1, 0  ;;  %v8683_v62 = vperm.slane %v15203_v1, 1 }
 0x5d0   :  { %8888 = vmatpush.msrb.mxu2 %v8759_v32  ;;  %8908 = vmatpush.msra.mxu3 %v8775_v22  ;;  %v8793_v57 = vld [vmem:[%s15467_s12 + $0x278] sm:$0xff]  ;;  %v8791_v32 = vld [vmem:[%s15467_s12 + $0x268] sm:$0xff] }
 0x5d1   :  { %8850 = vmatpush.msra.mxu0 %v8725_v14  ;;  %8870 = vmatpush.msrb.mxu1 %v8741_v34  ;;  %v15114_v50 = vadd.f32 %v7680_v24, %v14998_v23  ;;  %v8758_v23 = vld [vmem:[%s15467_s12 + $0x160] sm:$0xff]  ;;  %v8765_v24 = vld [vmem:[%s15467_s12 + $0x198] sm:$0xff]  ;;  %v8807_v22 = vld [vmem:[%s15467_s12 + $0x2e8] sm:$0xff] }
 0x5d2   :  { %8889 = vmatpush.msrb.mxu2 %v8758_v23  ;;  %8909 = vmatpush.msra.mxu3 %v8774_v49  ;;  %v8763_v23 = vld [vmem:[%s15467_s12 + $0x188] sm:$0xff] }
 0x5d3   :  { %8851 = vmatpush.msra.mxu0 %v8724_v63  ;;  %8871 = vmatpush.msrb.mxu1 %v8740_v20  ;;  %v8768_v63 = vld [vmem:[%s15467_s12 + $0x1b0] sm:$0xff]  ;;  %v8787_v49 = vld [vmem:[%s15467_s12 + $0x248] sm:$0xff] }
 0x5d4   :  { %8890 = vmatpush.msrb.mxu2 %v8757_v36  ;;  %8910 = vmatpush.msra.mxu3 %v8773_v13  ;;  %v8785_v13 = vld [vmem:[%s15467_s12 + $0x238] sm:$0xff] }
 0x5d5   :  { %8852 = vmatpush.msra.mxu0 %v8723_v16  ;;  %8872 = vmatpush.msrb.mxu1 %v8739_v18  ;;  %v8748_v16 = vld [vmem:[%s15467_s12 + $0x110] sm:$0xff]  ;;  %v8767_v18 = vld [vmem:[%s15467_s12 + $0x1a8] sm:$0xff] }
 0x5d6   :  { %v7668_v37 = vpop.f32.mrf.mxu2  ;;  %v7681_v51 = vpop.f32.mrf.mxu3  ;;  %8891 = vmatpush.msrb.mxu2 %v8756_v35  ;;  %8911 = vmatpush.msra.mxu3 %v8772_v55  ;;  %v8806_v35 = vld [vmem:[%s15467_s12 + $0x2e0] sm:$0xff]  ;;  %v8783_v55 = vld [vmem:[%s15467_s12 + $0x228] sm:$0xff] }
 0x5d7   :  { %8853 = vmatpush.msra.mxu0 %v8722_v4  ;;  %8873 = vmatpush.msrb.mxu1 %v8738_v47  ;;  %v8747_v47 = vld [vmem:[%s15467_s12 + $0x108] sm:$0xff]  ;;  %v8808_v37 = vld [vmem:[%s15467_s12 + $0x2f0] sm:$0xff] }
 0x5d8   :  { %8892 = vmatpush.msrb.mxu2 %v8755_v61  ;;  %8912 = vmatpush.msra.mxu3 %v8771_v42  ;;  %v8804_v61 = vld [vmem:[%s15467_s12 + $0x2d0] sm:$0xff] }
 0x5d9   :  { %8854 = vmatpush.msra.mxu0 %v8721_v48  ;;  %8874 = vmatpush.msrb.mxu1 %v8737_v8 }
 0x5da   :  { %8893 = vmatpush.msrb.mxu2 %v8754_v53  ;;  %8913 = vmatpush.msra.mxu3 %v8770_v58  ;;  %v8802_v53 = vld [vmem:[%s15467_s12 + $0x2c0] sm:$0xff]  ;;  %v8800_v58 = vld [vmem:[%s15467_s12 + $0x2b0] sm:$0xff] }
 0x5db   :  { %8855 = vmatpush.msra.mxu0 %v8720_v12  ;;  %8875 = vmatpush.msrb.mxu1 %v8736_v26 }
 0x5dc   :  { %8894 = vmatpush.msrb.mxu2 %v8753_v46  ;;  %8914 = vmatpush.msra.mxu3 %v8769_v6  ;;  %v8780_v6 = vld [vmem:[%s15467_s12 + $0x210] sm:$0xff] }
 0x5dd   :  { %8856 = vmatpush.msra.mxu0 %v8719_v31  ;;  %8876 = vmatpush.msrb.mxu1 %v8735_v5  ;;  %v8764_v31 = vld [vmem:[%s15467_s12 + $0x190] sm:$0xff] }
 0x5de   :  { %8895 = vmatpush.msrb.mxu2 %v8752_v29  ;;  %8915 = vmatpush.msra.mxu3 %v8768_v63  ;;  %v8781_v29 = vld [vmem:[%s15467_s12 + $0x218] sm:$0xff] }
 0x5df   :  { %8857 = vmatpush.msra.mxu0 %v8718_v0  ;;  %8877 = vmatpush.msrb.mxu1 %v8734_v11  ;;  %v8790_v0 = vld [vmem:[%s15467_s12 + $0x260] sm:$0xff]  ;;  %v8825_v63 = vld [vmem:[%s15467_s12 + $0x378] sm:$0xff] }
 0x5e0   :  { %8896 = vmatpush.msrb.mxu2 %v8751_v19  ;;  %8916 = vmatpush.msra.mxu3 %v8767_v18  ;;  %v8762_v11 = vld [vmem:[%s15467_s12 + $0x180] sm:$0xff] }
 0x5e1   :  { %8858 = vmatpush.msra.mxu0 %v8717_v59  ;;  %8878 = vmatpush.msrb.mxu1 %v8733_v44  ;;  %v8788_v44 = vld [vmem:[%s15467_s12 + $0x250] sm:$0xff] }
 0x5e2   :  { %8897 = vmatpush.msrb.mxu2 %v8750_v2  ;;  %v8684_v2 = vperm.slane %v15203_v1, 2 }
 0x5e3   :  { %8859 = vmatpush.msra.mxu0 %v8716_v39  ;;  %8879 = vmatpush.msrb.mxu1 %v8732_v17  ;;  %v8805_v39 = vld [vmem:[%s15467_s12 + $0x2d8] sm:$0xff]  ;;  %v8786_v17 = vld [vmem:[%s15467_s12 + $0x240] sm:$0xff] }
 0x5e4   :  { %8898 = vmatpush.msrb.mxu2 %v8749_v30 }
 0x5e5   :  { %8860 = vmatpush.msra.mxu0 %v8715_v52  ;;  %8880 = vmatpush.msrb.mxu1 %v8731_v9  ;;  %v8473_v14 = vpop.f32.mrf.mxu0  ;;  %v8486_v34 = vpop.f32.mrf.mxu1  ;;  %v8803_v52 = vld [vmem:[%s15467_s12 + $0x2c8] sm:$0xff]  ;;  %v8784_v9 = vld [vmem:[%s15467_s12 + $0x230] sm:$0xff] }
 0x5e6   :  { %v8487_v38 = vadd.f32 %v8486_v34, %v8473_v14  ;;  %8899 = vmatpush.msrb.mxu2 %v8748_v16  ;;  %v8799_v14 = vld [vmem:[%s15467_s12 + $0x2a8] sm:$0xff] }
 0x5e7   :  { %8861 = vmatpush.msra.mxu0 %v8714_v56  ;;  %8881 = vmatpush.msrb.mxu1 %v8730_v41  ;;  %v8782_v56 = vld [vmem:[%s15467_s12 + $0x220] sm:$0xff]  ;;  %v8801_v41 = vld [vmem:[%s15467_s12 + $0x2b8] sm:$0xff] }
 0x5e8   :  { %v8672_v20 = vadd.f32 %v8487_v38, %v15013_v43  ;;  %v8766_v43 = vld [vmem:[%s15467_s12 + $0x1a0] sm:$0xff]  ;;  %8900 = vmatpush.msrb.mxu2 %v8747_v47  ;;  %v8779_v38 = vld [vmem:[%s15467_s12 + $0x208] sm:$0xff]  ;;  %v8824_v47 = vld [vmem:[%s15467_s12 + $0x370] sm:$0xff] }
 0x5e9   :  { %8917 = vmatpush.msra.mxu3 %v8766_v43  ;;  %8926 = vmatpush.msrb.mxu0 %v8793_v57  ;;  %v8685_v57 = vperm.slane %v15203_v1, 3 }
 0x5ea   :  { %v8698_v4 = vadd.f32 %v8682_v60, %v8672_v20  ;;  %8901 = vmatpush.msrb.mxu2 %v8746_v21  ;;  %v8798_v60 = vld [vmem:[%s15467_s12 + $0x2a0] sm:$0xff]  ;;  %v8797_v20 = vld [vmem:[%s15467_s12 + $0x298] sm:$0xff]  ;;  %v8823_v21 = vld [vmem:[%s15467_s12 + $0x368] sm:$0xff] }
 0x5eb   :  { %8918 = vmatpush.msra.mxu3 %v8765_v24  ;;  %8927 = vmatpush.msrb.mxu0 %v8792_v27  ;;  %v8821_v27 = vld [vmem:[%s15467_s12 + $0x358] sm:$0xff] }
 0x5ec   :  { %v8706_v45 = vmax.f32 %v8698_v4, 0.0  ;;  %8966 = vmatpush.msra.mxu2 %v8825_v63  ;;  %v8827_v63 = vld [vmem:[%s15467_s12 + $0x388] sm:$0xff] }
 0x5ed   :  { %v8475_v12 = vpop.f32.mrf.mxu0  ;;  %v8488_v26 = vpop.f32.mrf.mxu1  ;;  %8919 = vmatpush.msra.mxu3 %v8764_v31  ;;  %8928 = vmatpush.msrb.mxu0 %v8791_v32  ;;  %v8840_v31 = vld [vmem:[%s15467_s12 + $0x3f0] sm:$0xff] }
 0x5ee   :  { %v8499_v48 = vpop.f32.mrf.mxu2  ;;  %v8512_v8 = vpop.f32.mrf.mxu3  ;;  %8862 = vmatmul.f32.vlgmr.msra.gmra.mxu0 %v8706_v45  ;;  %8967 = vmatpush.msra.mxu2 %v8824_v47  ;;  %v8841_v12 = vld [vmem:[%s15467_s12 + $0x3f8] sm:$0xff]  ;;  %v8820_v32 = vld [vmem:[%s15467_s12 + $0x350] sm:$0xff] }
 0x5ef   :  { %v8513_v25 = vadd.f32 %v8512_v8, %v8499_v48  ;;  %8920 = vmatpush.msra.mxu3 %v8763_v23  ;;  %8929 = vmatpush.msrb.mxu0 %v8790_v0  ;;  %v8796_v8 = vld [vmem:[%s15467_s12 + $0x290] sm:$0xff]  ;;  %v8839_v23 = vld [vmem:[%s15467_s12 + $0x3e8] sm:$0xff] }
 0x5f0   :  { %8968 = vmatpush.msra.mxu2 %v8823_v21 }
 0x5f1   :  { %v8673_v5 = vadd.f32 %v8513_v25, %v15018_v54  ;;  %v8809_v54 = vld [vmem:[%s15467_s12 + $0x2f8] sm:$0xff]  ;;  %8921 = vmatpush.msra.mxu3 %v8762_v11  ;;  %8930 = vmatpush.msrb.mxu0 %v8789_v40  ;;  %v8795_v25 = vld [vmem:[%s15467_s12 + $0x288] sm:$0xff]  ;;  %v8838_v11 = vld [vmem:[%s15467_s12 + $0x3e0] sm:$0xff] }
 0x5f2   :  { %8946 = vmatpush.msra.mxu1 %v8809_v54  ;;  %v8819_v54 = vld [vmem:[%s15467_s12 + $0x348] sm:$0xff]  ;;  %v8837_v40 = vld [vmem:[%s15467_s12 + $0x3d8] sm:$0xff] }
 0x5f3   :  { %v8699_v3 = vadd.f32 %v8683_v62, %v8673_v5  ;;  %8931 = vmatpush.msrb.mxu0 %v8788_v44  ;;  %v8822_v62 = vld [vmem:[%s15467_s12 + $0x360] sm:$0xff]  ;;  %8986 = vmatpush.msrb.mxu3 %v8841_v12  ;;  %v8835_v44 = vld [vmem:[%s15467_s12 + $0x3c8] sm:$0xff]  ;;  %v8689_v12 = vperm.slane %v15203_v1, 7 }
 0x5f4   :  { %8947 = vmatpush.msra.mxu1 %v8808_v37  ;;  %8969 = vmatpush.msra.mxu2 %v8822_v62  ;;  %v8817_v37 = vld [vmem:[%s15467_s12 + $0x338] sm:$0xff] }
 0x5f5   :  { %v8707_v36 = vmax.f32 %v8699_v3, 0.0  ;;  %8932 = vmatpush.msrb.mxu0 %v8787_v49  ;;  %8987 = vmatpush.msrb.mxu3 %v8840_v31  ;;  %v8814_v49 = vld [vmem:[%s15467_s12 + $0x320] sm:$0xff] }
 0x5f6   :  { %v8501_v51 = vpop.f32.mrf.mxu2  ;;  %v8514_v59 = vpop.f32.mrf.mxu3  ;;  %8948 = vmatpush.msra.mxu1 %v8807_v22  ;;  %8970 = vmatpush.msra.mxu2 %v8821_v27  ;;  %v8815_v22 = vld [vmem:[%s15467_s12 + $0x328] sm:$0xff] }
 0x5f7   :  { %8882 = vmatmul.f32.vlgmr.msrb.gmra.mxu1 %v8707_v36  ;;  %8933 = vmatpush.msrb.mxu0 %v8786_v17  ;;  %v8818_v36 = vld [vmem:[%s15467_s12 + $0x340] sm:$0xff]  ;;  %v8836_v51 = vld [vmem:[%s15467_s12 + $0x3d0] sm:$0xff]  ;;  %v8813_v17 = vld [vmem:[%s15467_s12 + $0x318] sm:$0xff] }
 0x5f8   :  { %8949 = vmatpush.msra.mxu1 %v8806_v35  ;;  %8971 = vmatpush.msra.mxu2 %v8820_v32  ;;  %v8816_v59 = vld [vmem:[%s15467_s12 + $0x330] sm:$0xff]  ;;  %v8834_v35 = vld [vmem:[%s15467_s12 + $0x3c0] sm:$0xff] }
 0x5f9   :  { %8934 = vmatpush.msrb.mxu0 %v8785_v13  ;;  %8988 = vmatpush.msrb.mxu3 %v8839_v23 }
 0x5fa   :  { %8950 = vmatpush.msra.mxu1 %v8805_v39  ;;  %8972 = vmatpush.msra.mxu2 %v8819_v54  ;;  %v8833_v39 = vld [vmem:[%s15467_s12 + $0x3b8] sm:$0xff] }
 0x5fb   :  { %8935 = vmatpush.msrb.mxu0 %v8784_v9  ;;  %8989 = vmatpush.msrb.mxu3 %v8838_v11 }
 0x5fc   :  { %8951 = vmatpush.msra.mxu1 %v8804_v61  ;;  %8973 = vmatpush.msra.mxu2 %v8818_v36  ;;  %v8832_v61 = vld [vmem:[%s15467_s12 + $0x3b0] sm:$0xff] }
 0x5fd   :  { %8936 = vmatpush.msrb.mxu0 %v8783_v55  ;;  %8990 = vmatpush.msrb.mxu3 %v8837_v40  ;;  %v8812_v55 = vld [vmem:[%s15467_s12 + $0x310] sm:$0xff] }
 0x5fe   :  { %8952 = vmatpush.msra.mxu1 %v8803_v52  ;;  %8974 = vmatpush.msra.mxu2 %v8817_v37 }
 0x5ff   :  { %8937 = vmatpush.msrb.mxu0 %v8782_v56  ;;  %8991 = vmatpush.msrb.mxu3 %v8836_v51  ;;  %v8831_v56 = vld [vmem:[%s15467_s12 + $0x3a8] sm:$0xff] }
 0x600   :  { %8953 = vmatpush.msra.mxu1 %v8802_v53  ;;  %8975 = vmatpush.msra.mxu2 %v8816_v59  ;;  %v8686_v53 = vperm.slane %v15203_v1, 4 }
 0x601   :  { %8938 = vmatpush.msrb.mxu0 %v8781_v29  ;;  %8992 = vmatpush.msrb.mxu3 %v8835_v44 }
 0x602   :  { %8954 = vmatpush.msra.mxu1 %v8801_v41  ;;  %8976 = vmatpush.msra.mxu2 %v8815_v22 }
 0x603   :  { %8939 = vmatpush.msrb.mxu0 %v8780_v6  ;;  %8993 = vmatpush.msrb.mxu3 %v8834_v35 }
 0x604   :  { %8955 = vmatpush.msra.mxu1 %v8800_v58  ;;  %8977 = vmatpush.msra.mxu2 %v8814_v49  ;;  %v8810_v58 = vld [vmem:[%s15467_s12 + $0x300] sm:$0xff] }
 0x605   :  { %v8525_v46 = vpop.f32.mrf.mxu0  ;;  %v8538_v42 = vpop.f32.mrf.mxu1  ;;  %8940 = vmatpush.msrb.mxu0 %v8779_v38  ;;  %8994 = vmatpush.msrb.mxu3 %v8833_v39  ;;  %v8687_v38 = vperm.slane %v15203_v1, 5 }
 0x606   :  { %v8539_v19 = vadd.f32 %v8538_v42, %v8525_v46  ;;  %8956 = vmatpush.msra.mxu1 %v8799_v14  ;;  %8978 = vmatpush.msra.mxu2 %v8813_v17  ;;  %v8811_v46 = vld [vmem:[%s15467_s12 + $0x308] sm:$0xff]  ;;  %v8830_v42 = vld [vmem:[%s15467_s12 + $0x3a0] sm:$0xff]  ;;  %v8828_v14 = vld [vmem:[%s15467_s12 + $0x390] sm:$0xff] }
 0x607   :  { %8995 = vmatpush.msrb.mxu3 %v8832_v61 }
 0x608   :  { %v8674_v34 = vadd.f32 %v8539_v19, %v15025_v10  ;;  %8957 = vmatpush.msra.mxu1 %v8798_v60  ;;  %v8778_v10 = vld [vmem:[%s15467_s12 + $0x200] sm:$0xff]  ;;  %8979 = vmatpush.msra.mxu2 %v8812_v55 }
 0x609   :  { %8941 = vmatpush.msrb.mxu0 %v8778_v10  ;;  %8996 = vmatpush.msrb.mxu3 %v8831_v56 }
 0x60a   :  { %v8700_v30 = vadd.f32 %v8684_v2, %v8674_v34  ;;  %8958 = vmatpush.msra.mxu1 %v8797_v20  ;;  %8980 = vmatpush.msra.mxu2 %v8811_v46  ;;  %v8826_v20 = vld [vmem:[%s15467_s12 + $0x380] sm:$0xff] }
 0x60b   :  { %8997 = vmatpush.msrb.mxu3 %v8830_v42 }
 0x60c   :  { %v8708_v16 = vmax.f32 %v8700_v30, 0.0  ;;  %8959 = vmatpush.msra.mxu1 %v8796_v8  ;;  %8981 = vmatpush.msra.mxu2 %v8810_v58 }
 0x60d   :  { %v8527_v45 = vpop.f32.mrf.mxu0  ;;  %v8540_v48 = vpop.f32.mrf.mxu1 }
 0x60e   :  { %v8551_v18 = vpop.f32.mrf.mxu2  ;;  %v8564_v4 = vpop.f32.mrf.mxu3  ;;  %8902 = vmatmul.f32.vlgmr.msrb.gmra.mxu2 %v8708_v16  ;;  %8960 = vmatpush.msra.mxu1 %v8795_v25  ;;  %v8688_v48 = vperm.slane %v15203_v1, 6 }
 0x60f   :  { %v8565_v43 = vadd.f32 %v8564_v4, %v8551_v18 }
 0x611   :  { %v8675_v24 = vadd.f32 %v8565_v43, %v15028_v28  ;;  %v8794_v28 = vld [vmem:[%s15467_s12 + $0x280] sm:$0xff] }
 0x612   :  { %8961 = vmatpush.msra.mxu1 %v8794_v28 }
 0x613   :  { %v8701_v26 = vadd.f32 %v8685_v57, %v8675_v24 }
 0x615   :  { %v8709_v5 = vmax.f32 %v8701_v26, 0.0 }
 0x616   :  { %v8553_v3 = vpop.f32.mrf.mxu2  ;;  %v8566_v0 = vpop.f32.mrf.mxu3 }
 0x617   :  { %8922 = vmatmul.f32.vlgmr.msra.gmra.mxu3 %v8709_v5  ;;  %v14195_v3 = vld [vmem:[#allocation20] ss:$0 sm:$0xff] }
 0x625   :  { %v8577_v13 = vpop.f32.mrf.mxu0  ;;  %v8590_v52 = vpop.f32.mrf.mxu1 }
 0x626   :  { %v8591_v9 = vadd.f32 %v8590_v52, %v8577_v13 }
 0x628   :  { %v8676_v41 = vadd.f32 %v8591_v9, %v15035_v15  ;;  %v8829_v15 = vld [vmem:[%s15467_s12 + $0x398] sm:$0xff]  ;;  %s14542_s12 = smov [#allocation22]  }
 0x629   :  { %8998 = vmatpush.msrb.mxu3 %v8829_v15  ;;  %s9013_s1 = sshll.u32 %s14542_s12, 4  ;;  %s9014_s1 = int_to_ptr.vmem [resolvable:$true] %s9013_s1 }
 0x62a   :  { %v8702_v29 = vadd.f32 %v8686_v53, %v8676_v41 }
 0x62b   :  { %8999 = vmatpush.msrb.mxu3 %v8828_v14 }
 0x62c   :  { %v8710_v19 = vmax.f32 %v8702_v29, 0.0 }
 0x62d   :  { %v8579_v60 = vpop.f32.mrf.mxu0  ;;  %v8592_v30 = vpop.f32.mrf.mxu1  ;;  %9000 = vmatpush.msrb.mxu3 %v8827_v63 }
 0x62e   :  { %v8603_v2 = vpop.f32.mrf.mxu2  ;;  %v8616_v6 = vpop.f32.mrf.mxu3  ;;  %8942 = vmatmul.f32.vlgmr.msrb.gmra.mxu0 %v8710_v19 }
 0x62f   :  { %v8617_v34 = vadd.f32 %v8616_v6, %v8603_v2  ;;  %9001 = vmatpush.msrb.mxu3 %v8826_v20 }
 0x631   :  { %v8677_v10 = vadd.f32 %v8617_v34, %v15038_v7 }
 0x633   :  { %v8703_v16 = vadd.f32 %v8687_v38, %v8677_v10 }
 0x635   :  { %v8711_v18 = vmax.f32 %v8703_v16, 0.0 }
 0x636   :  { %v8605_v4 = vpop.f32.mrf.mxu2  ;;  %v8618_v47 = vpop.f32.mrf.mxu3 }
 0x637   :  { %8962 = vmatmul.f32.vlgmr.msra.gmra.mxu1 %v8711_v18 }
 0x645   :  { %v8629_v43 = vpop.f32.mrf.mxu0  ;;  %v8642_v57 = vpop.f32.mrf.mxu1 }
 0x646   :  { %v8643_v45 = vadd.f32 %v8642_v57, %v8629_v43 }
 0x648   :  { %v8678_v8 = vadd.f32 %v8643_v45, %v15081_v33 }
 0x64a   :  { %v8704_v21 = vadd.f32 %v8688_v48, %v8678_v8 }
 0x64c   :  { %v8712_v7 = vmax.f32 %v8704_v21, 0.0 }
 0x64d   :  { %v8655_v24 = vpop.f32.mrf.mxu2  ;;  %v8668_v25 = vpop.f32.mrf.mxu3 }
 0x64e   :  { %v8669_v62 = vadd.f32 %v8668_v25, %v8655_v24  ;;  %v8631_v26 = vpop.f32.mrf.mxu0  ;;  %v8644_v28 = vpop.f32.mrf.mxu1  ;;  %8982 = vmatmul.f32.vlgmr.msra.gmra.mxu2 %v8712_v7 }
 0x650   :  { %v8679_v27 = vadd.f32 %v8669_v62, %v15114_v50 }
 0x652   :  { %v8705_v31 = vadd.f32 %v8689_v12, %v8679_v27 }
 0x654   :  { %v8713_v5 = vmax.f32 %v8705_v31, 0.0 }
 0x655   :  { %v8657_v32 = vpop.f32.mrf.mxu2  ;;  %v8670_v23 = vpop.f32.mrf.mxu3 }
 0x656   :  { %9002 = vmatmul.f32.vlgmr.msrb.gmra.mxu3 %v8713_v5 }
 0x66b   :  { %v8863_v0 = vpop.f32.mrf.mxu0 }
 0x66c   :  { %v8864_v54 = vadd.f32 %v14195_v3, %v8863_v0 }
 0x674   :  { %v8883_v33 = vpop.f32.mrf.mxu1 }
 0x675   :  { %v8884_v36 = vadd.f32 %v8883_v33, %v8864_v54 }
 0x691   :  { %v8903_v11 = vpop.f32.mrf.mxu2 }
 0x692   :  { %v8904_v37 = vadd.f32 %v8903_v11, %v8884_v36 }
 0x69a   :  { %v8923_v40 = vpop.f32.mrf.mxu3 }
 0x69b   :  { %v8924_v1 = vadd.f32 %v8923_v40, %v8904_v37 }
 0x6ab   :  { %v8943_v51 = vpop.f32.mrf.mxu0 }
 0x6ac   :  { %v8944_v44 = vadd.f32 %v8943_v51, %v8924_v1 }
 0x6b4   :  { %v8963_v59 = vpop.f32.mrf.mxu1 }
 0x6b5   :  { %v8964_v35 = vadd.f32 %v8963_v59, %v8944_v44 }
 0x6d1   :  { %v8983_v22 = vpop.f32.mrf.mxu2 }
 0x6d2   :  { %v8984_v50 = vadd.f32 %v8983_v22, %v8964_v35 }
 0x6d9   :  { %v9003_v49 = vpop.f32.mrf.mxu3 }
 0x6da   :  { %v9004_v39 = vadd.f32 %v9003_v49, %v8984_v50 }
 0x6dc   :  { %9007 = vst.msk [vmem:[#allocation22] sm:$0x3] %vm9006_vm5, %v9004_v39 }
 0x6dd   :  { %9018 = dma.vmem_to_hbm [thread:$0]  %s9014_s1, 32, %s9016_s15, [#allocation4]  }
 0x6de   :  { %14522 = dma.done.wait [#allocation4], 32  }
 0x6df   :  { %14523 = vsyncadd [#allocation4], 4294967264 }
 0x6e0   :  { %9023 = vsyncpa [#allocation3], 1 }
 0x6e1   :  { %9024 = vsyncpa [#allocation6], 1 }
 0x6e2   :  { %9025 = vsyncpa [#allocation9], 1 }
 0x6e3   :  { %9026 = vsyncpa [#allocation12], 1 }
 0x6e4   :  { %9027 = vsyncpa [#allocation15], 1 }
 0x6e5   :  { %9028 = vsyncpa [#allocation18], 1 }
 0x6e6   :  { %9029 = vsyncpa [#allocation21], 1 }
 0x6e7   :  { %9030 = vsyncpa [#allocation4], 1 }

</bundles_post_ra>
